<compile_context>
chip_gen: v6e
topology: v6e:2x2x1
jax: 0.10.0
libtpu: 0.0.40
codegen_flags: <defaults>
</compile_context>

<pallas_src>
import functools

import numpy as np

import jax
import jax.numpy as jnp
from jax.experimental import pallas as pl
from jax.experimental.pallas import tpu as pltpu

LANE = 128


def _round_up(x, m):
    return (x + m - 1) // m * m


# --------------------------------------------------------------------------
# BlockSpec helpers
# --------------------------------------------------------------------------

def _full_spec(a):
    """Whole-array block, same block for every grid step (weights / constants)."""
    zeros = (0,) * a.ndim
    return pl.BlockSpec(a.shape, lambda b, _z=zeros: _z)


# --------------------------------------------------------------------------
# Constant tap-selection matrices (built once on the host, per conv config)
# --------------------------------------------------------------------------

def _tap_selectors(H, W, k, stride, pad):
    """0/1 matrices S_t (t = di*k + dj), shape (k*k, Ho*Wo, H*W) as numpy float32.
    S_t[o, i] = 1 iff output position o reads valid input position i for tap (di, dj);
    out-of-bounds taps stay all-zero, which implements the zero padding."""
    Ho = (H + 2 * pad - k) // stride + 1
    Wo = (W + 2 * pad - k) // stride + 1
    sel = np.zeros((k * k, Ho * Wo, H * W), np.float32)
    for di in range(k):
        for dj in range(k):
            t = di * k + dj
            for io in range(Ho):
                ii = io * stride + di - pad
                if not (0 <= ii < H):
                    continue
                for jo in range(Wo):
                    jj = jo * stride + dj - pad
                    if 0 <= jj < W:
                        sel[t, io * Wo + jo, ii * W + jj] = 1.0
    return sel, Ho, Wo


# --------------------------------------------------------------------------
# Fused whole-network kernel (one image per grid step)
# --------------------------------------------------------------------------

def _network_kernel(*refs, residuals, inv_pool):
    x_ref = refs[0]
    stem_w, stem_b = refs[1], refs[2]
    o_ref = refs[-1]

    # ---- stem: im2col'd 3x3 conv (BN scale folded) + bias + ReLU (one dense dot) ----
    x = jnp.dot(x_ref[...], stem_w[...], preferred_element_type=jnp.float32)
    x = jnp.maximum(x + stem_b[...], 0.0)                     # (HW, C0_p) f32

    # ---- inverted-residual blocks (all intermediates stay on-chip) ----
    idx = 3
    for residual in residuals:
        (w_exp, b_exp, sel_m, w_dw, sum_sel, b_dw, w_proj, b_proj) = refs[idx:idx + 8]
        idx += 8

        # 1x1 expand (BN scale folded) + bias + ReLU
        e = jnp.dot(x.astype(jnp.bfloat16), w_exp[...],
                    preferred_element_type=jnp.float32)
        e = jnp.maximum(e + b_exp[...], 0.0)                  # (Mi, Cmid_p) f32

        # k x k depthwise: ONE dot over the tap-stacked 0/1 selector, per-channel tap
        # weights (with BN scale folded) applied AFTER the dot, then a 0/1 dot that
        # sums the taps.  Stride + zero padding are encoded in sel_m.
        t = jnp.dot(sel_m[...], e.astype(jnp.bfloat16),
                    preferred_element_type=jnp.float32)        # (taps*Mo, Cmid_p)
        t = (t * w_dw[...]).astype(jnp.bfloat16)
        d = jnp.dot(sum_sel[...], t, preferred_element_type=jnp.float32)  # (Mo, Cmid_p)
        d = jnp.maximum(d + b_dw[...], 0.0)

        # 1x1 project (BN scale folded) + bias (+ residual)
        y = jnp.dot(d.astype(jnp.bfloat16), w_proj[...],
                    preferred_element_type=jnp.float32)
        y = y + b_proj[...]                                    # (Mo, Cout_p) f32
        if residual:
            y = y + x
        x = y

    # ---- head: 1x1 conv -> BN -> ReLU -> global avg pool -> Linear classifier ----
    w_out, b_out, w_cls, b_cls = refs[idx:idx + 4]
    h = jnp.dot(x.astype(jnp.bfloat16), w_out[...], preferred_element_type=jnp.float32)
    h = jnp.maximum(h + b_out[...], 0.0)                       # (Mo, 1280)
    pooled = jnp.sum(h, axis=0, keepdims=True) * inv_pool      # (1, 1280)
    logits = jnp.dot(pooled.astype(jnp.bfloat16), w_cls[...],
                     preferred_element_type=jnp.float32)
    o_ref[...] = logits + b_cls[...]                           # (1, Ncls_p) f32


# --------------------------------------------------------------------------
# Parameter construction (deterministic, synthetic) with channel padding to 128
# --------------------------------------------------------------------------

def _fold_bn(gamma, beta, mean, var, eps=1e-5):
    scale = gamma / jnp.sqrt(var + eps)
    bias = beta - mean * scale
    return scale, bias


def _init_bn(key, c):
    k1, k2, k3, k4 = jax.random.split(key, 4)
    gamma = 1.0 + 0.1 * jax.random.normal(k1, (c,), jnp.float32)
    beta = 0.1 * jax.random.normal(k2, (c,), jnp.float32)
    mean = 0.1 * jax.random.normal(k3, (c,), jnp.float32)
    var = jnp.abs(1.0 + 0.1 * jax.random.normal(k4, (c,), jnp.float32))
    return _fold_bn(gamma, beta, mean, var)


def _embed2(a, rows, cols, dtype):
    return jnp.pad(a, ((0, rows - a.shape[0]), (0, cols - a.shape[1]))).astype(dtype)


def _embed_row(v, cols):
    return jnp.pad(v, (0, cols - v.shape[0])).reshape(1, cols).astype(jnp.float32)


def _make_ir_block(key, cin, cout, stride, k, expand, H, W):
    cmid = cin * expand
    cin_p, cmid_p, cout_p = (_round_up(c, LANE) for c in (cin, cmid, cout))
    k1, k2, k3, k4, k5, k6 = jax.random.split(key, 6)

    w_exp = jax.random.normal(k1, (cin, cmid), jnp.float32) / jnp.sqrt(cin)
    s_exp, b_exp = _init_bn(k2, cmid)
    w_dw = jax.random.normal(k3, (k * k, cmid), jnp.float32) / float(k)
    s_dw, b_dw = _init_bn(k4, cmid)
    w_proj = jax.random.normal(k5, (cmid, cout), jnp.float32) / jnp.sqrt(cmid)
    s_proj, b_proj = _init_bn(k6, cout)

    sel, Ho, Wo = _tap_selectors(H, W, k, stride, k // 2)
    taps, Mi, Mo = k * k, H * W, Ho * Wo

    # Tap-stacked selector: rows ordered as r = t*Mo + o.
    sel_m = jnp.asarray(sel.reshape(taps * Mo, Mi), jnp.bfloat16)
    # 0/1 tap-sum matrix: d[o] = sum_t weighted[t*Mo + o].
    ssel = np.zeros((Mo, taps * Mo), np.float32)
    for t in range(taps):
        ssel[np.arange(Mo), t * Mo + np.arange(Mo)] = 1.0
    sum_sel = jnp.asarray(ssel, jnp.bfloat16)

    # Fold BN scales into the matmul weights (only bias + ReLU left in the epilogue).
    w_exp_f = w_exp * s_exp[None, :]
    w_dw_f = w_dw * s_dw[None, :]                      # (taps, cmid)
    w_dw_exp = jnp.repeat(w_dw_f, Mo, axis=0)          # (taps*Mo, cmid), row r = t*Mo+o
    w_proj_f = w_proj * s_proj[None, :]

    params = dict(
        w_exp=_embed2(w_exp_f, cin_p, cmid_p, jnp.bfloat16),
        b_exp=_embed_row(b_exp, cmid_p),
        sel_m=sel_m,
        w_dw=_embed2(w_dw_exp, taps * Mo, cmid_p, jnp.float32),
        sum_sel=sum_sel,
        b_dw=_embed_row(b_dw, cmid_p),
        w_proj=_embed2(w_proj_f, cmid_p, cout_p, jnp.bfloat16),
        b_proj=_embed_row(b_proj, cout_p),
    )
    cfg = dict(taps=taps, Mi=Mi, Mo=Mo, Ho=Ho, Wo=Wo,
               cin_p=cin_p, cmid_p=cmid_p, cout_p=cout_p,
               residual=(stride == 1 and cin == cout))
    return cfg, params


def build_network(key, arch, num_classes=10, stages=(2, 3, 3), init_channels=32, spatial=16):
    assert len(arch) == sum(stages)
    candidate_OP = ["id", "ir_3x3_t3", "ir_5x5_t6"]
    ir_defs = {"ir_3x3_t3": (3, 3), "ir_5x5_t6": (5, 6)}
    arch_ = list(arch)
    keys = jax.random.split(key, 4 + len(arch))

    # ---- stem: 3x3 conv (pad 1, bias=False) + BN + ReLU, as one im2col dot ----
    c0 = init_channels
    c0_p = _round_up(c0, LANE)
    kin_p = _round_up(27, LANE)                        # 3*3*3 patch width -> 128 lanes
    w_stem = (jax.random.normal(keys[0], (3, 3, 3, c0), jnp.float32)
              / jnp.sqrt(27.0)).reshape(27, c0)        # row index = di*9 + dj*3 + ci
    s_stem, b_stem = _init_bn(keys[1], c0)
    stem_cfg = dict(kin_p=kin_p, c0_p=c0_p)
    stem_p = dict(w=_embed2(w_stem * s_stem[None, :], kin_p, c0_p, jnp.bfloat16),
                  b=_embed_row(b_stem, c0_p))

    # ---- features ----
    H = W = spatial
    channels = c0
    block_cfgs, block_ps = [], []
    ki = 4
    for stage in stages:
        for idx in range(stage):
            name = candidate_OP[arch_.pop(0)]
            stride = 2 if idx == 0 else 1
            cout = channels * 2 if idx == 0 else channels
            if name == "id":
                assert stride == 1 and cout == channels, \
                    "identity op cannot change channels/stride"
            else:
                k, expand = ir_defs[name]
                cfg, p = _make_ir_block(keys[ki], channels, cout, stride, k, expand, H, W)
                block_cfgs.append(cfg)
                block_ps.append(p)
                H, W = cfg["Ho"], cfg["Wo"]
            channels = cout
            ki += 1

    # ---- head: 1x1 conv -> 1280, BN, ReLU, global avg pool, Linear(1280, classes) ----
    c_last_p = _round_up(channels, LANE)
    kh1, kh2 = jax.random.split(keys[2])
    kc1, kc2 = jax.random.split(keys[3])
    w_out = jax.random.normal(kh1, (channels, 1280), jnp.float32) / jnp.sqrt(channels)
    s_out, b_out = _init_bn(kh2, 1280)
    ncls_p = _round_up(num_classes, LANE)
    w_cls = jax.random.normal(kc1, (1280, num_classes), jnp.float32) / jnp.sqrt(1280.0)
    b_cls = 0.01 * jax.random.normal(kc2, (num_classes,), jnp.float32)
    head_cfg = dict(ncls_p=ncls_p, num_classes=num_classes, pool=H * W)
    head_p = dict(
        w_out=_embed2(w_out * s_out[None, :], c_last_p, 1280, jnp.bfloat16),
        b_out=_embed_row(b_out, 1280),
        w_cls=_embed2(w_cls, 1280, ncls_p, jnp.bfloat16),
        b_cls=_embed_row(b_cls, ncls_p),
    )

    cfgs = dict(spatial=spatial, stem=stem_cfg, blocks=tuple(block_cfgs), head=head_cfg)
    params = dict(stem=stem_p, blocks=tuple(block_ps), head=head_p)
    return cfgs, params


# --------------------------------------------------------------------------
# Forward pass: one fused pallas_call over grid=(batch,)
# --------------------------------------------------------------------------

def make_forward(cfgs):
    stem_cfg, block_cfgs, head_cfg = cfgs["stem"], cfgs["blocks"], cfgs["head"]
    spatial = cfgs["spatial"]
    hw = spatial * spatial
    kin_p = stem_cfg["kin_p"]
    ncls_p = head_cfg["ncls_p"]
    residuals = tuple(c["residual"] for c in block_cfgs)

    kernel = functools.partial(_network_kernel, residuals=residuals,
                               inv_pool=1.0 / head_cfg["pool"])

    def forward(params, x_nchw):
        n = x_nchw.shape[0]
        # Tiny host-side (XLA) im2col for the stem: (N,3,16,16) -> (N, HW, 27) -> pad 128.
        x_nhwc = jnp.transpose(x_nchw, (0, 2, 3, 1))
        xp = jnp.pad(x_nhwc, ((0, 0), (1, 1), (1, 1), (0, 0)))
        patches = jnp.concatenate(
            [xp[:, di:di + spatial, dj:dj + spatial, :]
             for di in range(3) for dj in range(3)], axis=-1).reshape(n, hw, 27)
        patches = jnp.pad(patches, ((0, 0), (0, 0), (0, kin_p - 27))).astype(jnp.bfloat16)

        flat = [patches, params["stem"]["w"], params["stem"]["b"]]
        for p in params["blocks"]:
            flat += [p["w_exp"], p["b_exp"], p["sel_m"], p["w_dw"],
                     p["sum_sel"], p["b_dw"], p["w_proj"], p["b_proj"]]
        hp = params["head"]
        flat += [hp["w_out"], hp["b_out"], hp["w_cls"], hp["b_cls"]]

        in_specs = [pl.BlockSpec((None, hw, kin_p), lambda b: (b, 0, 0))]
        in_specs += [_full_spec(a) for a in flat[1:]]

        out = pl.pallas_call(
            kernel,
            out_shape=jax.ShapeDtypeStruct((n, 1, ncls_p), jnp.float32),
            grid=(n,),
            in_specs=in_specs,
            out_specs=pl.BlockSpec((None, 1, ncls_p), lambda b: (b, 0, 0)),
            compiler_params=pltpu.CompilerParams(
                dimension_semantics=("parallel",),
                vmem_limit_bytes=48 * 1024 * 1024),
        )(*flat)
        return out[:, 0, :head_cfg["num_classes"]]

    return forward


# --------------------------------------------------------------------------

if __name__ == "__main__":
    key = jax.random.PRNGKey(0)
    kp, kx = jax.random.split(key)

    # arch chosen so that the first block of every stage is a (strided) IR block
    arch = [1, 0, 2, 1, 0, 1, 2, 0]            # len == sum(stages) == 8
    cfgs, params = build_network(kp, arch, num_classes=10,
                                 stages=(2, 3, 3), init_channels=32, spatial=16)
    forward = jax.jit(make_forward(cfgs))

    x = jax.random.normal(kx, (2, 3, 16, 16), jnp.float32)    # NCHW input
    logits = jax.block_until_ready(forward(params, x))
    assert logits.shape == (2, 10), logits.shape
    assert bool(jnp.all(jnp.isfinite(logits)))
    print("KERNEL_OK")
</pallas_src>

<mosaic_0001>
module attributes {stable_mosaic.version = 11 : i64} {
  func.func @_network_kernel(%arg0: i32, %arg1: memref<1x256x128xbf16, #tpu.memory_space<vmem>>, %arg2: memref<128x128xbf16, #tpu.memory_space<vmem>>, %arg3: memref<1x128xf32, #tpu.memory_space<vmem>>, %arg4: memref<128x128xbf16, #tpu.memory_space<vmem>>, %arg5: memref<1x128xf32, #tpu.memory_space<vmem>>, %arg6: memref<576x256xbf16, #tpu.memory_space<vmem>>, %arg7: memref<576x128xf32, #tpu.memory_space<vmem>>, %arg8: memref<64x576xbf16, #tpu.memory_space<vmem>>, %arg9: memref<1x128xf32, #tpu.memory_space<vmem>>, %arg10: memref<128x128xbf16, #tpu.memory_space<vmem>>, %arg11: memref<1x128xf32, #tpu.memory_space<vmem>>, %arg12: memref<128x384xbf16, #tpu.memory_space<vmem>>, %arg13: memref<1x384xf32, #tpu.memory_space<vmem>>, %arg14: memref<400x64xbf16, #tpu.memory_space<vmem>>, %arg15: memref<400x384xf32, #tpu.memory_space<vmem>>, %arg16: memref<16x400xbf16, #tpu.memory_space<vmem>>, %arg17: memref<1x384xf32, #tpu.memory_space<vmem>>, %arg18: memref<384x128xbf16, #tpu.memory_space<vmem>>, %arg19: memref<1x128xf32, #tpu.memory_space<vmem>>, %arg20: memref<128x384xbf16, #tpu.memory_space<vmem>>, %arg21: memref<1x384xf32, #tpu.memory_space<vmem>>, %arg22: memref<144x16xbf16, #tpu.memory_space<vmem>>, %arg23: memref<144x384xf32, #tpu.memory_space<vmem>>, %arg24: memref<16x144xbf16, #tpu.memory_space<vmem>>, %arg25: memref<1x384xf32, #tpu.memory_space<vmem>>, %arg26: memref<384x128xbf16, #tpu.memory_space<vmem>>, %arg27: memref<1x128xf32, #tpu.memory_space<vmem>>, %arg28: memref<128x384xbf16, #tpu.memory_space<vmem>>, %arg29: memref<1x384xf32, #tpu.memory_space<vmem>>, %arg30: memref<36x16xbf16, #tpu.memory_space<vmem>>, %arg31: memref<36x384xf32, #tpu.memory_space<vmem>>, %arg32: memref<4x36xbf16, #tpu.memory_space<vmem>>, %arg33: memref<1x384xf32, #tpu.memory_space<vmem>>, %arg34: memref<384x256xbf16, #tpu.memory_space<vmem>>, %arg35: memref<1x256xf32, #tpu.memory_space<vmem>>, %arg36: memref<256x1536xbf16, #tpu.memory_space<vmem>>, %arg37: memref<1x1536xf32, #tpu.memory_space<vmem>>, %arg38: memref<100x4xbf16, #tpu.memory_space<vmem>>, %arg39: memref<100x1536xf32, #tpu.memory_space<vmem>>, %arg40: memref<4x100xbf16, #tpu.memory_space<vmem>>, %arg41: memref<1x1536xf32, #tpu.memory_space<vmem>>, %arg42: memref<1536x256xbf16, #tpu.memory_space<vmem>>, %arg43: memref<1x256xf32, #tpu.memory_space<vmem>>, %arg44: memref<256x1280xbf16, #tpu.memory_space<vmem>>, %arg45: memref<1x1280xf32, #tpu.memory_space<vmem>>, %arg46: memref<1280x128xbf16, #tpu.memory_space<vmem>>, %arg47: memref<1x128xf32, #tpu.memory_space<vmem>>, %arg48: memref<1x1x128xf32, #tpu.memory_space<vmem>>) attributes {dimension_semantics = [#tpu.dimension_semantics<parallel>], iteration_bounds = array<i64: 2>, scalar_prefetch = 0 : i64, scratch_operands = 0 : i64, tpu.core_type = #tpu.core_type<tc>, window_params = [{transform_indices = @transform_0, window_bounds = array<i64: 1, 256, 128>}, {pipeline_mode = #tpu.pipeline_mode<synchronous>, transform_indices = @transform_1, window_bounds = array<i64: 128, 128>}, {pipeline_mode = #tpu.pipeline_mode<synchronous>, transform_indices = @transform_2, window_bounds = array<i64: 1, 128>}, {pipeline_mode = #tpu.pipeline_mode<synchronous>, transform_indices = @transform_3, window_bounds = array<i64: 128, 128>}, {pipeline_mode = #tpu.pipeline_mode<synchronous>, transform_indices = @transform_4, window_bounds = array<i64: 1, 128>}, {pipeline_mode = #tpu.pipeline_mode<synchronous>, transform_indices = @transform_5, window_bounds = array<i64: 576, 256>}, {pipeline_mode = #tpu.pipeline_mode<synchronous>, transform_indices = @transform_6, window_bounds = array<i64: 576, 128>}, {pipeline_mode = #tpu.pipeline_mode<synchronous>, transform_indices = @transform_7, window_bounds = array<i64: 64, 576>}, {pipeline_mode = #tpu.pipeline_mode<synchronous>, transform_indices = @transform_8, window_bounds = array<i64: 1, 128>}, {pipeline_mode = #tpu.pipeline_mode<synchronous>, transform_indices = @transform_9, window_bounds = array<i64: 128, 128>}, {pipeline_mode = #tpu.pipeline_mode<synchronous>, transform_indices = @transform_10, window_bounds = array<i64: 1, 128>}, {pipeline_mode = #tpu.pipeline_mode<synchronous>, transform_indices = @transform_11, window_bounds = array<i64: 128, 384>}, {pipeline_mode = #tpu.pipeline_mode<synchronous>, transform_indices = @transform_12, window_bounds = array<i64: 1, 384>}, {pipeline_mode = #tpu.pipeline_mode<synchronous>, transform_indices = @transform_13, window_bounds = array<i64: 400, 64>}, {pipeline_mode = #tpu.pipeline_mode<synchronous>, transform_indices = @transform_14, window_bounds = array<i64: 400, 384>}, {pipeline_mode = #tpu.pipeline_mode<synchronous>, transform_indices = @transform_15, window_bounds = array<i64: 16, 400>}, {pipeline_mode = #tpu.pipeline_mode<synchronous>, transform_indices = @transform_16, window_bounds = array<i64: 1, 384>}, {pipeline_mode = #tpu.pipeline_mode<synchronous>, transform_indices = @transform_17, window_bounds = array<i64: 384, 128>}, {pipeline_mode = #tpu.pipeline_mode<synchronous>, transform_indices = @transform_18, window_bounds = array<i64: 1, 128>}, {pipeline_mode = #tpu.pipeline_mode<synchronous>, transform_indices = @transform_19, window_bounds = array<i64: 128, 384>}, {pipeline_mode = #tpu.pipeline_mode<synchronous>, transform_indices = @transform_20, window_bounds = array<i64: 1, 384>}, {pipeline_mode = #tpu.pipeline_mode<synchronous>, transform_indices = @transform_21, window_bounds = array<i64: 144, 16>}, {pipeline_mode = #tpu.pipeline_mode<synchronous>, transform_indices = @transform_22, window_bounds = array<i64: 144, 384>}, {pipeline_mode = #tpu.pipeline_mode<synchronous>, transform_indices = @transform_23, window_bounds = array<i64: 16, 144>}, {pipeline_mode = #tpu.pipeline_mode<synchronous>, transform_indices = @transform_24, window_bounds = array<i64: 1, 384>}, {pipeline_mode = #tpu.pipeline_mode<synchronous>, transform_indices = @transform_25, window_bounds = array<i64: 384, 128>}, {pipeline_mode = #tpu.pipeline_mode<synchronous>, transform_indices = @transform_26, window_bounds = array<i64: 1, 128>}, {pipeline_mode = #tpu.pipeline_mode<synchronous>, transform_indices = @transform_27, window_bounds = array<i64: 128, 384>}, {pipeline_mode = #tpu.pipeline_mode<synchronous>, transform_indices = @transform_28, window_bounds = array<i64: 1, 384>}, {pipeline_mode = #tpu.pipeline_mode<synchronous>, transform_indices = @transform_29, window_bounds = array<i64: 36, 16>}, {pipeline_mode = #tpu.pipeline_mode<synchronous>, transform_indices = @transform_30, window_bounds = array<i64: 36, 384>}, {pipeline_mode = #tpu.pipeline_mode<synchronous>, transform_indices = @transform_31, window_bounds = array<i64: 4, 36>}, {pipeline_mode = #tpu.pipeline_mode<synchronous>, transform_indices = @transform_32, window_bounds = array<i64: 1, 384>}, {pipeline_mode = #tpu.pipeline_mode<synchronous>, transform_indices = @transform_33, window_bounds = array<i64: 384, 256>}, {pipeline_mode = #tpu.pipeline_mode<synchronous>, transform_indices = @transform_34, window_bounds = array<i64: 1, 256>}, {pipeline_mode = #tpu.pipeline_mode<synchronous>, transform_indices = @transform_35, window_bounds = array<i64: 256, 1536>}, {pipeline_mode = #tpu.pipeline_mode<synchronous>, transform_indices = @transform_36, window_bounds = array<i64: 1, 1536>}, {pipeline_mode = #tpu.pipeline_mode<synchronous>, transform_indices = @transform_37, window_bounds = array<i64: 100, 4>}, {pipeline_mode = #tpu.pipeline_mode<synchronous>, transform_indices = @transform_38, window_bounds = array<i64: 100, 1536>}, {pipeline_mode = #tpu.pipeline_mode<synchronous>, transform_indices = @transform_39, window_bounds = array<i64: 4, 100>}, {pipeline_mode = #tpu.pipeline_mode<synchronous>, transform_indices = @transform_40, window_bounds = array<i64: 1, 1536>}, {pipeline_mode = #tpu.pipeline_mode<synchronous>, transform_indices = @transform_41, window_bounds = array<i64: 1536, 256>}, {pipeline_mode = #tpu.pipeline_mode<synchronous>, transform_indices = @transform_42, window_bounds = array<i64: 1, 256>}, {pipeline_mode = #tpu.pipeline_mode<synchronous>, transform_indices = @transform_43, window_bounds = array<i64: 256, 1280>}, {pipeline_mode = #tpu.pipeline_mode<synchronous>, transform_indices = @transform_44, window_bounds = array<i64: 1, 1280>}, {pipeline_mode = #tpu.pipeline_mode<synchronous>, transform_indices = @transform_45, window_bounds = array<i64: 1280, 128>}, {pipeline_mode = #tpu.pipeline_mode<synchronous>, transform_indices = @transform_46, window_bounds = array<i64: 1, 128>}, {transform_indices = @transform_47, window_bounds = array<i64: 1, 1, 128>}]} {
    %c0 = arith.constant 0 : index
    %c0_0 = arith.constant 0 : index
    %c0_1 = arith.constant 0 : index
    %0 = vector.load %arg1[%c0, %c0_0, %c0_1] : memref<1x256x128xbf16, #tpu.memory_space<vmem>>, vector<1x256x128xbf16>
    %1 = vector.shape_cast %0 : vector<1x256x128xbf16> to vector<256x128xbf16>
    %c0_2 = arith.constant 0 : index
    %c0_3 = arith.constant 0 : index
    %2 = vector.load %arg2[%c0_2, %c0_3] : memref<128x128xbf16, #tpu.memory_space<vmem>>, vector<128x128xbf16>
    %cst = arith.constant dense<0.000000e+00> : vector<256x128xf32>
    %3 = tpu.matmul %1, %2, %cst {dimension_numbers = #tpu.dot_dimension_numbers<[1], [0], [0], [1], [0, 0, 1, 1], [], []>} : vector<256x128xbf16>, vector<128x128xbf16>, vector<256x128xf32> -> vector<256x128xf32>
    %c0_4 = arith.constant 0 : index
    %c0_5 = arith.constant 0 : index
    %4 = vector.load %arg3[%c0_4, %c0_5] : memref<1x128xf32, #tpu.memory_space<vmem>>, vector<1x128xf32>
    %5 = vector.broadcast %4 : vector<1x128xf32> to vector<256x128xf32>
    %6 = arith.addf %3, %5 : vector<256x128xf32>
    %cst_6 = arith.constant 0.000000e+00 : f32
    %7 = vector.broadcast %cst_6 : f32 to vector<256x128xf32>
    %8 = arith.maximumf %6, %7 : vector<256x128xf32>
    %9 = arith.truncf %8 : vector<256x128xf32> to vector<256x128xbf16>
    %c0_7 = arith.constant 0 : index
    %c0_8 = arith.constant 0 : index
    %10 = vector.load %arg4[%c0_7, %c0_8] : memref<128x128xbf16, #tpu.memory_space<vmem>>, vector<128x128xbf16>
    %cst_9 = arith.constant dense<0.000000e+00> : vector<256x128xf32>
    %11 = tpu.matmul %9, %10, %cst_9 {dimension_numbers = #tpu.dot_dimension_numbers<[1], [0], [0], [1], [0, 0, 1, 1], [], []>} : vector<256x128xbf16>, vector<128x128xbf16>, vector<256x128xf32> -> vector<256x128xf32>
    %c0_10 = arith.constant 0 : index
    %c0_11 = arith.constant 0 : index
    %12 = vector.load %arg5[%c0_10, %c0_11] : memref<1x128xf32, #tpu.memory_space<vmem>>, vector<1x128xf32>
    %13 = vector.broadcast %12 : vector<1x128xf32> to vector<256x128xf32>
    %14 = arith.addf %11, %13 : vector<256x128xf32>
    %cst_12 = arith.constant 0.000000e+00 : f32
    %15 = vector.broadcast %cst_12 : f32 to vector<256x128xf32>
    %16 = arith.maximumf %14, %15 : vector<256x128xf32>
    %c0_13 = arith.constant 0 : index
    %c0_14 = arith.constant 0 : index
    %17 = vector.load %arg6[%c0_13, %c0_14] : memref<576x256xbf16, #tpu.memory_space<vmem>>, vector<576x256xbf16>
    %18 = arith.truncf %16 : vector<256x128xf32> to vector<256x128xbf16>
    %cst_15 = arith.constant dense<0.000000e+00> : vector<576x128xf32>
    %19 = tpu.matmul %17, %18, %cst_15 {dimension_numbers = #tpu.dot_dimension_numbers<[1], [0], [0], [1], [0, 0, 1, 1], [], []>} : vector<576x256xbf16>, vector<256x128xbf16>, vector<576x128xf32> -> vector<576x128xf32>
    %c0_16 = arith.constant 0 : index
    %c0_17 = arith.constant 0 : index
    %20 = vector.load %arg7[%c0_16, %c0_17] : memref<576x128xf32, #tpu.memory_space<vmem>>, vector<576x128xf32>
    %21 = arith.mulf %19, %20 : vector<576x128xf32>
    %22 = arith.truncf %21 : vector<576x128xf32> to vector<576x128xbf16>
    %c0_18 = arith.constant 0 : index
    %c0_19 = arith.constant 0 : index
    %23 = vector.load %arg8[%c0_18, %c0_19] : memref<64x576xbf16, #tpu.memory_space<vmem>>, vector<64x576xbf16>
    %cst_20 = arith.constant dense<0.000000e+00> : vector<64x128xf32>
    %24 = tpu.matmul %23, %22, %cst_20 {dimension_numbers = #tpu.dot_dimension_numbers<[1], [0], [0], [1], [0, 0, 1, 1], [], []>} : vector<64x576xbf16>, vector<576x128xbf16>, vector<64x128xf32> -> vector<64x128xf32>
    %c0_21 = arith.constant 0 : index
    %c0_22 = arith.constant 0 : index
    %25 = vector.load %arg9[%c0_21, %c0_22] : memref<1x128xf32, #tpu.memory_space<vmem>>, vector<1x128xf32>
    %26 = vector.broadcast %25 : vector<1x128xf32> to vector<64x128xf32>
    %27 = arith.addf %24, %26 : vector<64x128xf32>
    %cst_23 = arith.constant 0.000000e+00 : f32
    %28 = vector.broadcast %cst_23 : f32 to vector<64x128xf32>
    %29 = arith.maximumf %27, %28 : vector<64x128xf32>
    %30 = arith.truncf %29 : vector<64x128xf32> to vector<64x128xbf16>
    %c0_24 = arith.constant 0 : index
    %c0_25 = arith.constant 0 : index
    %31 = vector.load %arg10[%c0_24, %c0_25] : memref<128x128xbf16, #tpu.memory_space<vmem>>, vector<128x128xbf16>
    %cst_26 = arith.constant dense<0.000000e+00> : vector<64x128xf32>
    %32 = tpu.matmul %30, %31, %cst_26 {dimension_numbers = #tpu.dot_dimension_numbers<[1], [0], [0], [1], [0, 0, 1, 1], [], []>} : vector<64x128xbf16>, vector<128x128xbf16>, vector<64x128xf32> -> vector<64x128xf32>
    %c0_27 = arith.constant 0 : index
    %c0_28 = arith.constant 0 : index
    %33 = vector.load %arg11[%c0_27, %c0_28] : memref<1x128xf32, #tpu.memory_space<vmem>>, vector<1x128xf32>
    %34 = vector.broadcast %33 : vector<1x128xf32> to vector<64x128xf32>
    %35 = arith.addf %32, %34 : vector<64x128xf32>
    %36 = arith.truncf %35 : vector<64x128xf32> to vector<64x128xbf16>
    %c0_29 = arith.constant 0 : index
    %c0_30 = arith.constant 0 : index
    %37 = vector.load %arg12[%c0_29, %c0_30] : memref<128x384xbf16, #tpu.memory_space<vmem>>, vector<128x384xbf16>
    %cst_31 = arith.constant dense<0.000000e+00> : vector<64x384xf32>
    %38 = tpu.matmul %36, %37, %cst_31 {dimension_numbers = #tpu.dot_dimension_numbers<[1], [0], [0], [1], [0, 0, 1, 1], [], []>} : vector<64x128xbf16>, vector<128x384xbf16>, vector<64x384xf32> -> vector<64x384xf32>
    %c0_32 = arith.constant 0 : index
    %c0_33 = arith.constant 0 : index
    %39 = vector.load %arg13[%c0_32, %c0_33] : memref<1x384xf32, #tpu.memory_space<vmem>>, vector<1x384xf32>
    %40 = vector.broadcast %39 : vector<1x384xf32> to vector<64x384xf32>
    %41 = arith.addf %38, %40 : vector<64x384xf32>
    %cst_34 = arith.constant 0.000000e+00 : f32
    %42 = vector.broadcast %cst_34 : f32 to vector<64x384xf32>
    %43 = arith.maximumf %41, %42 : vector<64x384xf32>
    %c0_35 = arith.constant 0 : index
    %c0_36 = arith.constant 0 : index
    %44 = vector.load %arg14[%c0_35, %c0_36] : memref<400x64xbf16, #tpu.memory_space<vmem>>, vector<400x64xbf16>
    %45 = arith.truncf %43 : vector<64x384xf32> to vector<64x384xbf16>
    %cst_37 = arith.constant dense<0.000000e+00> : vector<400x384xf32>
    %46 = tpu.matmul %44, %45, %cst_37 {dimension_numbers = #tpu.dot_dimension_numbers<[1], [0], [0], [1], [0, 0, 1, 1], [], []>} : vector<400x64xbf16>, vector<64x384xbf16>, vector<400x384xf32> -> vector<400x384xf32>
    %c0_38 = arith.constant 0 : index
    %c0_39 = arith.constant 0 : index
    %47 = vector.load %arg15[%c0_38, %c0_39] : memref<400x384xf32, #tpu.memory_space<vmem>>, vector<400x384xf32>
    %48 = arith.mulf %46, %47 : vector<400x384xf32>
    %49 = arith.truncf %48 : vector<400x384xf32> to vector<400x384xbf16>
    %c0_40 = arith.constant 0 : index
    %c0_41 = arith.constant 0 : index
    %50 = vector.load %arg16[%c0_40, %c0_41] : memref<16x400xbf16, #tpu.memory_space<vmem>>, vector<16x400xbf16>
    %cst_42 = arith.constant dense<0.000000e+00> : vector<16x384xf32>
    %51 = tpu.matmul %50, %49, %cst_42 {dimension_numbers = #tpu.dot_dimension_numbers<[1], [0], [0], [1], [0, 0, 1, 1], [], []>} : vector<16x400xbf16>, vector<400x384xbf16>, vector<16x384xf32> -> vector<16x384xf32>
    %c0_43 = arith.constant 0 : index
    %c0_44 = arith.constant 0 : index
    %52 = vector.load %arg17[%c0_43, %c0_44] : memref<1x384xf32, #tpu.memory_space<vmem>>, vector<1x384xf32>
    %53 = vector.broadcast %52 : vector<1x384xf32> to vector<16x384xf32>
    %54 = arith.addf %51, %53 : vector<16x384xf32>
    %cst_45 = arith.constant 0.000000e+00 : f32
    %55 = vector.broadcast %cst_45 : f32 to vector<16x384xf32>
    %56 = arith.maximumf %54, %55 : vector<16x384xf32>
    %57 = arith.truncf %56 : vector<16x384xf32> to vector<16x384xbf16>
    %c0_46 = arith.constant 0 : index
    %c0_47 = arith.constant 0 : index
    %58 = vector.load %arg18[%c0_46, %c0_47] : memref<384x128xbf16, #tpu.memory_space<vmem>>, vector<384x128xbf16>
    %cst_48 = arith.constant dense<0.000000e+00> : vector<16x128xf32>
    %59 = tpu.matmul %57, %58, %cst_48 {dimension_numbers = #tpu.dot_dimension_numbers<[1], [0], [0], [1], [0, 0, 1, 1], [], []>} : vector<16x384xbf16>, vector<384x128xbf16>, vector<16x128xf32> -> vector<16x128xf32>
    %c0_49 = arith.constant 0 : index
    %c0_50 = arith.constant 0 : index
    %60 = vector.load %arg19[%c0_49, %c0_50] : memref<1x128xf32, #tpu.memory_space<vmem>>, vector<1x128xf32>
    %61 = vector.broadcast %60 : vector<1x128xf32> to vector<16x128xf32>
    %62 = arith.addf %59, %61 : vector<16x128xf32>
    %63 = arith.truncf %62 : vector<16x128xf32> to vector<16x128xbf16>
    %c0_51 = arith.constant 0 : index
    %c0_52 = arith.constant 0 : index
    %64 = vector.load %arg20[%c0_51, %c0_52] : memref<128x384xbf16, #tpu.memory_space<vmem>>, vector<128x384xbf16>
    %cst_53 = arith.constant dense<0.000000e+00> : vector<16x384xf32>
    %65 = tpu.matmul %63, %64, %cst_53 {dimension_numbers = #tpu.dot_dimension_numbers<[1], [0], [0], [1], [0, 0, 1, 1], [], []>} : vector<16x128xbf16>, vector<128x384xbf16>, vector<16x384xf32> -> vector<16x384xf32>
    %c0_54 = arith.constant 0 : index
    %c0_55 = arith.constant 0 : index
    %66 = vector.load %arg21[%c0_54, %c0_55] : memref<1x384xf32, #tpu.memory_space<vmem>>, vector<1x384xf32>
    %67 = vector.broadcast %66 : vector<1x384xf32> to vector<16x384xf32>
    %68 = arith.addf %65, %67 : vector<16x384xf32>
    %cst_56 = arith.constant 0.000000e+00 : f32
    %69 = vector.broadcast %cst_56 : f32 to vector<16x384xf32>
    %70 = arith.maximumf %68, %69 : vector<16x384xf32>
    %c0_57 = arith.constant 0 : index
    %c0_58 = arith.constant 0 : index
    %71 = vector.load %arg22[%c0_57, %c0_58] : memref<144x16xbf16, #tpu.memory_space<vmem>>, vector<144x16xbf16>
    %72 = arith.truncf %70 : vector<16x384xf32> to vector<16x384xbf16>
    %cst_59 = arith.constant dense<0.000000e+00> : vector<144x384xf32>
    %73 = tpu.matmul %71, %72, %cst_59 {dimension_numbers = #tpu.dot_dimension_numbers<[1], [0], [0], [1], [0, 0, 1, 1], [], []>} : vector<144x16xbf16>, vector<16x384xbf16>, vector<144x384xf32> -> vector<144x384xf32>
    %c0_60 = arith.constant 0 : index
    %c0_61 = arith.constant 0 : index
    %74 = vector.load %arg23[%c0_60, %c0_61] : memref<144x384xf32, #tpu.memory_space<vmem>>, vector<144x384xf32>
    %75 = arith.mulf %73, %74 : vector<144x384xf32>
    %76 = arith.truncf %75 : vector<144x384xf32> to vector<144x384xbf16>
    %c0_62 = arith.constant 0 : index
    %c0_63 = arith.constant 0 : index
    %77 = vector.load %arg24[%c0_62, %c0_63] : memref<16x144xbf16, #tpu.memory_space<vmem>>, vector<16x144xbf16>
    %cst_64 = arith.constant dense<0.000000e+00> : vector<16x384xf32>
    %78 = tpu.matmul %77, %76, %cst_64 {dimension_numbers = #tpu.dot_dimension_numbers<[1], [0], [0], [1], [0, 0, 1, 1], [], []>} : vector<16x144xbf16>, vector<144x384xbf16>, vector<16x384xf32> -> vector<16x384xf32>
    %c0_65 = arith.constant 0 : index
    %c0_66 = arith.constant 0 : index
    %79 = vector.load %arg25[%c0_65, %c0_66] : memref<1x384xf32, #tpu.memory_space<vmem>>, vector<1x384xf32>
    %80 = vector.broadcast %79 : vector<1x384xf32> to vector<16x384xf32>
    %81 = arith.addf %78, %80 : vector<16x384xf32>
    %cst_67 = arith.constant 0.000000e+00 : f32
    %82 = vector.broadcast %cst_67 : f32 to vector<16x384xf32>
    %83 = arith.maximumf %81, %82 : vector<16x384xf32>
    %84 = arith.truncf %83 : vector<16x384xf32> to vector<16x384xbf16>
    %c0_68 = arith.constant 0 : index
    %c0_69 = arith.constant 0 : index
    %85 = vector.load %arg26[%c0_68, %c0_69] : memref<384x128xbf16, #tpu.memory_space<vmem>>, vector<384x128xbf16>
    %cst_70 = arith.constant dense<0.000000e+00> : vector<16x128xf32>
    %86 = tpu.matmul %84, %85, %cst_70 {dimension_numbers = #tpu.dot_dimension_numbers<[1], [0], [0], [1], [0, 0, 1, 1], [], []>} : vector<16x384xbf16>, vector<384x128xbf16>, vector<16x128xf32> -> vector<16x128xf32>
    %c0_71 = arith.constant 0 : index
    %c0_72 = arith.constant 0 : index
    %87 = vector.load %arg27[%c0_71, %c0_72] : memref<1x128xf32, #tpu.memory_space<vmem>>, vector<1x128xf32>
    %88 = vector.broadcast %87 : vector<1x128xf32> to vector<16x128xf32>
    %89 = arith.addf %86, %88 : vector<16x128xf32>
    %90 = arith.addf %89, %62 : vector<16x128xf32>
    %91 = arith.truncf %90 : vector<16x128xf32> to vector<16x128xbf16>
    %c0_73 = arith.constant 0 : index
    %c0_74 = arith.constant 0 : index
    %92 = vector.load %arg28[%c0_73, %c0_74] : memref<128x384xbf16, #tpu.memory_space<vmem>>, vector<128x384xbf16>
    %cst_75 = arith.constant dense<0.000000e+00> : vector<16x384xf32>
    %93 = tpu.matmul %91, %92, %cst_75 {dimension_numbers = #tpu.dot_dimension_numbers<[1], [0], [0], [1], [0, 0, 1, 1], [], []>} : vector<16x128xbf16>, vector<128x384xbf16>, vector<16x384xf32> -> vector<16x384xf32>
    %c0_76 = arith.constant 0 : index
    %c0_77 = arith.constant 0 : index
    %94 = vector.load %arg29[%c0_76, %c0_77] : memref<1x384xf32, #tpu.memory_space<vmem>>, vector<1x384xf32>
    %95 = vector.broadcast %94 : vector<1x384xf32> to vector<16x384xf32>
    %96 = arith.addf %93, %95 : vector<16x384xf32>
    %cst_78 = arith.constant 0.000000e+00 : f32
    %97 = vector.broadcast %cst_78 : f32 to vector<16x384xf32>
    %98 = arith.maximumf %96, %97 : vector<16x384xf32>
    %c0_79 = arith.constant 0 : index
    %c0_80 = arith.constant 0 : index
    %99 = vector.load %arg30[%c0_79, %c0_80] : memref<36x16xbf16, #tpu.memory_space<vmem>>, vector<36x16xbf16>
    %100 = arith.truncf %98 : vector<16x384xf32> to vector<16x384xbf16>
    %cst_81 = arith.constant dense<0.000000e+00> : vector<36x384xf32>
    %101 = tpu.matmul %99, %100, %cst_81 {dimension_numbers = #tpu.dot_dimension_numbers<[1], [0], [0], [1], [0, 0, 1, 1], [], []>} : vector<36x16xbf16>, vector<16x384xbf16>, vector<36x384xf32> -> vector<36x384xf32>
    %c0_82 = arith.constant 0 : index
    %c0_83 = arith.constant 0 : index
    %102 = vector.load %arg31[%c0_82, %c0_83] : memref<36x384xf32, #tpu.memory_space<vmem>>, vector<36x384xf32>
    %103 = arith.mulf %101, %102 : vector<36x384xf32>
    %104 = arith.truncf %103 : vector<36x384xf32> to vector<36x384xbf16>
    %c0_84 = arith.constant 0 : index
    %c0_85 = arith.constant 0 : index
    %105 = vector.load %arg32[%c0_84, %c0_85] : memref<4x36xbf16, #tpu.memory_space<vmem>>, vector<4x36xbf16>
    %cst_86 = arith.constant dense<0.000000e+00> : vector<4x384xf32>
    %106 = tpu.matmul %105, %104, %cst_86 {dimension_numbers = #tpu.dot_dimension_numbers<[1], [0], [0], [1], [0, 0, 1, 1], [], []>} : vector<4x36xbf16>, vector<36x384xbf16>, vector<4x384xf32> -> vector<4x384xf32>
    %c0_87 = arith.constant 0 : index
    %c0_88 = arith.constant 0 : index
    %107 = vector.load %arg33[%c0_87, %c0_88] : memref<1x384xf32, #tpu.memory_space<vmem>>, vector<1x384xf32>
    %108 = vector.broadcast %107 : vector<1x384xf32> to vector<4x384xf32>
    %109 = arith.addf %106, %108 : vector<4x384xf32>
    %cst_89 = arith.constant 0.000000e+00 : f32
    %110 = vector.broadcast %cst_89 : f32 to vector<4x384xf32>
    %111 = arith.maximumf %109, %110 : vector<4x384xf32>
    %112 = arith.truncf %111 : vector<4x384xf32> to vector<4x384xbf16>
    %c0_90 = arith.constant 0 : index
    %c0_91 = arith.constant 0 : index
    %113 = vector.load %arg34[%c0_90, %c0_91] : memref<384x256xbf16, #tpu.memory_space<vmem>>, vector<384x256xbf16>
    %cst_92 = arith.constant dense<0.000000e+00> : vector<4x256xf32>
    %114 = tpu.matmul %112, %113, %cst_92 {dimension_numbers = #tpu.dot_dimension_numbers<[1], [0], [0], [1], [0, 0, 1, 1], [], []>} : vector<4x384xbf16>, vector<384x256xbf16>, vector<4x256xf32> -> vector<4x256xf32>
    %c0_93 = arith.constant 0 : index
    %c0_94 = arith.constant 0 : index
    %115 = vector.load %arg35[%c0_93, %c0_94] : memref<1x256xf32, #tpu.memory_space<vmem>>, vector<1x256xf32>
    %116 = vector.broadcast %115 : vector<1x256xf32> to vector<4x256xf32>
    %117 = arith.addf %114, %116 : vector<4x256xf32>
    %118 = arith.truncf %117 : vector<4x256xf32> to vector<4x256xbf16>
    %c0_95 = arith.constant 0 : index
    %c0_96 = arith.constant 0 : index
    %119 = vector.load %arg36[%c0_95, %c0_96] : memref<256x1536xbf16, #tpu.memory_space<vmem>>, vector<256x1536xbf16>
    %cst_97 = arith.constant dense<0.000000e+00> : vector<4x1536xf32>
    %120 = tpu.matmul %118, %119, %cst_97 {dimension_numbers = #tpu.dot_dimension_numbers<[1], [0], [0], [1], [0, 0, 1, 1], [], []>} : vector<4x256xbf16>, vector<256x1536xbf16>, vector<4x1536xf32> -> vector<4x1536xf32>
    %c0_98 = arith.constant 0 : index
    %c0_99 = arith.constant 0 : index
    %121 = vector.load %arg37[%c0_98, %c0_99] : memref<1x1536xf32, #tpu.memory_space<vmem>>, vector<1x1536xf32>
    %122 = vector.broadcast %121 : vector<1x1536xf32> to vector<4x1536xf32>
    %123 = arith.addf %120, %122 : vector<4x1536xf32>
    %cst_100 = arith.constant 0.000000e+00 : f32
    %124 = vector.broadcast %cst_100 : f32 to vector<4x1536xf32>
    %125 = arith.maximumf %123, %124 : vector<4x1536xf32>
    %c0_101 = arith.constant 0 : index
    %c0_102 = arith.constant 0 : index
    %126 = vector.load %arg38[%c0_101, %c0_102] : memref<100x4xbf16, #tpu.memory_space<vmem>>, vector<100x4xbf16>
    %127 = arith.truncf %125 : vector<4x1536xf32> to vector<4x1536xbf16>
    %cst_103 = arith.constant dense<0.000000e+00> : vector<100x1536xf32>
    %128 = tpu.matmul %126, %127, %cst_103 {dimension_numbers = #tpu.dot_dimension_numbers<[1], [0], [0], [1], [0, 0, 1, 1], [], []>} : vector<100x4xbf16>, vector<4x1536xbf16>, vector<100x1536xf32> -> vector<100x1536xf32>
    %c0_104 = arith.constant 0 : index
    %c0_105 = arith.constant 0 : index
    %129 = vector.load %arg39[%c0_104, %c0_105] : memref<100x1536xf32, #tpu.memory_space<vmem>>, vector<100x1536xf32>
    %130 = arith.mulf %128, %129 : vector<100x1536xf32>
    %131 = arith.truncf %130 : vector<100x1536xf32> to vector<100x1536xbf16>
    %c0_106 = arith.constant 0 : index
    %c0_107 = arith.constant 0 : index
    %132 = vector.load %arg40[%c0_106, %c0_107] : memref<4x100xbf16, #tpu.memory_space<vmem>>, vector<4x100xbf16>
    %cst_108 = arith.constant dense<0.000000e+00> : vector<4x1536xf32>
    %133 = tpu.matmul %132, %131, %cst_108 {dimension_numbers = #tpu.dot_dimension_numbers<[1], [0], [0], [1], [0, 0, 1, 1], [], []>} : vector<4x100xbf16>, vector<100x1536xbf16>, vector<4x1536xf32> -> vector<4x1536xf32>
    %c0_109 = arith.constant 0 : index
    %c0_110 = arith.constant 0 : index
    %134 = vector.load %arg41[%c0_109, %c0_110] : memref<1x1536xf32, #tpu.memory_space<vmem>>, vector<1x1536xf32>
    %135 = vector.broadcast %134 : vector<1x1536xf32> to vector<4x1536xf32>
    %136 = arith.addf %133, %135 : vector<4x1536xf32>
    %cst_111 = arith.constant 0.000000e+00 : f32
    %137 = vector.broadcast %cst_111 : f32 to vector<4x1536xf32>
    %138 = arith.maximumf %136, %137 : vector<4x1536xf32>
    %139 = arith.truncf %138 : vector<4x1536xf32> to vector<4x1536xbf16>
    %c0_112 = arith.constant 0 : index
    %c0_113 = arith.constant 0 : index
    %140 = vector.load %arg42[%c0_112, %c0_113] : memref<1536x256xbf16, #tpu.memory_space<vmem>>, vector<1536x256xbf16>
    %cst_114 = arith.constant dense<0.000000e+00> : vector<4x256xf32>
    %141 = tpu.matmul %139, %140, %cst_114 {dimension_numbers = #tpu.dot_dimension_numbers<[1], [0], [0], [1], [0, 0, 1, 1], [], []>} : vector<4x1536xbf16>, vector<1536x256xbf16>, vector<4x256xf32> -> vector<4x256xf32>
    %c0_115 = arith.constant 0 : index
    %c0_116 = arith.constant 0 : index
    %142 = vector.load %arg43[%c0_115, %c0_116] : memref<1x256xf32, #tpu.memory_space<vmem>>, vector<1x256xf32>
    %143 = vector.broadcast %142 : vector<1x256xf32> to vector<4x256xf32>
    %144 = arith.addf %141, %143 : vector<4x256xf32>
    %145 = arith.addf %144, %117 : vector<4x256xf32>
    %146 = arith.truncf %145 : vector<4x256xf32> to vector<4x256xbf16>
    %c0_117 = arith.constant 0 : index
    %c0_118 = arith.constant 0 : index
    %147 = vector.load %arg44[%c0_117, %c0_118] : memref<256x1280xbf16, #tpu.memory_space<vmem>>, vector<256x1280xbf16>
    %cst_119 = arith.constant dense<0.000000e+00> : vector<4x1280xf32>
    %148 = tpu.matmul %146, %147, %cst_119 {dimension_numbers = #tpu.dot_dimension_numbers<[1], [0], [0], [1], [0, 0, 1, 1], [], []>} : vector<4x256xbf16>, vector<256x1280xbf16>, vector<4x1280xf32> -> vector<4x1280xf32>
    %c0_120 = arith.constant 0 : index
    %c0_121 = arith.constant 0 : index
    %149 = vector.load %arg45[%c0_120, %c0_121] : memref<1x1280xf32, #tpu.memory_space<vmem>>, vector<1x1280xf32>
    %150 = vector.broadcast %149 : vector<1x1280xf32> to vector<4x1280xf32>
    %151 = arith.addf %148, %150 : vector<4x1280xf32>
    %cst_122 = arith.constant 0.000000e+00 : f32
    %152 = vector.broadcast %cst_122 : f32 to vector<4x1280xf32>
    %153 = arith.maximumf %151, %152 : vector<4x1280xf32>
    %cst_123 = arith.constant dense<0.000000e+00> : vector<1280xf32>
    %154 = vector.multi_reduction <add>, %153, %cst_123 [0] : vector<4x1280xf32> to vector<1280xf32>
    %155 = vector.shape_cast %154 : vector<1280xf32> to vector<1x1280xf32>
    %cst_124 = arith.constant 2.500000e-01 : f32
    %156 = vector.broadcast %cst_124 : f32 to vector<1x1280xf32>
    %157 = arith.mulf %155, %156 : vector<1x1280xf32>
    %158 = arith.truncf %157 : vector<1x1280xf32> to vector<1x1280xbf16>
    %c0_125 = arith.constant 0 : index
    %c0_126 = arith.constant 0 : index
    %159 = vector.load %arg46[%c0_125, %c0_126] : memref<1280x128xbf16, #tpu.memory_space<vmem>>, vector<1280x128xbf16>
    %cst_127 = arith.constant dense<0.000000e+00> : vector<1x128xf32>
    %160 = tpu.matmul %158, %159, %cst_127 {dimension_numbers = #tpu.dot_dimension_numbers<[1], [0], [0], [1], [0, 0, 1, 1], [], []>} : vector<1x1280xbf16>, vector<1280x128xbf16>, vector<1x128xf32> -> vector<1x128xf32>
    %c0_128 = arith.constant 0 : index
    %c0_129 = arith.constant 0 : index
    %161 = vector.load %arg47[%c0_128, %c0_129] : memref<1x128xf32, #tpu.memory_space<vmem>>, vector<1x128xf32>
    %162 = arith.addf %160, %161 : vector<1x128xf32>
    %c0_130 = arith.constant 0 : index
    %c0_131 = arith.constant 0 : index
    %c0_132 = arith.constant 0 : index
    %163 = vector.load %arg48[%c0_130, %c0_131, %c0_132] : memref<1x1x128xf32, #tpu.memory_space<vmem>>, vector<1x1x128xf32>
    %164 = vector.shape_cast %163 : vector<1x1x128xf32> to vector<1x128xf32>
    %165 = vector.shape_cast %162 : vector<1x128xf32> to vector<1x1x128xf32>
    tpu.vector_store %arg48[%c0_130, %c0_131, %c0_132], %165 {strides = array<i32>} : memref<1x1x128xf32, #tpu.memory_space<vmem>>, vector<1x1x128xf32>,
    return
  }
  func.func @transform_0(%arg0: i32) -> (i32, i32, i32) {
    %c0_i32 = arith.constant 0 : i32
    %c0_i32_0 = arith.constant 0 : i32
    %c0_i32_1 = arith.constant 0 : i32
    return %arg0, %c0_i32, %c0_i32_0 : i32, i32, i32
  }
  func.func @transform_1(%arg0: i32) -> (i32, i32) {
    %c0_i32 = arith.constant 0 : i32
    %c0_i32_0 = arith.constant 0 : i32
    %c0_i32_1 = arith.constant 0 : i32
    return %c0_i32, %c0_i32_0 : i32, i32
  }
  func.func @transform_2(%arg0: i32) -> (i32, i32) {
    %c0_i32 = arith.constant 0 : i32
    %c0_i32_0 = arith.constant 0 : i32
    %c0_i32_1 = arith.constant 0 : i32
    return %c0_i32, %c0_i32_0 : i32, i32
  }
  func.func @transform_3(%arg0: i32) -> (i32, i32) {
    %c0_i32 = arith.constant 0 : i32
    %c0_i32_0 = arith.constant 0 : i32
    %c0_i32_1 = arith.constant 0 : i32
    return %c0_i32, %c0_i32_0 : i32, i32
  }
  func.func @transform_4(%arg0: i32) -> (i32, i32) {
    %c0_i32 = arith.constant 0 : i32
    %c0_i32_0 = arith.constant 0 : i32
    %c0_i32_1 = arith.constant 0 : i32
    return %c0_i32, %c0_i32_0 : i32, i32
  }
  func.func @transform_5(%arg0: i32) -> (i32, i32) {
    %c0_i32 = arith.constant 0 : i32
    %c0_i32_0 = arith.constant 0 : i32
    %c0_i32_1 = arith.constant 0 : i32
    return %c0_i32, %c0_i32_0 : i32, i32
  }
  func.func @transform_6(%arg0: i32) -> (i32, i32) {
    %c0_i32 = arith.constant 0 : i32
    %c0_i32_0 = arith.constant 0 : i32
    %c0_i32_1 = arith.constant 0 : i32
    return %c0_i32, %c0_i32_0 : i32, i32
  }
  func.func @transform_7(%arg0: i32) -> (i32, i32) {
    %c0_i32 = arith.constant 0 : i32
    %c0_i32_0 = arith.constant 0 : i32
    %c0_i32_1 = arith.constant 0 : i32
    return %c0_i32, %c0_i32_0 : i32, i32
  }
  func.func @transform_8(%arg0: i32) -> (i32, i32) {
    %c0_i32 = arith.constant 0 : i32
    %c0_i32_0 = arith.constant 0 : i32
    %c0_i32_1 = arith.constant 0 : i32
    return %c0_i32, %c0_i32_0 : i32, i32
  }
  func.func @transform_9(%arg0: i32) -> (i32, i32) {
    %c0_i32 = arith.constant 0 : i32
    %c0_i32_0 = arith.constant 0 : i32
    %c0_i32_1 = arith.constant 0 : i32
    return %c0_i32, %c0_i32_0 : i32, i32
  }
  func.func @transform_10(%arg0: i32) -> (i32, i32) {
    %c0_i32 = arith.constant 0 : i32
    %c0_i32_0 = arith.constant 0 : i32
    %c0_i32_1 = arith.constant 0 : i32
    return %c0_i32, %c0_i32_0 : i32, i32
  }
  func.func @transform_11(%arg0: i32) -> (i32, i32) {
    %c0_i32 = arith.constant 0 : i32
    %c0_i32_0 = arith.constant 0 : i32
    %c0_i32_1 = arith.constant 0 : i32
    return %c0_i32, %c0_i32_0 : i32, i32
  }
  func.func @transform_12(%arg0: i32) -> (i32, i32) {
    %c0_i32 = arith.constant 0 : i32
    %c0_i32_0 = arith.constant 0 : i32
    %c0_i32_1 = arith.constant 0 : i32
    return %c0_i32, %c0_i32_0 : i32, i32
  }
  func.func @transform_13(%arg0: i32) -> (i32, i32) {
    %c0_i32 = arith.constant 0 : i32
    %c0_i32_0 = arith.constant 0 : i32
    %c0_i32_1 = arith.constant 0 : i32
    return %c0_i32, %c0_i32_0 : i32, i32
  }
  func.func @transform_14(%arg0: i32) -> (i32, i32) {
    %c0_i32 = arith.constant 0 : i32
    %c0_i32_0 = arith.constant 0 : i32
    %c0_i32_1 = arith.constant 0 : i32
    return %c0_i32, %c0_i32_0 : i32, i32
  }
  func.func @transform_15(%arg0: i32) -> (i32, i32) {
    %c0_i32 = arith.constant 0 : i32
    %c0_i32_0 = arith.constant 0 : i32
    %c0_i32_1 = arith.constant 0 : i32
    return %c0_i32, %c0_i32_0 : i32, i32
  }
  func.func @transform_16(%arg0: i32) -> (i32, i32) {
    %c0_i32 = arith.constant 0 : i32
    %c0_i32_0 = arith.constant 0 : i32
    %c0_i32_1 = arith.constant 0 : i32
    return %c0_i32, %c0_i32_0 : i32, i32
  }
  func.func @transform_17(%arg0: i32) -> (i32, i32) {
    %c0_i32 = arith.constant 0 : i32
    %c0_i32_0 = arith.constant 0 : i32
    %c0_i32_1 = arith.constant 0 : i32
    return %c0_i32, %c0_i32_0 : i32, i32
  }
  func.func @transform_18(%arg0: i32) -> (i32, i32) {
    %c0_i32 = arith.constant 0 : i32
    %c0_i32_0 = arith.constant 0 : i32
    %c0_i32_1 = arith.constant 0 : i32
    return %c0_i32, %c0_i32_0 : i32, i32
  }
  func.func @transform_19(%arg0: i32) -> (i32, i32) {
    %c0_i32 = arith.constant 0 : i32
    %c0_i32_0 = arith.constant 0 : i32
    %c0_i32_1 = arith.constant 0 : i32
    return %c0_i32, %c0_i32_0 : i32, i32
  }
  func.func @transform_20(%arg0: i32) -> (i32, i32) {
    %c0_i32 = arith.constant 0 : i32
    %c0_i32_0 = arith.constant 0 : i32
    %c0_i32_1 = arith.constant 0 : i32
    return %c0_i32, %c0_i32_0 : i32, i32
  }
  func.func @transform_21(%arg0: i32) -> (i32, i32) {
    %c0_i32 = arith.constant 0 : i32
    %c0_i32_0 = arith.constant 0 : i32
    %c0_i32_1 = arith.constant 0 : i32
    return %c0_i32, %c0_i32_0 : i32, i32
  }
  func.func @transform_22(%arg0: i32) -> (i32, i32) {
    %c0_i32 = arith.constant 0 : i32
    %c0_i32_0 = arith.constant 0 : i32
    %c0_i32_1 = arith.constant 0 : i32
    return %c0_i32, %c0_i32_0 : i32, i32
  }
  func.func @transform_23(%arg0: i32) -> (i32, i32) {
    %c0_i32 = arith.constant 0 : i32
    %c0_i32_0 = arith.constant 0 : i32
    %c0_i32_1 = arith.constant 0 : i32
    return %c0_i32, %c0_i32_0 : i32, i32
  }
  func.func @transform_24(%arg0: i32) -> (i32, i32) {
    %c0_i32 = arith.constant 0 : i32
    %c0_i32_0 = arith.constant 0 : i32
    %c0_i32_1 = arith.constant 0 : i32
    return %c0_i32, %c0_i32_0 : i32, i32
  }
  func.func @transform_25(%arg0: i32) -> (i32, i32) {
    %c0_i32 = arith.constant 0 : i32
    %c0_i32_0 = arith.constant 0 : i32
    %c0_i32_1 = arith.constant 0 : i32
    return %c0_i32, %c0_i32_0 : i32, i32
  }
  func.func @transform_26(%arg0: i32) -> (i32, i32) {
    %c0_i32 = arith.constant 0 : i32
    %c0_i32_0 = arith.constant 0 : i32
    %c0_i32_1 = arith.constant 0 : i32
    return %c0_i32, %c0_i32_0 : i32, i32
  }
  func.func @transform_27(%arg0: i32) -> (i32, i32) {
    %c0_i32 = arith.constant 0 : i32
    %c0_i32_0 = arith.constant 0 : i32
    %c0_i32_1 = arith.constant 0 : i32
    return %c0_i32, %c0_i32_0 : i32, i32
  }
  func.func @transform_28(%arg0: i32) -> (i32, i32) {
    %c0_i32 = arith.constant 0 : i32
    %c0_i32_0 = arith.constant 0 : i32
    %c0_i32_1 = arith.constant 0 : i32
    return %c0_i32, %c0_i32_0 : i32, i32
  }
  func.func @transform_29(%arg0: i32) -> (i32, i32) {
    %c0_i32 = arith.constant 0 : i32
    %c0_i32_0 = arith.constant 0 : i32
    %c0_i32_1 = arith.constant 0 : i32
    return %c0_i32, %c0_i32_0 : i32, i32
  }
  func.func @transform_30(%arg0: i32) -> (i32, i32) {
    %c0_i32 = arith.constant 0 : i32
    %c0_i32_0 = arith.constant 0 : i32
    %c0_i32_1 = arith.constant 0 : i32
    return %c0_i32, %c0_i32_0 : i32, i32
  }
  func.func @transform_31(%arg0: i32) -> (i32, i32) {
    %c0_i32 = arith.constant 0 : i32
    %c0_i32_0 = arith.constant 0 : i32
    %c0_i32_1 = arith.constant 0 : i32
    return %c0_i32, %c0_i32_0 : i32, i32
  }
  func.func @transform_32(%arg0: i32) -> (i32, i32) {
    %c0_i32 = arith.constant 0 : i32
    %c0_i32_0 = arith.constant 0 : i32
    %c0_i32_1 = arith.constant 0 : i32
    return %c0_i32, %c0_i32_0 : i32, i32
  }
  func.func @transform_33(%arg0: i32) -> (i32, i32) {
    %c0_i32 = arith.constant 0 : i32
    %c0_i32_0 = arith.constant 0 : i32
    %c0_i32_1 = arith.constant 0 : i32
    return %c0_i32, %c0_i32_0 : i32, i32
  }
  func.func @transform_34(%arg0: i32) -> (i32, i32) {
    %c0_i32 = arith.constant 0 : i32
    %c0_i32_0 = arith.constant 0 : i32
    %c0_i32_1 = arith.constant 0 : i32
    return %c0_i32, %c0_i32_0 : i32, i32
  }
  func.func @transform_35(%arg0: i32) -> (i32, i32) {
    %c0_i32 = arith.constant 0 : i32
    %c0_i32_0 = arith.constant 0 : i32
    %c0_i32_1 = arith.constant 0 : i32
    return %c0_i32, %c0_i32_0 : i32, i32
  }
  func.func @transform_36(%arg0: i32) -> (i32, i32) {
    %c0_i32 = arith.constant 0 : i32
    %c0_i32_0 = arith.constant 0 : i32
    %c0_i32_1 = arith.constant 0 : i32
    return %c0_i32, %c0_i32_0 : i32, i32
  }
  func.func @transform_37(%arg0: i32) -> (i32, i32) {
    %c0_i32 = arith.constant 0 : i32
    %c0_i32_0 = arith.constant 0 : i32
    %c0_i32_1 = arith.constant 0 : i32
    return %c0_i32, %c0_i32_0 : i32, i32
  }
  func.func @transform_38(%arg0: i32) -> (i32, i32) {
    %c0_i32 = arith.constant 0 : i32
    %c0_i32_0 = arith.constant 0 : i32
    %c0_i32_1 = arith.constant 0 : i32
    return %c0_i32, %c0_i32_0 : i32, i32
  }
  func.func @transform_39(%arg0: i32) -> (i32, i32) {
    %c0_i32 = arith.constant 0 : i32
    %c0_i32_0 = arith.constant 0 : i32
    %c0_i32_1 = arith.constant 0 : i32
    return %c0_i32, %c0_i32_0 : i32, i32
  }
  func.func @transform_40(%arg0: i32) -> (i32, i32) {
    %c0_i32 = arith.constant 0 : i32
    %c0_i32_0 = arith.constant 0 : i32
    %c0_i32_1 = arith.constant 0 : i32
    return %c0_i32, %c0_i32_0 : i32, i32
  }
  func.func @transform_41(%arg0: i32) -> (i32, i32) {
    %c0_i32 = arith.constant 0 : i32
    %c0_i32_0 = arith.constant 0 : i32
    %c0_i32_1 = arith.constant 0 : i32
    return %c0_i32, %c0_i32_0 : i32, i32
  }
  func.func @transform_42(%arg0: i32) -> (i32, i32) {
    %c0_i32 = arith.constant 0 : i32
    %c0_i32_0 = arith.constant 0 : i32
    %c0_i32_1 = arith.constant 0 : i32
    return %c0_i32, %c0_i32_0 : i32, i32
  }
  func.func @transform_43(%arg0: i32) -> (i32, i32) {
    %c0_i32 = arith.constant 0 : i32
    %c0_i32_0 = arith.constant 0 : i32
    %c0_i32_1 = arith.constant 0 : i32
    return %c0_i32, %c0_i32_0 : i32, i32
  }
  func.func @transform_44(%arg0: i32) -> (i32, i32) {
    %c0_i32 = arith.constant 0 : i32
    %c0_i32_0 = arith.constant 0 : i32
    %c0_i32_1 = arith.constant 0 : i32
    return %c0_i32, %c0_i32_0 : i32, i32
  }
  func.func @transform_45(%arg0: i32) -> (i32, i32) {
    %c0_i32 = arith.constant 0 : i32
    %c0_i32_0 = arith.constant 0 : i32
    %c0_i32_1 = arith.constant 0 : i32
    return %c0_i32, %c0_i32_0 : i32, i32
  }
  func.func @transform_46(%arg0: i32) -> (i32, i32) {
    %c0_i32 = arith.constant 0 : i32
    %c0_i32_0 = arith.constant 0 : i32
    %c0_i32_1 = arith.constant 0 : i32
    return %c0_i32, %c0_i32_0 : i32, i32
  }
  func.func @transform_47(%arg0: i32) -> (i32, i32, i32) {
    %c0_i32 = arith.constant 0 : i32
    %c0_i32_0 = arith.constant 0 : i32
    %c0_i32_1 = arith.constant 0 : i32
    return %arg0, %c0_i32, %c0_i32_0 : i32, i32, i32
  }
}

</mosaic_0001>

<bundles_post_ra>
// kernel: forward.1
= control target key start
LH: loop header
LB: loop body
LE: loop exit
PB: predicated region body
PF: predicated region fallthrough
CT: control target
= control target key end

     0   :  { %s19882_s6 = smov 1   ;;  %s19883_s10 = smov 2   ;;  %s22944_s0 = inlined_call_operand.smem [shape: u32[48], index: -1, kind: input, shape index: {}] }
   0x1   :  { %s19992_s5 = sld [smem:[%s22944_s0]]   ;;  %s19884_s14 = smov 3  }
   0x2   :  { %s19997_s9 = sld [smem:[%s22944_s0 + %s19882_s6]]   ;;  %s19885_s18 = smov 4  }
   0x3   :  { %s20002_s13 = sld [smem:[%s22944_s0 + %s19883_s10]]   ;;  %s19886_s22 = smov 5  }
   0x4   :  { %s20007_s17 = sld [smem:[%s22944_s0 + %s19884_s14]]   ;;  %s19887_s26 = smov 6  }
   0x5   :  { %s20012_s21 = sld [smem:[%s22944_s0 + %s19885_s18]]   ;;  %s19888_s30 = smov 7  }
   0x6   :  { %s20017_s25 = sld [smem:[%s22944_s0 + %s19886_s22]]   ;;  %s19889_s4 = smov 8  }
   0x7   :  { %23073 = sst [smem:[#allocation80_spill]] %s19992_s5  ;;  %s19890_s10 = smov 9  }
   0x8   :  { %23074 = sst [smem:[#allocation81_spill]] %s19997_s9  ;;  %s19891_s15 = smov 10  }
   0x9   :  { %23075 = sst [smem:[#allocation82_spill]] %s20002_s13  ;;  %s19892_s20 = smov 11  }
   0xa   :  { %23076 = sst [smem:[#allocation83_spill]] %s20007_s17  ;;  %s19894_s1 = smov 13  }
   0xb   :  { %23077 = sst [smem:[#allocation84_spill]] %s20012_s21  ;;  %s19895_s7 = smov 14  }
   0xc   :  { %23078 = sst [smem:[#allocation85_spill]] %s20017_s25  ;;  %s19897_s22 = smov 16  }
   0xd   :  { %s20022_s29 = sld [smem:[%s22944_s0 + %s19887_s26]]   ;;  %s19893_s26 = smov 12  }
   0xe   :  { %s20027_s3 = sld [smem:[%s22944_s0 + %s19888_s30]]   ;;  %s19898_s28 = smov 17  }
   0xf   :  { %s20032_s8 = sld [smem:[%s22944_s0 + %s19889_s4]]  }
  0x10   :  { %s20037_s14 = sld [smem:[%s22944_s0 + %s19890_s10]]  }
  0x11   :  { %s20042_s19 = sld [smem:[%s22944_s0 + %s19891_s15]]   ;;  %s19896_s15 = smov 15  }
  0x12   :  { %s20047_s24 = sld [smem:[%s22944_s0 + %s19892_s20]]  }
  0x13   :  { %s20052_s30 = sld [smem:[%s22944_s0 + %s19893_s26]]  }
  0x14   :  { %23079 = sst [smem:[#allocation86_spill]] %s20027_s3 }
  0x15   :  { %23080 = sst [smem:[#allocation87_spill]] %s20032_s8 }
  0x16   :  { %23081 = sst [smem:[#allocation88_spill]] %s20037_s14 }
  0x17   :  { %s20057_s6 = sld [smem:[%s22944_s0 + %s19894_s1]]  }
  0x18   :  { %23082 = sst [smem:[#allocation89_spill]] %s20047_s24 }
  0x19   :  { %23083 = sst [smem:[#allocation90_spill]] %s20052_s30 }
  0x1a   :  { %s20062_s12 = sld [smem:[%s22944_s0 + %s19895_s7]]   ;;  %s19899_s7 = smov 18  }
  0x1b   :  { %s20067_s20 = sld [smem:[%s22944_s0 + %s19896_s15]]   ;;  %s19900_s15 = smov 19  }
  0x1c   :  { %s20072_s27 = sld [smem:[%s22944_s0 + %s19897_s22]]   ;;  %s19901_s22 = smov 20  }
  0x1d   :  { %23084 = sst [smem:[#allocation91_spill]] %s20057_s6 }
  0x1e   :  { %s20077_s4 = sld [smem:[%s22944_s0 + %s19898_s28]]   ;;  %s19902_s28 = smov 21  }
  0x1f   :  { %s20082_s6 = sld [smem:[%s22944_s0 + %s19899_s7]]   ;;  %s19903_s7 = smov 22  }
  0x20   :  { %23085 = sst [smem:[#allocation92_spill]] %s20062_s12 }
  0x21   :  { %23086 = sst [smem:[#allocation93_spill]] %s20067_s20 }
  0x22   :  { %s20087_s30 = sld [smem:[%s22944_s0 + %s19900_s15]]   ;;  %s19904_s15 = smov 23  }
  0x23   :  { %s20092_s5 = sld [smem:[%s22944_s0 + %s19901_s22]]   ;;  %s19905_s22 = smov 24  }
  0x24   :  { %23087 = sst [smem:[#allocation94_spill]] %s20077_s4 }
  0x25   :  { %23088 = sst [smem:[#allocation95_spill]] %s20082_s6 }
  0x26   :  { %s20097_s4 = sld [smem:[%s22944_s0 + %s19902_s28]]   ;;  %s19906_s28 = smov 25  }
  0x27   :  { %s20102_s20 = sld [smem:[%s22944_s0 + %s19903_s7]]   ;;  %s19907_s7 = smov 26  }
  0x28   :  { %23089 = sst [smem:[#allocation96_spill]] %s20087_s30 }
  0x29   :  { %23090 = sst [smem:[#allocation97_spill]] %s20092_s5 }
  0x2a   :  { %s20107_s30 = sld [smem:[%s22944_s0 + %s19904_s15]]   ;;  %s19908_s15 = smov 27  }
  0x2b   :  { %s20112_s24 = sld [smem:[%s22944_s0 + %s19905_s22]]   ;;  %s19909_s22 = smov 28  }
  0x2c   :  { %23091 = sst [smem:[#allocation98_spill]] %s20097_s4 }
  0x2d   :  { %23092 = sst [smem:[#allocation99_spill]] %s20102_s20 }
  0x2e   :  { %s20117_s4 = sld [smem:[%s22944_s0 + %s19906_s28]]   ;;  %s19910_s28 = smov 29  }
  0x2f   :  { %s20122_s20 = sld [smem:[%s22944_s0 + %s19907_s7]]   ;;  %s19911_s7 = smov 30  }
  0x30   :  { %23093 = sst [smem:[#allocation100_spill]] %s20107_s30 }
  0x31   :  { %s20127_s30 = sld [smem:[%s22944_s0 + %s19908_s15]]   ;;  %s19912_s15 = smov 31  }
  0x32   :  { %s20132_s14 = sld [smem:[%s22944_s0 + %s19909_s22]]   ;;  %s19913_s22 = smov 32  }
  0x33   :  { %s20142_s3 = sld [smem:[%s22944_s0 + %s19911_s7]]   ;;  %s19915_s7 = smov 34  }
  0x34   :  { %23094 = sst [smem:[#allocation101_spill]] %s20117_s4 }
  0x35   :  { %s20137_s4 = sld [smem:[%s22944_s0 + %s19910_s28]]   ;;  %s19914_s28 = smov 33  }
  0x36   :  { %s20152_s25 = sld [smem:[%s22944_s0 + %s19913_s22]]   ;;  %s19917_s22 = smov 36  }
  0x37   :  { %23095 = sst [smem:[#allocation102_spill]] %s20127_s30 }
  0x38   :  { %23096 = sst [smem:[#allocation103_spill]] %s20132_s14 }
  0x39   :  { %23098 = sst [smem:[#allocation105_spill]] %s20142_s3 }
  0x3a   :  { %s20147_s30 = sld [smem:[%s22944_s0 + %s19912_s15]]   ;;  %s19916_s15 = smov 35  }
  0x3b   :  { %23097 = sst [smem:[#allocation104_spill]] %s20137_s4 }
  0x3c   :  { %23099 = sst [smem:[#allocation106_spill]] %s20152_s25 }
  0x3d   :  { %s20157_s4 = sld [smem:[%s22944_s0 + %s19914_s28]]   ;;  %s19918_s28 = smov 37  }
  0x3e   :  { %s20162_s3 = sld [smem:[%s22944_s0 + %s19915_s7]]   ;;  %s19919_s7 = smov 38  }
  0x3f   :  { %s20167_s17 = sld [smem:[%s22944_s0 + %s19916_s15]]   ;;  %s19920_s15 = smov 39  }
  0x40   :  { %s20172_s25 = sld [smem:[%s22944_s0 + %s19917_s22]]   ;;  %s19921_s22 = smov 40  }
  0x41   :  { %s20177_s9 = sld [smem:[%s22944_s0 + %s19918_s28]]   ;;  %s19922_s28 = smov 41  }
  0x43   :  { %23100 = sst [smem:[#allocation107_spill]] %s20157_s4 }
  0x44   :  { %23101 = sst [smem:[#allocation108_spill]] %s20162_s3 }
  0x45   :  { %23102 = sst [smem:[#allocation109_spill]] %s20167_s17 }
  0x46   :  { %23103 = sst [smem:[#allocation110_spill]] %s20172_s25 }
  0x47   :  { %23104 = sst [smem:[#allocation111_spill]] %s20177_s9 }
  0x48   :  { %s20182_s3 = sld [smem:[%s22944_s0 + %s19919_s7]]   ;;  %s19923_s7 = smov 42  }
  0x49   :  { %s20187_s17 = sld [smem:[%s22944_s0 + %s19920_s15]]   ;;  %s19924_s15 = smov 43  }
  0x4a   :  { %s20192_s25 = sld [smem:[%s22944_s0 + %s19921_s22]]   ;;  %s19925_s22 = smov 44  }
  0x4b   :  { %s20197_s9 = sld [smem:[%s22944_s0 + %s19922_s28]]   ;;  %s19926_s28 = smov 45  }
  0x4e   :  { %23105 = sst [smem:[#allocation112_spill]] %s20182_s3 }
  0x4f   :  { %23106 = sst [smem:[#allocation113_spill]] %s20187_s17 }
  0x50   :  { %23107 = sst [smem:[#allocation114_spill]] %s20192_s25 }
  0x51   :  { %23108 = sst [smem:[#allocation115_spill]] %s20197_s9 }
  0x52   :  { %s20202_s3 = sld [smem:[%s22944_s0 + %s19923_s7]]   ;;  %s19927_s7 = smov 46  }
  0x53   :  { %s20207_s17 = sld [smem:[%s22944_s0 + %s19924_s15]]   ;;  %s19928_s15 = smov 47  }
  0x54   :  { %s20212_s25 = sld [smem:[%s22944_s0 + %s19925_s22]]  }
  0x55   :  { %s20217_s9 = sld [smem:[%s22944_s0 + %s19926_s28]]  }
  0x58   :  { %23109 = sst [smem:[#allocation116_spill]] %s20202_s3 }
  0x59   :  { %23110 = sst [smem:[#allocation117_spill]] %s20207_s17 }
  0x5a   :  { %s20222_s3 = sld [smem:[%s22944_s0 + %s19927_s7]]  }
  0x5b   :  { %23111 = sst [smem:[#allocation118_spill]] %s20217_s9 }
  0x5c   :  { %s20227_s17 = sld [smem:[%s22944_s0 + %s19928_s15]]  }
  0x5d   :  { %100 = vsyncpa [#allocation3], 0 }
  0x5e   :  { %101 = vsyncpa [#allocation6], 0 }
  0x5f   :  { %102 = vsyncpa [#allocation9], 0 }
  0x60   :  { %103 = vsyncpa [#allocation12], 0 }
  0x61   :  { %104 = vsyncpa [#allocation15], 0 }
  0x62   :  { %105 = vsyncpa [#allocation18], 0 }
  0x63   :  { %106 = vsyncpa [#allocation21], 0 }
  0x64   :  { %107 = vsyncpa [#allocation24], 0 }
  0x65   :  { %108 = vsyncpa [#allocation27], 0 }
  0x66   :  { %109 = vsyncpa [#allocation30], 0 }
  0x67   :  { %110 = vsyncpa [#allocation33], 0 }
  0x68   :  { %111 = vsyncpa [#allocation36], 0 }
  0x69   :  { %112 = vsyncpa [#allocation39], 0 }
  0x6a   :  { %113 = vsyncpa [#allocation42], 0 }
  0x6b   :  { %114 = vsyncpa [#allocation45], 0 }
  0x6c   :  { %115 = vsyncpa [#allocation48], 0 }
  0x6d   :  { %116 = vsyncpa [#allocation51], 0 }
  0x6e   :  { %117 = vsyncpa [#allocation54], 0 }
  0x6f   :  { %118 = vsyncpa [#allocation57], 0 }
  0x70   :  { %119 = vsyncpa [#allocation4], 0 }
  0x71   :  { %121 = vsyncpa [#allocation4 + $0x1], 0  ;;  %s20229_s0 = smov 0   ;;  %s20231_s22 = smov 0  }
  0x72   :  { %s20233_s23 = smov 0   ;;  %s20235_s26 = smov 0  }
  0x73 LB: > { %23112 = sst [smem:[#allocation119_spill]] %s19876_s23  ;;  %s20250_s28 = sadd.s32 4294967295, %s19880_s26   ;;  %s19880_s26 = sphi %s20235_s26, %s23396_s26   ;;  %s19876_s23 = sphi %s20233_s23, %s23398_s23   ;;  %s19872_s22 = sphi %s20231_s22, %s23400_s22   ;;  %s19868_s0 = sphi %s20229_s0, %s23399_s0  }
  0x74   : > { %s15112_s1 = sadd.s32 4294967294, %s19880_s26   ;;  %s20254_s2 = sadd.s32 1, %s19880_s26  }
  0x75   : > { %23113 = sst [smem:[#allocation120_spill]] %s20254_s2  ;;  %s1126_s7 = sadd.s32 1, %s19876_s23 }
  0x76   : > { %s1123_s10 = ssub.s32 %s19880_s26, %s20254_s2  ;;  %p1136_p0 = scmp.ne.s32.totalorder %s19876_s23, %s19872_s22 }
  0x77   : > { %p1124_p1 = scmp.eq.s32.totalorder %s1123_s10, 0  ;;  %p1137_p2 = scmp.eq.s32.totalorder %s20250_s28, 1 }
  0x78   : > { %p1142_p3 = scmp.ne.s32.totalorder %s19872_s22, %s19868_s0  ;;  %p1143_p4 = scmp.eq.s32.totalorder %s15112_s1, 1 }
  0x79   : > { %s20265_s11 = scalar_select %p1124_p1, %s19876_s23, %s1126_s7  }
  0x7a   : > { %p20267_p5 = por %p1137_p2, %p1136_p0  ;;  %p20271_p6 = por %p1143_p4, %p1142_p3 }
  0x7b   : > { %23114 = sst [smem:[#allocation121_spill]] %s20265_s11  ;;  %p15113_p7 = scmp.ge.s32.totalorder %s19880_s26, 1 }
  0x7c   : > { %s23115_s15 = scalar_select %p20267_p5, 1, 0 }
  0x7d   : > { %s23116_s16 = scalar_select %p20271_p6, 1, 0 }
  0x7e   : > { %p1150_p8 = scmp.lt.s32.totalorder %s19880_s26, 3 }
  0x7f   : > { %23117 = sst [smem:[#allocation122_spill]] %s23116_s16 }
  0x80   : > { %p20277_p9 = pnand %p15113_p7, %p1150_p8 }
  0x81   : > { %p17306_p10 = scmp.eq.s32.totalorder (!%p20277_p9), %s20250_s28, 0  ;;  %s19929_s1 = smov (!%p20277_p9), [#allocation5]  }
  0x82   : > { %1154 = sbr.rel (%p20277_p9) target bundleno = 565 (0x235), region = 12  ;;  %s1176_s7 = sshll.u32 (!%p20277_p9), %s19929_s1, 4  ;;  %s1177_s7 = int_to_ptr.vmem [resolvable:$true] %s1176_s7 }
  0x83   : > { %s19930_s10 = smov (!%p20277_p9), [#allocation8]   ;;  %s18866_s23 = scalar_lea.vmem (!%p20277_p9), %s1177_s7, 16 }
  0x84   : > { %s1200_s11 = sshll.u32 (!%p20277_p9), %s19930_s10, 4  ;;  %p18867_p11 = scmp.ne.s32.totalorder (!%p20277_p9), %s1177_s7, %s18866_s23  ;;  %s1201_s11 = int_to_ptr.vmem [resolvable:$true] %s1200_s11 }
  0x85   : > { %s18872_s2 = scalar_lea.vmem (!%p20277_p9), %s1177_s7, 32  ;;  %p18873_p0 = scmp.lt.s32.totalorder (!%p20277_p9), %s1177_s7, %s1177_s7 }
  0x86   : > { %p18868_p12 = pnand (!%p20277_p9), %p18867_p11, %p17306_p10  ;;  %p18874_p1 = scmp.lt.s32.totalorder (!%p20277_p9), %s18872_s2, %s18866_s23 }
  0x88   : > { %p18869_p13 = pneg %p18868_p12  ;;  %p18875_p2 = por %p18874_p1, %p18873_p0 }
  0x8a   : > { %p18876_p3 = pnand %p18875_p2, %p18869_p13 }
  0x8c   : > { %18879 = shalt.err (!%p18876_p3)
}
  0x8d   : > { %s23119_s13 = sld [smem:[#allocation82_spill]]  ;;  %s18890_s1 = scalar_lea.vmem %s1201_s11, 16 }
  0x8e   : > { %p18891_p4 = scmp.ne.s32.totalorder %s1201_s11, %s18890_s1  ;;  %s18896_s10 = scalar_lea.vmem %s1201_s11, 32 }
  0x8f   : > { %p18897_p11 = scmp.lt.s32.totalorder %s1201_s11, %s1201_s11  ;;  %p18898_p12 = scmp.lt.s32.totalorder %s18896_s10, %s18890_s1 }
  0x90   : > { %p18892_p7 = pnand %p18891_p4, %p17306_p10 }
  0x91   : > { %p18899_p6 = por %p18898_p12, %p18897_p11 }
  0x92   : > { %p18893_p8 = pneg %p18892_p7 }
  0x93   : > { %17155 = dma.hbm_to_vmem [thread:$0]  (%p17306_p10), %s23119_s13, 16, %s1177_s7, [#allocation6]  }
  0x94   : > { %p18900_p5 = pnand %p18899_p6, %p18893_p8 }
  0x96   : > { %18903 = shalt.err (!%p18900_p5)
}
  0x97   : > { %s23120_s21 = sld [smem:[#allocation84_spill]]  ;;  %s19931_s23 = smov [#allocation11]  }
  0x98   : > { %s1223_s2 = sshll.u32 %s19931_s23, 4  ;;  %s19932_s7 = smov [#allocation14]   ;;  %s1224_s2 = int_to_ptr.vmem [resolvable:$true] %s1223_s2 }
  0x99   : > { %s1250_s13 = sshll.u32 %s19932_s7, 4  ;;  %s18914_s16 = scalar_lea.vmem %s1224_s2, 9216  ;;  %s1251_s13 = int_to_ptr.vmem [resolvable:$true] %s1250_s13 }
  0x9a   : > { %p18915_p13 = scmp.ne.s32.totalorder %s1224_s2, %s18914_s16  ;;  %p18921_p2 = scmp.lt.s32.totalorder %s1224_s2, %s1224_s2 }
  0x9b   : > { %p18922_p3 = scmp.lt.s32.totalorder %s18914_s16, %s18914_s16 }
  0x9c   : > { %p18916_p0 = pnand %p18915_p13, %p17306_p10 }
  0x9d   : > { %17159 = dma.hbm_to_vmem [thread:$0]  (%p17306_p10), %s23120_s21, 16, %s1201_s11, [#allocation9]  }
  0x9e   : > { %p18917_p1 = pneg %p18916_p0  ;;  %p18923_p4 = por %p18922_p3, %p18921_p2 }
  0xa0   : > { %p18924_p6 = pnand %p18923_p4, %p18917_p1 }
  0xa2   : > { %18927 = shalt.err (!%p18924_p6)
}
  0xa3   : > { %s22957_s1 = smov 128   ;;  %s22959_s11 = smov 8  }
  0xa4   : > { %17163 = dma.hbm_to_vmem [thread:$0]  (%p17306_p10), %s20022_s29, 9216, %s1224_s2, [#allocation12], %s22957_s1, %s22957_s1, %s22959_s11  }
  0xa5   : > { %s18938_s10 = scalar_lea.vmem %s1251_s13, 16  ;;  %s18944_s16 = scalar_lea.vmem %s1251_s13, 32 }
  0xa6   : > { %p18939_p5 = scmp.ne.s32.totalorder %s1251_s13, %s18938_s10  ;;  %p18945_p11 = scmp.lt.s32.totalorder %s1251_s13, %s1251_s13 }
  0xa7   : > { %p18946_p12 = scmp.lt.s32.totalorder %s18944_s16, %s18938_s10 }
  0xa8   : > { %p18940_p7 = pnand %p18939_p5, %p17306_p10 }
  0xa9   : > { %p18947_p13 = por %p18946_p12, %p18945_p11 }
  0xaa   : > { %p18941_p8 = pneg %p18940_p7 }
  0xac   : > { %p18948_p0 = pnand %p18947_p13, %p18941_p8 }
  0xae   : > { %18951 = shalt.err (!%p18948_p0)
}
  0xaf   : > { %s23121_s8 = sld [smem:[#allocation87_spill]]  ;;  %s19935_s23 = smov [#allocation17]  }
  0xb0   : > { %s1274_s7 = sshll.u32 %s19935_s23, 4  ;;  %s19936_s2 = smov [#allocation20]   ;;  %s1275_s7 = int_to_ptr.vmem [resolvable:$true] %s1274_s7 }
  0xb1   : > { %s1303_s1 = sshll.u32 %s19936_s2, 4  ;;  %s18962_s11 = scalar_lea.vmem %s1275_s7, 16  ;;  %s1304_s1 = int_to_ptr.vmem [resolvable:$true] %s1303_s1 }
  0xb2   : > { %p18963_p1 = scmp.ne.s32.totalorder %s1275_s7, %s18962_s11  ;;  %s18968_s21 = scalar_lea.vmem %s1275_s7, 32 }
  0xb3   : > { %p18969_p4 = scmp.lt.s32.totalorder %s1275_s7, %s1275_s7  ;;  %p18970_p6 = scmp.lt.s32.totalorder %s18968_s21, %s18962_s11 }
  0xb4   : > { %p18964_p2 = pnand %p18963_p1, %p17306_p10 }
  0xb5   : > { %17167 = dma.hbm_to_vmem [thread:$0]  (%p17306_p10), %s23121_s8, 16, %s1251_s13, [#allocation15]  }
  0xb6   : > { %p18965_p3 = pneg %p18964_p2  ;;  %p18971_p5 = por %p18970_p6, %p18969_p4 }
  0xb8   : > { %p18972_p7 = pnand %p18971_p5, %p18965_p3 }
  0xba   : > { %18975 = shalt.err (!%p18972_p7)
}
  0xbb   : > { %17171 = dma.hbm_to_vmem [thread:$0]  (%p17306_p10), %s20042_s19, 16, %s1275_s7, [#allocation18]  }
  0xbc   : > { %s18986_s13 = scalar_lea.vmem %s1304_s1, 19200  ;;  %p18993_p13 = scmp.lt.s32.totalorder %s1304_s1, %s1304_s1 }
  0xbd   : > { %p18987_p8 = scmp.ne.s32.totalorder %s1304_s1, %s18986_s13  ;;  %p18994_p0 = scmp.lt.s32.totalorder %s18986_s13, %s18986_s13 }
  0xbf   : > { %p18988_p11 = pnand %p18987_p8, %p17306_p10  ;;  %p18995_p1 = por %p18994_p0, %p18993_p13 }
  0xc1   : > { %p18989_p12 = pneg %p18988_p11 }
  0xc3   : > { %p18996_p2 = pnand %p18995_p1, %p18989_p12 }
  0xc5   : > { %18999 = shalt.err (!%p18996_p2)
}
  0xc6   : > { %s22961_s21 = smov 384   ;;  %s23122_s12 = sld [smem:[#allocation92_spill]] }
  0xc7   : > { %s22963_s11 = smov 24   ;;  %s19939_s10 = smov [#allocation23]  }
  0xc8   : > { %s1330_s16 = sshll.u32 %s19939_s10, 4  ;;  %s19940_s23 = smov [#allocation26]   ;;  %s1331_s16 = int_to_ptr.vmem [resolvable:$true] %s1330_s16 }
  0xc9   : > { %s1354_s7 = sshll.u32 %s19940_s23, 4  ;;  %s19010_s2 = scalar_lea.vmem %s1331_s16, 48  ;;  %s1355_s7 = int_to_ptr.vmem [resolvable:$true] %s1354_s7 }
  0xca   : > { %p19011_p3 = scmp.ne.s32.totalorder %s1331_s16, %s19010_s2  ;;  %s19016_s13 = scalar_lea.vmem %s1331_s16, 64 }
  0xcb   : > { %p19017_p5 = scmp.lt.s32.totalorder %s1331_s16, %s1331_s16  ;;  %p19018_p7 = scmp.lt.s32.totalorder %s19016_s13, %s19010_s2 }
  0xcc   : > { %17175 = dma.hbm_to_vmem [thread:$0]  (%p17306_p10), %s23122_s12, 19200, %s1304_s1, [#allocation21], %s22961_s21, %s22961_s21, %s22963_s11  }
  0xcd   : > { %p19012_p4 = pnand %p19011_p3, %p17306_p10  ;;  %p19019_p8 = por %p19018_p7, %p19017_p5 }
  0xcf   : > { %p19013_p6 = pneg %p19012_p4 }
  0xd1   : > { %p19020_p11 = pnand %p19019_p8, %p19013_p6 }
  0xd3   : > { %19023 = shalt.err (!%p19020_p11)
}
  0xd4   : > { %17179 = dma.hbm_to_vmem [thread:$0]  (%p17306_p10), %s20072_s27, 48, %s1331_s16, [#allocation24]  }
  0xd5   : > { %s19034_s1 = scalar_lea.vmem %s1355_s7, 16  ;;  %s19040_s10 = scalar_lea.vmem %s1355_s7, 32 }
  0xd6   : > { %p19035_p12 = scmp.ne.s32.totalorder %s1355_s7, %s19034_s1  ;;  %p19041_p1 = scmp.lt.s32.totalorder %s1355_s7, %s1355_s7 }
  0xd7   : > { %p19042_p2 = scmp.lt.s32.totalorder %s19040_s10, %s19034_s1 }
  0xd8   : > { %p19036_p13 = pnand %p19035_p12, %p17306_p10 }
  0xd9   : > { %p19043_p3 = por %p19042_p2, %p19041_p1 }
  0xda   : > { %p19037_p0 = pneg %p19036_p13 }
  0xdc   : > { %p19044_p4 = pnand %p19043_p3, %p19037_p0 }
  0xde   : > { %19047 = shalt.err (!%p19044_p4)
}
  0xdf   : > { %s23123_s6 = sld [smem:[#allocation95_spill]]  ;;  %s19941_s23 = smov [#allocation29]  }
  0xe0   : > { %s1378_s2 = sshll.u32 %s19941_s23, 4  ;;  %s19942_s16 = smov [#allocation32]   ;;  %s1379_s2 = int_to_ptr.vmem [resolvable:$true] %s1378_s2 }
  0xe1   : > { %s1408_s13 = sshll.u32 %s19942_s16, 4  ;;  %s19058_s21 = scalar_lea.vmem %s1379_s2, 48  ;;  %s1409_s13 = int_to_ptr.vmem [resolvable:$true] %s1408_s13 }
  0xe2   : > { %p19059_p6 = scmp.ne.s32.totalorder %s1379_s2, %s19058_s21  ;;  %s19064_s11 = scalar_lea.vmem %s1379_s2, 64 }
  0xe3   : > { %p19065_p8 = scmp.lt.s32.totalorder %s1379_s2, %s1379_s2  ;;  %p19066_p11 = scmp.lt.s32.totalorder %s19064_s11, %s19058_s21 }
  0xe4   : > { %p19060_p5 = pnand %p19059_p6, %p17306_p10 }
  0xe5   : > { %17183 = dma.hbm_to_vmem [thread:$0]  (%p17306_p10), %s23123_s6, 16, %s1355_s7, [#allocation27]  }
  0xe6   : > { %p19061_p7 = pneg %p19060_p5  ;;  %p19067_p12 = por %p19066_p11, %p19065_p8 }
  0xe8   : > { %p19068_p13 = pnand %p19067_p12, %p19061_p7 }
  0xea   : > { %19071 = shalt.err (!%p19068_p13)
}
  0xeb   : > { %s23124_s5 = sld [smem:[#allocation97_spill]]  ;;  %s19082_s7 = scalar_lea.vmem %s1409_s13, 48 }
  0xec   : > { %p19083_p0 = scmp.ne.s32.totalorder %s1409_s13, %s19082_s7  ;;  %s19088_s1 = scalar_lea.vmem %s1409_s13, 64 }
  0xed   : > { %p19089_p3 = scmp.lt.s32.totalorder %s1409_s13, %s1409_s13  ;;  %p19090_p4 = scmp.lt.s32.totalorder %s19088_s1, %s19082_s7 }
  0xee   : > { %p19084_p1 = pnand %p19083_p0, %p17306_p10 }
  0xef   : > { %p19091_p6 = por %p19090_p4, %p19089_p3 }
  0xf0   : > { %p19085_p2 = pneg %p19084_p1 }
  0xf1   : > { %17187 = dma.hbm_to_vmem [thread:$0]  (%p17306_p10), %s23124_s5, 48, %s1379_s2, [#allocation30]  }
  0xf2   : > { %p19092_p5 = pnand %p19091_p6, %p19085_p2 }
  0xf4   : > { %19095 = shalt.err (!%p19092_p5)
}
  0xf5   : > { %17191 = dma.hbm_to_vmem [thread:$0]  (%p17306_p10), %s20112_s24, 48, %s1409_s13, [#allocation33]  }
  0xf6   : > { %s19943_s21 = smov [#allocation35]   ;;  %s19944_s10 = smov [#allocation38]  }
  0xf7   : > { %s1432_s11 = sshll.u32 %s19943_s21, 4  ;;  %s1456_s23 = sshll.u32 %s19944_s10, 4  ;;  %s1433_s11 = int_to_ptr.vmem [resolvable:$true] %s1432_s11  ;;  %s1457_s23 = int_to_ptr.vmem [resolvable:$true] %s1456_s23 }
  0xf8   : > { %s19106_s2 = scalar_lea.vmem %s1433_s11, 16  ;;  %s19112_s16 = scalar_lea.vmem %s1433_s11, 32 }
  0xf9   : > { %p19107_p7 = scmp.ne.s32.totalorder %s1433_s11, %s19106_s2  ;;  %p19113_p12 = scmp.lt.s32.totalorder %s1433_s11, %s1433_s11 }
  0xfa   : > { %p19114_p13 = scmp.lt.s32.totalorder %s19112_s16, %s19106_s2 }
  0xfb   : > { %p19108_p8 = pnand %p19107_p7, %p17306_p10 }
  0xfc   : > { %p19115_p0 = por %p19114_p13, %p19113_p12 }
  0xfd   : > { %p19109_p11 = pneg %p19108_p8 }
  0xff   : > { %p19116_p1 = pnand %p19115_p0, %p19109_p11 }
 0x101   : > { %19119 = shalt.err (!%p19116_p1)
}
 0x102   : > { %17195 = dma.hbm_to_vmem [thread:$0]  (%p17306_p10), %s20122_s20, 16, %s1433_s11, [#allocation36]  }
 0x103   : > { %s19130_s13 = scalar_lea.vmem %s1457_s23, 48  ;;  %s19136_s7 = scalar_lea.vmem %s1457_s23, 64 }
 0x104   : > { %p19131_p2 = scmp.ne.s32.totalorder %s1457_s23, %s19130_s13  ;;  %p19137_p6 = scmp.lt.s32.totalorder %s1457_s23, %s1457_s23 }
 0x105   : > { %p19138_p5 = scmp.lt.s32.totalorder %s19136_s7, %s19130_s13 }
 0x106   : > { %p19132_p3 = pnand %p19131_p2, %p17306_p10 }
 0x107   : > { %p19139_p7 = por %p19138_p5, %p19137_p6 }
 0x108   : > { %p19133_p4 = pneg %p19132_p3 }
 0x10a   : > { %p19140_p8 = pnand %p19139_p7, %p19133_p4 }
 0x10c   : > { %19143 = shalt.err (!%p19140_p8)
}
 0x10d   : > { %s23125_s14 = sld [smem:[#allocation103_spill]]  ;;  %s19945_s1 = smov [#allocation41]  }
 0x10e   : > { %s1483_s21 = sshll.u32 %s19945_s1, 4  ;;  %s19946_s11 = smov [#allocation44]   ;;  %s1484_s21 = int_to_ptr.vmem [resolvable:$true] %s1483_s21 }
 0x10f   : > { %s1504_s10 = sshll.u32 %s19946_s11, 4  ;;  %s19154_s2 = scalar_lea.vmem %s1484_s21, 32  ;;  %s1505_s10 = int_to_ptr.vmem [resolvable:$true] %s1504_s10 }
 0x110   : > { %p19155_p11 = scmp.ne.s32.totalorder %s1484_s21, %s19154_s2  ;;  %p19161_p0 = scmp.lt.s32.totalorder %s1484_s21, %s1484_s21 }
 0x111   : > { %p19162_p1 = scmp.lt.s32.totalorder %s19154_s2, %s19154_s2 }
 0x112   : > { %p19156_p12 = pnand %p19155_p11, %p17306_p10 }
 0x113   : > { %17199 = dma.hbm_to_vmem [thread:$0]  (%p17306_p10), %s23125_s14, 48, %s1457_s23, [#allocation39]  }
 0x114   : > { %p19157_p13 = pneg %p19156_p12  ;;  %p19163_p2 = por %p19162_p1, %p19161_p0 }
 0x116   : > { %p19164_p3 = pnand %p19163_p2, %p19157_p13 }
 0x118   : > { %19167 = shalt.err (!%p19164_p3)
}
 0x119   : > { %17203 = dma.hbm_to_vmem [thread:$0]  (%p17306_p10), %s20147_s30, 32, %s1484_s21, [#allocation42]  }
 0x11a   : > { %s19178_s23 = scalar_lea.vmem %s1505_s10, 6144  ;;  %p19185_p7 = scmp.lt.s32.totalorder %s1505_s10, %s1505_s10 }
 0x11b   : > { %p19179_p4 = scmp.ne.s32.totalorder %s1505_s10, %s19178_s23  ;;  %p19186_p8 = scmp.lt.s32.totalorder %s19178_s23, %s19178_s23 }
 0x11d   : > { %p19180_p6 = pnand %p19179_p4, %p17306_p10  ;;  %p19187_p11 = por %p19186_p8, %p19185_p7 }
 0x11f   : > { %p19181_p5 = pneg %p19180_p6 }
 0x121   : > { %p19188_p12 = pnand %p19187_p11, %p19181_p5 }
 0x123   : > { %19191 = shalt.err (!%p19188_p12)
}
 0x124   : > { %s23126_s16 = smov 8   ;;  %s23127_s13 = smov 128  }
 0x125   : > { %s23128_s4 = sld [smem:[#allocation107_spill]]  ;;  %s19947_s7 = smov [#allocation47]  }
 0x126   : > { %s1532_s1 = sshll.u32 %s19947_s7, 4  ;;  %s19948_s21 = smov [#allocation50]   ;;  %s1533_s1 = int_to_ptr.vmem [resolvable:$true] %s1532_s1 }
 0x127   : > { %s1560_s11 = sshll.u32 %s19948_s21, 4  ;;  %s19202_s2 = scalar_lea.vmem %s1533_s1, 192  ;;  %s1561_s11 = int_to_ptr.vmem [resolvable:$true] %s1560_s11 }
 0x128   : > { %p19203_p13 = scmp.ne.s32.totalorder %s1533_s1, %s19202_s2  ;;  %p19209_p2 = scmp.lt.s32.totalorder %s1533_s1, %s1533_s1 }
 0x129   : > { %p19210_p3 = scmp.lt.s32.totalorder %s19202_s2, %s19202_s2 }
 0x12a   : > { %p19204_p0 = pnand %p19203_p13, %p17306_p10 }
 0x12b   : > { %17207 = dma.hbm_to_vmem [thread:$0]  (%p17306_p10), %s23128_s4, 6144, %s1505_s10, [#allocation45], %s23127_s13, %s23127_s13, %s23126_s16  }
 0x12c   : > { %p19205_p1 = pneg %p19204_p0  ;;  %p19211_p4 = por %p19210_p3, %p19209_p2 }
 0x12e   : > { %p19212_p6 = pnand %p19211_p4, %p19205_p1 }
 0x130   : > { %19215 = shalt.err (!%p19212_p6)
}
 0x131   : > { %s23129_s23 = sld [smem:[#allocation110_spill]]  ;;  %s19226_s10 = scalar_lea.vmem %s1561_s11, 192 }
 0x132   : > { %p19227_p5 = scmp.ne.s32.totalorder %s1561_s11, %s19226_s10  ;;  %p19233_p11 = scmp.lt.s32.totalorder %s1561_s11, %s1561_s11 }
 0x133   : > { %p19234_p12 = scmp.lt.s32.totalorder %s19226_s10, %s19226_s10 }
 0x134   : > { %p19228_p7 = pnand %p19227_p5, %p17306_p10 }
 0x135   : > { %p19235_p13 = por %p19234_p12, %p19233_p11 }
 0x136   : > { %p19229_p8 = pneg %p19228_p7 }
 0x137   : > { %17211 = dma.hbm_to_vmem [thread:$0]  (%p17306_p10), %s23129_s23, 192, %s1533_s1, [#allocation48]  }
 0x138   : > { %p19236_p0 = pnand %p19235_p13, %p19229_p8 }
 0x13a   : > { %19239 = shalt.err (!%p19236_p0)
}
 0x13b   : > { %s23130_s7 = sld [smem:[#allocation114_spill]]  ;;  %s19949_s21 = smov [#allocation53]  }
 0x13c   : > { %s1584_s2 = sshll.u32 %s19949_s21, 4  ;;  %s1585_s2 = int_to_ptr.vmem [resolvable:$true] %s1584_s2 }
 0x13d   : > { %s19250_s1 = scalar_lea.vmem %s1585_s2, 32  ;;  %p19257_p4 = scmp.lt.s32.totalorder %s1585_s2, %s1585_s2 }
 0x13e   : > { %p19251_p1 = scmp.ne.s32.totalorder %s1585_s2, %s19250_s1  ;;  %p19258_p6 = scmp.lt.s32.totalorder %s19250_s1, %s19250_s1 }
 0x140   : > { %p19252_p2 = pnand %p19251_p1, %p17306_p10  ;;  %p19259_p5 = por %p19258_p6, %p19257_p4 }
 0x141   : > { %17215 = dma.hbm_to_vmem [thread:$0]  (%p17306_p10), %s23130_s7, 192, %s1561_s11, [#allocation51]  }
 0x142   : > { %p19253_p3 = pneg %p19252_p2 }
 0x144   : > { %p19260_p7 = pnand %p19259_p5, %p19253_p3 }
 0x146   : > { %19263 = shalt.err (!%p19260_p7)
}
 0x147   : > { %s23131_s23 = sld [smem:[#allocation116_spill]]  ;;  %s19950_s10 = smov [#allocation56]  }
 0x148   : > { %s1610_s11 = sshll.u32 %s19950_s10, 4  ;;  %s19951_s7 = smov [#allocation2]   ;;  %s1611_s11 = int_to_ptr.vmem [resolvable:$true] %s1610_s11 }
 0x149   : > { %s1162_s21 = sshll.u32 %s19951_s7, 4  ;;  %s19274_s4 = scalar_lea.vmem %s1611_s11, 10240  ;;  %s1163_s21 = int_to_ptr.vmem [resolvable:$true] %s1162_s21 }
 0x14a   : > { %p19275_p8 = scmp.ne.s32.totalorder %s1611_s11, %s19274_s4  ;;  %p19281_p13 = scmp.lt.s32.totalorder %s1611_s11, %s1611_s11 }
 0x14b   : > { %p19282_p0 = scmp.lt.s32.totalorder %s19274_s4, %s19274_s4 }
 0x14c   : > { %p19276_p11 = pnand %p19275_p8, %p17306_p10 }
 0x14d   : > { %17219 = dma.hbm_to_vmem [thread:$0]  (%p17306_p10), %s23131_s23, 32, %s1585_s2, [#allocation54]  }
 0x14e   : > { %p19277_p12 = pneg %p19276_p11  ;;  %p19283_p1 = por %p19282_p0, %p19281_p13 }
 0x150   : > { %p19284_p2 = pnand %p19283_p1, %p19277_p12 }
 0x152   : > { %19287 = shalt.err (!%p19284_p2)
}
 0x153   : > { %s22965_s1 = smov 64   ;;  %s23132_s9 = sld [smem:[#allocation118_spill]] }
 0x154   : > { %s22967_s2 = smov 4   ;;  %s19298_s23 = scalar_lea.vmem %s1163_s21, 1024 }
 0x155   : > { %p19299_p3 = scmp.ne.s32.totalorder %s1163_s21, %s19298_s23  ;;  %p19305_p5 = scmp.lt.s32.totalorder %s1163_s21, %s1163_s21 }
 0x156   : > { %p19306_p7 = scmp.lt.s32.totalorder %s19298_s23, %s19298_s23 }
 0x157   : > { %p19300_p4 = pnand %p19299_p3, %p17306_p10 }
 0x158   : > { %p19307_p8 = por %p19306_p7, %p19305_p5 }
 0x159   : > { %17223 = dma.hbm_to_vmem [thread:$0]  (%p17306_p10), %s23132_s9, 10240, %s1611_s11, [#allocation57], %s22965_s1, %s22965_s1, %s22967_s2  }
 0x15a   : > { %p19301_p6 = pneg %p19300_p4 }
 0x15c   : > { %p19308_p11 = pnand %p19307_p8, %p19301_p6 }
 0x15e   : > { %19311 = shalt.err (!%p19308_p11)
}
 0x15f   : > { %s23133_s4 = sld [smem:[#allocation81_spill]]  ;;  %s19954_s10 = smov [#allocation7]  }
 0x160   : > { %s1186_s11 = sshll.u32 %s19954_s10, 4  ;;  %s19955_s7 = smov [#allocation10]   ;;  %s1187_s11 = int_to_ptr.vmem [resolvable:$true] %s1186_s11 }
 0x161   : > { %s1210_s5 = sshll.u32 %s19955_s7, 4  ;;  %s19322_s6 = scalar_lea.vmem %s1187_s11, 1024  ;;  %s1211_s5 = int_to_ptr.vmem [resolvable:$true] %s1210_s5 }
 0x162   : > { %p19323_p12 = scmp.ne.s32.totalorder %s1187_s11, %s19322_s6  ;;  %p19329_p1 = scmp.lt.s32.totalorder %s1187_s11, %s1187_s11 }
 0x163   : > { %p19330_p2 = scmp.lt.s32.totalorder %s19322_s6, %s19322_s6 }
 0x164   : > { %p19324_p13 = pnand %p19323_p12, %p17306_p10 }
 0x165   : > { %17153 = dma.hbm_to_vmem [thread:$0]  (%p17306_p10), %s23133_s4, 1024, %s1163_s21, [#allocation3], %s22965_s1, %s22965_s1, %s22967_s2  }
 0x166   : > { %p19325_p0 = pneg %p19324_p13  ;;  %p19331_p3 = por %p19330_p2, %p19329_p1 }
 0x168   : > { %p19332_p4 = pnand %p19331_p3, %p19325_p0 }
 0x16a   : > { %19335 = shalt.err (!%p19332_p4)
}
 0x16b   : > { %s23134_s21 = sld [smem:[#allocation83_spill]]  ;;  %s19346_s23 = scalar_lea.vmem %s1211_s5, 9216 }
 0x16c   : > { %p19347_p6 = scmp.ne.s32.totalorder %s1211_s5, %s19346_s23  ;;  %p19353_p8 = scmp.lt.s32.totalorder %s1211_s5, %s1211_s5 }
 0x16d   : > { %p19354_p11 = scmp.lt.s32.totalorder %s19346_s23, %s19346_s23 }
 0x16e   : > { %p19348_p5 = pnand %p19347_p6, %p17306_p10 }
 0x16f   : > { %p19355_p12 = por %p19354_p11, %p19353_p8 }
 0x170   : > { %p19349_p7 = pneg %p19348_p5 }
 0x171   : > { %17157 = dma.hbm_to_vmem [thread:$0]  (%p17306_p10), %s23134_s21, 1024, %s1187_s11, [#allocation6], %s22965_s1, %s22965_s1, %s22967_s2  }
 0x172   : > { %p19356_p13 = pnand %p19355_p12, %p19349_p7 }
 0x174   : > { %19359 = shalt.err (!%p19356_p13)
}
 0x175   : > { %s23135_s6 = sld [smem:[#allocation85_spill]]  ;;  %s19956_s4 = smov [#allocation13]  }
 0x176   : > { %s1236_s10 = sshll.u32 %s19956_s4, 4  ;;  %s1237_s10 = int_to_ptr.vmem [resolvable:$true] %s1236_s10 }
 0x177   : > { %s19370_s11 = scalar_lea.vmem %s1237_s10, 2560  ;;  %p19377_p3 = scmp.lt.s32.totalorder %s1237_s10, %s1237_s10 }
 0x178   : > { %p19371_p0 = scmp.ne.s32.totalorder %s1237_s10, %s19370_s11  ;;  %p19378_p4 = scmp.lt.s32.totalorder %s19370_s11, %s19370_s11 }
 0x17a   : > { %p19372_p1 = pnand %p19371_p0, %p17306_p10  ;;  %p19379_p6 = por %p19378_p4, %p19377_p3 }
 0x17b   : > { %17161 = dma.hbm_to_vmem [thread:$0]  (%p17306_p10), %s23135_s6, 9216, %s1211_s5, [#allocation9], %s23127_s13, %s23127_s13, %s23126_s16  }
 0x17c   : > { %p19373_p2 = pneg %p19372_p1 }
 0x17e   : > { %p19380_p5 = pnand %p19379_p6, %p19373_p2 }
 0x180   : > { %19383 = shalt.err (!%p19380_p5)
}
 0x181   : > { %s19957_s7 = smov 320   ;;  %s23136_s21 = sld [smem:[#allocation86_spill]] }
 0x182   : > { %s19958_s23 = smov 20   ;;  %s19959_s5 = smov [#allocation16]  }
 0x183   : > { %s1260_s6 = sshll.u32 %s19959_s5, 4  ;;  %s19960_s4 = smov [#allocation19]   ;;  %s1261_s6 = int_to_ptr.vmem [resolvable:$true] %s1260_s6 }
 0x184   : > { %s1284_s1 = sshll.u32 %s19960_s4, 4  ;;  %s19394_s2 = scalar_lea.vmem %s1261_s6, 1024  ;;  %s1285_s1 = int_to_ptr.vmem [resolvable:$true] %s1284_s1 }
 0x185   : > { %p19395_p7 = scmp.ne.s32.totalorder %s1261_s6, %s19394_s2  ;;  %p19401_p12 = scmp.lt.s32.totalorder %s1261_s6, %s1261_s6 }
 0x186   : > { %p19402_p13 = scmp.lt.s32.totalorder %s19394_s2, %s19394_s2 }
 0x187   : > { %17165 = dma.hbm_to_vmem [thread:$0]  (%p17306_p10), %s23136_s21, 2560, %s1237_s10, [#allocation12], %s19957_s7, %s19957_s7, %s19958_s23  }
 0x188   : > { %p19396_p8 = pnand %p19395_p7, %p17306_p10  ;;  %p19403_p0 = por %p19402_p13, %p19401_p12 }
 0x18a   : > { %p19397_p11 = pneg %p19396_p8 }
 0x18c   : > { %p19404_p1 = pnand %p19403_p0, %p19397_p11 }
 0x18e   : > { %19407 = shalt.err (!%p19404_p1)
}
 0x18f   : > { %s23137_s11 = smov 4   ;;  %s23138_s10 = smov 64  }
 0x190   : > { %s23139_s7 = sld [smem:[#allocation88_spill]]  ;;  %s19418_s21 = scalar_lea.vmem %s1285_s1, 3072 }
 0x191   : > { %p19419_p2 = scmp.ne.s32.totalorder %s1285_s1, %s19418_s21  ;;  %p19425_p6 = scmp.lt.s32.totalorder %s1285_s1, %s1285_s1 }
 0x192   : > { %p19426_p5 = scmp.lt.s32.totalorder %s19418_s21, %s19418_s21 }
 0x193   : > { %p19420_p3 = pnand %p19419_p2, %p17306_p10 }
 0x194   : > { %p19427_p7 = por %p19426_p5, %p19425_p6 }
 0x195   : > { %p19421_p4 = pneg %p19420_p3 }
 0x196   : > { %17169 = dma.hbm_to_vmem [thread:$0]  (%p17306_p10), %s23139_s7, 1024, %s1261_s6, [#allocation15], %s23138_s10, %s23138_s10, %s23137_s11  }
 0x197   : > { %p19428_p8 = pnand %p19427_p7, %p19421_p4 }
 0x199   : > { %19431 = shalt.err (!%p19428_p8)
}
 0x19a   : > { %s22969_s2 = smov 192   ;;  %s23140_s23 = sld [smem:[#allocation89_spill]] }
 0x19b   : > { %s22971_s5 = smov 12   ;;  %s19963_s6 = smov [#allocation22]  }
 0x19c   : > { %s1316_s4 = sshll.u32 %s19963_s6, 4  ;;  %s1317_s4 = int_to_ptr.vmem [resolvable:$true] %s1316_s4 }
 0x19d   : > { %s19442_s7 = scalar_lea.vmem %s1317_s4, 512  ;;  %p19449_p0 = scmp.lt.s32.totalorder %s1317_s4, %s1317_s4 }
 0x19e   : > { %p19443_p11 = scmp.ne.s32.totalorder %s1317_s4, %s19442_s7  ;;  %p19450_p1 = scmp.lt.s32.totalorder %s19442_s7, %s19442_s7 }
 0x1a0   : > { %17173 = dma.hbm_to_vmem [thread:$0]  (%p17306_p10), %s23140_s23, 3072, %s1285_s1, [#allocation18], %s22969_s2, %s22969_s2, %s22971_s5  }
 0x1a1   : > { %p19444_p12 = pnand %p19443_p11, %p17306_p10  ;;  %p19451_p2 = por %p19450_p1, %p19449_p0 }
 0x1a3   : > { %p19445_p13 = pneg %p19444_p12 }
 0x1a5   : > { %p19452_p3 = pnand %p19451_p2, %p19445_p13 }
 0x1a7   : > { %19455 = shalt.err (!%p19452_p3)
}
 0x1a8   : > { %s19964_s21 = smov 256   ;;  %s23141_s8 = sld [smem:[#allocation93_spill]] }
 0x1a9   : > { %s19965_s9 = smov 16   ;;  %s19966_s1 = smov [#allocation25]  }
 0x1aa   : > { %s1340_s23 = sshll.u32 %s19966_s1, 4  ;;  %s19967_s6 = smov [#allocation28]   ;;  %s1341_s23 = int_to_ptr.vmem [resolvable:$true] %s1340_s23 }
 0x1ab   : > { %s1364_s2 = sshll.u32 %s19967_s6, 4  ;;  %s19466_s5 = scalar_lea.vmem %s1341_s23, 3072  ;;  %s1365_s2 = int_to_ptr.vmem [resolvable:$true] %s1364_s2 }
 0x1ac   : > { %p19467_p4 = scmp.ne.s32.totalorder %s1341_s23, %s19466_s5  ;;  %p19473_p7 = scmp.lt.s32.totalorder %s1341_s23, %s1341_s23 }
 0x1ad   : > { %p19474_p8 = scmp.lt.s32.totalorder %s19466_s5, %s19466_s5 }
 0x1ae   : > { %17177 = dma.hbm_to_vmem [thread:$0]  (%p17306_p10), %s23141_s8, 512, %s1317_s4, [#allocation21], %s19964_s21, %s19964_s21, %s19965_s9  }
 0x1af   : > { %p19468_p6 = pnand %p19467_p4, %p17306_p10  ;;  %p19475_p11 = por %p19474_p8, %p19473_p7 }
 0x1b1   : > { %p19469_p5 = pneg %p19468_p6 }
 0x1b3   : > { %p19476_p12 = pnand %p19475_p11, %p19469_p5 }
 0x1b5   : > { %19479 = shalt.err (!%p19476_p12)
}
 0x1b6   : > { %s23142_s9 = sld [smem:[#allocation94_spill]]  ;;  %s19490_s8 = scalar_lea.vmem %s1365_s2, 3072 }
 0x1b7   : > { %p19491_p13 = scmp.ne.s32.totalorder %s1365_s2, %s19490_s8  ;;  %p19497_p2 = scmp.lt.s32.totalorder %s1365_s2, %s1365_s2 }
 0x1b8   : > { %p19498_p3 = scmp.lt.s32.totalorder %s19490_s8, %s19490_s8 }
 0x1b9   : > { %p19492_p0 = pnand %p19491_p13, %p17306_p10 }
 0x1ba   : > { %p19499_p4 = por %p19498_p3, %p19497_p2 }
 0x1bb   : > { %p19493_p1 = pneg %p19492_p0 }
 0x1bc   : > { %17181 = dma.hbm_to_vmem [thread:$0]  (%p17306_p10), %s23142_s9, 3072, %s1341_s23, [#allocation24], %s23138_s10, %s23138_s10, %s23137_s11  }
 0x1bd   : > { %p19500_p6 = pnand %p19499_p4, %p19493_p1 }
 0x1bf   : > { %19503 = shalt.err (!%p19500_p6)
}
 0x1c0   : > { %s23143_s5 = smov 12   ;;  %s23144_s4 = smov 192  }
 0x1c1   : > { %s23145_s7 = sld [smem:[#allocation96_spill]]  ;;  %s19968_s21 = smov [#allocation31]  }
 0x1c2   : > { %s1391_s1 = sshll.u32 %s19968_s21, 4  ;;  %s19969_s23 = smov [#allocation34]   ;;  %s1392_s1 = int_to_ptr.vmem [resolvable:$true] %s1391_s1 }
 0x1c3   : > { %s1418_s6 = sshll.u32 %s19969_s23, 4  ;;  %s19514_s9 = scalar_lea.vmem %s1392_s1, 6912  ;;  %s1419_s6 = int_to_ptr.vmem [resolvable:$true] %s1418_s6 }
 0x1c4   : > { %p19515_p5 = scmp.ne.s32.totalorder %s1392_s1, %s19514_s9  ;;  %p19521_p11 = scmp.lt.s32.totalorder %s1392_s1, %s1392_s1 }
 0x1c5   : > { %p19522_p12 = scmp.lt.s32.totalorder %s19514_s9, %s19514_s9 }
 0x1c6   : > { %p19516_p7 = pnand %p19515_p5, %p17306_p10 }
 0x1c7   : > { %17185 = dma.hbm_to_vmem [thread:$0]  (%p17306_p10), %s23145_s7, 3072, %s1365_s2, [#allocation27], %s23144_s4, %s23144_s4, %s23143_s5  }
 0x1c8   : > { %p19517_p8 = pneg %p19516_p7  ;;  %p19523_p13 = por %p19522_p12, %p19521_p11 }
 0x1ca   : > { %p19524_p0 = pnand %p19523_p13, %p19517_p8 }
 0x1cc   : > { %19527 = shalt.err (!%p19524_p0)
}
 0x1cd   : > { %s23146_s8 = smov 24   ;;  %s23147_s12 = smov 384  }
 0x1ce   : > { %s23148_s2 = sld [smem:[#allocation99_spill]]  ;;  %s19538_s7 = scalar_lea.vmem %s1419_s6, 3072 }
 0x1cf   : > { %p19539_p1 = scmp.ne.s32.totalorder %s1419_s6, %s19538_s7  ;;  %p19545_p4 = scmp.lt.s32.totalorder %s1419_s6, %s1419_s6 }
 0x1d0   : > { %p19546_p6 = scmp.lt.s32.totalorder %s19538_s7, %s19538_s7 }
 0x1d1   : > { %p19540_p2 = pnand %p19539_p1, %p17306_p10 }
 0x1d2   : > { %p19547_p5 = por %p19546_p6, %p19545_p4 }
 0x1d3   : > { %p19541_p3 = pneg %p19540_p2 }
 0x1d4   : > { %17189 = dma.hbm_to_vmem [thread:$0]  (%p17306_p10), %s23148_s2, 6912, %s1392_s1, [#allocation30], %s23147_s12, %s23147_s12, %s23146_s8  }
 0x1d5   : > { %p19548_p7 = pnand %p19547_p5, %p19541_p3 }
 0x1d7   : > { %19551 = shalt.err (!%p19548_p7)
}
 0x1d8   : > { %s23149_s21 = sld [smem:[#allocation101_spill]]  ;;  %s19970_s1 = smov [#allocation37]  }
 0x1d9   : > { %s1442_s23 = sshll.u32 %s19970_s1, 4  ;;  %s19971_s9 = smov [#allocation40]   ;;  %s1443_s23 = int_to_ptr.vmem [resolvable:$true] %s1442_s23 }
 0x1da   : > { %s1469_s2 = sshll.u32 %s19971_s9, 4  ;;  %s19562_s14 = scalar_lea.vmem %s1443_s23, 3072  ;;  %s1470_s2 = int_to_ptr.vmem [resolvable:$true] %s1469_s2 }
 0x1db   : > { %p19563_p8 = scmp.ne.s32.totalorder %s1443_s23, %s19562_s14  ;;  %p19569_p13 = scmp.lt.s32.totalorder %s1443_s23, %s1443_s23 }
 0x1dc   : > { %p19570_p0 = scmp.lt.s32.totalorder %s19562_s14, %s19562_s14 }
 0x1dd   : > { %p19564_p11 = pnand %p19563_p8, %p17306_p10 }
 0x1de   : > { %17193 = dma.hbm_to_vmem [thread:$0]  (%p17306_p10), %s23149_s21, 3072, %s1419_s6, [#allocation33], %s23138_s10, %s23138_s10, %s23137_s11  }
 0x1df   : > { %p19565_p12 = pneg %p19564_p11  ;;  %p19571_p1 = por %p19570_p0, %p19569_p13 }
 0x1e1   : > { %p19572_p2 = pnand %p19571_p1, %p19565_p12 }
 0x1e3   : > { %19575 = shalt.err (!%p19572_p2)
}
 0x1e4   : > { %s23150_s11 = sld [smem:[#allocation102_spill]]  ;;  %s19586_s10 = scalar_lea.vmem %s1470_s2, 1920 }
 0x1e5   : > { %p19587_p3 = scmp.ne.s32.totalorder %s1470_s2, %s19586_s10  ;;  %p19593_p5 = scmp.lt.s32.totalorder %s1470_s2, %s1470_s2 }
 0x1e6   : > { %p19594_p7 = scmp.lt.s32.totalorder %s19586_s10, %s19586_s10 }
 0x1e7   : > { %p19588_p4 = pnand %p19587_p3, %p17306_p10 }
 0x1e8   : > { %p19595_p8 = por %p19594_p7, %p19593_p5 }
 0x1e9   : > { %p19589_p6 = pneg %p19588_p4 }
 0x1ea   : > { %17197 = dma.hbm_to_vmem [thread:$0]  (%p17306_p10), %s23150_s11, 3072, %s1443_s23, [#allocation36], %s23144_s4, %s23144_s4, %s23143_s5  }
 0x1eb   : > { %p19596_p11 = pnand %p19595_p8, %p19589_p6 }
 0x1ed   : > { %19599 = shalt.err (!%p19596_p11)
}
 0x1ee   : > { %s23151_s14 = sld [smem:[#allocation105_spill]]  ;;  %s19972_s5 = smov [#allocation43]  }
 0x1ef   : > { %s1494_s4 = sshll.u32 %s19972_s5, 4  ;;  %s19973_s6 = smov [#allocation46]   ;;  %s1495_s4 = int_to_ptr.vmem [resolvable:$true] %s1494_s4 }
 0x1f0   : > { %s1518_s7 = sshll.u32 %s19973_s6, 4  ;;  %s19610_s21 = scalar_lea.vmem %s1495_s4, 48  ;;  %s1519_s7 = int_to_ptr.vmem [resolvable:$true] %s1518_s7 }
 0x1f1   : > { %p19611_p12 = scmp.ne.s32.totalorder %s1495_s4, %s19610_s21  ;;  %s19616_s1 = scalar_lea.vmem %s1495_s4, 64 }
 0x1f2   : > { %p19617_p1 = scmp.lt.s32.totalorder %s1495_s4, %s1495_s4  ;;  %p19618_p2 = scmp.lt.s32.totalorder %s19616_s1, %s19610_s21 }
 0x1f3   : > { %p19612_p13 = pnand %p19611_p12, %p17306_p10 }
 0x1f4   : > { %17201 = dma.hbm_to_vmem [thread:$0]  (%p17306_p10), %s23151_s14, 1920, %s1470_s2, [#allocation39], %s23147_s12, %s23147_s12, %s23146_s8  }
 0x1f5   : > { %p19613_p0 = pneg %p19612_p13  ;;  %p19619_p3 = por %p19618_p2, %p19617_p1 }
 0x1f7   : > { %p19620_p4 = pnand %p19619_p3, %p19613_p0 }
 0x1f9   : > { %19623 = shalt.err (!%p19620_p4)
}
 0x1fa   : > { %s23152_s23 = sld [smem:[#allocation106_spill]]  ;;  %s19634_s12 = scalar_lea.vmem %s1519_s7, 32 }
 0x1fb   : > { %p19635_p6 = scmp.ne.s32.totalorder %s1519_s7, %s19634_s12  ;;  %p19641_p8 = scmp.lt.s32.totalorder %s1519_s7, %s1519_s7 }
 0x1fc   : > { %p19642_p11 = scmp.lt.s32.totalorder %s19634_s12, %s19634_s12 }
 0x1fd   : > { %p19636_p5 = pnand %p19635_p6, %p17306_p10 }
 0x1fe   : > { %p19643_p12 = por %p19642_p11, %p19641_p8 }
 0x1ff   : > { %p19637_p7 = pneg %p19636_p5 }
 0x200   : > { %17205 = dma.hbm_to_vmem [thread:$0]  (%p17306_p10), %s23152_s23, 48, %s1495_s4, [#allocation42]  }
 0x201   : > { %p19644_p13 = pnand %p19643_p12, %p19637_p7 }
 0x203   : > { %19647 = shalt.err (!%p19644_p13)
}
 0x204   : > { %s23153_s8 = sld [smem:[#allocation108_spill]]  ;;  %s19974_s9 = smov [#allocation49]  }
 0x205   : > { %s1549_s2 = sshll.u32 %s19974_s9, 4  ;;  %s19975_s11 = smov [#allocation52]   ;;  %s1550_s2 = int_to_ptr.vmem [resolvable:$true] %s1549_s2 }
 0x206   : > { %s1570_s10 = sshll.u32 %s19975_s11, 4  ;;  %s19658_s14 = scalar_lea.vmem %s1550_s2, 32  ;;  %s1571_s10 = int_to_ptr.vmem [resolvable:$true] %s1570_s10 }
 0x207   : > { %p19659_p0 = scmp.ne.s32.totalorder %s1550_s2, %s19658_s14  ;;  %p19665_p3 = scmp.lt.s32.totalorder %s1550_s2, %s1550_s2 }
 0x208   : > { %p19666_p4 = scmp.lt.s32.totalorder %s19658_s14, %s19658_s14 }
 0x209   : > { %p19660_p1 = pnand %p19659_p0, %p17306_p10 }
 0x20a   : > { %17209 = dma.hbm_to_vmem [thread:$0]  (%p17306_p10), %s23153_s8, 32, %s1519_s7, [#allocation45]  }
 0x20b   : > { %p19661_p2 = pneg %p19660_p1  ;;  %p19667_p6 = por %p19666_p4, %p19665_p3 }
 0x20d   : > { %p19668_p5 = pnand %p19667_p6, %p19661_p2 }
 0x20f   : > { %19671 = shalt.err (!%p19668_p5)
}
 0x210   : > { %s23154_s5 = sld [smem:[#allocation113_spill]]  ;;  %s19682_s4 = scalar_lea.vmem %s1571_s10, 24576 }
 0x211   : > { %p19683_p7 = scmp.ne.s32.totalorder %s1571_s10, %s19682_s4  ;;  %p19689_p12 = scmp.lt.s32.totalorder %s1571_s10, %s1571_s10 }
 0x212   : > { %p19690_p13 = scmp.lt.s32.totalorder %s19682_s4, %s19682_s4 }
 0x213   : > { %p19684_p8 = pnand %p19683_p7, %p17306_p10 }
 0x214   : > { %p19691_p0 = por %p19690_p13, %p19689_p12 }
 0x215   : > { %p19685_p11 = pneg %p19684_p8 }
 0x216   : > { %17213 = dma.hbm_to_vmem [thread:$0]  (%p17306_p10), %s23154_s5, 32, %s1550_s2, [#allocation48]  }
 0x217   : > { %p19692_p1 = pnand %p19691_p0, %p19685_p11 }
 0x219   : > { %19695 = shalt.err (!%p19692_p1)
}
 0x21a   : > { %s23155_s6 = sld [smem:[#allocation115_spill]]  ;;  %s19976_s7 = smov [#allocation55]  }
 0x21b   : > { %s1594_s21 = sshll.u32 %s19976_s7, 4  ;;  %s1595_s21 = int_to_ptr.vmem [resolvable:$true] %s1594_s21 }
 0x21c   : > { %s19706_s1 = scalar_lea.vmem %s1595_s21, 20480  ;;  %p19713_p6 = scmp.lt.s32.totalorder %s1595_s21, %s1595_s21 }
 0x21d   : > { %p19707_p2 = scmp.ne.s32.totalorder %s1595_s21, %s19706_s1  ;;  %p19714_p5 = scmp.lt.s32.totalorder %s19706_s1, %s19706_s1 }
 0x21f   : > { %p19708_p3 = pnand %p19707_p2, %p17306_p10  ;;  %p19715_p7 = por %p19714_p5, %p19713_p6 }
 0x220   : > { %17217 = dma.hbm_to_vmem [thread:$0]  (%p17306_p10), %s23155_s6, 24576, %s1571_s10, [#allocation51], %s23127_s13, %s23127_s13, %s23126_s16  }
 0x221   : > { %p19709_p4 = pneg %p19708_p3 }
 0x223   : > { %p19716_p8 = pnand %p19715_p7, %p19709_p4 }
 0x225   : > { %19719 = shalt.err (!%p19716_p8)
}
 0x226   : > { %s19977_s23 = smov 640   ;;  %s23156_s12 = sld [smem:[#allocation117_spill]] }
 0x227   : > { %s19978_s8 = smov 40   ;;  %s19979_s16 = smov [#allocation58]  }
 0x228   : > { %s1624_s13 = sshll.u32 %s19979_s16, 4  ;;  %s1625_s13 = int_to_ptr.vmem [resolvable:$true] %s1624_s13 }
 0x229   : > { %s19730_s9 = scalar_lea.vmem %s1625_s13, 16  ;;  %s19736_s2 = scalar_lea.vmem %s1625_s13, 32 }
 0x22a   : > { %p19731_p11 = scmp.ne.s32.totalorder %s1625_s13, %s19730_s9  ;;  %p19737_p0 = scmp.lt.s32.totalorder %s1625_s13, %s1625_s13 }
 0x22b   : > { %p19738_p1 = scmp.lt.s32.totalorder %s19736_s2, %s19730_s9 }
 0x22c   : > { %17221 = dma.hbm_to_vmem [thread:$0]  (%p17306_p10), %s23156_s12, 20480, %s1595_s21, [#allocation54], %s19977_s23, %s19977_s23, %s19978_s8  }
 0x22d   : > { %p19732_p12 = pnand %p19731_p11, %p17306_p10  ;;  %p19739_p2 = por %p19738_p1, %p19737_p0 }
 0x22f   : > { %p19733_p13 = pneg %p19732_p12 }
 0x231   : > { %p19740_p3 = pnand %p19739_p2, %p19733_p13 }
 0x233   : > { %19743 = shalt.err (!%p19740_p3)
}
 0x234   : > { %17225 = dma.hbm_to_vmem [thread:$0]  (%p17306_p10), %s20222_s3, 16, %s1625_s13, [#allocation57]  }
 0x235 PF: > { %1645 = sbr.rel (%p20277_p9) target bundleno = 6553 (0x1999), region = 208 }
 0x23a   : > { %p17343_p4 = scmp.eq.s32.totalorder %s20250_s28, 0 }
 0x23c   : > { %19787 = dma.done.wait (%p17343_p4), [#allocation3], 1024  }
 0x23d   : > { %19789 = vsyncadd (%p17343_p4), [#allocation3], 4294966272 }
 0x23e   : > { %19791 = dma.done.wait (%p17343_p4), [#allocation6], 1040  }
 0x23f   : > { %19793 = vsyncadd (%p17343_p4), [#allocation6], 4294966256 }
 0x240   : > { %19795 = dma.done.wait (%p17343_p4), [#allocation9], 9232  }
 0x241   : > { %19797 = vsyncadd (%p17343_p4), [#allocation9], 4294958064 }
 0x242   : > { %19799 = dma.done.wait (%p17343_p4), [#allocation12], 11776  }
 0x243   : > { %19801 = vsyncadd (%p17343_p4), [#allocation12], 4294955520 }
 0x244   : > { %19803 = dma.done.wait (%p17343_p4), [#allocation15], 1040  }
 0x245   : > { %19805 = vsyncadd (%p17343_p4), [#allocation15], 4294966256 }
 0x246   : > { %19807 = dma.done.wait (%p17343_p4), [#allocation18], 3088  }
 0x247   : > { %19809 = vsyncadd (%p17343_p4), [#allocation18], 4294964208 }
 0x248   : > { %19811 = dma.done.wait (%p17343_p4), [#allocation21], 19712  }
 0x249   : > { %19813 = vsyncadd (%p17343_p4), [#allocation21], 4294947584 }
 0x24a   : > { %19815 = dma.done.wait (%p17343_p4), [#allocation24], 3120  }
 0x24b   : > { %19817 = vsyncadd (%p17343_p4), [#allocation24], 4294964176 }
 0x24c   : > { %19819 = dma.done.wait (%p17343_p4), [#allocation27], 3088  }
 0x24d   : > { %19821 = vsyncadd (%p17343_p4), [#allocation27], 4294964208 }
 0x24e   : > { %19823 = dma.done.wait (%p17343_p4), [#allocation30], 6960  }
 0x24f   : > { %19825 = vsyncadd (%p17343_p4), [#allocation30], 4294960336 }
 0x250   : > { %19827 = dma.done.wait (%p17343_p4), [#allocation33], 3120  }
 0x251   : > { %19829 = vsyncadd (%p17343_p4), [#allocation33], 4294964176 }
 0x252   : > { %19831 = dma.done.wait (%p17343_p4), [#allocation36], 3088  }
 0x253   : > { %19833 = vsyncadd (%p17343_p4), [#allocation36], 4294964208 }
 0x254   : > { %19835 = dma.done.wait (%p17343_p4), [#allocation39], 1968  }
 0x255   : > { %19837 = vsyncadd (%p17343_p4), [#allocation39], 4294965328 }
 0x256   : > { %19839 = dma.done.wait (%p17343_p4), [#allocation42], 80  }
 0x257   : > { %19841 = vsyncadd (%p17343_p4), [#allocation42], 4294967216 }
 0x258   : > { %19843 = dma.done.wait (%p17343_p4), [#allocation45], 6176  }
 0x259   : > { %19845 = vsyncadd (%p17343_p4), [#allocation45], 4294961120 }
 0x25a   : > { %19847 = dma.done.wait (%p17343_p4), [#allocation48], 224  }
 0x25b   : > { %19849 = vsyncadd (%p17343_p4), [#allocation48], 4294967072 }
 0x25c   : > { %19851 = dma.done.wait (%p17343_p4), [#allocation51], 24768  }
 0x25d   : > { %19853 = vsyncadd (%p17343_p4), [#allocation51], 4294942528 }
 0x25e   : > { %19855 = dma.done.wait (%p17343_p4), [#allocation54], 20512  }
 0x25f   : > { %19857 = vsyncadd (%p17343_p4), [#allocation54], 4294946784 }
 0x260   : > { %19859 = dma.done.wait (%p17343_p4), [#allocation57], 10256  }
 0x261   : > { %19861 = vsyncadd (%p17343_p4), [#allocation57], 4294957040  ;;  %s23157_s18 = sld [smem:[#allocation80_spill]]  ;;  %p1900_p9 = scmp.lt.s32.totalorder %s20250_s28, 1  ;;  %v17514_v0 = vld [vmem:[#allocation2 + $0x38] sm:$0xff]   ;;  %v17515_v1 = vld [vmem:[#allocation2 + $0x30] sm:$0xff]  }
 0x262   : > { %16740 = vmatprep.subr.bf16.mxu0 %v17514_v0  ;;  %v17516_v2 = vld [vmem:[#allocation2 + $0x28] sm:$0xff]   ;;  %v17517_v3 = vld [vmem:[#allocation2 + $0x20] sm:$0xff]   ;;  %v17518_v5 = vld [vmem:[#allocation2 + $0x18] sm:$0xff]   ;;  %vm3658_vm0 = vcmask 523264   ;;  %vm19982_vm1 = vmmov 0   ;;  %s23158_s5 = sld [smem:[#allocation90_spill]] }
 0x263   : > { %s1901_s11 = scalar_select %p1900_p9, %s20250_s28, 1  ;;  %16741 = vmatpush3.bf16.msra.mxu0 %v17514_v0  ;;  %v17519_v6 = vld [vmem:[#allocation2 + $0x10] sm:$0xff]   ;;  %v17520_v7 = vld [vmem:[#allocation2 + $0x8] sm:$0xff]   ;;  %v17521_v8 = vld [vmem:[#allocation2] sm:$0xff]   ;;  %vm5550_vm2 = vcmask 130048   ;;  %vm7619_vm3 = vcmask 1041408  }
 0x264   : > { %16742 = vmatprep.subr.bf16.mxu0 %v17515_v1  ;;  %v17538_v9 = vld [vmem:[#allocation7 + $0x38] sm:$0xff]   ;;  %v17539_v10 = vld [vmem:[#allocation7 + $0x30] sm:$0xff]   ;;  %v17540_v12 = vld [vmem:[#allocation7 + $0x28] sm:$0xff]   ;;  %s23163_s4 = sld [smem:[#allocation91_spill]]  ;;  %vm7615_vm4 = vcmask 293888   ;;  %vm9632_vm5 = vcmask 31744  }
 0x265   : > { %s16320_s10 = sshll.u32 %s1901_s11, 7  ;;  %16788 = vmatprep.subr.bf16.mxu1 %v17538_v9  ;;  %v17541_v14 = vld [vmem:[#allocation7 + $0x20] sm:$0xff]   ;;  %v17542_v15 = vld [vmem:[#allocation7 + $0x18] sm:$0xff]   ;;  %v17543_v29 = vld [vmem:[#allocation7 + $0x10] sm:$0xff]   ;;  %s23279_s6 = sld [smem:[#allocation98_spill]]  ;;  %vm10757_vm6 = vcmask 818176  }
 0x266   : > { %16789 = vmatpush3.bf16.msra.mxu1 %v17538_v9  ;;  %v17544_v30 = vld [vmem:[#allocation7 + $0x8] sm:$0xff]   ;;  %v17545_v31 = vld [vmem:[#allocation7] sm:$0xff]   ;;  %v20617_v33 = vld [vmem:[#allocation5] ss:$0 sm:$0xff]  ;;  %s23280_s7 = sld [smem:[#allocation100_spill]]  ;;  %vm13710_vm7 = vcmask 1043456  }
 0x267   : > { %s20599_s14 = scalar_lea.vmem %s23157_s18, %s16320_s10  ;;  %16743 = vmatpush3.bf16.msra.mxu0 %v17515_v1  ;;  %16790 = vmatprep.subr.bf16.mxu1 %v17539_v10  ;;  %s23309_s21 = sld [smem:[#allocation104_spill]] }
 0x268   : > { %16744 = vmatprep.subr.bf16.mxu0 %v17516_v2  ;;  %v17522_v4 = vld [vmem:[%s20599_s14] sm:$0xff]   ;;  %v17523_v11 = vld [vmem:[%s20599_s14 + $0x8] sm:$0xff]   ;;  %v17524_v13 = vld [vmem:[%s20599_s14 + $0x10] sm:$0xff]   ;;  %s23310_s1 = sld [smem:[#allocation109_spill]]  ;;  %s1898_s16 = sand.u32 1, %s19872_s22  }
 0x269   : > { %16756 = vmatprep.mubr.bf16.mxu0 %v17522_v4  ;;  %v17525_v16 = vld [vmem:[%s20599_s14 + $0x18] sm:$0xff]   ;;  %v17526_v17 = vld [vmem:[%s20599_s14 + $0x20] sm:$0xff]   ;;  %v17527_v18 = vld [vmem:[%s20599_s14 + $0x28] sm:$0xff]   ;;  %s23315_s23 = sld [smem:[#allocation111_spill]]  ;;  %s16317_s13 = sshll.u32 %s20250_s28, 4 }
 0x26a   : > { %16791 = vmatpush3.bf16.msra.mxu1 %v17539_v10  ;;  %v17528_v19 = vld [vmem:[%s20599_s14 + $0x30] sm:$0xff]   ;;  %v17529_v20 = vld [vmem:[%s20599_s14 + $0x38] sm:$0xff]   ;;  %v17530_v21 = vld [vmem:[%s20599_s14 + $0x40] sm:$0xff]   ;;  %s23321_s8 = sld [smem:[#allocation112_spill]]  ;;  %s1899_s9 = scalar_lea.vmem [#allocation59], %s1898_s16 }
 0x26b   : > { %16745 = vmatpush3.bf16.msra.mxu0 %v17516_v2  ;;  %16792 = vmatprep.subr.bf16.mxu1 %v17540_v12  ;;  %v17531_v22 = vld [vmem:[%s20599_s14 + $0x48] sm:$0xff]   ;;  %v17532_v23 = vld [vmem:[%s20599_s14 + $0x50] sm:$0xff]   ;;  %v17533_v24 = vld [vmem:[%s20599_s14 + $0x58] sm:$0xff]   ;;  %s14656_s2 = sshll.u32 %s1899_s9, 4  ;;  %s22913_s18 = scalar_lea.hbm %s20227_s17, %s16317_s13  ;;  %s14657_s2 = int_to_ptr.vmem [resolvable:$true] %s14656_s2 }
 0x26c   : > { %16746 = vmatprep.subr.bf16.mxu0 %v17517_v3  ;;  %v17534_v25 = vld [vmem:[%s20599_s14 + $0x60] sm:$0xff]   ;;  %v17535_v26 = vld [vmem:[%s20599_s14 + $0x68] sm:$0xff]   ;;  %v17536_v27 = vld [vmem:[%s20599_s14 + $0x70] sm:$0xff]   ;;  %s14644_s11 = scalar_lea.sflag [#allocation4], %s1898_s16  ;;  %s19744_s10 = scalar_lea.vmem %s14657_s2, 16 }
 0x26d   : > { %v17537_v28 = vld [vmem:[%s20599_s14 + $0x78] sm:$0xff]   ;;  %p19745_p10 = scmp.ne.s32.totalorder %s14657_s2, %s19744_s10  ;;  %p23393_p6 = scmp.ne.s32.totalorder %s23115_s15, 0 }
 0x26e   : > { %16793 = vmatpush3.bf16.msra.mxu1 %v17540_v12  ;;  %s19983_s14 = smov [#allocation59]  }
 0x26f   : > { %16747 = vmatpush3.bf16.msra.mxu0 %v17517_v3  ;;  %16794 = vmatprep.subr.bf16.mxu1 %v17541_v14  ;;  %s23316_s12 = smov %s23315_s23  ;;  %p19746_p5 = pnand %p19745_p10, %p23393_p6 }
 0x270   : > { %16748 = vmatprep.subr.bf16.mxu0 %v17518_v5 }
 0x271   : > { %p19747_p7 = pneg %p19746_p5 }
 0x272   : > { %16795 = vmatpush3.bf16.msra.mxu1 %v17541_v14 }
 0x273   : > { %16749 = vmatpush3.bf16.msra.mxu0 %v17518_v5  ;;  %16796 = vmatprep.subr.bf16.mxu1 %v17542_v15 }
 0x274   : > { %16750 = vmatprep.subr.bf16.mxu0 %v17519_v6 }
 0x276   : > { %16797 = vmatpush3.bf16.msra.mxu1 %v17542_v15 }
 0x277   : > { %16751 = vmatpush3.bf16.msra.mxu0 %v17519_v6  ;;  %16798 = vmatprep.subr.bf16.mxu1 %v17543_v29 }
 0x278   : > { %16752 = vmatprep.subr.bf16.mxu0 %v17520_v7 }
 0x27a   : > { %16799 = vmatpush3.bf16.msra.mxu1 %v17543_v29 }
 0x27b   : > { %16753 = vmatpush3.bf16.msra.mxu0 %v17520_v7  ;;  %16800 = vmatprep.subr.bf16.mxu1 %v17544_v30 }
 0x27c   : > { %16754 = vmatprep.subr.bf16.mxu0 %v17521_v8 }
 0x27e   : > { %16801 = vmatpush3.bf16.msra.mxu1 %v17544_v30 }
 0x27f   : > { %16755 = vmatpush3.bf16.msra.mxu0 %v17521_v8  ;;  %16802 = vmatprep.subr.bf16.mxu1 %v17545_v31 }
 0x282   : > { %16757 = vmatmul.mubr.bf16.vlgmr.msra.gmra.mxu0 %v17523_v11  ;;  %16803 = vmatpush3.bf16.msra.mxu1 %v17545_v31 }
 0x283   : > { %16760 = vmatprep.mubr.bf16.mxu0 %v17524_v13 }
 0x28a   : > { %16761 = vmatmul.mubr.bf16.gmra.mxu0 %v17525_v16 }
 0x28b   : > { %16764 = vmatprep.mubr.bf16.mxu0 %v17526_v17 }
 0x292   : > { %16765 = vmatmul.mubr.bf16.gmra.mxu0 %v17527_v18 }
 0x293   : > { %16768 = vmatprep.mubr.bf16.mxu0 %v17528_v19 }
 0x29a   : > { %16769 = vmatmul.mubr.bf16.gmra.mxu0 %v17529_v20 }
 0x29b   : > { %16772 = vmatprep.mubr.bf16.mxu0 %v17530_v21 }
 0x2a2   : > { %16773 = vmatmul.mubr.bf16.gmra.mxu0 %v17531_v22 }
 0x2a3   : > { %16776 = vmatprep.mubr.bf16.mxu0 %v17532_v23 }
 0x2aa   : > { %16777 = vmatmul.mubr.bf16.gmra.mxu0 %v17533_v24 }
 0x2ab   : > { %16780 = vmatprep.mubr.bf16.mxu0 %v17534_v25 }
 0x2b2   : > { %16781 = vmatmul.mubr.bf16.gmra.mxu0 %v17535_v26 }
 0x2b3   : > { %16784 = vmatprep.mubr.bf16.mxu0 %v17536_v27 }
 0x2ba   : > { %16785 = vmatmul.mubr.bf16.gmra.mxu0 %v17537_v28 }
 0x342   : > { %v16758_v32 = vpop.f32.mrf.mxu0 }
 0x343   : > { %v2148_v38 = vadd.f32 %v16758_v32, %v20617_v33 }
 0x344   : > { %v2139_v34 = vpop.f32.mrf.mxu0 }
 0x345   : > { %v2140_v36 = vadd.f32 %v20617_v33, %v2139_v34  ;;  %v2268_v46 = vmax.f32 %v2148_v38, 0.0 }
 0x346   : > { %v16759_v35 = vpop.f32.mrf.mxu0 }
 0x347   : > { %v2151_v37 = vadd.f32 %v16759_v35, %v20617_v33  ;;  %v2266_v43 = vmax.f32 %v2140_v36, 0.0 }
 0x348   : > { %v2142_v39 = vpop.f32.mrf.mxu0 }
 0x349   : > { %v2143_v40 = vadd.f32 %v20617_v33, %v2142_v39  ;;  %v2269_v41 = vmax.f32 %v2151_v37, 0.0 }
 0x34a   : > { %v16762_v42 = vpop.f32.mrf.mxu0 }
 0x34b   : > { %v2164_v44 = vadd.f32 %v16762_v42, %v20617_v33  ;;  %v2267_v45 = vmax.f32 %v2143_v40, 0.0  ;;  %v2299_v50 = vpack.c.bf16 %v2269_v41, %v2268_v46 }
 0x34c   : > { %v2155_v47 = vpop.f32.mrf.mxu0 }
 0x34d   : > { %v2156_v48 = vadd.f32 %v20617_v33, %v2155_v47  ;;  %v2298_v49 = vpack.c.bf16 %v2267_v45, %v2266_v43  ;;  %v2272_v52 = vmax.f32 %v2164_v44, 0.0 }
 0x34e   : > { %v16763_v51 = vpop.f32.mrf.mxu0 }
 0x34f   : > { %v2270_v53 = vmax.f32 %v2156_v48, 0.0  ;;  %v2167_v54 = vadd.f32 %v16763_v51, %v20617_v33  ;;  %16804 = vmatprep.mubr.bf16.mxu1 %v2298_v49 }
 0x350   : > { %v2158_v55 = vpop.f32.mrf.mxu0  ;;  %16805 = vmatmul.mubr.bf16.vlgmr.msra.gmra.mxu1 %v2299_v50 }
 0x351   : > { %v2273_v56 = vmax.f32 %v2167_v54, 0.0  ;;  %v2159_v57 = vadd.f32 %v20617_v33, %v2158_v55 }
 0x352   : > { %v16766_v58 = vpop.f32.mrf.mxu0 }
 0x353   : > { %v2271_v59 = vmax.f32 %v2159_v57, 0.0  ;;  %v2301_v62 = vpack.c.bf16 %v2273_v56, %v2272_v52  ;;  %v2180_v2 = vadd.f32 %v16766_v58, %v20617_v33 }
 0x354   : > { %v2171_v60 = vpop.f32.mrf.mxu0 }
 0x355   : > { %v2300_v61 = vpack.c.bf16 %v2271_v59, %v2270_v53  ;;  %v2172_v0 = vadd.f32 %v20617_v33, %v2171_v60  ;;  %v2276_v9 = vmax.f32 %v2180_v2, 0.0 }
 0x356   : > { %v16767_v63 = vpop.f32.mrf.mxu0 }
 0x357   : > { %v2183_v1 = vadd.f32 %v16767_v63, %v20617_v33  ;;  %16808 = vmatprep.mubr.bf16.mxu1 %v2300_v61  ;;  %v2274_v7 = vmax.f32 %v2172_v0, 0.0 }
 0x358   : > { %v2174_v3 = vpop.f32.mrf.mxu0  ;;  %16809 = vmatmul.mubr.bf16.gmra.mxu1 %v2301_v62 }
 0x359   : > { %v2175_v4 = vadd.f32 %v20617_v33, %v2174_v3  ;;  %v2277_v5 = vmax.f32 %v2183_v1, 0.0 }
 0x35a   : > { %v16770_v6 = vpop.f32.mrf.mxu0 }
 0x35b   : > { %v2275_v8 = vmax.f32 %v2175_v4, 0.0  ;;  %v2303_v12 = vpack.c.bf16 %v2277_v5, %v2276_v9  ;;  %v2196_v16 = vadd.f32 %v16770_v6, %v20617_v33 }
 0x35c   : > { %v2187_v10 = vpop.f32.mrf.mxu0 }
 0x35d   : > { %v2302_v11 = vpack.c.bf16 %v2275_v8, %v2274_v7  ;;  %v2188_v14 = vadd.f32 %v20617_v33, %v2187_v10  ;;  %v2280_v23 = vmax.f32 %v2196_v16, 0.0 }
 0x35e   : > { %v16771_v13 = vpop.f32.mrf.mxu0 }
 0x35f   : > { %v2199_v15 = vadd.f32 %v16771_v13, %v20617_v33  ;;  %16812 = vmatprep.mubr.bf16.mxu1 %v2302_v11  ;;  %v2278_v21 = vmax.f32 %v2188_v14, 0.0 }
 0x360   : > { %v2190_v17 = vpop.f32.mrf.mxu0  ;;  %16813 = vmatmul.mubr.bf16.gmra.mxu1 %v2303_v12 }
 0x361   : > { %v2191_v18 = vadd.f32 %v20617_v33, %v2190_v17  ;;  %v2281_v19 = vmax.f32 %v2199_v15, 0.0 }
 0x362   : > { %v16774_v20 = vpop.f32.mrf.mxu0 }
 0x363   : > { %v2279_v22 = vmax.f32 %v2191_v18, 0.0  ;;  %v2305_v26 = vpack.c.bf16 %v2281_v19, %v2280_v23  ;;  %v2212_v30 = vadd.f32 %v16774_v20, %v20617_v33  ;;  %v22975_v18 = vmov 0   ;;  %v17548_v19 = vld [vmem:[#allocation10 + $0x4] ss:$8 sps:$4 sm:$0xff]  }
 0x364   : > { %v2203_v24 = vpop.f32.mrf.mxu0  ;;  %3026 = vmatprep.subr.bf16.mxu0 %v22975_v18  ;;  %3058 = vmatprep.mubr.bf16.mxu0 %v17548_v19 }
 0x365   : > { %v2304_v25 = vpack.c.bf16 %v2279_v22, %v2278_v21  ;;  %v2204_v28 = vadd.f32 %v20617_v33, %v2203_v24  ;;  %v2284_v38 = vmax.f32 %v2212_v30, 0.0 }
 0x366   : > { %v16775_v27 = vpop.f32.mrf.mxu0 }
 0x367   : > { %v2215_v29 = vadd.f32 %v16775_v27, %v20617_v33  ;;  %16816 = vmatprep.mubr.bf16.mxu1 %v2304_v25  ;;  %v2282_v36 = vmax.f32 %v2204_v28, 0.0 }
 0x368   : > { %v2206_v31 = vpop.f32.mrf.mxu0  ;;  %16817 = vmatmul.mubr.bf16.gmra.mxu1 %v2305_v26 }
 0x369   : > { %v2207_v32 = vadd.f32 %v20617_v33, %v2206_v31  ;;  %v2285_v34 = vmax.f32 %v2215_v29, 0.0 }
 0x36a   : > { %v16778_v35 = vpop.f32.mrf.mxu0 }
 0x36b   : > { %v2283_v37 = vmax.f32 %v2207_v32, 0.0  ;;  %v2307_v41 = vpack.c.bf16 %v2285_v34, %v2284_v38  ;;  %v2228_v45 = vadd.f32 %v16778_v35, %v20617_v33  ;;  %v20658_v32 = vld [vmem:[#allocation8] ss:$0 sm:$0xff] }
 0x36c   : > { %v2219_v39 = vpop.f32.mrf.mxu0 }
 0x36d   : > { %v2306_v40 = vpack.c.bf16 %v2283_v37, %v2282_v36  ;;  %v2220_v43 = vadd.f32 %v20617_v33, %v2219_v39  ;;  %v2288_v52 = vmax.f32 %v2228_v45, 0.0 }
 0x36e   : > { %v16779_v42 = vpop.f32.mrf.mxu0 }
 0x36f   : > { %v2231_v44 = vadd.f32 %v16779_v42, %v20617_v33  ;;  %16820 = vmatprep.mubr.bf16.mxu1 %v2306_v40  ;;  %v2286_v50 = vmax.f32 %v2220_v43, 0.0 }
 0x370   : > { %v2222_v46 = vpop.f32.mrf.mxu0  ;;  %16821 = vmatmul.mubr.bf16.gmra.mxu1 %v2307_v41 }
 0x371   : > { %v2223_v47 = vadd.f32 %v20617_v33, %v2222_v46  ;;  %v2289_v48 = vmax.f32 %v2231_v44, 0.0 }
 0x372   : > { %v16782_v49 = vpop.f32.mrf.mxu0 }
 0x373   : > { %v2287_v51 = vmax.f32 %v2223_v47, 0.0  ;;  %v2309_v55 = vpack.c.bf16 %v2289_v48, %v2288_v52  ;;  %v2244_v59 = vadd.f32 %v16782_v49, %v20617_v33 }
 0x374   : > { %v2235_v53 = vpop.f32.mrf.mxu0 }
 0x375   : > { %v2308_v54 = vpack.c.bf16 %v2287_v51, %v2286_v50  ;;  %v2236_v57 = vadd.f32 %v20617_v33, %v2235_v53  ;;  %v2292_v2 = vmax.f32 %v2244_v59, 0.0 }
 0x376   : > { %v16783_v56 = vpop.f32.mrf.mxu0 }
 0x377   : > { %v2247_v58 = vadd.f32 %v16783_v56, %v20617_v33  ;;  %16824 = vmatprep.mubr.bf16.mxu1 %v2308_v54  ;;  %v2290_v0 = vmax.f32 %v2236_v57, 0.0 }
 0x378   : > { %v2238_v60 = vpop.f32.mrf.mxu0  ;;  %16825 = vmatmul.mubr.bf16.gmra.mxu1 %v2309_v55 }
 0x379   : > { %v2239_v61 = vadd.f32 %v20617_v33, %v2238_v60  ;;  %v2293_v62 = vmax.f32 %v2247_v58, 0.0 }
 0x37a   : > { %v16786_v63 = vpop.f32.mrf.mxu0 }
 0x37b   : > { %v2291_v1 = vmax.f32 %v2239_v61, 0.0  ;;  %v2311_v5 = vpack.c.bf16 %v2293_v62, %v2292_v2  ;;  %v2260_v9 = vadd.f32 %v16786_v63, %v20617_v33 }
 0x37c   : > { %v2251_v3 = vpop.f32.mrf.mxu0 }
 0x37d   : > { %v2310_v4 = vpack.c.bf16 %v2291_v1, %v2290_v0  ;;  %v2252_v7 = vadd.f32 %v20617_v33, %v2251_v3  ;;  %v2296_v15 = vmax.f32 %v2260_v9, 0.0 }
 0x37e   : > { %v16787_v6 = vpop.f32.mrf.mxu0 }
 0x37f   : > { %v2263_v8 = vadd.f32 %v16787_v6, %v20617_v33  ;;  %16828 = vmatprep.mubr.bf16.mxu1 %v2310_v4  ;;  %v2294_v13 = vmax.f32 %v2252_v7, 0.0 }
 0x380   : > { %v2254_v10 = vpop.f32.mrf.mxu0  ;;  %16829 = vmatmul.mubr.bf16.gmra.mxu1 %v2311_v5 }
 0x381   : > { %v2255_v11 = vadd.f32 %v20617_v33, %v2254_v10  ;;  %v2297_v12 = vmax.f32 %v2263_v8, 0.0 }
 0x383   : > { %v2295_v14 = vmax.f32 %v2255_v11, 0.0  ;;  %v2313_v17 = vpack.c.bf16 %v2297_v12, %v2296_v15 }
 0x385   : > { %v2312_v16 = vpack.c.bf16 %v2295_v14, %v2294_v13 }
 0x387   : > { %16832 = vmatprep.mubr.bf16.mxu1 %v2312_v16 }
 0x388   : > { %16833 = vmatmul.mubr.bf16.gmra.mxu1 %v2313_v17 }
 0x410   : > { %v20652_v20 = vpop.f32.mrf.mxu1 }
 0x411   : > { %v2428_v12 = vadd.f32 %v20652_v20, %v20658_v32 }
 0x412   : > { %v20654_v21 = vpop.f32.mrf.mxu1 }
 0x414   : > { %v16807_v22 = vpop.f32.mrf.mxu1 }
 0x415   : > { %v2431_v8 = vadd.f32 %v16807_v22, %v20658_v32  ;;  %v2420_v22 = vadd.f32 %v20658_v32, %v20654_v21 }
 0x416   : > { %v20656_v23 = vpop.f32.mrf.mxu1 }
 0x417   : > { %v2549_v15 = vmax.f32 %v2431_v8, 0.0  ;;  %v2423_v16 = vadd.f32 %v20658_v32, %v20656_v23 }
 0x418   : > { %v16810_v33 = vpop.f32.mrf.mxu1 }
 0x419   : > { %v2444_v62 = vadd.f32 %v16810_v33, %v20658_v32  ;;  %v2548_v33 = vmax.f32 %v2428_v12, 0.0  ;;  %v17557_v12 = vld [vmem:[#allocation10 + $0x30] ss:$8 sps:$4 sm:$0xff]  }
 0x41a   : > { %v2435_v24 = vpop.f32.mrf.mxu1 }
 0x41b   : > { %v2552_v5 = vmax.f32 %v2444_v62, 0.0  ;;  %v2436_v6 = vadd.f32 %v20658_v32, %v2435_v24  ;;  %v2651_v20 = vpack.c.bf16 %v2549_v15, %v2548_v33  ;;  %v17561_v15 = vld [vmem:[#allocation10 + $0x54] ss:$8 sps:$4 sm:$0xff]  }
 0x41c   : > { %v16811_v25 = vpop.f32.mrf.mxu1  ;;  %v17567_v33 = vld [vmem:[#allocation10 + $0x74] ss:$8 sps:$4 sm:$0xff]  }
 0x41d   : > { %v2447_v58 = vadd.f32 %v16811_v25, %v20658_v32  ;;  %v2550_v13 = vmax.f32 %v2436_v6, 0.0  ;;  %v2547_v25 = vmax.f32 %v2423_v16, 0.0  ;;  %v17563_v16 = vld [vmem:[#allocation10 + $0x50] ss:$8 sps:$4 sm:$0xff]  }
 0x41e   : > { %v2438_v26 = vpop.f32.mrf.mxu1 }
 0x41f   : > { %v2553_v1 = vmax.f32 %v2447_v58, 0.0  ;;  %v2439_v2 = vadd.f32 %v20658_v32, %v2438_v26 }
 0x420   : > { %v16814_v27 = vpop.f32.mrf.mxu1 }
 0x421   : > { %v2460_v48 = vadd.f32 %v16814_v27, %v20658_v32  ;;  %v2653_v9 = vpack.c.bf16 %v2553_v1, %v2552_v5  ;;  %v2551_v10 = vmax.f32 %v2439_v2, 0.0  ;;  %v2546_v27 = vmax.f32 %v2420_v22, 0.0  ;;  %v17569_v22 = vld [vmem:[#allocation10 + $0x70] ss:$8 sps:$4 sm:$0xff]  }
 0x422   : > { %v2451_v28 = vpop.f32.mrf.mxu1 }
 0x423   : > { %v2556_v55 = vmax.f32 %v2460_v48, 0.0  ;;  %v2452_v56 = vadd.f32 %v20658_v32, %v2451_v28  ;;  %v2652_v17 = vpack.c.bf16 %v2551_v10, %v2550_v13  ;;  %v2650_v23 = vpack.c.bf16 %v2547_v25, %v2546_v27  ;;  %v17549_v10 = vld [vmem:[#allocation10 + $0x14] ss:$8 sps:$4 sm:$0xff]   ;;  %v17558_v13 = vld [vmem:[#allocation10 + $0x44] ss:$8 sps:$4 sm:$0xff]  }
 0x424   : > { %v16815_v29 = vpop.f32.mrf.mxu1  ;;  %v17573_v25 = vld [vmem:[#allocation10 + $0x94] ss:$8 sps:$4 sm:$0xff]   ;;  %v17576_v27 = vld [vmem:[#allocation10 + $0xa4] ss:$8 sps:$4 sm:$0xff]  }
 0x425   : > { %v2463_v44 = vadd.f32 %v16815_v29, %v20658_v32  ;;  %v2554_v63 = vmax.f32 %v2452_v56, 0.0 }
 0x426   : > { %v2454_v30 = vpop.f32.mrf.mxu1 }
 0x427   : > { %v2557_v51 = vmax.f32 %v2463_v44, 0.0  ;;  %v2455_v52 = vadd.f32 %v20658_v32, %v2454_v30 }
 0x428   : > { %v16818_v31 = vpop.f32.mrf.mxu1 }
 0x429   : > { %v2476_v35 = vadd.f32 %v16818_v31, %v20658_v32  ;;  %v2655_v59 = vpack.c.bf16 %v2557_v51, %v2556_v55  ;;  %v2555_v60 = vmax.f32 %v2455_v52, 0.0 }
 0x42a   : > { %v2467_v34 = vpop.f32.mrf.mxu1 }
 0x42b   : > { %v2560_v39 = vmax.f32 %v2476_v35, 0.0  ;;  %v2468_v40 = vadd.f32 %v20658_v32, %v2467_v34  ;;  %v2654_v3 = vpack.c.bf16 %v2555_v60, %v2554_v63 }
 0x42c   : > { %v16819_v36 = vpop.f32.mrf.mxu1 }
 0x42d   : > { %v2479_v37 = vadd.f32 %v16819_v36, %v20658_v32  ;;  %v2558_v49 = vmax.f32 %v2468_v40, 0.0 }
 0x42e   : > { %v2470_v38 = vpop.f32.mrf.mxu1 }
 0x42f   : > { %v2561_v41 = vmax.f32 %v2479_v37, 0.0  ;;  %v2471_v42 = vadd.f32 %v20658_v32, %v2470_v38 }
 0x430   : > { %v20664_v43 = vpop.f32.mrf.mxu1 }
 0x431   : > { %v2657_v45 = vpack.c.bf16 %v2561_v41, %v2560_v39  ;;  %v2559_v46 = vmax.f32 %v2471_v42, 0.0  ;;  %v2492_v1 = vadd.f32 %v20664_v43, %v20658_v32 }
 0x432   : > { %v20667_v47 = vpop.f32.mrf.mxu1 }
 0x433   : > { %3027 = vmatpush1.bf16.msra.mxu0 %v2657_v45  ;;  %v2656_v53 = vpack.c.bf16 %v2559_v46, %v2558_v49  ;;  %v2564_v5 = vmax.f32 %v2492_v1, 0.0  ;;  %v2484_v6 = vadd.f32 %v20658_v32, %v20667_v47  ;;  %v17555_v47 = vld [vmem:[#allocation10 + $0x34] ss:$8 sps:$4 sm:$0xff]  }
 0x434   : > { %v20670_v50 = vpop.f32.mrf.mxu1  ;;  %3028 = vmatprep.subr.bf16.mxu0 %v22975_v18 }
 0x435   : > { %v2495_v63 = vadd.f32 %v20670_v50, %v20658_v32  ;;  %v2562_v8 = vmax.f32 %v2484_v6, 0.0  ;;  %v17626_v6 = vld [vmem:[#allocation10 + $0x1a4] ss:$8 sps:$4 sm:$0xff]  }
 0x436   : > { %v20674_v54 = vpop.f32.mrf.mxu1 }
 0x437   : > { %3029 = vmatpush1.bf16.msra.mxu0 %v2656_v53 }
 0x438   : > { %v20677_v57 = vpop.f32.mrf.mxu1  ;;  %3030 = vmatprep.subr.bf16.mxu0 %v22975_v18 }
 0x439   : > { %v2508_v53 = vadd.f32 %v20677_v57, %v20658_v32 }
 0x43a   : > { %v20681_v61 = vpop.f32.mrf.mxu1 }
 0x43b   : > { %3031 = vmatpush1.bf16.msra.mxu0 %v2655_v59  ;;  %v2568_v60 = vmax.f32 %v2508_v53, 0.0  ;;  %v2500_v62 = vadd.f32 %v20658_v32, %v20681_v61  ;;  %v17609_v53 = vld [vmem:[#allocation10 + $0x150] ss:$8 sps:$4 sm:$0xff]  }
 0x43c   : > { %v16827_v0 = vpop.f32.mrf.mxu1  ;;  %3032 = vmatprep.subr.bf16.mxu0 %v22975_v18 }
 0x43d   : > { %v2511_v49 = vadd.f32 %v16827_v0, %v20658_v32  ;;  %v2566_v2 = vmax.f32 %v2500_v62, 0.0  ;;  %v17618_v62 = vld [vmem:[#allocation10 + $0x180] ss:$8 sps:$4 sm:$0xff]  }
 0x43e   : > { %v20686_v4 = vpop.f32.mrf.mxu1 }
 0x43f   : > { %3033 = vmatpush1.bf16.msra.mxu0 %v2654_v3  ;;  %v2569_v56 = vmax.f32 %v2511_v49, 0.0  ;;  %v2503_v58 = vadd.f32 %v20658_v32, %v20686_v4  ;;  %v2565_v3 = vmax.f32 %v2495_v63, 0.0  ;;  %v2487_v4 = vadd.f32 %v20658_v32, %v20674_v54  ;;  %v17551_v54 = vld [vmem:[#allocation10 + $0x10] ss:$8 sps:$4 sm:$0xff]   ;;  %v17608_v49 = vld [vmem:[#allocation10 + $0x144] ss:$8 sps:$4 sm:$0xff]  }
 0x440   : > { %v16830_v7 = vpop.f32.mrf.mxu1  ;;  %3034 = vmatprep.subr.bf16.mxu0 %v22975_v18  ;;  %v17623_v63 = vld [vmem:[#allocation10 + $0x194] ss:$8 sps:$4 sm:$0xff]  }
 0x441   : > { %v2524_v40 = vadd.f32 %v16830_v7, %v20658_v32  ;;  %v2661_v57 = vpack.c.bf16 %v2569_v56, %v2568_v60  ;;  %v2567_v0 = vmax.f32 %v2503_v58, 0.0  ;;  %v2659_v50 = vpack.c.bf16 %v2565_v3, %v2564_v5  ;;  %v17612_v56 = vld [vmem:[#allocation10 + $0x160] ss:$8 sps:$4 sm:$0xff]   ;;  %v17617_v58 = vld [vmem:[#allocation10 + $0x174] ss:$8 sps:$4 sm:$0xff]  }
 0x442   : > { %v2515_v11 = vpop.f32.mrf.mxu1  ;;  %v2563_v7 = vmax.f32 %v2487_v4, 0.0  ;;  %v17620_v60 = vld [vmem:[#allocation10 + $0x184] ss:$8 sps:$4 sm:$0xff]   ;;  %v17621_v4 = vld [vmem:[#allocation10 + $0x190] ss:$8 sps:$4 sm:$0xff]  }
 0x443   : > { %3035 = vmatpush1.bf16.msra.mxu0 %v2653_v9  ;;  %v2572_v46 = vmax.f32 %v2524_v40, 0.0  ;;  %v2516_v48 = vadd.f32 %v20658_v32, %v2515_v11  ;;  %v2660_v61 = vpack.c.bf16 %v2567_v0, %v2566_v2  ;;  %v17546_v9 = vld [vmem:[#allocation10] ss:$8 sps:$4 sm:$0xff]   ;;  %v17552_v11 = vld [vmem:[#allocation10 + $0x24] ss:$8 sps:$4 sm:$0xff]  }
 0x444   : > { %v16831_v14 = vpop.f32.mrf.mxu1  ;;  %3036 = vmatprep.subr.bf16.mxu0 %v22975_v18  ;;  %v2658_v43 = vpack.c.bf16 %v2563_v7, %v2562_v8  ;;  %v17596_v40 = vld [vmem:[#allocation10 + $0x100] ss:$8 sps:$4 sm:$0xff]  }
 0x445   : > { %v2527_v37 = vadd.f32 %v16831_v14, %v20658_v32  ;;  %v2570_v55 = vmax.f32 %v2516_v48, 0.0  ;;  %v17560_v14 = vld [vmem:[#allocation10 + $0x40] ss:$8 sps:$4 sm:$0xff]   ;;  %v17605_v48 = vld [vmem:[#allocation10 + $0x130] ss:$8 sps:$4 sm:$0xff]  }
 0x446   : > { %v2518_v19 = vpop.f32.mrf.mxu1  ;;  %v3347_v0 = vld [vmem:[#allocation11] sm:$0xff]  ;;  %v3348_v2 = vld [vmem:[#allocation11 + $0x8] sm:$0xff] }
 0x447   : > { %3037 = vmatpush1.bf16.msra.mxu0 %v2652_v17  ;;  %v2573_v42 = vmax.f32 %v2527_v37, 0.0  ;;  %v2519_v44 = vadd.f32 %v20658_v32, %v2518_v19  ;;  %v17564_v17 = vld [vmem:[#allocation10 + $0x64] ss:$8 sps:$4 sm:$0xff]   ;;  %v17566_v19 = vld [vmem:[#allocation10 + $0x60] ss:$8 sps:$4 sm:$0xff]  }
 0x448   : > { %v16834_v24 = vpop.f32.mrf.mxu1  ;;  %3038 = vmatprep.subr.bf16.mxu0 %v22975_v18  ;;  %v17591_v37 = vld [vmem:[#allocation10 + $0xf4] ss:$8 sps:$4 sm:$0xff]  }
 0x449   : > { %v2540_v28 = vadd.f32 %v16834_v24, %v20658_v32  ;;  %v2663_v51 = vpack.c.bf16 %v2573_v42, %v2572_v46  ;;  %v2571_v52 = vmax.f32 %v2519_v44, 0.0  ;;  %v17570_v24 = vld [vmem:[#allocation10 + $0x84] ss:$8 sps:$4 sm:$0xff]   ;;  %v17599_v42 = vld [vmem:[#allocation10 + $0x110] ss:$8 sps:$4 sm:$0xff]  }
 0x44a   : > { %v2531_v26 = vpop.f32.mrf.mxu1  ;;  %v17600_v44 = vld [vmem:[#allocation10 + $0x124] ss:$8 sps:$4 sm:$0xff]   ;;  %v17603_v46 = vld [vmem:[#allocation10 + $0x134] ss:$8 sps:$4 sm:$0xff]  }
 0x44b   : > { %3039 = vmatpush1.bf16.msra.mxu0 %v2651_v20  ;;  %v2576_v34 = vmax.f32 %v2540_v28, 0.0  ;;  %v2532_v21 = vadd.f32 %v20658_v32, %v2531_v26  ;;  %v2662_v59 = vpack.c.bf16 %v2571_v52, %v2570_v55  ;;  %v17572_v20 = vld [vmem:[#allocation10 + $0x80] ss:$8 sps:$4 sm:$0xff]   ;;  %v17575_v26 = vld [vmem:[#allocation10 + $0x90] ss:$8 sps:$4 sm:$0xff]  }
 0x44c   : > { %v16835_v29 = vpop.f32.mrf.mxu1  ;;  %3040 = vmatprep.subr.bf16.mxu0 %v22975_v18  ;;  %v17578_v28 = vld [vmem:[#allocation10 + $0xa0] ss:$8 sps:$4 sm:$0xff]   ;;  %v17611_v52 = vld [vmem:[#allocation10 + $0x154] ss:$8 sps:$4 sm:$0xff]   ;;  %v17614_v55 = vld [vmem:[#allocation10 + $0x164] ss:$8 sps:$4 sm:$0xff]  }
 0x44d   : > { %v2543_v30 = vadd.f32 %v16835_v29, %v20658_v32  ;;  %v2574_v41 = vmax.f32 %v2532_v21, 0.0  ;;  %v17579_v29 = vld [vmem:[#allocation10 + $0xb4] ss:$8 sps:$4 sm:$0xff]   ;;  %v17587_v21 = vld [vmem:[#allocation10 + $0xd0] ss:$8 sps:$4 sm:$0xff]  }
 0x44e   : > { %v2534_v31 = vpop.f32.mrf.mxu1 }
 0x44f   : > { %v2577_v35 = vmax.f32 %v2543_v30, 0.0  ;;  %v2535_v36 = vadd.f32 %v20658_v32, %v2534_v31  ;;  %3041 = vmatpush1.bf16.msra.mxu0 %v2650_v23  ;;  %v17554_v32 = vld [vmem:[#allocation10 + $0x20] ss:$8 sps:$4 sm:$0xff]   ;;  %v17581_v23 = vld [vmem:[#allocation10 + $0xb0] ss:$8 sps:$4 sm:$0xff]  }
 0x450   : > { %3042 = vmatprep.subr.bf16.mxu0 %v22975_v18  ;;  %v17582_v30 = vld [vmem:[#allocation10 + $0xc4] ss:$8 sps:$4 sm:$0xff]   ;;  %v17584_v31 = vld [vmem:[#allocation10 + $0xc0] ss:$8 sps:$4 sm:$0xff]  }
 0x451   : > { %v2665_v38 = vpack.c.bf16 %v2577_v35, %v2576_v34  ;;  %v2575_v39 = vmax.f32 %v2535_v36, 0.0  ;;  %v17585_v34 = vld [vmem:[#allocation10 + $0xd4] ss:$8 sps:$4 sm:$0xff]   ;;  %v17588_v35 = vld [vmem:[#allocation10 + $0xe4] ss:$8 sps:$4 sm:$0xff]  }
 0x452   : > { %v17590_v36 = vld [vmem:[#allocation10 + $0xe0] ss:$8 sps:$4 sm:$0xff]  }
 0x453   : > { %3043 = vmatpush2.bf16.msra.mxu0 %v2665_v38  ;;  %v2664_v45 = vpack.c.bf16 %v2575_v39, %v2574_v41  ;;  %v17593_v38 = vld [vmem:[#allocation10 + $0xf0] ss:$8 sps:$4 sm:$0xff]   ;;  %v17594_v39 = vld [vmem:[#allocation10 + $0x104] ss:$8 sps:$4 sm:$0xff]   ;;  %v17597_v41 = vld [vmem:[#allocation10 + $0x114] ss:$8 sps:$4 sm:$0xff]  }
 0x454   : > { %3044 = vmatprep.subr.bf16.mxu0 %v22975_v18 }
 0x457   : > { %3045 = vmatpush2.bf16.msra.mxu0 %v2664_v45  ;;  %v17602_v45 = vld [vmem:[#allocation10 + $0x120] ss:$8 sps:$4 sm:$0xff]  }
 0x458   : > { %3046 = vmatprep.subr.bf16.mxu0 %v22975_v18 }
 0x45b   : > { %3047 = vmatpush2.bf16.msra.mxu0 %v2663_v51  ;;  %v17606_v51 = vld [vmem:[#allocation10 + $0x140] ss:$8 sps:$4 sm:$0xff]  }
 0x45c   : > { %3048 = vmatprep.subr.bf16.mxu0 %v22975_v18 }
 0x45f   : > { %3049 = vmatpush2.bf16.msra.mxu0 %v2662_v59  ;;  %v17615_v59 = vld [vmem:[#allocation10 + $0x170] ss:$8 sps:$4 sm:$0xff]  }
 0x460   : > { %3050 = vmatprep.subr.bf16.mxu0 %v22975_v18 }
 0x463   : > { %3051 = vmatpush2.bf16.msra.mxu0 %v2661_v57 }
 0x464   : > { %3052 = vmatprep.subr.bf16.mxu0 %v22975_v18 }
 0x467   : > { %3053 = vmatpush2.bf16.msra.mxu0 %v2660_v61 }
 0x468   : > { %3054 = vmatprep.subr.bf16.mxu0 %v22975_v18 }
 0x46b   : > { %3055 = vmatpush2.bf16.msra.mxu0 %v2659_v50 }
 0x46c   : > { %3056 = vmatprep.subr.bf16.mxu0 %v22975_v18 }
 0x46f   : > { %3057 = vmatpush2.bf16.msra.mxu0 %v2658_v43  ;;  %v3349_v43 = vld [vmem:[#allocation11 + $0x10] sm:$0xff] }
 0x472   : > { %3059 = vmatmul.mubr.bf16.vlgmr.msra.gmra.mxu0 %v17546_v9 }
 0x473   : > { %3066 = vmatprep.mubr.bf16.mxu0 %v17549_v10  ;;  %v3350_v10 = vld [vmem:[#allocation11 + $0x18] sm:$0xff] }
 0x47a   : > { %3067 = vmatmul.mubr.bf16.gmra.mxu0 %v17551_v54 }
 0x47b   : > { %3074 = vmatprep.mubr.bf16.mxu0 %v17552_v11  ;;  %v17624_v11 = vld [vmem:[#allocation10 + $0x1a0] ss:$8 sps:$4 sm:$0xff]  }
 0x482   : > { %3075 = vmatmul.mubr.bf16.gmra.mxu0 %v17554_v32 }
 0x483   : > { %3082 = vmatprep.mubr.bf16.mxu0 %v17555_v47 }
 0x48a   : > { %3083 = vmatmul.mubr.bf16.gmra.mxu0 %v17557_v12  ;;  %v17629_v12 = vld [vmem:[#allocation10 + $0x1b4] ss:$8 sps:$4 sm:$0xff]  }
 0x48b   : > { %3090 = vmatprep.mubr.bf16.mxu0 %v17558_v13 }
 0x492   : > { %3091 = vmatmul.mubr.bf16.gmra.mxu0 %v17560_v14 }
 0x493   : > { %3098 = vmatprep.mubr.bf16.mxu0 %v17561_v15 }
 0x49a   : > { %3099 = vmatmul.mubr.bf16.gmra.mxu0 %v17563_v16  ;;  %v3351_v16 = vld [vmem:[#allocation11 + $0x20] sm:$0xff] }
 0x49b   : > { %3106 = vmatprep.mubr.bf16.mxu0 %v17564_v17 }
 0x4a2   : > { %3107 = vmatmul.mubr.bf16.gmra.mxu0 %v17566_v19  ;;  %v3352_v19 = vld [vmem:[#allocation11 + $0x28] sm:$0xff] }
 0x4a3   : > { %3114 = vmatprep.mubr.bf16.mxu0 %v17567_v33 }
 0x4aa   : > { %3115 = vmatmul.mubr.bf16.gmra.mxu0 %v17569_v22  ;;  %v17627_v22 = vld [vmem:[#allocation10 + $0x1b0] ss:$8 sps:$4 sm:$0xff]  }
 0x4ab   : > { %3122 = vmatprep.mubr.bf16.mxu0 %v17570_v24 }
 0x4b2   : > { %3123 = vmatmul.mubr.bf16.gmra.mxu0 %v17572_v20 }
 0x4b3   : > { %3130 = vmatprep.mubr.bf16.mxu0 %v17573_v25  ;;  %v17632_v25 = vld [vmem:[#allocation10 + $0x1c4] ss:$8 sps:$4 sm:$0xff]  }
 0x4ba   : > { %3131 = vmatmul.mubr.bf16.gmra.mxu0 %v17575_v26 }
 0x4bb   : > { %3138 = vmatprep.mubr.bf16.mxu0 %v17576_v27 }
 0x4c2   : > { %3139 = vmatmul.mubr.bf16.gmra.mxu0 %v17578_v28 }
 0x4c3   : > { %3146 = vmatprep.mubr.bf16.mxu0 %v17579_v29  ;;  %v3353_v29 = vld [vmem:[#allocation11 + $0x30] sm:$0xff] }
 0x4ca   : > { %3147 = vmatmul.mubr.bf16.gmra.mxu0 %v17581_v23 }
 0x4cb   : > { %3154 = vmatprep.mubr.bf16.mxu0 %v17582_v30  ;;  %v3354_v30 = vld [vmem:[#allocation11 + $0x38] sm:$0xff] }
 0x4d2   : > { %3155 = vmatmul.mubr.bf16.gmra.mxu0 %v17584_v31 }
 0x4d3   : > { %3162 = vmatprep.mubr.bf16.mxu0 %v17585_v34  ;;  %v17630_v34 = vld [vmem:[#allocation10 + $0x1c0] ss:$8 sps:$4 sm:$0xff]  }
 0x4da   : > { %3163 = vmatmul.mubr.bf16.gmra.mxu0 %v17587_v21 }
 0x4db   : > { %3170 = vmatprep.mubr.bf16.mxu0 %v17588_v35 }
 0x4e2   : > { %3171 = vmatmul.mubr.bf16.gmra.mxu0 %v17590_v36  ;;  %v17635_v36 = vld [vmem:[#allocation10 + $0x1d4] ss:$8 sps:$4 sm:$0xff]  }
 0x4e3   : > { %3178 = vmatprep.mubr.bf16.mxu0 %v17591_v37 }
 0x4ea   : > { %3179 = vmatmul.mubr.bf16.gmra.mxu0 %v17593_v38 }
 0x4eb   : > { %3186 = vmatprep.mubr.bf16.mxu0 %v17594_v39 }
 0x4f2   : > { %3187 = vmatmul.mubr.bf16.gmra.mxu0 %v17596_v40  ;;  %v3355_v40 = vld [vmem:[#allocation11 + $0x40] sm:$0xff] }
 0x4f3   : > { %3194 = vmatprep.mubr.bf16.mxu0 %v17597_v41 }
 0x4fa   : > { %3195 = vmatmul.mubr.bf16.gmra.mxu0 %v17599_v42  ;;  %v3356_v42 = vld [vmem:[#allocation11 + $0x48] sm:$0xff] }
 0x4fb   : > { %3202 = vmatprep.mubr.bf16.mxu0 %v17600_v44 }
 0x502   : > { %3203 = vmatmul.mubr.bf16.gmra.mxu0 %v17602_v45  ;;  %v17633_v45 = vld [vmem:[#allocation10 + $0x1d0] ss:$8 sps:$4 sm:$0xff]  }
 0x503   : > { %3210 = vmatprep.mubr.bf16.mxu0 %v17603_v46 }
 0x50a   : > { %3211 = vmatmul.mubr.bf16.gmra.mxu0 %v17605_v48 }
 0x50b   : > { %3218 = vmatprep.mubr.bf16.mxu0 %v17608_v49  ;;  %v17638_v49 = vld [vmem:[#allocation10 + $0x1e4] ss:$8 sps:$4 sm:$0xff]  }
 0x512   : > { %3219 = vmatmul.mubr.bf16.gmra.mxu0 %v17606_v51 }
 0x513   : > { %3226 = vmatprep.mubr.bf16.mxu0 %v17611_v52 }
 0x51a   : > { %3227 = vmatmul.mubr.bf16.gmra.mxu0 %v17609_v53 }
 0x51b   : > { %3234 = vmatprep.mubr.bf16.mxu0 %v17614_v55  ;;  %v3357_v55 = vld [vmem:[#allocation11 + $0x50] sm:$0xff] }
 0x522   : > { %3235 = vmatmul.mubr.bf16.gmra.mxu0 %v17612_v56 }
 0x523   : > { %3242 = vmatprep.mubr.bf16.mxu0 %v17617_v58  ;;  %v3358_v58 = vld [vmem:[#allocation11 + $0x58] sm:$0xff] }
 0x52a   : > { %3243 = vmatmul.mubr.bf16.gmra.mxu0 %v17615_v59 }
 0x52b   : > { %3250 = vmatprep.mubr.bf16.mxu0 %v17620_v60  ;;  %v17636_v60 = vld [vmem:[#allocation10 + $0x1e0] ss:$8 sps:$4 sm:$0xff]  }
 0x532   : > { %v3060_v57 = vpop.f32.mrf.mxu0  ;;  %3251 = vmatmul.mubr.bf16.gmra.mxu0 %v17618_v62 }
 0x533   : > { %3258 = vmatprep.mubr.bf16.mxu0 %v17623_v63  ;;  %v20731_v61 = vmul.f32 %v3347_v0, %v3060_v57  ;;  %v17641_v57 = vld [vmem:[#allocation10 + $0x1f4] ss:$8 sps:$4 sm:$0xff]  }
 0x534   : > { %v3062_v1 = vpop.f32.mrf.mxu0 }
 0x536   : > { %v3063_v3 = vpop.f32.mrf.mxu0 }
 0x537   : > { %v20733_v5 = vmul.f32 %v3348_v2, %v3063_v3  ;;  %v3359_v3 = vld [vmem:[#allocation11 + $0x60] sm:$0xff] }
 0x538   : > { %v3065_v50 = vpop.f32.mrf.mxu0 }
 0x539   : > { %v3491_v7 = vpack.c.bf16 %v20733_v5, %v20731_v61 }
 0x53a   : > { %v3068_v8 = vpop.f32.mrf.mxu0  ;;  %3259 = vmatmul.mubr.bf16.gmra.mxu0 %v17621_v4 }
 0x53b   : > { %3266 = vmatprep.mubr.bf16.mxu0 %v17626_v6  ;;  %v20737_v32 = vmul.f32 %v3349_v43, %v3068_v8  ;;  %v3360_v6 = vld [vmem:[#allocation11 + $0x68] sm:$0xff]  ;;  %v17639_v8 = vld [vmem:[#allocation10 + $0x1f0] ss:$8 sps:$4 sm:$0xff]  }
 0x53c   : > { %v3070_v9 = vpop.f32.mrf.mxu0 }
 0x53e   : > { %v3071_v54 = vpop.f32.mrf.mxu0 }
 0x53f   : > { %v20739_v47 = vmul.f32 %v3350_v10, %v3071_v54  ;;  %v17644_v10 = vld [vmem:[#allocation10 + $0x204] ss:$8 sps:$4 sm:$0xff]  }
 0x540   : > { %v3073_v13 = vpop.f32.mrf.mxu0 }
 0x541   : > { %v3492_v14 = vpack.c.bf16 %v20739_v47, %v20737_v32  ;;  %v3361_v13 = vld [vmem:[#allocation11 + $0x70] sm:$0xff] }
 0x542   : > { %v3076_v15 = vpop.f32.mrf.mxu0  ;;  %3267 = vmatmul.mubr.bf16.gmra.mxu0 %v17624_v11 }
 0x543   : > { %3274 = vmatprep.mubr.bf16.mxu0 %v17629_v12  ;;  %v20743_v24 = vmul.f32 %v3351_v16, %v3076_v15  ;;  %v3362_v16 = vld [vmem:[#allocation11 + $0x78] sm:$0xff] }
 0x544   : > { %v3078_v17 = vpop.f32.mrf.mxu0 }
 0x546   : > { %v3079_v33 = vpop.f32.mrf.mxu0 }
 0x547   : > { %v20745_v20 = vmul.f32 %v3352_v19, %v3079_v33  ;;  %v17642_v19 = vld [vmem:[#allocation10 + $0x200] ss:$8 sps:$4 sm:$0xff]  }
 0x548   : > { %v3081_v26 = vpop.f32.mrf.mxu0 }
 0x549   : > { %v3493_v27 = vpack.c.bf16 %v20745_v20, %v20743_v24 }
 0x54a   : > { %v3084_v28 = vpop.f32.mrf.mxu0  ;;  %3275 = vmatmul.mubr.bf16.gmra.mxu0 %v17627_v22 }
 0x54b   : > { %3282 = vmatprep.mubr.bf16.mxu0 %v17632_v25  ;;  %v20749_v21 = vmul.f32 %v3353_v29, %v3084_v28  ;;  %v17647_v25 = vld [vmem:[#allocation10 + $0x214] ss:$8 sps:$4 sm:$0xff]  }
 0x54c   : > { %v3086_v23 = vpop.f32.mrf.mxu0 }
 0x54d   : > { %v3363_v23 = vld [vmem:[#allocation11 + $0x80] sm:$0xff] }
 0x54e   : > { %v3087_v31 = vpop.f32.mrf.mxu0 }
 0x54f   : > { %v20751_v35 = vmul.f32 %v3354_v30, %v3087_v31  ;;  %v3364_v31 = vld [vmem:[#allocation11 + $0x88] sm:$0xff] }
 0x550   : > { %v3089_v37 = vpop.f32.mrf.mxu0 }
 0x551   : > { %v3494_v38 = vpack.c.bf16 %v20751_v35, %v20749_v21  ;;  %v3385_v35 = vld [vmem:[#allocation11 + $0x130] sm:$0xff] }
 0x552   : > { %v3092_v39 = vpop.f32.mrf.mxu0  ;;  %3283 = vmatmul.mubr.bf16.gmra.mxu0 %v17630_v34 }
 0x553   : > { %3290 = vmatprep.mubr.bf16.mxu0 %v17635_v36  ;;  %v20755_v46 = vmul.f32 %v3355_v40, %v3092_v39  ;;  %v17645_v36 = vld [vmem:[#allocation10 + $0x210] ss:$8 sps:$4 sm:$0xff]   ;;  %v17650_v40 = vld [vmem:[#allocation10 + $0x224] ss:$8 sps:$4 sm:$0xff]  }
 0x554   : > { %v3094_v41 = vpop.f32.mrf.mxu0 }
 0x556   : > { %v3095_v44 = vpop.f32.mrf.mxu0 }
 0x557   : > { %v20757_v48 = vmul.f32 %v3356_v42, %v3095_v44 }
 0x558   : > { %v3097_v51 = vpop.f32.mrf.mxu0 }
 0x559   : > { %v3495_v52 = vpack.c.bf16 %v20757_v48, %v20755_v46  ;;  %v3366_v51 = vld [vmem:[#allocation11 + $0x98] sm:$0xff] }
 0x55a   : > { %v3100_v53 = vpop.f32.mrf.mxu0  ;;  %3291 = vmatmul.mubr.bf16.gmra.mxu0 %v17633_v45  ;;  %v3365_v45 = vld [vmem:[#allocation11 + $0x90] sm:$0xff] }
 0x55b   : > { %3298 = vmatprep.mubr.bf16.mxu0 %v17638_v49  ;;  %v20761_v62 = vmul.f32 %v3357_v55, %v3100_v53  ;;  %v17648_v55 = vld [vmem:[#allocation10 + $0x220] ss:$8 sps:$4 sm:$0xff]  }
 0x55c   : > { %v3102_v56 = vpop.f32.mrf.mxu0 }
 0x55e   : > { %v3103_v59 = vpop.f32.mrf.mxu0 }
 0x55f   : > { %v20763_v63 = vmul.f32 %v3358_v58, %v3103_v59  ;;  %v17653_v59 = vld [vmem:[#allocation10 + $0x234] ss:$8 sps:$4 sm:$0xff]  }
 0x560   : > { %v3105_v0 = vpop.f32.mrf.mxu0 }
 0x561   : > { %v3496_v1 = vpack.c.bf16 %v20763_v63, %v20761_v62 }
 0x562   : > { %v3108_v2 = vpop.f32.mrf.mxu0  ;;  %3299 = vmatmul.mubr.bf16.gmra.mxu0 %v17636_v60 }
 0x563   : > { %3306 = vmatprep.mubr.bf16.mxu0 %v17641_v57  ;;  %v20767_v43 = vmul.f32 %v3359_v3, %v3108_v2 }
 0x564   : > { %v3110_v4 = vpop.f32.mrf.mxu0 }
 0x565   : > { %v17651_v4 = vld [vmem:[#allocation10 + $0x230] ss:$8 sps:$4 sm:$0xff]  }
 0x566   : > { %v3111_v50 = vpop.f32.mrf.mxu0 }
 0x567   : > { %v20769_v9 = vmul.f32 %v3360_v6, %v3111_v50 }
 0x568   : > { %v3113_v54 = vpop.f32.mrf.mxu0 }
 0x569   : > { %v3497_v11 = vpack.c.bf16 %v20769_v9, %v20767_v43  ;;  %v3367_v9 = vld [vmem:[#allocation11 + $0xa0] sm:$0xff] }
 0x56a   : > { %v3116_v12 = vpop.f32.mrf.mxu0  ;;  %3307 = vmatmul.mubr.bf16.gmra.mxu0 %v17639_v8 }
 0x56b   : > { %3314 = vmatprep.mubr.bf16.mxu0 %v17644_v10  ;;  %v20773_v33 = vmul.f32 %v3361_v13, %v3116_v12 }
 0x56c   : > { %v3118_v15 = vpop.f32.mrf.mxu0 }
 0x56e   : > { %v3119_v17 = vpop.f32.mrf.mxu0 }
 0x56f   : > { %v20775_v22 = vmul.f32 %v3362_v16, %v3119_v17 }
 0x570   : > { %v3121_v26 = vpop.f32.mrf.mxu0 }
 0x571   : > { %v3498_v28 = vpack.c.bf16 %v20775_v22, %v20773_v33  ;;  %v3369_v22 = vld [vmem:[#allocation11 + $0xb0] sm:$0xff] }
 0x572   : > { %v3124_v29 = vpop.f32.mrf.mxu0  ;;  %3315 = vmatmul.mubr.bf16.gmra.mxu0 %v17642_v19 }
 0x573   : > { %3322 = vmatprep.mubr.bf16.mxu0 %v17647_v25  ;;  %v20779_v37 = vmul.f32 %v3363_v23, %v3124_v29 }
 0x574   : > { %v3126_v30 = vpop.f32.mrf.mxu0 }
 0x576   : > { %v3127_v34 = vpop.f32.mrf.mxu0 }
 0x577   : > { %v20781_v39 = vmul.f32 %v3364_v31, %v3127_v34 }
 0x578   : > { %v3129_v41 = vpop.f32.mrf.mxu0 }
 0x579   : > { %v3499_v42 = vpack.c.bf16 %v20781_v39, %v20779_v37  ;;  %v3377_v41 = vld [vmem:[#allocation11 + $0xf0] sm:$0xff]  ;;  %v3388_v39 = vld [vmem:[#allocation11 + $0x148] sm:$0xff] }
 0x57a   : > { %v3132_v44 = vpop.f32.mrf.mxu0  ;;  %3323 = vmatmul.mubr.bf16.gmra.mxu0 %v17645_v36  ;;  %v17656_v36 = vld [vmem:[#allocation13 + $0x4] ss:$20 sps:$4 sm:$0xff]  }
 0x57b   : > { %3330 = vmatprep.mubr.bf16.mxu0 %v17650_v40  ;;  %v20785_v56 = vmul.f32 %v3365_v45, %v3132_v44  ;;  %v3376_v40 = vld [vmem:[#allocation11 + $0xe8] sm:$0xff]  ;;  %v3378_v45 = vld [vmem:[#allocation11 + $0xf8] sm:$0xff]  ;;  %3703 = vmatprep.mubr.bf16.mxu1 %v17656_v36 }
 0x57c   : > { %v3134_v49 = vpop.f32.mrf.mxu0 }
 0x57d   : > { %v3375_v49 = vld [vmem:[#allocation11 + $0xe0] sm:$0xff] }
 0x57e   : > { %v3135_v53 = vpop.f32.mrf.mxu0 }
 0x57f   : > { %v20787_v58 = vmul.f32 %v3366_v51, %v3135_v53 }
 0x580   : > { %v3137_v60 = vpop.f32.mrf.mxu0 }
 0x581   : > { %v3500_v57 = vpack.c.bf16 %v20787_v58, %v20785_v56  ;;  %v3374_v60 = vld [vmem:[#allocation11 + $0xd8] sm:$0xff]  ;;  %v17657_v58 = vld [vmem:[#allocation13 + $0x2c] ss:$20 sps:$4 sm:$0xff]  }
 0x582   : > { %v20791_v0 = vpop.f32.mrf.mxu0  ;;  %3331 = vmatmul.mubr.bf16.gmra.mxu0 %v17648_v55 }
 0x583   : > { %3338 = vmatprep.mubr.bf16.mxu0 %v17653_v59  ;;  %v3439_v62 = vmul.f32 %v3367_v9, %v20791_v0  ;;  %v3386_v0 = vld [vmem:[#allocation11 + $0x138] sm:$0xff] }
 0x584   : > { %v3142_v2 = vpop.f32.mrf.mxu0 }
 0x586   : > { %v20793_v3 = vpop.f32.mrf.mxu0 }
 0x588   : > { %v3145_v6 = vpop.f32.mrf.mxu0 }
 0x58a   : > { %v20795_v50 = vpop.f32.mrf.mxu0  ;;  %3339 = vmatmul.mubr.bf16.gmra.mxu0 %v17651_v4 }
 0x58b   : > { %v3441_v43 = vmul.f32 %v3369_v22, %v20795_v50 }
 0x58c   : > { %v3150_v8 = vpop.f32.mrf.mxu0 }
 0x58d   : > { %v3373_v8 = vld [vmem:[#allocation11 + $0xd0] sm:$0xff] }
 0x58e   : > { %v3151_v10 = vpop.f32.mrf.mxu0 }
 0x590   : > { %v3153_v54 = vpop.f32.mrf.mxu0 }
 0x592   : > { %v3156_v12 = vpop.f32.mrf.mxu0 }
 0x594   : > { %v3158_v13 = vpop.f32.mrf.mxu0 }
 0x596   : > { %v3159_v15 = vpop.f32.mrf.mxu0 }
 0x598   : > { %v3161_v16 = vpop.f32.mrf.mxu0 }
 0x59a   : > { %v3164_v17 = vpop.f32.mrf.mxu0 }
 0x59c   : > { %v3166_v19 = vpop.f32.mrf.mxu0 }
 0x59d   : > { %v3372_v19 = vld [vmem:[#allocation11 + $0xc8] sm:$0xff] }
 0x59e   : > { %v3167_v25 = vpop.f32.mrf.mxu0 }
 0x59f   : > { %v3446_v13 = vmul.f32 %v3374_v60, %v3167_v25  ;;  %v3370_v25 = vld [vmem:[#allocation11 + $0xb8] sm:$0xff] }
 0x5a0   : > { %v3169_v26 = vpop.f32.mrf.mxu0 }
 0x5a1   : > { %v3379_v26 = vld [vmem:[#allocation11 + $0x100] sm:$0xff] }
 0x5a2   : > { %v3172_v29 = vpop.f32.mrf.mxu0 }
 0x5a3   : > { %v3447_v4 = vmul.f32 %v3375_v49, %v3172_v29 }
 0x5a4   : > { %v3174_v23 = vpop.f32.mrf.mxu0 }
 0x5a6   : > { %v3175_v30 = vpop.f32.mrf.mxu0 }
 0x5a7   : > { %v3448_v53 = vmul.f32 %v3376_v40, %v3175_v30  ;;  %v3445_v30 = vmul.f32 %v3373_v8, %v3164_v17  ;;  %v3444_v40 = vmul.f32 %v3372_v19, %v3159_v15  ;;  %v3442_v17 = vmul.f32 %v3370_v25, %v3151_v10  ;;  %v3384_v8 = vld [vmem:[#allocation11 + $0x128] sm:$0xff]  ;;  %v17662_v25 = vld [vmem:[#allocation13 + $0x50] ss:$20 sps:$4 sm:$0xff]  }
 0x5a8   : > { %v3177_v31 = vpop.f32.mrf.mxu0 }
 0x5a9   : > { %v3505_v16 = vpack.c.bf16 %v3448_v53, %v3447_v4  ;;  %v3380_v31 = vld [vmem:[#allocation11 + $0x108] sm:$0xff]  ;;  %v3504_v29 = vpack.c.bf16 %v3446_v13, %v3445_v30  ;;  %v3381_v53 = vld [vmem:[#allocation11 + $0x110] sm:$0xff]  ;;  %v3502_v60 = vpack.c.bf16 %v3442_v17, %v3441_v43  ;;  %v3391_v17 = vld [vmem:[#allocation11 + $0x160] sm:$0xff] }
 0x5aa   : > { %v3180_v34 = vpop.f32.mrf.mxu0  ;;  %v17665_v43 = vld [vmem:[#allocation13 + $0x78] ss:$20 sps:$4 sm:$0xff]  }
 0x5ab   : > { %v3449_v55 = vmul.f32 %v3377_v41, %v3180_v34  ;;  %v3371_v34 = vld [vmem:[#allocation11 + $0xc0] sm:$0xff] }
 0x5ac   : > { %v3182_v44 = vpop.f32.mrf.mxu0  ;;  %v3443_v49 = vmul.f32 %v3371_v34, %v3156_v12  ;;  %v3390_v34 = vld [vmem:[#allocation11 + $0x158] sm:$0xff] }
 0x5ae   : > { %v3183_v51 = vpop.f32.mrf.mxu0  ;;  %v3503_v15 = vpack.c.bf16 %v3444_v40, %v3443_v49  ;;  %v17663_v49 = vld [vmem:[#allocation13 + $0x7c] ss:$20 sps:$4 sm:$0xff]  }
 0x5af   : > { %v3450_v59 = vmul.f32 %v3378_v45, %v3183_v51  ;;  %v3368_v51 = vld [vmem:[#allocation11 + $0xa8] sm:$0xff] }
 0x5b0   : > { %v3185_v2 = vpop.f32.mrf.mxu0  ;;  %v3440_v12 = vmul.f32 %v3368_v51, %v20793_v3  ;;  %v3392_v51 = vld [vmem:[#allocation11 + $0x168] sm:$0xff] }
 0x5b1   : > { %v3506_v6 = vpack.c.bf16 %v3450_v59, %v3449_v55  ;;  %v3382_v59 = vld [vmem:[#allocation11 + $0x118] sm:$0xff] }
 0x5b2   : > { %v3188_v54 = vpop.f32.mrf.mxu0  ;;  %v3501_v50 = vpack.c.bf16 %v3440_v12, %v3439_v62 }
 0x5b3   : > { %16369 = vmatprep.subr.bf16.mxu1 %v3506_v6  ;;  %v20800_v41 = vmul.f32 %v3379_v26, %v3188_v54  ;;  %v3383_v6 = vld [vmem:[#allocation11 + $0x120] sm:$0xff]  ;;  %v17659_v26 = vld [vmem:[#allocation13 + $0x28] ss:$20 sps:$4 sm:$0xff]  }
 0x5b4   : > { %v3190_v23 = vpop.f32.mrf.mxu0  ;;  %16370 = vmatpush3.bf16.msra.mxu1 %v3498_v28 }
 0x5b5   : > { %16371 = vmatprep.subr.bf16.mxu1 %v3505_v16  ;;  %v17654_v16 = vld [vmem:[#allocation13] ss:$20 sps:$4 sm:$0xff]  }
 0x5b6   : > { %v3191_v36 = vpop.f32.mrf.mxu0 }
 0x5b7   : > { %v20802_v44 = vmul.f32 %v3380_v31, %v3191_v36  ;;  %v17660_v31 = vld [vmem:[#allocation13 + $0x54] ss:$20 sps:$4 sm:$0xff]  }
 0x5b8   : > { %v3193_v45 = vpop.f32.mrf.mxu0  ;;  %16372 = vmatpush3.bf16.msra.mxu1 %v3497_v11 }
 0x5b9   : > { %v3507_v33 = vpack.c.bf16 %v20802_v44, %v20800_v41  ;;  %16373 = vmatprep.subr.bf16.mxu1 %v3504_v29  ;;  %v17671_v41 = vld [vmem:[#allocation13 + $0x30] ss:$20 sps:$4 sm:$0xff]  }
 0x5ba   : > { %v3196_v28 = vpop.f32.mrf.mxu0  ;;  %v17672_v44 = vld [vmem:[#allocation13 + $0x5c] ss:$20 sps:$4 sm:$0xff]  }
 0x5bb   : > { %v20814_v2 = vmul.f32 %v3381_v53, %v3196_v28 }
 0x5bc   : > { %v3198_v55 = vpop.f32.mrf.mxu0  ;;  %16374 = vmatpush3.bf16.msra.mxu1 %v3496_v1 }
 0x5bd   : > { %16375 = vmatprep.subr.bf16.mxu1 %v3503_v15 }
 0x5be   : > { %v3199_v11 = vpop.f32.mrf.mxu0 }
 0x5bf   : > { %v20816_v10 = vmul.f32 %v3382_v59, %v3199_v11  ;;  %v17668_v11 = vld [vmem:[#allocation13 + $0xc] ss:$20 sps:$4 sm:$0xff]  }
 0x5c0   : > { %v3201_v4 = vpop.f32.mrf.mxu0  ;;  %16376 = vmatpush3.bf16.msra.mxu1 %v3495_v52 }
 0x5c1   : > { %v3508_v63 = vpack.c.bf16 %v20816_v10, %v20814_v2  ;;  %16377 = vmatprep.subr.bf16.mxu1 %v3502_v60  ;;  %v3393_v4 = vld [vmem:[#allocation11 + $0x170] sm:$0xff] }
 0x5c2   : > { %v3204_v1 = vpop.f32.mrf.mxu0  ;;  %v17669_v2 = vld [vmem:[#allocation13 + $0x34] ss:$20 sps:$4 sm:$0xff]  }
 0x5c3   : > { %v20827_v13 = vmul.f32 %v3383_v6, %v3204_v1  ;;  %v3394_v1 = vld [vmem:[#allocation11 + $0x178] sm:$0xff] }
 0x5c4   : > { %v3206_v3 = vpop.f32.mrf.mxu0  ;;  %16378 = vmatpush3.bf16.msra.mxu1 %v3494_v38 }
 0x5c5   : > { %16379 = vmatprep.subr.bf16.mxu1 %v3501_v50 }
 0x5c6   : > { %v3207_v54 = vpop.f32.mrf.mxu0 }
 0x5c7   : > { %v20829_v46 = vmul.f32 %v3384_v8, %v3207_v54 }
 0x5c8   : > { %v3209_v48 = vpop.f32.mrf.mxu0  ;;  %16380 = vmatpush3.bf16.msra.mxu1 %v3493_v27 }
 0x5c9   : > { %v3509_v52 = vpack.c.bf16 %v20829_v46, %v20827_v13  ;;  %16381 = vmatprep.subr.bf16.mxu1 %v3500_v57 }
 0x5ca   : > { %v3212_v21 = vpop.f32.mrf.mxu0 }
 0x5cb   : > { %v20845_v20 = vmul.f32 %v3385_v35, %v3212_v21  ;;  %v3395_v21 = vld [vmem:[#allocation11 + $0x180] sm:$0xff] }
 0x5cc   : > { %v3214_v38 = vpop.f32.mrf.mxu0  ;;  %16382 = vmatpush3.bf16.msra.mxu1 %v3492_v14  ;;  %v3387_v14 = vld [vmem:[#allocation11 + $0x140] sm:$0xff] }
 0x5cd   : > { %16383 = vmatprep.subr.bf16.mxu1 %v3499_v42  ;;  %v3396_v38 = vld [vmem:[#allocation11 + $0x188] sm:$0xff] }
 0x5ce   : > { %v3215_v24 = vpop.f32.mrf.mxu0 }
 0x5cf   : > { %v20847_v27 = vmul.f32 %v3386_v0, %v3215_v24 }
 0x5d0   : > { %v3217_v56 = vpop.f32.mrf.mxu0  ;;  %16384 = vmatpush3.bf16.msra.mxu1 %v3491_v7  ;;  %v3389_v7 = vld [vmem:[#allocation11 + $0x150] sm:$0xff] }
 0x5d1   : > { %v3510_v32 = vpack.c.bf16 %v20847_v27, %v20845_v20  ;;  %v3418_v20 = vld [vmem:[#allocation11 + $0x238] sm:$0xff] }
 0x5d2   : > { %v3220_v47 = vpop.f32.mrf.mxu0 }
 0x5d3   : > { %3704 = vmatmul.mubr.bf16.vlgmr.msra.gmra.mxu1 %v17654_v16  ;;  %v20854_v57 = vmul.f32 %v3387_v14, %v3220_v47  ;;  %v3397_v14 = vld [vmem:[#allocation11 + $0x190] sm:$0xff] }
 0x5d4   : > { %v3222_v37 = vpop.f32.mrf.mxu0  ;;  %3711 = vmatprep.mubr.bf16.mxu1 %v17657_v58 }
 0x5d6   : > { %v3223_v42 = vpop.f32.mrf.mxu0 }
 0x5d7   : > { %v20856_v19 = vmul.f32 %v3388_v39, %v3223_v42  ;;  %v3398_v39 = vld [vmem:[#allocation11 + $0x198] sm:$0xff] }
 0x5d8   : > { %v3225_v23 = vpop.f32.mrf.mxu0 }
 0x5d9   : > { %v3511_v61 = vpack.c.bf16 %v20856_v19, %v20854_v57  ;;  %v3415_v57 = vld [vmem:[#allocation11 + $0x220] sm:$0xff]  ;;  %v3416_v19 = vld [vmem:[#allocation11 + $0x228] sm:$0xff] }
 0x5da   : > { %v3228_v5 = vpop.f32.mrf.mxu0 }
 0x5db   : > { %3712 = vmatmul.mubr.bf16.gmra.mxu1 %v17659_v26  ;;  %v20860_v40 = vmul.f32 %v3389_v7, %v3228_v5 }
 0x5dc   : > { %v3230_v30 = vpop.f32.mrf.mxu0  ;;  %3719 = vmatprep.mubr.bf16.mxu1 %v17660_v31 }
 0x5de   : > { %v3231_v36 = vpop.f32.mrf.mxu0 }
 0x5df   : > { %v20862_v29 = vmul.f32 %v3390_v34, %v3231_v36 }
 0x5e0   : > { %v3233_v45 = vpop.f32.mrf.mxu0 }
 0x5e1   : > { %v3512_v22 = vpack.c.bf16 %v20862_v29, %v20860_v40 }
 0x5e2   : > { %v3236_v28 = vpop.f32.mrf.mxu0 }
 0x5e3   : > { %3720 = vmatmul.mubr.bf16.gmra.mxu1 %v17662_v25  ;;  %v20866_v55 = vmul.f32 %v3391_v17, %v3236_v28 }
 0x5e4   : > { %v3238_v15 = vpop.f32.mrf.mxu0  ;;  %3727 = vmatprep.mubr.bf16.mxu1 %v17663_v49 }
 0x5e6   : > { %v3239_v53 = vpop.f32.mrf.mxu0 }
 0x5e7   : > { %v20868_v59 = vmul.f32 %v3392_v51, %v3239_v53 }
 0x5e8   : > { %v3241_v9 = vpop.f32.mrf.mxu0 }
 0x5e9   : > { %v3513_v12 = vpack.c.bf16 %v20868_v59, %v20866_v55 }
 0x5ea   : > { %v3244_v60 = vpop.f32.mrf.mxu0 }
 0x5eb   : > { %3728 = vmatmul.mubr.bf16.gmra.mxu1 %v17665_v43  ;;  %v20872_v6 = vmul.f32 %v3393_v4, %v3244_v60 }
 0x5ec   : > { %v3246_v62 = vpop.f32.mrf.mxu0  ;;  %3768 = vmatprep.mubr.bf16.mxu1 %v17668_v11 }
 0x5ee   : > { %v3247_v50 = vpop.f32.mrf.mxu0 }
 0x5ef   : > { %v3466_v3 = vmul.f32 %v3394_v1, %v3247_v50 }
 0x5f0   : > { %v3249_v8 = vpop.f32.mrf.mxu0 }
 0x5f1   : > { %v3514_v54 = vpack.c.bf16 %v3466_v3, %v20872_v6  ;;  %v3408_v3 = vld [vmem:[#allocation11 + $0x1e8] sm:$0xff]  ;;  %v3409_v8 = vld [vmem:[#allocation11 + $0x1f0] sm:$0xff] }
 0x5f2   : > { %v3252_v48 = vpop.f32.mrf.mxu0 }
 0x5f3   : > { %v20875_v24 = vmul.f32 %v3395_v21, %v3252_v48  ;;  %v3410_v21 = vld [vmem:[#allocation11 + $0x1f8] sm:$0xff] }
 0x5f4   : > { %v3254_v35 = vpop.f32.mrf.mxu0 }
 0x5f5   : > { %v3407_v35 = vld [vmem:[#allocation11 + $0x1e0] sm:$0xff] }
 0x5f6   : > { %v3255_v0 = vpop.f32.mrf.mxu0 }
 0x5f7   : > { %v20877_v16 = vmul.f32 %v3396_v38, %v3255_v0 }
 0x5f8   : > { %v3257_v56 = vpop.f32.mrf.mxu0 }
 0x5f9   : > { %v3515_v58 = vpack.c.bf16 %v20877_v16, %v20875_v24  ;;  %v3412_v24 = vld [vmem:[#allocation11 + $0x208] sm:$0xff] }
 0x5fa   : > { %v3260_v47 = vpop.f32.mrf.mxu0 }
 0x5fb   : > { %v20881_v26 = vmul.f32 %v3397_v14, %v3260_v47  ;;  %v3406_v14 = vld [vmem:[#allocation11 + $0x1d8] sm:$0xff] }
 0x5fc   : > { %v3262_v37 = vpop.f32.mrf.mxu0 }
 0x5fe   : > { %v3263_v42 = vpop.f32.mrf.mxu0 }
 0x5ff   : > { %v20883_v23 = vmul.f32 %v3398_v39, %v3263_v42 }
 0x600   : > { %v3265_v31 = vpop.f32.mrf.mxu0 }
 0x601   : > { %v3516_v5 = vpack.c.bf16 %v20883_v23, %v20881_v26  ;;  %v3405_v31 = vld [vmem:[#allocation11 + $0x1d0] sm:$0xff]  ;;  %v3414_v23 = vld [vmem:[#allocation11 + $0x218] sm:$0xff] }
 0x602   : > { %v20887_v7 = vpop.f32.mrf.mxu0  ;;  %v3413_v26 = vld [vmem:[#allocation11 + $0x210] sm:$0xff] }
 0x604   : > { %v3270_v30 = vpop.f32.mrf.mxu0 }
 0x606   : > { %v3271_v34 = vpop.f32.mrf.mxu0 }
 0x608   : > { %v3273_v36 = vpop.f32.mrf.mxu0 }
 0x60a   : > { %v3276_v25 = vpop.f32.mrf.mxu0 }
 0x60c   : > { %v3278_v45 = vpop.f32.mrf.mxu0 }
 0x60e   : > { %v3279_v49 = vpop.f32.mrf.mxu0 }
 0x610   : > { %v3281_v28 = vpop.f32.mrf.mxu0 }
 0x611   : > { %v3404_v28 = vld [vmem:[#allocation11 + $0x1c8] sm:$0xff] }
 0x612   : > { %v3284_v17 = vpop.f32.mrf.mxu0 }
 0x614   : > { %v3286_v15 = vpop.f32.mrf.mxu0 }
 0x616   : > { %v3287_v51 = vpop.f32.mrf.mxu0 }
 0x618   : > { %v3289_v53 = vpop.f32.mrf.mxu0 }
 0x61a   : > { %v3292_v43 = vpop.f32.mrf.mxu0 }
 0x61b   : > { %v3477_v53 = vmul.f32 %v3405_v31, %v3292_v43  ;;  %v17678_v31 = vld [vmem:[#allocation13 + $0x10] ss:$20 sps:$4 sm:$0xff]  }
 0x61c   : > { %v3294_v9 = vpop.f32.mrf.mxu0 }
 0x61d   : > { %v3403_v9 = vld [vmem:[#allocation11 + $0x1c0] sm:$0xff] }
 0x61e   : > { %v3295_v11 = vpop.f32.mrf.mxu0 }
 0x61f   : > { %v3478_v36 = vmul.f32 %v3406_v14, %v3295_v11  ;;  %v3401_v11 = vld [vmem:[#allocation11 + $0x1b0] sm:$0xff] }
 0x620   : > { %v3297_v60 = vpop.f32.mrf.mxu0 }
 0x622   : > { %v3300_v4 = vpop.f32.mrf.mxu0 }
 0x623   : > { %v3479_v39 = vmul.f32 %v3407_v35, %v3300_v4  ;;  %v3475_v4 = vmul.f32 %v3403_v9, %v3284_v17  ;;  %v17685_v9 = vld [vmem:[#allocation16 + $0x20] sm:$0xff]  }
 0x624   : > { %v3302_v62 = vpop.f32.mrf.mxu0 }
 0x625   : > { %v3476_v62 = vmul.f32 %v3404_v28, %v3287_v51  ;;  %v3473_v51 = vmul.f32 %v3401_v11, %v3276_v25  ;;  %v17682_v28 = vld [vmem:[#allocation16 + $0x38] sm:$0xff]  }
 0x626   : > { %v3303_v1 = vpop.f32.mrf.mxu0 }
 0x627   : > { %v3480_v0 = vmul.f32 %v3408_v3, %v3303_v1  ;;  %v3520_v1 = vpack.c.bf16 %v3478_v36, %v3477_v53  ;;  %v17680_v36 = vld [vmem:[#allocation13 + $0x60] ss:$20 sps:$4 sm:$0xff]   ;;  %v17684_v53 = vld [vmem:[#allocation16 + $0x28] sm:$0xff]  }
 0x628   : > { %v3305_v50 = vpop.f32.mrf.mxu0 }
 0x629   : > { %v3521_v45 = vpack.c.bf16 %v3480_v0, %v3479_v39  ;;  %v3402_v50 = vld [vmem:[#allocation11 + $0x1b8] sm:$0xff] }
 0x62a   : > { %v3308_v6 = vpop.f32.mrf.mxu0  ;;  %v17675_v39 = vld [vmem:[#allocation13 + $0x84] ss:$20 sps:$4 sm:$0xff]  }
 0x62b   : > { %v3481_v56 = vmul.f32 %v3409_v8, %v3308_v6  ;;  %v3474_v8 = vmul.f32 %v3402_v50, %v3279_v49  ;;  %v17689_v50 = vld [vmem:[#allocation16] sm:$0xff]  }
 0x62c   : > { %v3310_v48 = vpop.f32.mrf.mxu0 }
 0x62d   : > { %v3519_v48 = vpack.c.bf16 %v3476_v62, %v3475_v4  ;;  %v3518_v0 = vpack.c.bf16 %v3474_v8, %v3473_v51  ;;  %v17687_v62 = vld [vmem:[#allocation16 + $0x10] sm:$0xff]  }
 0x62e   : > { %v3311_v38 = vpop.f32.mrf.mxu0 }
 0x62f   : > { %v3482_v47 = vmul.f32 %v3410_v21, %v3311_v38  ;;  %v3399_v21 = vld [vmem:[#allocation11 + $0x1a0] sm:$0xff] }
 0x630   : > { %v3313_v37 = vpop.f32.mrf.mxu0  ;;  %v3471_v59 = vmul.f32 %v3399_v21, %v20887_v7 }
 0x631   : > { %v3522_v42 = vpack.c.bf16 %v3482_v47, %v3481_v56  ;;  %v3411_v47 = vld [vmem:[#allocation11 + $0x200] sm:$0xff]  ;;  %v17674_v37 = vld [vmem:[#allocation13 + $0x58] ss:$20 sps:$4 sm:$0xff]  }
 0x632   : > { %v20889_v30 = vpop.f32.mrf.mxu0 }
 0x633   : > { %16409 = vmatprep.subr.bf16.mxu1 %v3522_v42  ;;  %v3483_v16 = vmul.f32 %v3411_v47, %v20889_v30  ;;  %v17677_v42 = vld [vmem:[#allocation13 + $0x80] ss:$20 sps:$4 sm:$0xff]   ;;  %v17679_v30 = vld [vmem:[#allocation13 + $0x38] ss:$20 sps:$4 sm:$0xff]  }
 0x634   : > { %v3318_v15 = vpop.f32.mrf.mxu0  ;;  %16410 = vmatpush3.bf16.msra.mxu1 %v3514_v54  ;;  %v3400_v54 = vld [vmem:[#allocation11 + $0x1a8] sm:$0xff] }
 0x635   : > { %16411 = vmatprep.subr.bf16.mxu1 %v3521_v45  ;;  %v3472_v38 = vmul.f32 %v3400_v54, %v3271_v34  ;;  %v17681_v45 = vld [vmem:[#allocation13 + $0x88] ss:$20 sps:$4 sm:$0xff]   ;;  %v17683_v15 = vld [vmem:[#allocation16 + $0x30] sm:$0xff]  }
 0x636   : > { %v20891_v60 = vpop.f32.mrf.mxu0 }
 0x637   : > { %v3517_v49 = vpack.c.bf16 %v3472_v38, %v3471_v59 }
 0x638   : > { %v3321_v6 = vpop.f32.mrf.mxu0  ;;  %16412 = vmatpush3.bf16.msra.mxu1 %v3513_v12 }
 0x639   : > { %16413 = vmatprep.subr.bf16.mxu1 %v3520_v1  ;;  %v17688_v1 = vld [vmem:[#allocation16 + $0x8] sm:$0xff]  }
 0x63a   : > { %v3324_v3 = vpop.f32.mrf.mxu0  ;;  %v17692_v6 = vld [vmem:[#allocation19 + $0xac] ss:$12 sps:$4 sm:$0xff]  }
 0x63b   : > { %v3485_v25 = vmul.f32 %v3413_v26, %v3324_v3 }
 0x63c   : > { %v3326_v43 = vpop.f32.mrf.mxu0  ;;  %16414 = vmatpush3.bf16.msra.mxu1 %v3512_v22  ;;  %v3417_v22 = vld [vmem:[#allocation11 + $0x230] sm:$0xff] }
 0x63d   : > { %16415 = vmatprep.subr.bf16.mxu1 %v3519_v48 }
 0x63e   : > { %v3327_v35 = vpop.f32.mrf.mxu0 }
 0x63f   : > { %v3486_v56 = vmul.f32 %v3414_v23, %v3327_v35 }
 0x640   : > { %v3329_v55 = vpop.f32.mrf.mxu0  ;;  %16416 = vmatpush3.bf16.msra.mxu1 %v3511_v61 }
 0x641   : > { %16417 = vmatprep.subr.bf16.mxu1 %v3518_v0  ;;  %v3524_v14 = vpack.c.bf16 %v3486_v56, %v3485_v25 }
 0x642   : > { %v3332_v12 = vpop.f32.mrf.mxu0 }
 0x643   : > { %v3487_v27 = vmul.f32 %v3415_v57, %v3332_v12 }
 0x644   : > { %v3334_v17 = vpop.f32.mrf.mxu0  ;;  %16418 = vmatpush3.bf16.msra.mxu1 %v3510_v32 }
 0x645   : > { %16419 = vmatprep.subr.bf16.mxu1 %v3517_v49 }
 0x646   : > { %v3335_v40 = vpop.f32.mrf.mxu0 }
 0x647   : > { %v3488_v32 = vmul.f32 %v3416_v19, %v3335_v40 }
 0x648   : > { %v3337_v29 = vpop.f32.mrf.mxu0  ;;  %16420 = vmatpush3.bf16.msra.mxu1 %v3509_v52  ;;  %v17666_v52 = vld [vmem:[#allocation13 + $0x8] ss:$20 sps:$4 sm:$0xff]  }
 0x649   : > { %16421 = vmatprep.subr.bf16.mxu1 %v3516_v5  ;;  %v3525_v10 = vpack.c.bf16 %v3488_v32, %v3487_v27 }
 0x64a   : > { %v3340_v61 = vpop.f32.mrf.mxu0 }
 0x64b   : > { %v3489_v34 = vmul.f32 %v3417_v22, %v3340_v61 }
 0x64c   : > { %v3342_v7 = vpop.f32.mrf.mxu0  ;;  %16422 = vmatpush3.bf16.msra.mxu1 %v3508_v63 }
 0x64d   : > { %16423 = vmatprep.subr.bf16.mxu1 %v3515_v58  ;;  %v3484_v58 = vmul.f32 %v3412_v24, %v20891_v60  ;;  %v17686_v60 = vld [vmem:[#allocation16 + $0x18] sm:$0xff]  }
 0x64e   : > { %v3343_v13 = vpop.f32.mrf.mxu0 }
 0x64f   : > { %v3490_v46 = vmul.f32 %v3418_v20, %v3343_v13 }
 0x650   : > { %16424 = vmatpush3.bf16.msra.mxu1 %v3507_v33  ;;  %v3345_v5 = vpop.f32.mrf.mxu0  ;;  %v3523_v33 = vpack.c.bf16 %v3484_v58, %v3483_v16 }
 0x651   : > { %v3526_v63 = vpack.c.bf16 %v3490_v46, %v3489_v34  ;;  %v15298_v5 = vld [vmem:[#allocation14] ss:$0 sm:$0xff] }
 0x653   : > { %3769 = vmatmul.mubr.bf16.vlgmr.msra.gmra.mxu1 %v17666_v52  ;;  %16836 = vmatprep.subr.bf16.mxu1 %v3526_v63 }
 0x654   : > { %16837 = vmatpush3.bf16.msra.mxu1 %v3526_v63  ;;  %3776 = vmatprep.mubr.bf16.mxu1 %v17669_v2 }
 0x655   : > { %16838 = vmatprep.subr.bf16.mxu1 %v3525_v10 }
 0x658   : > { %16839 = vmatpush3.bf16.msra.mxu1 %v3525_v10 }
 0x659   : > { %16840 = vmatprep.subr.bf16.mxu1 %v3524_v14 }
 0x65b   : > { %3777 = vmatmul.mubr.bf16.gmra.mxu1 %v17671_v41 }
 0x65c   : > { %16841 = vmatpush3.bf16.msra.mxu1 %v3524_v14  ;;  %3784 = vmatprep.mubr.bf16.mxu1 %v17672_v44 }
 0x65d   : > { %16842 = vmatprep.subr.bf16.mxu1 %v3523_v33 }
 0x660   : > { %16843 = vmatpush3.bf16.msra.mxu1 %v3523_v33 }
 0x661   : > { %16852 = vmatprep.subr.bf16.mxu1 %v17682_v28 }
 0x663   : > { %3785 = vmatmul.mubr.bf16.gmra.mxu1 %v17674_v37 }
 0x664   : > { %3792 = vmatprep.mubr.bf16.mxu1 %v17675_v39 }
 0x66b   : > { %3793 = vmatmul.mubr.bf16.gmra.mxu1 %v17677_v42 }
 0x66c   : > { %16844 = vmatprep.mubr.msk.bf16.mxu1 %vm3658_vm0, %v17678_v31 }
 0x673   : > { %16845 = vmatmul.mubr.msk.bf16.vlgmr.msra.gmra.mxu1 %vm3658_vm0, %v17679_v30 }
 0x674   : > { %16848 = vmatprep.mubr.msk.bf16.mxu1 %vm3658_vm0, %v17680_v36  ;;  %16853 = vmatpush3.bf16.msra.mxu1 %v17682_v28 }
 0x675   : > { %16854 = vmatprep.subr.bf16.mxu1 %v17683_v15 }
 0x678   : > { %16855 = vmatpush3.bf16.msra.mxu1 %v17683_v15 }
 0x679   : > { %16856 = vmatprep.subr.bf16.mxu1 %v17684_v53 }
 0x67b   : > { %16849 = vmatmul.mubr.msk.bf16.gmra.mxu1 %vm3658_vm0, %v17681_v45 }
 0x67c   : > { %16857 = vmatpush3.bf16.msra.mxu1 %v17684_v53 }
 0x67d   : > { %16858 = vmatprep.subr.bf16.mxu1 %v17685_v9 }
 0x680   : > { %16859 = vmatpush3.bf16.msra.mxu1 %v17685_v9 }
 0x681   : > { %16860 = vmatprep.subr.bf16.mxu1 %v17686_v60 }
 0x684   : > { %16861 = vmatpush3.bf16.msra.mxu1 %v17686_v60 }
 0x685   : > { %16862 = vmatprep.subr.bf16.mxu1 %v17687_v62 }
 0x688   : > { %16863 = vmatpush3.bf16.msra.mxu1 %v17687_v62 }
 0x689   : > { %16864 = vmatprep.subr.bf16.mxu1 %v17688_v1 }
 0x68c   : > { %16865 = vmatpush3.bf16.msra.mxu1 %v17688_v1 }
 0x68d   : > { %16866 = vmatprep.subr.bf16.mxu1 %v17689_v50 }
 0x690   : > { %16867 = vmatpush3.bf16.msra.mxu1 %v17689_v50 }
 0x691   : > { %4195 = vmatprep.subr.bf16.mxu1 %v17692_v6 }
 0x693   : > { %v16385_v4 = vpop.f32.mrf.mxu1 }
 0x695   : > { %v16386_v11 = vpop.f32.mrf.mxu1 }
 0x696   : > { %v16387_v26 = vadd.f32 %v16386_v11, %v16385_v4 }
 0x697   : > { %v16388_v3 = vpop.f32.mrf.mxu1 }
 0x698   : > { %v3706_v16 = vadd.f32 %v16387_v26, %v15298_v5 }
 0x699   : > { %v16389_v8 = vpop.f32.mrf.mxu1 }
 0x69a   : > { %v16390_v63 = vadd.f32 %v16389_v8, %v16388_v3 }
 0x69b   : > { %v16391_v48 = vpop.f32.mrf.mxu1 }
 0x69c   : > { %v3709_v33 = vadd.f32 %v16390_v63, %v15298_v5  ;;  %v17699_v63 = vld [vmem:[#allocation19 + $0x60] ss:$12 sps:$4 sm:$0xff]  }
 0x69d   : > { %v16392_v54 = vpop.f32.mrf.mxu1 }
 0x69e   : > { %v16393_v2 = vadd.f32 %v16392_v54, %v16391_v48 }
 0x69f   : > { %v16394_v43 = vpop.f32.mrf.mxu1 }
 0x6a0   : > { %v3714_v41 = vadd.f32 %v16393_v2, %v15298_v5 }
 0x6a1   : > { %v16395_v51 = vpop.f32.mrf.mxu1 }
 0x6a2   : > { %v16396_v23 = vadd.f32 %v16395_v51, %v16394_v43 }
 0x6a3   : > { %v16397_v21 = vpop.f32.mrf.mxu1 }
 0x6a4   : > { %v3717_v58 = vadd.f32 %v16396_v23, %v15298_v5 }
 0x6a5   : > { %v16398_v35 = vpop.f32.mrf.mxu1 }
 0x6a6   : > { %v16399_v42 = vadd.f32 %v16398_v35, %v16397_v21 }
 0x6a7   : > { %v16400_v38 = vpop.f32.mrf.mxu1 }
 0x6a8   : > { %v3722_v4 = vadd.f32 %v16399_v42, %v15298_v5  ;;  %v15323_v42 = vld [vmem:[#allocation17] ss:$0 sm:$0xff] }
 0x6a9   : > { %v16401_v0 = vpop.f32.mrf.mxu1 }
 0x6aa   : > { %v16402_v62 = vadd.f32 %v16401_v0, %v16400_v38 }
 0x6ab   : > { %v16403_v55 = vpop.f32.mrf.mxu1 }
 0x6ad   : > { %v16404_v59 = vpop.f32.mrf.mxu1 }
 0x6ae   : > { %v16405_v53 = vadd.f32 %v16404_v59, %v16403_v55 }
 0x6af   : > { %v16406_v12 = vpop.f32.mrf.mxu1 }
 0x6b0   : > { %v3730_v21 = vadd.f32 %v16405_v53, %v15298_v5 }
 0x6b1   : > { %v16407_v49 = vpop.f32.mrf.mxu1 }
 0x6b2   : > { %v16408_v36 = vadd.f32 %v16407_v49, %v16406_v12  ;;  %v3725_v49 = vadd.f32 %v16402_v62, %v15298_v5 }
 0x6b4   : > { %v3733_v48 = vadd.f32 %v16408_v36, %v15298_v5  ;;  %v17696_v5 = vld [vmem:[#allocation19 + $0x78] ss:$12 sps:$4 sm:$0xff]  }
 0x713   : > { %v16425_v17 = vpop.f32.mrf.mxu1 }
 0x715   : > { %v16426_v40 = vpop.f32.mrf.mxu1 }
 0x716   : > { %v16427_v25 = vadd.f32 %v16426_v40, %v16425_v17  ;;  %v17690_v40 = vld [vmem:[#allocation19 + $0xa8] ss:$12 sps:$4 sm:$0xff]  }
 0x717   : > { %v16428_v29 = vpop.f32.mrf.mxu1 }
 0x718   : > { %v3771_v37 = vadd.f32 %v16427_v25, %v3706_v16  ;;  %v17704_v25 = vld [vmem:[#allocation19 + $0x4c] ss:$12 sps:$4 sm:$0xff]   ;;  %v17710_v16 = vld [vmem:[#allocation19 + $0x1c] ss:$12 sps:$4 sm:$0xff]  }
 0x719   : > { %v16429_v57 = vpop.f32.mrf.mxu1 }
 0x71a   : > { %v16430_v14 = vadd.f32 %v16429_v57, %v16428_v29  ;;  %v17695_v57 = vld [vmem:[#allocation19 + $0x94] ss:$12 sps:$4 sm:$0xff]  }
 0x71b   : > { %v16431_v19 = vpop.f32.mrf.mxu1 }
 0x71c   : > { %v3774_v15 = vadd.f32 %v16430_v14, %v3709_v33  ;;  %v17713_v14 = vld [vmem:[#allocation19 + $0x4] ss:$12 sps:$4 sm:$0xff]  }
 0x71d   : > { %v16432_v61 = vpop.f32.mrf.mxu1 }
 0x71e   : > { %v16433_v47 = vadd.f32 %v16432_v61, %v16431_v19 }
 0x71f   : > { %v16434_v22 = vpop.f32.mrf.mxu1 }
 0x720   : > { %v3779_v31 = vadd.f32 %v16433_v47, %v3714_v41  ;;  %v17707_v47 = vld [vmem:[#allocation19 + $0x34] ss:$12 sps:$4 sm:$0xff]  }
 0x721   : > { %v16435_v7 = vpop.f32.mrf.mxu1  ;;  %v17711_v41 = vld [vmem:[#allocation19] ss:$12 sps:$4 sm:$0xff]  }
 0x722   : > { %v16436_v56 = vadd.f32 %v16435_v7, %v16434_v22 }
 0x723   : > { %v16437_v20 = vpop.f32.mrf.mxu1 }
 0x724   : > { %v3782_v39 = vadd.f32 %v16436_v56, %v3717_v58  ;;  %v17702_v56 = vld [vmem:[#allocation19 + $0x48] ss:$12 sps:$4 sm:$0xff]   ;;  %v17708_v58 = vld [vmem:[#allocation19 + $0x18] ss:$12 sps:$4 sm:$0xff]  }
 0x725   : > { %v16438_v27 = vpop.f32.mrf.mxu1 }
 0x726   : > { %v16439_v1 = vadd.f32 %v16438_v27, %v16437_v20 }
 0x727   : > { %v16440_v32 = vpop.f32.mrf.mxu1 }
 0x728   : > { %v3787_v17 = vadd.f32 %v16439_v1, %v3722_v4 }
 0x729   : > { %v16441_v34 = vpop.f32.mrf.mxu1 }
 0x72a   : > { %v16442_v54 = vadd.f32 %v16441_v34, %v16440_v32  ;;  %v17693_v32 = vld [vmem:[#allocation19 + $0x90] ss:$12 sps:$4 sm:$0xff]  }
 0x72b   : > { %v16443_v13 = vpop.f32.mrf.mxu1 }
 0x72c   : > { %v3790_v22 = vadd.f32 %v16442_v54, %v3725_v49  ;;  %v17719_v54 = vld [vmem:[#allocation19 + $0x38] ss:$12 sps:$4 sm:$0xff]   ;;  %v22973_v49 = vmov 0.0  }
 0x72d   : > { %v16444_v46 = vpop.f32.mrf.mxu1  ;;  %16900 = vmatprep.subr.bf16.mxu0 %v22973_v49  ;;  %16908 = vmatprep.mubr.msk.bf16.mxu0 %vm19982_vm1, %v22973_v49 }
 0x72e   : > { %v16445_v11 = vadd.f32 %v16444_v46, %v16443_v13  ;;  %v17698_v13 = vld [vmem:[#allocation19 + $0x7c] ss:$12 sps:$4 sm:$0xff]  }
 0x72f   : > { %v16446_v52 = vpop.f32.mrf.mxu1 }
 0x730   : > { %v3795_v0 = vadd.f32 %v16445_v11, %v3730_v21 }
 0x731   : > { %v16447_v10 = vpop.f32.mrf.mxu1 }
 0x732   : > { %v16448_v50 = vadd.f32 %v16447_v10, %v16446_v52  ;;  %v17701_v10 = vld [vmem:[#allocation19 + $0x64] ss:$12 sps:$4 sm:$0xff]  }
 0x733   : > { %v16846_v24 = vpop.f32.mrf.mxu1 }
 0x734   : > { %v3844_v9 = vadd.f32 %v16846_v24, %v3779_v31  ;;  %v3798_v55 = vadd.f32 %v16448_v50, %v3733_v48  ;;  %v17705_v24 = vld [vmem:[#allocation19 + $0x30] ss:$12 sps:$4 sm:$0xff]  }
 0x735   : > { %v3835_v44 = vpop.f32.mrf.mxu1 }
 0x736   : > { %v3836_v45 = vadd.f32 %v3835_v44, %v3771_v37  ;;  %v3868_v35 = vmax.f32 %v3844_v9, 0.0  ;;  %v17714_v44 = vld [vmem:[#allocation19 + $0xb0] ss:$12 sps:$4 sm:$0xff]  }
 0x737   : > { %v16847_v30 = vpop.f32.mrf.mxu1 }
 0x738   : > { %v3847_v28 = vadd.f32 %v16847_v30, %v3782_v39  ;;  %v3866_v43 = vmax.f32 %v3836_v45, 0.0 }
 0x739   : > { %v3838_v60 = vpop.f32.mrf.mxu1 }
 0x73a   : > { %v3839_v6 = vadd.f32 %v3838_v60, %v3774_v15  ;;  %v3869_v3 = vmax.f32 %v3847_v28, 0.0  ;;  %v17715_v15 = vld [vmem:[#allocation19 + $0x98] ss:$12 sps:$4 sm:$0xff]   ;;  %v17716_v60 = vld [vmem:[#allocation19 + $0x80] ss:$12 sps:$4 sm:$0xff]  }
 0x73b   : > { %v16850_v8 = vpop.f32.mrf.mxu1 }
 0x73c   : > { %v3867_v51 = vmax.f32 %v3839_v6, 0.0  ;;  %v3875_v38 = vpack.c.bf16 %v3869_v3, %v3868_v35  ;;  %v3860_v7 = vadd.f32 %v16850_v8, %v3795_v0  ;;  %v17717_v6 = vld [vmem:[#allocation19 + $0x68] ss:$12 sps:$4 sm:$0xff]   ;;  %v17718_v3 = vld [vmem:[#allocation19 + $0x50] ss:$12 sps:$4 sm:$0xff]  }
 0x73d   : > { %v3851_v12 = vpop.f32.mrf.mxu1 }
 0x73e   : > { %v3874_v59 = vpack.c.bf16 %v3867_v51, %v3866_v43  ;;  %v3852_v19 = vadd.f32 %v3851_v12, %v3787_v17  ;;  %v3872_v26 = vmax.f32 %v3860_v7, 0.0  ;;  %v17720_v51 = vld [vmem:[#allocation19 + $0x20] ss:$12 sps:$4 sm:$0xff]   ;;  %v17721_v12 = vld [vmem:[#allocation19 + $0x8] ss:$12 sps:$4 sm:$0xff]  }
 0x73f   : > { %v16851_v29 = vpop.f32.mrf.mxu1 }
 0x740   : > { %v3863_v61 = vadd.f32 %v16851_v29, %v3798_v55  ;;  %16868 = vmatprep.mubr.bf16.mxu1 %v3874_v59  ;;  %v3870_v46 = vmax.f32 %v3852_v19, 0.0  ;;  %v4052_v19 = vlaneseq }
 0x741   : > { %v3854_v20 = vpop.f32.mrf.mxu1  ;;  %16869 = vmatmul.mubr.bf16.vlgmr.msra.gmra.mxu1 %v3875_v38 }
 0x742   : > { %v3855_v27 = vadd.f32 %v3854_v20, %v3790_v22  ;;  %4196 = vmatpush1.bf16.msra.mxu1 %v17690_v40  ;;  %v3873_v34 = vmax.f32 %v3863_v61, 0.0  ;;  %v20937_v7 = vshrl.u32 %v4052_v19, 7 }
 0x743   : > { %4197 = vmatprep.subr.bf16.mxu1 %v17695_v57 }
 0x744   : > { %v3871_v52 = vmax.f32 %v3855_v27, 0.0  ;;  %v3877_v2 = vpack.c.bf16 %v3873_v34, %v3872_v26  ;;  %23159 = vst [vmem:[#allocation123_spill] sm:$0xff] %v20937_v7  ;;  %v20943_v34 = vsub.s32 1, %v20937_v7 }
 0x746   : > { %v3876_v23 = vpack.c.bf16 %v3871_v52, %v3870_v46  ;;  %4198 = vmatpush1.bf16.msra.mxu1 %v17693_v32  ;;  %v20940_v32 = vsub.s32 0, %v20937_v7  ;;  %23161 = vst [vmem:[#allocation125_spill] sm:$0xff] %v20943_v34 }
 0x747   : > { %4199 = vmatprep.subr.bf16.mxu1 %v17698_v13  ;;  %v4050_v13 = vld [vmem:[%s23158_s5] sm:$0x7]  ;;  %s19748_s5 = sshll.u32 %s19983_s14, 4  ;;  %s19749_s5 = int_to_ptr.vmem [resolvable:$false] %s19748_s5 }
 0x748   : > { %16872 = vmatprep.mubr.bf16.mxu1 %v3876_v23  ;;  %23160 = vst [vmem:[#allocation124_spill] sm:$0xff] %v20940_v32  ;;  %v4055_v26 = vrot.slane %v4050_v13, %v20940_v32  ;;  %v4059_v23 = vrot.slane %v4050_v13, %v20943_v34  ;;  %s19750_s28 = scalar_lea.vmem %s19749_s5, 32  ;;  %p19751_p8 = scmp.lt.s32.totalorder %s14657_s2, %s19749_s5 }
 0x749   : > { %16873 = vmatmul.mubr.bf16.gmra.mxu1 %v3877_v2  ;;  %p19752_p11 = scmp.lt.s32.totalorder %s19750_s28, %s19744_s10 }
 0x74a   : > { %4200 = vmatpush1.bf16.msra.mxu1 %v17696_v5  ;;  %4227 = vmatprep.mubr.bf16.mxu1 %v22975_v18 }
 0x74b   : > { %4201 = vmatprep.subr.bf16.mxu1 %v17701_v10  ;;  %p19753_p12 = por %p19752_p11, %p19751_p8 }
 0x74d   : > { %p19754_p13 = pnand %p19753_p12, %p19747_p7 }
 0x74e   : > { %4202 = vmatpush1.bf16.msra.mxu1 %v17699_v63 }
 0x74f   : > { %4203 = vmatprep.subr.bf16.mxu1 %v17704_v25 }
 0x752   : > { %4204 = vmatpush1.bf16.msra.mxu1 %v17702_v56 }
 0x753   : > { %4205 = vmatprep.subr.bf16.mxu1 %v17707_v47 }
 0x756   : > { %4206 = vmatpush1.bf16.msra.mxu1 %v17705_v24 }
 0x757   : > { %4207 = vmatprep.subr.bf16.mxu1 %v17710_v16 }
 0x75a   : > { %4208 = vmatpush1.bf16.msra.mxu1 %v17708_v58 }
 0x75b   : > { %4209 = vmatprep.subr.bf16.mxu1 %v17713_v14 }
 0x75e   : > { %4210 = vmatpush1.bf16.msra.mxu1 %v17711_v41 }
 0x75f   : > { %16876 = vmatprep.subr.bf16.mxu1 %v17714_v44 }
 0x801   : > { %v16870_v33 = vpop.f32.mrf.mxu1 }
 0x802   : > { %v3992_v1 = vadd.f32 %v16870_v33, %v15323_v42 }
 0x803   : > { %v3983_v37 = vpop.f32.mrf.mxu1 }
 0x804   : > { %v3984_v30 = vadd.f32 %v15323_v42, %v3983_v37 }
 0x805   : > { %v16871_v39 = vpop.f32.mrf.mxu1 }
 0x806   : > { %v3995_v9 = vadd.f32 %v16871_v39, %v15323_v42 }
 0x807   : > { %v3986_v31 = vpop.f32.mrf.mxu1 }
 0x808   : > { %v3987_v36 = vadd.f32 %v15323_v42, %v3986_v31  ;;  %v4015_v50 = vpack.c.bf16 %v3995_v9, %v3992_v1  ;;  %v20951_v1 = vsub.s32 2, %v20937_v7  ;;  %v5176_v7 = vld [vmem:[#allocation20 + $0x148] sm:$0xff] }
 0x809   : > { %v16874_v45 = vpop.f32.mrf.mxu1 }
 0x80a   : > { %v4014_v28 = vpack.c.bf16 %v3987_v36, %v3984_v30  ;;  %v4008_v21 = vadd.f32 %v16874_v45, %v15323_v42  ;;  %23162 = vst [vmem:[#allocation126_spill] sm:$0xff] %v20951_v1 }
 0x80b   : > { %v3999_v53 = vpop.f32.mrf.mxu1 }
 0x80c   : > { %4228 = vmatmul.mubr.bf16.vlgmr.msra.gmra.mxu1 %v4014_v28  ;;  %v4000_v8 = vadd.f32 %v15323_v42, %v3999_v53 }
 0x80d   : > { %16877 = vmatpush3.bf16.msra.mxu1 %v17714_v44  ;;  %4237 = vmatprep.mubr.bf16.mxu1 %v22975_v18  ;;  %v16875_v62 = vpop.f32.mrf.mxu1 }
 0x80e   : > { %16878 = vmatprep.subr.bf16.mxu1 %v17715_v15  ;;  %v4011_v43 = vadd.f32 %v16875_v62, %v15323_v42 }
 0x80f   : > { %v4002_v4 = vpop.f32.mrf.mxu1 }
 0x810   : > { %v4003_v11 = vadd.f32 %v15323_v42, %v4002_v4  ;;  %v4017_v35 = vpack.c.bf16 %v4011_v43, %v4008_v21 }
 0x811   : > { %16879 = vmatpush3.bf16.msra.mxu1 %v17715_v15 }
 0x812   : > { %16880 = vmatprep.subr.bf16.mxu1 %v17716_v60  ;;  %v4016_v48 = vpack.c.bf16 %v4003_v11, %v4000_v8 }
 0x814   : > { %4238 = vmatmul.mubr.bf16.gmra.mxu1 %v4015_v50 }
 0x815   : > { %16881 = vmatpush3.bf16.msra.mxu1 %v17716_v60  ;;  %4247 = vmatprep.mubr.bf16.mxu1 %v22975_v18 }
 0x816   : > { %16882 = vmatprep.subr.bf16.mxu1 %v17717_v6 }
 0x819   : > { %16883 = vmatpush3.bf16.msra.mxu1 %v17717_v6 }
 0x81a   : > { %16884 = vmatprep.subr.bf16.mxu1 %v17718_v3 }
 0x81c   : > { %4248 = vmatmul.mubr.bf16.gmra.mxu1 %v4016_v48 }
 0x81d   : > { %16885 = vmatpush3.bf16.msra.mxu1 %v17718_v3  ;;  %4257 = vmatprep.mubr.bf16.mxu1 %v22975_v18 }
 0x81e   : > { %16886 = vmatprep.subr.bf16.mxu1 %v17719_v54 }
 0x821   : > { %16887 = vmatpush3.bf16.msra.mxu1 %v17719_v54 }
 0x822   : > { %16888 = vmatprep.subr.bf16.mxu1 %v17720_v51 }
 0x824   : > { %4258 = vmatmul.mubr.bf16.gmra.mxu1 %v4017_v35 }
 0x825   : > { %16889 = vmatpush3.bf16.msra.mxu1 %v17720_v51  ;;  %16892 = vmatprep.mubr.bf16.mxu1 %v4014_v28 }
 0x826   : > { %16890 = vmatprep.subr.bf16.mxu1 %v17721_v12 }
 0x829   : > { %16891 = vmatpush3.bf16.msra.mxu1 %v17721_v12 }
 0x82c   : > { %16893 = vmatmul.mubr.bf16.vlgmr.msra.gmra.mxu1 %v4015_v50 }
 0x82d   : > { %16896 = vmatprep.mubr.bf16.mxu1 %v4016_v48 }
 0x834   : > { %16897 = vmatmul.mubr.bf16.gmra.mxu1 %v4017_v35  ;;  %v4063_v35 = vrot.slane %v4050_v13, %v20951_v1  ;;  %v5169_v1 = vld [vmem:[#allocation20 + $0x110] sm:$0xff] }
 0x835   : > { %4651 = vmatprep.mubr.bf16.mxu1 %v22975_v18 }
 0x8cc   : > { %v20935_v17 = vpop.f32.mrf.mxu1 }
 0x8ce   : > { %v4231_v55 = vpop.f32.mrf.mxu1 }
 0x8cf   : > { %v4232_v3 = vadd.f32 %v4231_v55, %v4059_v23 }
 0x8d0   : > { %v4233_v59 = vpop.f32.mrf.mxu1 }
 0x8d1   : > { %v4234_v48 = vadd.f32 %v4233_v59, %v4055_v26 }
 0x8d2   : > { %v4235_v40 = vpop.f32.mrf.mxu1 }
 0x8d3   : > { %v4236_v60 = vadd.f32 %v4235_v40, %v4059_v23  ;;  %v4230_v40 = vadd.f32 %v20935_v17, %v4055_v26  ;;  %v4336_v19 = vmax.f32 %v4234_v48, 0.0  ;;  %v17742_v48 = vld [vmem:[%s23163_s4 + $0xa0] sm:$0xff]  }
 0x8d4   : > { %v4239_v38 = vpop.f32.mrf.mxu1 }
 0x8d5   : > { %v4240_v6 = vadd.f32 %v4239_v38, %v4055_v26  ;;  %v4337_v21 = vmax.f32 %v4236_v60, 0.0  ;;  %v4334_v38 = vmax.f32 %v4232_v3, 0.0  ;;  %v17734_v60 = vld [vmem:[%s23163_s4 + $0x60] sm:$0xff]   ;;  %v17740_v3 = vld [vmem:[%s23163_s4 + $0x90] sm:$0xff]  }
 0x8d6   : > { %v4241_v0 = vpop.f32.mrf.mxu1 }
 0x8d7   : > { %v4242_v30 = vadd.f32 %v4241_v0, %v4059_v23  ;;  %v4339_v0 = vmax.f32 %v4240_v6, 0.0  ;;  %v17737_v6 = vld [vmem:[%s23163_s4 + $0x78] sm:$0xff]  }
 0x8d8   : > { %v4243_v29 = vpop.f32.mrf.mxu1 }
 0x8d9   : > { %v4244_v28 = vadd.f32 %v4243_v29, %v4055_v26  ;;  %v4340_v8 = vmax.f32 %v4242_v30, 0.0  ;;  %v17727_v30 = vld [vmem:[%s23163_s4 + $0x28] sm:$0xff]  }
 0x8da   : > { %v4245_v57 = vpop.f32.mrf.mxu1 }
 0x8db   : > { %v4246_v41 = vadd.f32 %v4245_v57, %v4059_v23  ;;  %v4342_v54 = vmax.f32 %v4244_v28, 0.0  ;;  %v17730_v28 = vld [vmem:[%s23163_s4 + $0x40] sm:$0xff]  }
 0x8dc   : > { %v4249_v61 = vpop.f32.mrf.mxu1 }
 0x8dd   : > { %v4250_v39 = vadd.f32 %v4249_v61, %v4055_v26  ;;  %v4343_v62 = vmax.f32 %v4246_v41, 0.0  ;;  %v4410_v55 = vpack.c.bf16 %v4342_v54, %v4339_v0  ;;  %v17743_v54 = vld [vmem:[%s23163_s4 + $0xa8] sm:$0xff]   ;;  %v5138_v0 = vld [vmem:[#allocation20 + $0x18] sm:$0xff] }
 0x8de   : > { %v4251_v22 = vpop.f32.mrf.mxu1 }
 0x8df   : > { %v4252_v47 = vadd.f32 %v4251_v22, %v4059_v23  ;;  %v4345_v4 = vmax.f32 %v4250_v39, 0.0  ;;  %v4411_v12 = vpack.c.bf16 %v4343_v62, %v4340_v8  ;;  %v4408_v22 = vpack.c.bf16 %v4337_v21, %v4334_v38  ;;  %v17724_v39 = vld [vmem:[%s23163_s4 + $0x10] sm:$0xff]   ;;  %v17735_v62 = vld [vmem:[%s23163_s4 + $0x68] sm:$0xff]   ;;  %v17741_v8 = vld [vmem:[%s23163_s4 + $0x98] sm:$0xff]  }
 0x8e0   : > { %v4253_v20 = vpop.f32.mrf.mxu1  ;;  %v17746_v21 = vld [vmem:[%s23163_s4 + $0xc0] sm:$0xff]  }
 0x8e1   : > { %v4254_v16 = vadd.f32 %v4253_v20, %v4055_v26  ;;  %v4346_v36 = vmax.f32 %v4252_v47, 0.0  ;;  %v4333_v20 = vmax.f32 %v4230_v40, 0.0 }
 0x8e2   : > { %v4255_v27 = vpop.f32.mrf.mxu1 }
 0x8e3   : > { %v4256_v2 = vadd.f32 %v4255_v27, %v4059_v23  ;;  %v4348_v15 = vmax.f32 %v4254_v16, 0.0  ;;  %v4407_v17 = vpack.c.bf16 %v4336_v19, %v4333_v20  ;;  %v5144_v20 = vld [vmem:[#allocation20 + $0x48] sm:$0xff] }
 0x8e4   : > { %v4259_v46 = vpop.f32.mrf.mxu1 }
 0x8e5   : > { %v4260_v25 = vadd.f32 %v4259_v46, %v4055_v26  ;;  %v4349_v44 = vmax.f32 %v4256_v2, 0.0  ;;  %v4413_v43 = vpack.c.bf16 %v4348_v15, %v4345_v4  ;;  %v17731_v15 = vld [vmem:[%s23163_s4 + $0x48] sm:$0xff]   ;;  %v17738_v4 = vld [vmem:[%s23163_s4 + $0x80] sm:$0xff]  }
 0x8e6   : > { %v4261_v52 = vpop.f32.mrf.mxu1 }
 0x8e7   : > { %v4262_v10 = vadd.f32 %v4261_v52, %v4059_v23  ;;  %v4351_v42 = vmax.f32 %v4260_v25, 0.0  ;;  %v4414_v50 = vpack.c.bf16 %v4349_v44, %v4346_v36  ;;  %v17723_v44 = vld [vmem:[%s23163_s4 + $0x8] sm:$0xff]   ;;  %v17728_v36 = vld [vmem:[%s23163_s4 + $0x30] sm:$0xff]  }
 0x8e8   : > { %v4263_v5 = vpop.f32.mrf.mxu1 }
 0x8e9   : > { %v4264_v63 = vadd.f32 %v4263_v5, %v4055_v26  ;;  %v4352_v33 = vmax.f32 %v4262_v10, 0.0  ;;  %v17722_v10 = vld [vmem:[%s23163_s4] sm:$0xff]  }
 0x8ea   : > { %v4265_v56 = vpop.f32.mrf.mxu1 }
 0x8eb   : > { %v4266_v24 = vadd.f32 %v4265_v56, %v4059_v23  ;;  %v4354_v58 = vmax.f32 %v4264_v63, 0.0 }
 0x8ec   : > { %v16894_v14 = vpop.f32.mrf.mxu1 }
 0x8ed   : > { %v4355_v37 = vmax.f32 %v4266_v24, 0.0  ;;  %v4416_v53 = vpack.c.bf16 %v4354_v58, %v4351_v42  ;;  %v4311_v63 = vadd.f32 %v16894_v14, %v4063_v35  ;;  %v17725_v42 = vld [vmem:[%s23163_s4 + $0x18] sm:$0xff]  }
 0x8ee   : > { %v20948_v31 = vpop.f32.mrf.mxu1 }
 0x8ef   : > { %v4417_v45 = vpack.c.bf16 %v4355_v37, %v4352_v33  ;;  %v4341_v16 = vmax.f32 %v4311_v63, 0.0  ;;  %v4303_v58 = vadd.f32 %v20948_v31, %v4063_v35  ;;  %v17726_v31 = vld [vmem:[%s23163_s4 + $0x20] sm:$0xff]  }
 0x8f0   : > { %v16895_v9 = vpop.f32.mrf.mxu1 }
 0x8f1   : > { %4627 = vmatprep.subr.bf16.mxu1 %v4417_v45  ;;  %v4314_v26 = vadd.f32 %v16895_v9, %v4063_v35  ;;  %v4335_v33 = vmax.f32 %v4303_v58, 0.0  ;;  %v17729_v45 = vld [vmem:[%s23163_s4 + $0x38] sm:$0xff]  }
 0x8f2   : > { %v4305_v11 = vpop.f32.mrf.mxu1  ;;  %4628 = vmatpush1.bf16.msra.mxu1 %v4416_v53  ;;  %v17732_v53 = vld [vmem:[%s23163_s4 + $0x50] sm:$0xff]   ;;  %v17733_v9 = vld [vmem:[%s23163_s4 + $0x58] sm:$0xff]  }
 0x8f3   : > { %4629 = vmatprep.subr.bf16.mxu1 %v4414_v50  ;;  %v4344_v56 = vmax.f32 %v4314_v26, 0.0  ;;  %v4306_v47 = vadd.f32 %v4305_v11, %v4063_v35  ;;  %v17736_v50 = vld [vmem:[%s23163_s4 + $0x70] sm:$0xff]   ;;  %v17739_v11 = vld [vmem:[%s23163_s4 + $0x88] sm:$0xff]   ;;  %v5181_v58 = vld [vmem:[#allocation20 + $0x170] sm:$0xff] }
 0x8f4   : > { %v16898_v51 = vpop.f32.mrf.mxu1 }
 0x8f5   : > { %v4327_v57 = vadd.f32 %v16898_v51, %v4063_v35  ;;  %v4412_v14 = vpack.c.bf16 %v4344_v56, %v4341_v16  ;;  %v4338_v41 = vmax.f32 %v4306_v47, 0.0  ;;  %v17745_v51 = vld [vmem:[%s23163_s4 + $0xb8] sm:$0xff]  }
 0x8f6   : > { %v4318_v29 = vpop.f32.mrf.mxu1  ;;  %4630 = vmatpush1.bf16.msra.mxu1 %v4413_v43  ;;  %v17744_v43 = vld [vmem:[%s23163_s4 + $0xb0] sm:$0xff]  }
 0x8f7   : > { %4631 = vmatprep.subr.bf16.mxu1 %v4411_v12  ;;  %v4353_v46 = vmax.f32 %v4327_v57, 0.0  ;;  %v4319_v13 = vadd.f32 %v4318_v29, %v4063_v35  ;;  %v4409_v37 = vpack.c.bf16 %v4338_v41, %v4335_v33  ;;  %v5135_v12 = vld [vmem:[#allocation20] sm:$0xff] }
 0x8f8   : > { %v16899_v61 = vpop.f32.mrf.mxu1  ;;  %v5143_v41 = vld [vmem:[#allocation20 + $0x40] sm:$0xff] }
 0x8f9   : > { %v4330_v59 = vadd.f32 %v16899_v61, %v4063_v35  ;;  %v4347_v25 = vmax.f32 %v4319_v13, 0.0 }
 0x8fa   : > { %v4321_v27 = vpop.f32.mrf.mxu1  ;;  %4632 = vmatpush1.bf16.msra.mxu1 %v4410_v55  ;;  %v5174_v55 = vld [vmem:[#allocation20 + $0x138] sm:$0xff] }
 0x8fb   : > { %v4356_v52 = vmax.f32 %v4330_v59, 0.0  ;;  %v4322_v23 = vadd.f32 %v4321_v27, %v4063_v35  ;;  %4633 = vmatprep.subr.bf16.mxu1 %v4408_v22  ;;  %v5141_v59 = vld [vmem:[#allocation20 + $0x30] sm:$0xff] }
 0x8fd   : > { %v4418_v5 = vpack.c.bf16 %v4356_v52, %v4353_v46  ;;  %v4350_v2 = vmax.f32 %v4322_v23, 0.0  ;;  %v5137_v23 = vld [vmem:[#allocation20 + $0x10] sm:$0xff] }
 0x8fe   : > { %4634 = vmatpush1.bf16.msra.mxu1 %v4407_v17 }
 0x8ff   : > { %16901 = vmatpush3.bf16.msra.mxu0 %v4418_v5  ;;  %v4415_v24 = vpack.c.bf16 %v4350_v2, %v4347_v25  ;;  %v5140_v2 = vld [vmem:[#allocation20 + $0x28] sm:$0xff] }
 0x900   : > { %16902 = vmatprep.subr.bf16.mxu0 %v22973_v49 }
 0x901   : > { %15381 = vmatmul.mubr.msk.bf16.vlgmr.msra.gmra.mxu1 %vm3658_vm0, %v17722_v10 }
 0x902   : > { %4661 = vmatprep.mubr.bf16.mxu1 %v22975_v18 }
 0x903   : > { %16903 = vmatpush3.bf16.msra.mxu0 %v4415_v24 }
 0x904   : > { %16904 = vmatprep.subr.bf16.mxu0 %v22973_v49 }
 0x907   : > { %16905 = vmatpush3.bf16.msra.mxu0 %v4412_v14 }
 0x908   : > { %16906 = vmatprep.subr.bf16.mxu0 %v22973_v49 }
 0x909   : > { %15382 = vmatmul.mubr.msk.bf16.gmra.mxu1 %vm3658_vm0, %v17723_v44 }
 0x90a   : > { %4671 = vmatprep.mubr.bf16.mxu1 %v22975_v18 }
 0x90b   : > { %16907 = vmatpush3.bf16.msra.mxu0 %v4409_v37  ;;  %v5146_v37 = vld [vmem:[#allocation20 + $0x58] sm:$0xff] }
 0x90e   : > { %16909 = vmatmul.mubr.msk.bf16.vlgmr.msra.gmra.mxu0 %vm3658_vm0, %v17722_v10 }
 0x90f   : > { %16912 = vmatprep.mubr.msk.bf16.mxu0 %vm19982_vm1, %v22973_v49 }
 0x911   : > { %15383 = vmatmul.mubr.msk.bf16.gmra.mxu1 %vm3658_vm0, %v17724_v39 }
 0x912   : > { %4681 = vmatprep.mubr.bf16.mxu1 %v22975_v18 }
 0x916   : > { %16913 = vmatmul.mubr.msk.bf16.gmra.mxu0 %vm3658_vm0, %v17723_v44 }
 0x917   : > { %16916 = vmatprep.mubr.msk.bf16.mxu0 %vm19982_vm1, %v22973_v49 }
 0x919   : > { %15384 = vmatmul.mubr.msk.bf16.gmra.mxu1 %vm3658_vm0, %v17725_v42 }
 0x91a   : > { %4691 = vmatprep.mubr.bf16.mxu1 %v22975_v18 }
 0x91e   : > { %16917 = vmatmul.mubr.msk.bf16.gmra.mxu0 %vm3658_vm0, %v17724_v39 }
 0x91f   : > { %16920 = vmatprep.mubr.msk.bf16.mxu0 %vm19982_vm1, %v22973_v49 }
 0x921   : > { %15385 = vmatmul.mubr.msk.bf16.gmra.mxu1 %vm3658_vm0, %v17726_v31 }
 0x922   : > { %4701 = vmatprep.mubr.bf16.mxu1 %v22975_v18 }
 0x926   : > { %16921 = vmatmul.mubr.msk.bf16.gmra.mxu0 %vm3658_vm0, %v17725_v42 }
 0x927   : > { %16924 = vmatprep.mubr.msk.bf16.mxu0 %vm19982_vm1, %v22973_v49 }
 0x929   : > { %15386 = vmatmul.mubr.msk.bf16.gmra.mxu1 %vm3658_vm0, %v17727_v30 }
 0x92a   : > { %4711 = vmatprep.mubr.bf16.mxu1 %v22975_v18 }
 0x92e   : > { %16925 = vmatmul.mubr.msk.bf16.gmra.mxu0 %vm3658_vm0, %v17726_v31 }
 0x92f   : > { %16928 = vmatprep.mubr.msk.bf16.mxu0 %vm19982_vm1, %v22973_v49 }
 0x931   : > { %15387 = vmatmul.mubr.msk.bf16.gmra.mxu1 %vm3658_vm0, %v17728_v36 }
 0x932   : > { %4721 = vmatprep.mubr.bf16.mxu1 %v22975_v18 }
 0x936   : > { %16929 = vmatmul.mubr.msk.bf16.gmra.mxu0 %vm3658_vm0, %v17727_v30 }
 0x937   : > { %16932 = vmatprep.mubr.msk.bf16.mxu0 %vm19982_vm1, %v22973_v49 }
 0x939   : > { %15388 = vmatmul.mubr.msk.bf16.gmra.mxu1 %vm3658_vm0, %v17729_v45 }
 0x93a   : > { %4731 = vmatprep.mubr.bf16.mxu1 %v22975_v18 }
 0x93e   : > { %16933 = vmatmul.mubr.msk.bf16.gmra.mxu0 %vm3658_vm0, %v17728_v36 }
 0x93f   : > { %16936 = vmatprep.mubr.msk.bf16.mxu0 %vm19982_vm1, %v22973_v49 }
 0x941   : > { %15389 = vmatmul.mubr.msk.bf16.gmra.mxu1 %vm3658_vm0, %v17730_v28 }
 0x942   : > { %4741 = vmatprep.mubr.bf16.mxu1 %v22975_v18 }
 0x946   : > { %16937 = vmatmul.mubr.msk.bf16.gmra.mxu0 %vm3658_vm0, %v17729_v45 }
 0x947   : > { %16940 = vmatprep.mubr.msk.bf16.mxu0 %vm19982_vm1, %v22973_v49 }
 0x949   : > { %15390 = vmatmul.mubr.msk.bf16.gmra.mxu1 %vm3658_vm0, %v17731_v15 }
 0x94a   : > { %4751 = vmatprep.mubr.bf16.mxu1 %v22975_v18 }
 0x94e   : > { %16941 = vmatmul.mubr.msk.bf16.gmra.mxu0 %vm3658_vm0, %v17730_v28 }
 0x94f   : > { %16944 = vmatprep.mubr.msk.bf16.mxu0 %vm19982_vm1, %v22973_v49 }
 0x951   : > { %15391 = vmatmul.mubr.msk.bf16.gmra.mxu1 %vm3658_vm0, %v17732_v53 }
 0x952   : > { %4761 = vmatprep.mubr.bf16.mxu1 %v22975_v18 }
 0x956   : > { %16945 = vmatmul.mubr.msk.bf16.gmra.mxu0 %vm3658_vm0, %v17731_v15 }
 0x957   : > { %16948 = vmatprep.mubr.msk.bf16.mxu0 %vm19982_vm1, %v22973_v49 }
 0x959   : > { %15392 = vmatmul.mubr.msk.bf16.gmra.mxu1 %vm3658_vm0, %v17733_v9 }
 0x95a   : > { %4771 = vmatprep.mubr.bf16.mxu1 %v22975_v18 }
 0x95e   : > { %16949 = vmatmul.mubr.msk.bf16.gmra.mxu0 %vm3658_vm0, %v17732_v53 }
 0x95f   : > { %16952 = vmatprep.mubr.msk.bf16.mxu0 %vm19982_vm1, %v22973_v49 }
 0x961   : > { %15393 = vmatmul.mubr.msk.bf16.gmra.mxu1 %vm3658_vm0, %v17734_v60 }
 0x962   : > { %4781 = vmatprep.mubr.bf16.mxu1 %v22975_v18 }
 0x966   : > { %16953 = vmatmul.mubr.msk.bf16.gmra.mxu0 %vm3658_vm0, %v17733_v9  ;;  %v5149_v9 = vld [vmem:[#allocation20 + $0x70] sm:$0xff] }
 0x967   : > { %16956 = vmatprep.mubr.msk.bf16.mxu0 %vm19982_vm1, %v22973_v49 }
 0x969   : > { %15394 = vmatmul.mubr.msk.bf16.gmra.mxu1 %vm3658_vm0, %v17735_v62 }
 0x96a   : > { %4791 = vmatprep.mubr.bf16.mxu1 %v22975_v18 }
 0x96e   : > { %16957 = vmatmul.mubr.msk.bf16.gmra.mxu0 %vm3658_vm0, %v17734_v60 }
 0x96f   : > { %16960 = vmatprep.mubr.msk.bf16.mxu0 %vm19982_vm1, %v22973_v49 }
 0x971   : > { %15395 = vmatmul.mubr.msk.bf16.gmra.mxu1 %vm3658_vm0, %v17736_v50 }
 0x972   : > { %4801 = vmatprep.mubr.bf16.mxu1 %v22975_v18 }
 0x976   : > { %16961 = vmatmul.mubr.msk.bf16.gmra.mxu0 %vm3658_vm0, %v17735_v62 }
 0x977   : > { %16964 = vmatprep.mubr.msk.bf16.mxu0 %vm19982_vm1, %v22973_v49 }
 0x979   : > { %15396 = vmatmul.mubr.msk.bf16.gmra.mxu1 %vm3658_vm0, %v17737_v6 }
 0x97a   : > { %4811 = vmatprep.mubr.bf16.mxu1 %v22975_v18 }
 0x97e   : > { %16965 = vmatmul.mubr.msk.bf16.gmra.mxu0 %vm3658_vm0, %v17736_v50  ;;  %v5152_v50 = vld [vmem:[#allocation20 + $0x88] sm:$0xff] }
 0x97f   : > { %16968 = vmatprep.mubr.msk.bf16.mxu0 %vm19982_vm1, %v22973_v49 }
 0x981   : > { %15397 = vmatmul.mubr.msk.bf16.gmra.mxu1 %vm3658_vm0, %v17738_v4 }
 0x982   : > { %4821 = vmatprep.mubr.bf16.mxu1 %v22975_v18 }
 0x986   : > { %16969 = vmatmul.mubr.msk.bf16.gmra.mxu0 %vm3658_vm0, %v17737_v6 }
 0x987   : > { %16972 = vmatprep.mubr.msk.bf16.mxu0 %vm19982_vm1, %v22973_v49 }
 0x989   : > { %15398 = vmatmul.mubr.msk.bf16.gmra.mxu1 %vm3658_vm0, %v17739_v11 }
 0x98a   : > { %4831 = vmatprep.mubr.bf16.mxu1 %v22975_v18 }
 0x98e   : > { %16973 = vmatmul.mubr.msk.bf16.gmra.mxu0 %vm3658_vm0, %v17738_v4 }
 0x98f   : > { %16976 = vmatprep.mubr.msk.bf16.mxu0 %vm19982_vm1, %v22973_v49 }
 0x991   : > { %15399 = vmatmul.mubr.msk.bf16.gmra.mxu1 %vm3658_vm0, %v17740_v3 }
 0x992   : > { %4841 = vmatprep.mubr.bf16.mxu1 %v22975_v18 }
 0x996   : > { %16977 = vmatmul.mubr.msk.bf16.gmra.mxu0 %vm3658_vm0, %v17739_v11 }
 0x997   : > { %16980 = vmatprep.mubr.msk.bf16.mxu0 %vm19982_vm1, %v22973_v49 }
 0x999   : > { %15400 = vmatmul.mubr.msk.bf16.gmra.mxu1 %vm3658_vm0, %v17741_v8 }
 0x99a   : > { %4851 = vmatprep.mubr.bf16.mxu1 %v22975_v18 }
 0x99e   : > { %16981 = vmatmul.mubr.msk.bf16.gmra.mxu0 %vm3658_vm0, %v17740_v3 }
 0x99f   : > { %16984 = vmatprep.mubr.msk.bf16.mxu0 %vm19982_vm1, %v22973_v49 }
 0x9a1   : > { %15401 = vmatmul.mubr.msk.bf16.gmra.mxu1 %vm3658_vm0, %v17742_v48 }
 0x9a2   : > { %4861 = vmatprep.mubr.bf16.mxu1 %v22975_v18 }
 0x9a6   : > { %16985 = vmatmul.mubr.msk.bf16.gmra.mxu0 %vm3658_vm0, %v17741_v8 }
 0x9a7   : > { %16988 = vmatprep.mubr.msk.bf16.mxu0 %vm19982_vm1, %v22973_v49 }
 0x9a9   : > { %15402 = vmatmul.mubr.msk.bf16.gmra.mxu1 %vm3658_vm0, %v17743_v54 }
 0x9aa   : > { %4871 = vmatprep.mubr.bf16.mxu1 %v22975_v18 }
 0x9ae   : > { %16989 = vmatmul.mubr.msk.bf16.gmra.mxu0 %vm3658_vm0, %v17742_v48 }
 0x9af   : > { %16992 = vmatprep.mubr.msk.bf16.mxu0 %vm19982_vm1, %v22973_v49 }
 0x9b1   : > { %15403 = vmatmul.mubr.msk.bf16.gmra.mxu1 %vm3658_vm0, %v17744_v43 }
 0x9b2   : > { %4881 = vmatprep.mubr.bf16.mxu1 %v22975_v18 }
 0x9b6   : > { %16993 = vmatmul.mubr.msk.bf16.gmra.mxu0 %vm3658_vm0, %v17743_v54 }
 0x9b7   : > { %16996 = vmatprep.mubr.msk.bf16.mxu0 %vm19982_vm1, %v22973_v49 }
 0x9b9   : > { %15404 = vmatmul.mubr.msk.bf16.gmra.mxu1 %vm3658_vm0, %v17745_v51 }
 0x9ba   : > { %4891 = vmatprep.mubr.bf16.mxu1 %v22975_v18 }
 0x9be   : > { %16997 = vmatmul.mubr.msk.bf16.gmra.mxu0 %vm3658_vm0, %v17744_v43  ;;  %v5177_v43 = vld [vmem:[#allocation20 + $0x150] sm:$0xff] }
 0x9bf   : > { %17000 = vmatprep.mubr.msk.bf16.mxu0 %vm19982_vm1, %v22973_v49 }
 0x9c1   : > { %v4653_v35 = vpop.f32.mrf.mxu1  ;;  %15405 = vmatmul.mubr.msk.bf16.gmra.mxu1 %vm3658_vm0, %v17746_v21 }
 0x9c2   : > { %v21104_v38 = vmul.f32 %v5135_v12, %v4653_v35 }
 0x9c3   : > { %v21102_v40 = vpop.f32.mrf.mxu1 }
 0x9c5   : > { %v4657_v29 = vpop.f32.mrf.mxu1 }
 0x9c6   : > { %v21106_v57 = vmul.f32 %v5138_v0, %v4657_v29  ;;  %17001 = vmatmul.mubr.msk.bf16.gmra.mxu0 %vm3658_vm0, %v17745_v51  ;;  %v5158_v0 = vld [vmem:[#allocation20 + $0xb8] sm:$0xff] }
 0x9c7   : > { %v21109_v19 = vpop.f32.mrf.mxu1  ;;  %17004 = vmatprep.mubr.msk.bf16.mxu0 %vm19982_vm1, %v22973_v49  ;;  %v5178_v49 = vld [vmem:[#allocation20 + $0x158] sm:$0xff] }
 0x9c9   : > { %v4663_v61 = vpop.f32.mrf.mxu1 }
 0x9ca   : > { %v21117_v46 = vmul.f32 %v5141_v59, %v4663_v61 }
 0x9cb   : > { %v21115_v22 = vpop.f32.mrf.mxu1 }
 0x9cd   : > { %v4667_v27 = vpop.f32.mrf.mxu1 }
 0x9ce   : > { %v21119_v13 = vmul.f32 %v5144_v20, %v4667_v27  ;;  %v4936_v52 = vpop.f32.mrf.mxu0  ;;  %17005 = vmatmul.mubr.msk.bf16.gmra.mxu0 %vm3658_vm0, %v17746_v21  ;;  %v5155_v21 = vld [vmem:[#allocation20 + $0xa0] sm:$0xff] }
 0x9cf   : > { %v21122_v17 = vpop.f32.mrf.mxu1  ;;  %v21128_v63 = vmul.f32 %v5137_v23, %v4936_v52 }
 0x9d0   : > { %v16910_v5 = vpop.f32.mrf.mxu0 }
 0x9d1   : > { %v21126_v10 = vpop.f32.mrf.mxu1  ;;  %23164 = vst [vmem:[#allocation127_spill] sm:$0xff] %v21128_v63  ;;  %v5173_v5 = vld [vmem:[#allocation20 + $0x130] sm:$0xff] }
 0x9d2   : > { %v4939_v25 = vpop.f32.mrf.mxu0 }
 0x9d3   : > { %v21130_v56 = vpop.f32.mrf.mxu1  ;;  %v21132_v47 = vmul.f32 %v5140_v2, %v4939_v25  ;;  %v5161_v25 = vld [vmem:[#allocation20 + $0xd0] sm:$0xff] }
 0x9d4   : > { %v16911_v24 = vpop.f32.mrf.mxu0 }
 0x9d5   : > { %23165 = vst [vmem:[#allocation128_spill] sm:$0xff] %v21132_v47  ;;  %v21134_v16 = vpop.f32.mrf.mxu1  ;;  %v5171_v47 = vld [vmem:[#allocation20 + $0x120] sm:$0xff] }
 0x9d6   : > { %v4944_v14 = vpop.f32.mrf.mxu0 }
 0x9d7   : > { %v21138_v44 = vpop.f32.mrf.mxu1  ;;  %v21142_v42 = vmul.f32 %v5143_v41, %v4944_v14  ;;  %v5164_v41 = vld [vmem:[#allocation20 + $0xe8] sm:$0xff] }
 0x9d8   : > { %v16914_v33 = vpop.f32.mrf.mxu0 }
 0x9d9   : > { %v21140_v39 = vpop.f32.mrf.mxu1  ;;  %23166 = vst [vmem:[#allocation129_spill] sm:$0xff] %v21142_v42 }
 0x9da   : > { %v4947_v31 = vpop.f32.mrf.mxu0 }
 0x9db   : > { %v21144_v30 = vpop.f32.mrf.mxu1  ;;  %v21146_v36 = vmul.f32 %v5146_v37, %v4947_v31 }
 0x9dc   : > { %v16915_v45 = vpop.f32.mrf.mxu0 }
 0x9dd   : > { %23167 = vst [vmem:[#allocation130_spill] sm:$0xff] %v21146_v36  ;;  %v21148_v28 = vpop.f32.mrf.mxu1 }
 0x9de   : > { %v4952_v53 = vpop.f32.mrf.mxu0 }
 0x9df   : > { %v21152_v60 = vpop.f32.mrf.mxu1  ;;  %v21156_v4 = vmul.f32 %v5149_v9, %v4952_v53 }
 0x9e0   : > { %v16918_v62 = vpop.f32.mrf.mxu0 }
 0x9e1   : > { %v21154_v6 = vpop.f32.mrf.mxu1  ;;  %23168 = vst [vmem:[#allocation131_spill] sm:$0xff] %v21156_v4  ;;  %v5166_v4 = vld [vmem:[#allocation20 + $0xf8] sm:$0xff] }
 0x9e2   : > { %v4955_v11 = vpop.f32.mrf.mxu0 }
 0x9e3   : > { %v21158_v3 = vpop.f32.mrf.mxu1  ;;  %v21160_v8 = vmul.f32 %v5152_v50, %v4955_v11 }
 0x9e4   : > { %v16919_v48 = vpop.f32.mrf.mxu0 }
 0x9e5   : > { %23169 = vst [vmem:[#allocation132_spill] sm:$0xff] %v21160_v8  ;;  %v21162_v54 = vpop.f32.mrf.mxu1  ;;  %v5167_v48 = vld [vmem:[#allocation20 + $0x100] sm:$0xff] }
 0x9e6   : > { %v4960_v51 = vpop.f32.mrf.mxu0 }
 0x9e7   : > { %v21166_v35 = vpop.f32.mrf.mxu1  ;;  %v21170_v61 = vmul.f32 %v5155_v21, %v4960_v51 }
 0x9e8   : > { %v16922_v12 = vpop.f32.mrf.mxu0 }
 0x9e9   : > { %v21168_v29 = vpop.f32.mrf.mxu1  ;;  %23170 = vst [vmem:[#allocation133_spill] sm:$0xff] %v21170_v61  ;;  %v5170_v12 = vld [vmem:[#allocation20 + $0x118] sm:$0xff]  ;;  %v5224_v61 = vld [vmem:[#allocation20 + $0x2c8] sm:$0xff] }
 0x9ea   : > { %v4963_v59 = vpop.f32.mrf.mxu0 }
 0x9eb   : > { %v21172_v20 = vpop.f32.mrf.mxu1  ;;  %v21174_v27 = vmul.f32 %v5158_v0, %v4963_v59 }
 0x9ec   : > { %v16923_v52 = vpop.f32.mrf.mxu0 }
 0x9ed   : > { %23171 = vst [vmem:[#allocation134_spill] sm:$0xff] %v21174_v27  ;;  %v21176_v23 = vpop.f32.mrf.mxu1 }
 0x9ee   : > { %v4968_v2 = vpop.f32.mrf.mxu0 }
 0x9ef   : > { %v4709_v24 = vpop.f32.mrf.mxu1  ;;  %v21180_v37 = vmul.f32 %v5161_v25, %v4968_v2 }
 0x9f0   : > { %v16926_v14 = vpop.f32.mrf.mxu0 }
 0x9f1   : > { %v4713_v33 = vpop.f32.mrf.mxu1  ;;  %23172 = vst [vmem:[#allocation135_spill] sm:$0xff] %v21180_v37  ;;  %v5180_v14 = vld [vmem:[#allocation20 + $0x168] sm:$0xff]  ;;  %v5219_v37 = vld [vmem:[#allocation20 + $0x2a0] sm:$0xff] }
 0x9f2   : > { %v4971_v31 = vpop.f32.mrf.mxu0 }
 0x9f3   : > { %v4715_v45 = vpop.f32.mrf.mxu1  ;;  %v21182_v53 = vmul.f32 %v5164_v41, %v4971_v31  ;;  %v17749_v31 = vld [vmem:[#allocation22 + $0x4] ss:$16 sps:$4 sm:$0xff]  }
 0x9f4   : > { %v16927_v9 = vpop.f32.mrf.mxu0  ;;  %5586 = vmatprep.mubr.bf16.mxu1 %v17749_v31 }
 0x9f5   : > { %23173 = vst [vmem:[#allocation136_spill] sm:$0xff] %v21182_v53  ;;  %v4717_v62 = vpop.f32.mrf.mxu1  ;;  %v5175_v9 = vld [vmem:[#allocation20 + $0x140] sm:$0xff] }
 0x9f6   : > { %v4976_v11 = vpop.f32.mrf.mxu0  ;;  %v5324_v31 = vmul.f32 %v5174_v55, %v4717_v62  ;;  %v5165_v55 = vld [vmem:[#allocation20 + $0xf0] sm:$0xff] }
 0x9f7   : > { %v4719_v51 = vpop.f32.mrf.mxu1  ;;  %v21186_v59 = vmul.f32 %v5167_v48, %v4976_v11  ;;  %v5172_v11 = vld [vmem:[#allocation20 + $0x128] sm:$0xff] }
 0x9f8   : > { %v16930_v21 = vpop.f32.mrf.mxu0  ;;  %v5322_v15 = vmul.f32 %v5172_v11, %v4715_v45  ;;  %v5315_v11 = vmul.f32 %v5165_v55, %v21168_v29  ;;  %v5156_v29 = vld [vmem:[#allocation20 + $0xa8] sm:$0xff] }
 0x9f9   : > { %v4723_v0 = vpop.f32.mrf.mxu1  ;;  %23174 = vst [vmem:[#allocation137_spill] sm:$0xff] %v21186_v59 }
 0x9fa   : > { %v4979_v52 = vpop.f32.mrf.mxu0  ;;  %v5327_v34 = vmul.f32 %v5177_v43, %v4723_v0  ;;  %v5321_v0 = vmul.f32 %v5171_v47, %v4713_v33 }
 0x9fb   : > { %v4725_v2 = vpop.f32.mrf.mxu1  ;;  %v21188_v25 = vmul.f32 %v5170_v12, %v4979_v52  ;;  %v5325_v12 = vmul.f32 %v5175_v9, %v4719_v51  ;;  %v5186_v51 = vld [vmem:[#allocation20 + $0x198] sm:$0xff] }
 0x9fc   : > { %v16931_v41 = vpop.f32.mrf.mxu0  ;;  %v5328_v52 = vmul.f32 %v5178_v49, %v4725_v2 }
 0x9fd   : > { %23175 = vst [vmem:[#allocation138_spill] sm:$0xff] %v21188_v25  ;;  %v4727_v18 = vpop.f32.mrf.mxu1  ;;  %v5454_v2 = vpack.c.bf16 %v5325_v12, %v5322_v15  ;;  %v5453_v15 = vpack.c.bf16 %v5324_v31, %v5321_v0  ;;  %v5154_v31 = vld [vmem:[#allocation20 + $0x98] sm:$0xff] }
 0x9fe   : > { %v4984_v21 = vpop.f32.mrf.mxu0  ;;  %v5330_v48 = vmul.f32 %v5180_v14, %v4727_v18  ;;  %v5183_v18 = vld [vmem:[#allocation20 + $0x180] sm:$0xff] }
 0x9ff   : > { %v4729_v50 = vpop.f32.mrf.mxu1  ;;  %v21192_v63 = vmul.f32 %v5173_v5, %v4984_v21  ;;  %v5163_v5 = vld [vmem:[#allocation20 + $0xe0] sm:$0xff]  ;;  %v5157_v21 = vld [vmem:[#allocation20 + $0xb0] sm:$0xff] }
 0xa00   : > { %v5331_v26 = vmul.f32 %v5181_v58, %v4729_v50  ;;  %v16934_v41 = vpop.f32.mrf.mxu0  ;;  %v5456_v8 = vpack.c.bf16 %v5330_v48, %v5327_v34  ;;  %v5168_v58 = vld [vmem:[#allocation20 + $0x108] sm:$0xff]  ;;  %v5319_v50 = vmul.f32 %v5169_v1, %v4709_v24  ;;  %v5316_v34 = vmul.f32 %v5166_v4, %v21172_v20  ;;  %v5179_v1 = vld [vmem:[#allocation20 + $0x160] sm:$0xff]  ;;  %v5182_v20 = vld [vmem:[#allocation20 + $0x178] sm:$0xff] }
 0xa01   : > { %v4733_v32 = vpop.f32.mrf.mxu1  ;;  %23176 = vst [vmem:[#allocation139_spill] sm:$0xff] %v21192_v63  ;;  %v5313_v24 = vmul.f32 %v5163_v5, %v21166_v35 }
 0xa02   : > { %v5457_v42 = vpack.c.bf16 %v5331_v26, %v5328_v52  ;;  %v4987_v36 = vpop.f32.mrf.mxu0  ;;  %v21201_v45 = vmul.f32 %v5183_v18, %v4733_v32  ;;  %v5451_v33 = vpack.c.bf16 %v5319_v50, %v5316_v34  ;;  %v5192_v50 = vld [vmem:[#allocation20 + $0x1c8] sm:$0xff]  ;;  %v5153_v34 = vld [vmem:[#allocation20 + $0x90] sm:$0xff] }
 0xa03   : > { %v21194_v14 = vpop.f32.mrf.mxu1  ;;  %v21196_v49 = vmul.f32 %v5176_v7, %v4987_v36  ;;  %v5160_v36 = vld [vmem:[#allocation20 + $0xc8] sm:$0xff] }
 0xa04   : > { %5554 = vmatprep.subr.bf16.mxu1 %v5457_v42  ;;  %v16935_v43 = vpop.f32.mrf.mxu0  ;;  %v5318_v42 = vmul.f32 %v5168_v58, %v21176_v23  ;;  %v5159_v23 = vld [vmem:[#allocation20 + $0xc0] sm:$0xff]  ;;  %v5310_v52 = vmul.f32 %v5160_v36, %v21158_v3 }
 0xa05   : > { %23177 = vst [vmem:[#allocation140_spill] sm:$0xff] %v21196_v49  ;;  %v4737_v9 = vpop.f32.mrf.mxu1  ;;  %5555 = vmatpush1.bf16.msra.mxu1 %v5456_v8  ;;  %v5162_v8 = vld [vmem:[#allocation20 + $0xd8] sm:$0xff]  ;;  %v5307_v43 = vmul.f32 %v5157_v21, %v21152_v60  ;;  %v5309_v3 = vmul.f32 %v5159_v23, %v21154_v6  ;;  %v5185_v60 = vld [vmem:[#allocation20 + $0x190] sm:$0xff]  ;;  %v5303_v23 = vmul.f32 %v5153_v34, %v21140_v39  ;;  %v5191_v34 = vld [vmem:[#allocation20 + $0x1c0] sm:$0xff] }
 0xa06   : > { %v21203_v62 = vmul.f32 %v5186_v51, %v4737_v9  ;;  %5556 = vmatprep.subr.bf16.mxu1 %v5454_v2  ;;  %v4992_v7 = vpop.f32.mrf.mxu0  ;;  %v5312_v35 = vmul.f32 %v5162_v8, %v21162_v54  ;;  %v5450_v18 = vpack.c.bf16 %v5318_v42, %v5315_v11  ;;  %v5189_v51 = vld [vmem:[#allocation20 + $0x1b0] sm:$0xff]  ;;  %v5448_v5 = vpack.c.bf16 %v5313_v24, %v5310_v52  ;;  %v5151_v9 = vld [vmem:[#allocation20 + $0x80] sm:$0xff]  ;;  %v5188_v11 = vld [vmem:[#allocation20 + $0x1a8] sm:$0xff] }
 0xa07   : > { %v21206_v47 = vpop.f32.mrf.mxu1  ;;  %v21212_v12 = vmul.f32 %v5179_v1, %v4992_v7  ;;  %v5304_v7 = vmul.f32 %v5154_v31, %v21144_v30  ;;  %v5306_v8 = vmul.f32 %v5156_v29, %v21148_v28  ;;  %v5147_v28 = vld [vmem:[#allocation20 + $0x60] sm:$0xff]  ;;  %v5228_v54 = vld [vmem:[#allocation20 + $0x2e8] sm:$0xff]  ;;  %v5229_v30 = vld [vmem:[#allocation20 + $0x2f0] sm:$0xff] }
 0xa08   : > { %v16938_v32 = vpop.f32.mrf.mxu0  ;;  %v5447_v24 = vpack.c.bf16 %v5312_v35, %v5309_v3 }
 0xa09   : > { %v4743_v48 = vpop.f32.mrf.mxu1  ;;  %5557 = vmatpush1.bf16.msra.mxu1 %v5453_v15  ;;  %v5148_v15 = vld [vmem:[#allocation20 + $0x68] sm:$0xff]  ;;  %v5301_v32 = vmul.f32 %v5151_v9, %v21138_v44  ;;  %v5142_v44 = vld [vmem:[#allocation20 + $0x38] sm:$0xff]  ;;  %v5297_v9 = vmul.f32 %v5147_v28, %v21126_v10 }
 0xa0a   : > { %5558 = vmatprep.subr.bf16.mxu1 %v5451_v33  ;;  %v4995_v41 = vpop.f32.mrf.mxu0  ;;  %v21225_v1 = vmul.f32 %v5189_v51, %v4743_v48  ;;  %v5150_v33 = vld [vmem:[#allocation20 + $0x78] sm:$0xff]  ;;  %v5145_v48 = vld [vmem:[#allocation20 + $0x50] sm:$0xff]  ;;  %v5298_v31 = vmul.f32 %v5148_v15, %v21130_v56  ;;  %v5444_v51 = vpack.c.bf16 %v5306_v8, %v5303_v23 }
 0xa0b   : > { %v21216_v58 = vpop.f32.mrf.mxu1  ;;  %v21218_v2 = vmul.f32 %v5182_v20, %v4995_v41  ;;  %v5445_v20 = vpack.c.bf16 %v5307_v43, %v5304_v7  ;;  %v5295_v39 = vmul.f32 %v5145_v48, %v21122_v17  ;;  %v5136_v7 = vld [vmem:[#allocation20 + $0x8] sm:$0xff]  ;;  %v5194_v10 = vld [vmem:[#allocation20 + $0x1d8] sm:$0xff] }
 0xa0c   : > { %v16939_v0 = vpop.f32.mrf.mxu0  ;;  %v5442_v43 = vpack.c.bf16 %v5301_v32, %v5298_v31  ;;  %v5286_v32 = vmul.f32 %v5136_v7, %v21102_v40  ;;  %v5197_v40 = vld [vmem:[#allocation20 + $0x1f0] sm:$0xff] }
 0xa0d   : > { %v4747_v55 = vpop.f32.mrf.mxu1  ;;  %5559 = vmatpush1.bf16.msra.mxu1 %v5450_v18  ;;  %v5300_v18 = vmul.f32 %v5150_v33, %v21134_v16  ;;  %v5139_v0 = vld [vmem:[#allocation20 + $0x20] sm:$0xff]  ;;  %v5292_v16 = vmul.f32 %v5142_v44, %v21115_v22 }
 0xa0e   : > { %v21227_v36 = vmul.f32 %v5192_v50, %v4747_v55  ;;  %5560 = vmatprep.subr.bf16.mxu1 %v5448_v5  ;;  %v5000_v42 = vpop.f32.mrf.mxu0  ;;  %v5289_v17 = vmul.f32 %v5139_v0, %v21109_v19  ;;  %v23182_v19 = vpack.c.bf16 %v21119_v13, %v21117_v46 }
 0xa0f   : > { %v21230_v6 = vpop.f32.mrf.mxu1  ;;  %v21238_v41 = vmul.f32 %v5185_v60, %v5000_v42  ;;  %v5441_v42 = vpack.c.bf16 %v5300_v18, %v5297_v9  ;;  %v5439_v15 = vpack.c.bf16 %v5295_v39, %v5292_v16  ;;  %v5200_v18 = vld [vmem:[#allocation20 + $0x208] sm:$0xff]  ;;  %v23183_v39 = vpack.c.bf16 %v21106_v57, %v21104_v38  ;;  %v5206_v38 = vld [vmem:[#allocation20 + $0x238] sm:$0xff] }
 0xa10   : > { %v16942_v21 = vpop.f32.mrf.mxu0  ;;  %v5218_v16 = vld [vmem:[#allocation20 + $0x298] sm:$0xff] }
 0xa11   : > { %v21236_v52 = vpop.f32.mrf.mxu1  ;;  %5561 = vmatpush1.bf16.msra.mxu1 %v5447_v24  ;;  %23178 = vst [vmem:[#allocation141_spill] sm:$0xff] %v21238_v41  ;;  %v5225_v41 = vld [vmem:[#allocation20 + $0x2d0] sm:$0xff] }
 0xa12   : > { %5562 = vmatprep.subr.bf16.mxu1 %v5445_v20  ;;  %v5003_v35 = vpop.f32.mrf.mxu0 }
 0xa13   : > { %v21242_v50 = vpop.f32.mrf.mxu1  ;;  %v21244_v29 = vmul.f32 %v5188_v11, %v5003_v35  ;;  %v5436_v11 = vpack.c.bf16 %v5289_v17, %v5286_v32 }
 0xa14   : > { %v16943_v5 = vpop.f32.mrf.mxu0 }
 0xa15   : > { %23179 = vst [vmem:[#allocation142_spill] sm:$0xff] %v21244_v29  ;;  %v21248_v3 = vpop.f32.mrf.mxu1  ;;  %5563 = vmatpush1.bf16.msra.mxu1 %v5444_v51 }
 0xa16   : > { %5564 = vmatprep.subr.bf16.mxu1 %v5442_v43  ;;  %v5008_v55 = vpop.f32.mrf.mxu0 }
 0xa17   : > { %v21253_v60 = vpop.f32.mrf.mxu1  ;;  %v21258_v33 = vmul.f32 %v5191_v34, %v5008_v55  ;;  %v5203_v34 = vld [vmem:[#allocation20 + $0x220] sm:$0xff] }
 0xa18   : > { %v16946_v8 = vpop.f32.mrf.mxu0 }
 0xa19   : > { %v21256_v24 = vpop.f32.mrf.mxu1  ;;  %5565 = vmatpush1.bf16.msra.mxu1 %v5441_v42  ;;  %23180 = vst [vmem:[#allocation143_spill] sm:$0xff] %v21258_v33  ;;  %v5220_v33 = vld [vmem:[#allocation20 + $0x2a8] sm:$0xff] }
 0xa1a   : > { %5566 = vmatprep.subr.bf16.mxu1 %v5439_v15  ;;  %v5011_v22 = vpop.f32.mrf.mxu0 }
 0xa1b   : > { %v21261_v20 = vpop.f32.mrf.mxu1  ;;  %v21263_v21 = vmul.f32 %v5194_v10, %v5011_v22 }
 0xa1c   : > { %v16947_v48 = vpop.f32.mrf.mxu0 }
 0xa1d   : > { %23181 = vst [vmem:[#allocation144_spill] sm:$0xff] %v21263_v21  ;;  %v21265_v23 = vpop.f32.mrf.mxu1  ;;  %5567 = vmatpush1.bf16.msra.mxu1 %v23182_v19  ;;  %v5209_v19 = vld [vmem:[#allocation20 + $0x250] sm:$0xff] }
 0xa1e   : > { %5568 = vmatprep.subr.bf16.mxu1 %v5436_v11  ;;  %v5016_v31 = vpop.f32.mrf.mxu0 }
 0xa1f   : > { %v21272_v35 = vpop.f32.mrf.mxu1  ;;  %v21279_v43 = vmul.f32 %v5197_v40, %v5016_v31 }
 0xa20   : > { %v16950_v44 = vpop.f32.mrf.mxu0 }
 0xa21   : > { %v21274_v51 = vpop.f32.mrf.mxu1  ;;  %5569 = vmatpush1.bf16.msra.mxu1 %v23183_v39  ;;  %23184 = vst [vmem:[#allocation145_spill] sm:$0xff] %v21279_v43  ;;  %v5212_v44 = vld [vmem:[#allocation20 + $0x268] sm:$0xff] }
 0xa22   : > { %v5019_v46 = vpop.f32.mrf.mxu0 }
 0xa23   : > { %v21281_v13 = vpop.f32.mrf.mxu1  ;;  %v21283_v5 = vmul.f32 %v5200_v18, %v5019_v46 }
 0xa24   : > { %v16951_v0 = vpop.f32.mrf.mxu0 }
 0xa25   : > { %23185 = vst [vmem:[#allocation146_spill] sm:$0xff] %v21283_v5  ;;  %v21285_v9 = vpop.f32.mrf.mxu1 }
 0xa26   : > { %v5024_v55 = vpop.f32.mrf.mxu0 }
 0xa27   : > { %v21289_v7 = vpop.f32.mrf.mxu1  ;;  %v21293_v17 = vmul.f32 %v5203_v34, %v5024_v55 }
 0xa28   : > { %v16954_v42 = vpop.f32.mrf.mxu0 }
 0xa29   : > { %v21291_v57 = vpop.f32.mrf.mxu1  ;;  %23186 = vst [vmem:[#allocation147_spill] sm:$0xff] %v21293_v17 }
 0xa2a   : > { %v5027_v15 = vpop.f32.mrf.mxu0 }
 0xa2b   : > { %v21295_v8 = vpop.f32.mrf.mxu1  ;;  %v21297_v10 = vmul.f32 %v5206_v38, %v5027_v15 }
 0xa2c   : > { %v16955_v32 = vpop.f32.mrf.mxu0 }
 0xa2d   : > { %23187 = vst [vmem:[#allocation148_spill] sm:$0xff] %v21297_v10  ;;  %v21299_v22 = vpop.f32.mrf.mxu1  ;;  %v5215_v32 = vld [vmem:[#allocation20 + $0x280] sm:$0xff] }
 0xa2e   : > { %v5032_v48 = vpop.f32.mrf.mxu0 }
 0xa2f   : > { %v4789_v31 = vpop.f32.mrf.mxu1  ;;  %v21303_v39 = vmul.f32 %v5209_v19, %v5032_v48 }
 0xa30   : > { %v16958_v40 = vpop.f32.mrf.mxu0 }
 0xa31   : > { %v4793_v18 = vpop.f32.mrf.mxu1  ;;  %23188 = vst [vmem:[#allocation149_spill] sm:$0xff] %v21303_v39 }
 0xa32   : > { %v5035_v46 = vpop.f32.mrf.mxu0 }
 0xa33   : > { %v4795_v0 = vpop.f32.mrf.mxu1  ;;  %v21305_v55 = vmul.f32 %v5212_v44, %v5035_v46  ;;  %v5223_v46 = vld [vmem:[#allocation20 + $0x2c0] sm:$0xff] }
 0xa34   : > { %v16959_v34 = vpop.f32.mrf.mxu0  ;;  %v5370_v53 = vmul.f32 %v5220_v33, %v4795_v0 }
 0xa35   : > { %23189 = vst [vmem:[#allocation150_spill] sm:$0xff] %v21305_v55  ;;  %v4797_v42 = vpop.f32.mrf.mxu1  ;;  %v5226_v34 = vld [vmem:[#allocation20 + $0x2d8] sm:$0xff] }
 0xa36   : > { %v5040_v15 = vpop.f32.mrf.mxu0  ;;  %v5214_v55 = vld [vmem:[#allocation20 + $0x278] sm:$0xff] }
 0xa37   : > { %v4799_v56 = vpop.f32.mrf.mxu1  ;;  %v21309_v40 = vmul.f32 %v5215_v32, %v5040_v15  ;;  %v5222_v32 = vld [vmem:[#allocation20 + $0x2b8] sm:$0xff] }
 0xa38   : > { %v16962_v28 = vpop.f32.mrf.mxu0  ;;  %v5373_v43 = vmul.f32 %v5223_v46, %v4799_v56  ;;  %v5372_v59 = vmul.f32 %v5222_v32, %v4797_v42  ;;  %v5234_v56 = vld [vmem:[#allocation20 + $0x318] sm:$0xff] }
 0xa39   : > { %v4803_v11 = vpop.f32.mrf.mxu1  ;;  %23190 = vst [vmem:[#allocation151_spill] sm:$0xff] %v21309_v40  ;;  %v5221_v28 = vld [vmem:[#allocation20 + $0x2b0] sm:$0xff] }
 0xa3a   : > { %v5043_v26 = vpop.f32.mrf.mxu0  ;;  %v5375_v27 = vmul.f32 %v5225_v41, %v4803_v11  ;;  %v5369_v11 = vmul.f32 %v5219_v37, %v4793_v18 }
 0xa3b   : > { %v4805_v48 = vpop.f32.mrf.mxu1  ;;  %v21311_v19 = vmul.f32 %v5218_v16, %v5043_v26 }
 0xa3c   : > { %v16963_v44 = vpop.f32.mrf.mxu0  ;;  %v5376_v5 = vmul.f32 %v5226_v34, %v4805_v48  ;;  %v5478_v34 = vpack.c.bf16 %v5373_v43, %v5370_v53  ;;  %v5208_v53 = vld [vmem:[#allocation20 + $0x248] sm:$0xff] }
 0xa3d   : > { %23191 = vst [vmem:[#allocation152_spill] sm:$0xff] %v21311_v19  ;;  %v4807_v4 = vpop.f32.mrf.mxu1  ;;  %v5217_v44 = vld [vmem:[#allocation20 + $0x290] sm:$0xff] }
 0xa3e   : > { %v5048_v29 = vpop.f32.mrf.mxu0  ;;  %v5378_v21 = vmul.f32 %v5228_v54, %v4807_v4  ;;  %v5231_v4 = vld [vmem:[#allocation20 + $0x300] sm:$0xff]  ;;  %v5367_v46 = vmul.f32 %v5217_v44, %v4789_v31  ;;  %v5202_v44 = vld [vmem:[#allocation20 + $0x218] sm:$0xff] }
 0xa3f   : > { %v4809_v15 = vpop.f32.mrf.mxu1  ;;  %v21315_v10 = vmul.f32 %v5221_v28, %v5048_v29  ;;  %v5211_v29 = vld [vmem:[#allocation20 + $0x260] sm:$0xff] }
 0xa40   : > { %v5379_v26 = vmul.f32 %v5229_v30, %v4809_v15  ;;  %v16966_v16 = vpop.f32.mrf.mxu0  ;;  %v5480_v25 = vpack.c.bf16 %v5378_v21, %v5375_v27  ;;  %v5216_v30 = vld [vmem:[#allocation20 + $0x288] sm:$0xff]  ;;  %v5364_v27 = vmul.f32 %v5214_v55, %v21295_v8  ;;  %v5227_v31 = vld [vmem:[#allocation20 + $0x2e0] sm:$0xff]  ;;  %v5361_v18 = vmul.f32 %v5211_v29, %v21289_v7  ;;  %v5230_v55 = vld [vmem:[#allocation20 + $0x2f8] sm:$0xff] }
 0xa41   : > { %v4813_v17 = vpop.f32.mrf.mxu1  ;;  %v5366_v43 = vmul.f32 %v5216_v30, %v21299_v22  ;;  %v5207_v22 = vld [vmem:[#allocation20 + $0x240] sm:$0xff] }
 0xa42   : > { %v5481_v38 = vpack.c.bf16 %v5379_v26, %v5376_v5  ;;  %v5051_v39 = vpop.f32.mrf.mxu0  ;;  %v5213_v5 = vld [vmem:[#allocation20 + $0x270] sm:$0xff]  ;;  %v21324_v21 = vmul.f32 %v5231_v4, %v4813_v17  ;;  %v5475_v42 = vpack.c.bf16 %v5367_v46, %v5364_v27  ;;  %v5240_v46 = vld [vmem:[#allocation20 + $0x348] sm:$0xff] }
 0xa43   : > { %v21317_v54 = vpop.f32.mrf.mxu1  ;;  %v21319_v48 = vmul.f32 %v5224_v61, %v5051_v39  ;;  %v5477_v39 = vpack.c.bf16 %v5372_v59, %v5369_v11  ;;  %v5363_v15 = vmul.f32 %v5213_v5, %v21291_v57  ;;  %v5358_v59 = vmul.f32 %v5208_v53, %v21281_v13  ;;  %v5204_v57 = vld [vmem:[#allocation20 + $0x228] sm:$0xff]  ;;  %v5201_v27 = vld [vmem:[#allocation20 + $0x210] sm:$0xff] }
 0xa44   : > { %5570 = vmatprep.subr.bf16.mxu1 %v5481_v38  ;;  %v16967_v41 = vpop.f32.mrf.mxu0  ;;  %v5205_v38 = vld [vmem:[#allocation20 + $0x230] sm:$0xff]  ;;  %v5357_v13 = vmul.f32 %v5207_v22, %v21274_v51  ;;  %v5351_v22 = vmul.f32 %v5201_v27, %v21256_v24  ;;  %v5239_v27 = vld [vmem:[#allocation20 + $0x340] sm:$0xff] }
 0xa45   : > { %v4817_v28 = vpop.f32.mrf.mxu1  ;;  %5571 = vmatpush2.bf16.msra.mxu1 %v5480_v25  ;;  %v5210_v25 = vld [vmem:[#allocation20 + $0x258] sm:$0xff]  ;;  %v5474_v4 = vpack.c.bf16 %v5366_v43, %v5363_v15  ;;  %v5355_v41 = vmul.f32 %v5205_v38, %v21272_v35  ;;  %v5472_v29 = vpack.c.bf16 %v5361_v18, %v5358_v59  ;;  %v5233_v35 = vld [vmem:[#allocation20 + $0x310] sm:$0xff]  ;;  %v5236_v15 = vld [vmem:[#allocation20 + $0x328] sm:$0xff] }
 0xa46   : > { %v21326_v0 = vmul.f32 %v5234_v56, %v4817_v28  ;;  %5572 = vmatprep.subr.bf16.mxu1 %v5478_v34  ;;  %v5056_v61 = vpop.f32.mrf.mxu0  ;;  %v5360_v7 = vmul.f32 %v5210_v25, %v21285_v9  ;;  %v5237_v56 = vld [vmem:[#allocation20 + $0x330] sm:$0xff]  ;;  %v5199_v28 = vld [vmem:[#allocation20 + $0x200] sm:$0xff]  ;;  %v5354_v25 = vmul.f32 %v5204_v57, %v21265_v23  ;;  %v5266_v9 = vld [vmem:[#allocation20 + $0x418] sm:$0xff] }
 0xa47   : > { %v21329_v37 = vpop.f32.mrf.mxu1  ;;  %v21335_v26 = vmul.f32 %v5227_v31, %v5056_v61  ;;  %v5352_v61 = vmul.f32 %v5202_v44, %v21261_v20  ;;  %v5195_v23 = vld [vmem:[#allocation20 + $0x1e0] sm:$0xff]  ;;  %v5276_v20 = vld [vmem:[#allocation20 + $0x468] sm:$0xff] }
 0xa48   : > { %v16970_v17 = vpop.f32.mrf.mxu0  ;;  %v5471_v18 = vpack.c.bf16 %v5360_v7, %v5357_v13 }
 0xa49   : > { %v4823_v32 = vpop.f32.mrf.mxu1  ;;  %5573 = vmatpush2.bf16.msra.mxu1 %v5477_v39  ;;  %v5196_v39 = vld [vmem:[#allocation20 + $0x1e8] sm:$0xff]  ;;  %v5349_v17 = vmul.f32 %v5199_v28, %v21253_v60  ;;  %v5190_v60 = vld [vmem:[#allocation20 + $0x1b8] sm:$0xff]  ;;  %v5345_v28 = vmul.f32 %v5195_v23, %v21236_v52 }
 0xa4a   : > { %5574 = vmatprep.subr.bf16.mxu1 %v5475_v42  ;;  %v5059_v16 = vpop.f32.mrf.mxu0  ;;  %v21348_v31 = vmul.f32 %v5237_v56, %v4823_v32  ;;  %v5198_v42 = vld [vmem:[#allocation20 + $0x1f8] sm:$0xff]  ;;  %v5193_v32 = vld [vmem:[#allocation20 + $0x1d0] sm:$0xff]  ;;  %v5346_v44 = vmul.f32 %v5196_v39, %v21242_v50  ;;  %v5468_v56 = vpack.c.bf16 %v5354_v25, %v5351_v22 }
 0xa4b   : > { %v21339_v30 = vpop.f32.mrf.mxu1  ;;  %v21341_v34 = vmul.f32 %v5230_v55, %v5059_v16  ;;  %v5469_v55 = vpack.c.bf16 %v5355_v41, %v5352_v61  ;;  %v5343_v24 = vmul.f32 %v5193_v32, %v21230_v6  ;;  %v5184_v61 = vld [vmem:[#allocation20 + $0x188] sm:$0xff]  ;;  %v5242_v52 = vld [vmem:[#allocation20 + $0x358] sm:$0xff] }
 0xa4c   : > { %v16971_v11 = vpop.f32.mrf.mxu0  ;;  %v5466_v41 = vpack.c.bf16 %v5349_v17, %v5346_v44  ;;  %v5334_v17 = vmul.f32 %v5184_v61, %v21194_v14  ;;  %v5245_v14 = vld [vmem:[#allocation20 + $0x370] sm:$0xff] }
 0xa4d   : > { %v4827_v5 = vpop.f32.mrf.mxu1  ;;  %5575 = vmatpush2.bf16.msra.mxu1 %v5474_v4  ;;  %v5348_v4 = vmul.f32 %v5198_v42, %v21248_v3  ;;  %v5187_v11 = vld [vmem:[#allocation20 + $0x1a0] sm:$0xff]  ;;  %v5340_v3 = vmul.f32 %v5190_v60, %v21216_v58 }
 0xa4e   : > { %v21350_v53 = vmul.f32 %v5240_v46, %v4827_v5  ;;  %5576 = vmatprep.subr.bf16.mxu1 %v5472_v29  ;;  %v5064_v43 = vpop.f32.mrf.mxu0  ;;  %v5337_v6 = vmul.f32 %v5187_v11, %v21206_v47  ;;  %v23196_v47 = vpack.c.bf16 %v21227_v36, %v21225_v1  ;;  %v21397_v60 = vld [vmem:[#allocation22] ss:$16 sps:$4 sm:$0xff]   ;;  %v21406_v36 = vld [vmem:[#allocation22 + $0xc] ss:$16 sps:$4 sm:$0xff]  }
 0xa4f   : > { %v21353_v51 = vpop.f32.mrf.mxu1  ;;  %v21361_v16 = vmul.f32 %v5233_v35, %v5064_v43  ;;  %v5465_v43 = vpack.c.bf16 %v5348_v4, %v5345_v28  ;;  %v5463_v39 = vpack.c.bf16 %v5343_v24, %v5340_v3  ;;  %23197 = vst [vmem:[#allocation157_spill] sm:$0xff] %v21397_v60  ;;  %23200 = vst [vmem:[#allocation159_spill] sm:$0xff] %v21406_v36 }
 0xa50   : > { %v16974_v38 = vpop.f32.mrf.mxu0 }
 0xa51   : > { %v21359_v59 = vpop.f32.mrf.mxu1  ;;  %5577 = vmatpush2.bf16.msra.mxu1 %v5471_v18  ;;  %23192 = vst [vmem:[#allocation153_spill] sm:$0xff] %v21361_v16 }
 0xa52   : > { %5578 = vmatprep.subr.bf16.mxu1 %v5469_v55  ;;  %v5067_v7 = vpop.f32.mrf.mxu0 }
 0xa53   : > { %v21365_v46 = vpop.f32.mrf.mxu1  ;;  %v21367_v57 = vmul.f32 %v5236_v15, %v5067_v7  ;;  %v5460_v15 = vpack.c.bf16 %v5337_v6, %v5334_v17  ;;  %v5254_v6 = vld [vmem:[#allocation20 + $0x3b8] sm:$0xff] }
 0xa54   : > { %v16975_v29 = vpop.f32.mrf.mxu0 }
 0xa55   : > { %23193 = vst [vmem:[#allocation154_spill] sm:$0xff] %v21367_v57  ;;  %v21371_v13 = vpop.f32.mrf.mxu1  ;;  %5579 = vmatpush2.bf16.msra.mxu1 %v5468_v56  ;;  %v5248_v56 = vld [vmem:[#allocation20 + $0x388] sm:$0xff]  ;;  %v5277_v57 = vld [vmem:[#allocation20 + $0x470] sm:$0xff] }
 0xa56   : > { %5580 = vmatprep.subr.bf16.mxu1 %v5466_v41  ;;  %v5072_v5 = vpop.f32.mrf.mxu0  ;;  %v23198_v41 = vpack.c.bf16 %v21203_v62, %v21201_v45  ;;  %v5251_v62 = vld [vmem:[#allocation20 + $0x3a0] sm:$0xff] }
 0xa57   : > { %v21376_v35 = vpop.f32.mrf.mxu1  ;;  %v21381_v42 = vmul.f32 %v5239_v27, %v5072_v5 }
 0xa58   : > { %v16978_v25 = vpop.f32.mrf.mxu0 }
 0xa59   : > { %v21379_v18 = vpop.f32.mrf.mxu1  ;;  %5581 = vmatpush2.bf16.msra.mxu1 %v5465_v43  ;;  %23194 = vst [vmem:[#allocation155_spill] sm:$0xff] %v21381_v42  ;;  %v5273_v42 = vld [vmem:[#allocation20 + $0x450] sm:$0xff] }
 0xa5a   : > { %5582 = vmatprep.subr.bf16.mxu1 %v5463_v39  ;;  %v5075_v58 = vpop.f32.mrf.mxu0 }
 0xa5b   : > { %v21384_v55 = vpop.f32.mrf.mxu1  ;;  %v21386_v38 = vmul.f32 %v5242_v52, %v5075_v58 }
 0xa5c   : > { %v16979_v32 = vpop.f32.mrf.mxu0 }
 0xa5d   : > { %23195 = vst [vmem:[#allocation156_spill] sm:$0xff] %v21386_v38  ;;  %v21388_v22 = vpop.f32.mrf.mxu1  ;;  %5583 = vmatpush2.bf16.msra.mxu1 %v23196_v47  ;;  %v17753_v32 = vld [vmem:[#allocation25 + $0x78] sm:$0xff]  }
 0xa5e   : > { %5584 = vmatprep.subr.bf16.mxu1 %v5460_v15  ;;  %v5080_v44 = vpop.f32.mrf.mxu0  ;;  %v17754_v47 = vld [vmem:[#allocation25 + $0x38] sm:$0xff]   ;;  %16532 = vmatprep.subr.bf16.mxu0 %v17753_v32 }
 0xa5f   : > { %v21395_v7 = vpop.f32.mrf.mxu1  ;;  %v21404_v1 = vmul.f32 %v5245_v14, %v5080_v44  ;;  %16533 = vmatpush3.bf16.msra.mxu0 %v17754_v47  ;;  %v5263_v14 = vld [vmem:[#allocation20 + $0x400] sm:$0xff] }
 0xa60   : > { %v16982_v4 = vpop.f32.mrf.mxu0 }
 0xa61   : > { %v21399_v24 = vpop.f32.mrf.mxu1  ;;  %5585 = vmatpush2.bf16.msra.mxu1 %v23198_v41  ;;  %23199 = vst [vmem:[#allocation158_spill] sm:$0xff] %v21404_v1  ;;  %v5268_v1 = vld [vmem:[#allocation20 + $0x428] sm:$0xff] }
 0xa62   : > { %v5083_v29 = vpop.f32.mrf.mxu0 }
 0xa63   : > { %v21408_v11 = vpop.f32.mrf.mxu1  ;;  %v21410_v28 = vmul.f32 %v5248_v56, %v5083_v29  ;;  %v5257_v56 = vld [vmem:[#allocation20 + $0x3d0] sm:$0xff] }
 0xa64   : > { %5587 = vmatmul.mubr.bf16.vlgmr.msra.gmra.mxu1 %v21397_v60  ;;  %v16983_v3 = vpop.f32.mrf.mxu0  ;;  %v5267_v60 = vld [vmem:[#allocation20 + $0x420] sm:$0xff] }
 0xa65   : > { %23201 = vst [vmem:[#allocation160_spill] sm:$0xff] %v21410_v28  ;;  %v21413_v5 = vpop.f32.mrf.mxu1  ;;  %15435 = vmatprep.mubr.msk.bf16.mxu1 %vm5550_vm2, %v21406_v36  ;;  %v5260_v3 = vld [vmem:[#allocation20 + $0x3e8] sm:$0xff] }
 0xa66   : > { %v5088_v45 = vpop.f32.mrf.mxu0 }
 0xa67   : > { %v21419_v61 = vpop.f32.mrf.mxu1  ;;  %v21423_v25 = vmul.f32 %v5251_v62, %v5088_v45 }
 0xa68   : > { %v16986_v43 = vpop.f32.mrf.mxu0 }
 0xa69   : > { %v21421_v39 = vpop.f32.mrf.mxu1  ;;  %23202 = vst [vmem:[#allocation161_spill] sm:$0xff] %v21423_v25 }
 0xa6a   : > { %v5091_v52 = vpop.f32.mrf.mxu0 }
 0xa6b   : > { %v21425_v17 = vpop.f32.mrf.mxu1  ;;  %v21427_v58 = vmul.f32 %v5254_v6, %v5091_v52 }
 0xa6c   : > { %v16987_v15 = vpop.f32.mrf.mxu0 }
 0xa6d   : > { %23203 = vst [vmem:[#allocation162_spill] sm:$0xff] %v21427_v58  ;;  %v21429_v44 = vpop.f32.mrf.mxu1 }
 0xa6e   : > { %v5096_v4 = vpop.f32.mrf.mxu0 }
 0xa6f   : > { %v4869_v41 = vpop.f32.mrf.mxu1  ;;  %v21433_v62 = vmul.f32 %v5257_v56, %v5096_v4 }
 0xa70   : > { %v16990_v29 = vpop.f32.mrf.mxu0 }
 0xa71   : > { %v4873_v45 = vpop.f32.mrf.mxu1  ;;  %23204 = vst [vmem:[#allocation163_spill] sm:$0xff] %v21433_v62  ;;  %v5272_v62 = vld [vmem:[#allocation20 + $0x448] sm:$0xff] }
 0xa72   : > { %v5099_v43 = vpop.f32.mrf.mxu0 }
 0xa73   : > { %v4875_v6 = vpop.f32.mrf.mxu1  ;;  %v21435_v52 = vmul.f32 %v5260_v3, %v5099_v43  ;;  %v5271_v43 = vld [vmem:[#allocation20 + $0x440] sm:$0xff] }
 0xa74   : > { %v16991_v15 = vpop.f32.mrf.mxu0  ;;  %v5418_v40 = vmul.f32 %v5268_v1, %v4875_v6  ;;  %v5250_v6 = vld [vmem:[#allocation20 + $0x398] sm:$0xff] }
 0xa75   : > { %23205 = vst [vmem:[#allocation164_spill] sm:$0xff] %v21435_v52  ;;  %v4877_v50 = vpop.f32.mrf.mxu1  ;;  %v5274_v15 = vld [vmem:[#allocation20 + $0x458] sm:$0xff] }
 0xa76   : > { %v5104_v27 = vpop.f32.mrf.mxu0 }
 0xa77   : > { %v4879_v33 = vpop.f32.mrf.mxu1  ;;  %v21439_v29 = vmul.f32 %v5263_v14, %v5104_v27  ;;  %v5270_v14 = vld [vmem:[#allocation20 + $0x438] sm:$0xff] }
 0xa78   : > { %v16994_v32 = vpop.f32.mrf.mxu0  ;;  %v5421_v25 = vmul.f32 %v5271_v43, %v4879_v33  ;;  %v5417_v43 = vmul.f32 %v5267_v60, %v4873_v45  ;;  %v5253_v60 = vld [vmem:[#allocation20 + $0x3b0] sm:$0xff]  ;;  %v5255_v45 = vld [vmem:[#allocation20 + $0x3c0] sm:$0xff] }
 0xa79   : > { %v4883_v47 = vpop.f32.mrf.mxu1  ;;  %23206 = vst [vmem:[#allocation165_spill] sm:$0xff] %v21439_v29  ;;  %v5269_v32 = vld [vmem:[#allocation20 + $0x430] sm:$0xff]  ;;  %v5262_v29 = vld [vmem:[#allocation20 + $0x3f8] sm:$0xff] }
 0xa7a   : > { %v5107_v8 = vpop.f32.mrf.mxu0  ;;  %v5423_v52 = vmul.f32 %v5273_v42, %v4883_v47  ;;  %v5502_v33 = vpack.c.bf16 %v5421_v25, %v5418_v40  ;;  %v5412_v1 = vmul.f32 %v5262_v29, %v21425_v17  ;;  %v5252_v47 = vld [vmem:[#allocation20 + $0x3a8] sm:$0xff]  ;;  %v5403_v29 = vmul.f32 %v5253_v60, %v21395_v7 }
 0xa7b   : > { %v4885_v4 = vpop.f32.mrf.mxu1  ;;  %v21441_v56 = vmul.f32 %v5266_v9, %v5107_v8 }
 0xa7c   : > { %v16995_v3 = vpop.f32.mrf.mxu0  ;;  %v5424_v58 = vmul.f32 %v5274_v15, %v4885_v4  ;;  %v5259_v4 = vld [vmem:[#allocation20 + $0x3e0] sm:$0xff] }
 0xa7d   : > { %23207 = vst [vmem:[#allocation166_spill] sm:$0xff] %v21441_v56  ;;  %v4887_v16 = vpop.f32.mrf.mxu1  ;;  %v5265_v3 = vld [vmem:[#allocation20 + $0x410] sm:$0xff]  ;;  %v5420_v56 = vmul.f32 %v5270_v14, %v4877_v50  ;;  %v5256_v50 = vld [vmem:[#allocation20 + $0x3c8] sm:$0xff]  ;;  %v5409_v40 = vmul.f32 %v5259_v4, %v21419_v61  ;;  %v5247_v15 = vld [vmem:[#allocation20 + $0x380] sm:$0xff] }
 0xa7e   : > { %v5112_v38 = vpop.f32.mrf.mxu0  ;;  %v5426_v28 = vmul.f32 %v5276_v20, %v4887_v16  ;;  %v5264_v20 = vld [vmem:[#allocation20 + $0x408] sm:$0xff]  ;;  %v5415_v16 = vmul.f32 %v5265_v3, %v4869_v41  ;;  %v5258_v41 = vld [vmem:[#allocation20 + $0x3d8] sm:$0xff]  ;;  %v5397_v7 = vmul.f32 %v5247_v15, %v21376_v35  ;;  %v5241_v4 = vld [vmem:[#allocation20 + $0x350] sm:$0xff] }
 0xa7f   : > { %v4889_v27 = vpop.f32.mrf.mxu1  ;;  %v21445_v36 = vmul.f32 %v5269_v32, %v5112_v38  ;;  %v5261_v38 = vld [vmem:[#allocation20 + $0x3f0] sm:$0xff]  ;;  %v5405_v32 = vmul.f32 %v5255_v45, %v21399_v24  ;;  %v5232_v45 = vld [vmem:[#allocation20 + $0x308] sm:$0xff] }
 0xa80   : > { %v5427_v8 = vmul.f32 %v5277_v57, %v4889_v27  ;;  %v16998_v9 = vpop.f32.mrf.mxu0  ;;  %v5504_v63 = vpack.c.bf16 %v5426_v28, %v5423_v52  ;;  %v5501_v28 = vpack.c.bf16 %v5420_v56, %v5417_v43  ;;  %v5408_v52 = vmul.f32 %v5258_v41, %v21413_v5  ;;  %v5249_v27 = vld [vmem:[#allocation20 + $0x390] sm:$0xff] }
 0xa81   : > { %v5244_v9 = vld [vmem:[#allocation20 + $0x368] sm:$0xff]  ;;  %v5402_v5 = vmul.f32 %v5252_v47, %v21388_v22  ;;  %v5399_v24 = vmul.f32 %v5249_v27, %v21379_v18  ;;  %v5238_v22 = vld [vmem:[#allocation20 + $0x338] sm:$0xff]  ;;  %v5391_v41 = vmul.f32 %v5241_v4, %v21353_v51  ;;  %v5235_v18 = vld [vmem:[#allocation20 + $0x320] sm:$0xff]  ;;  %v5382_v47 = vmul.f32 %v5232_v45, %v21317_v54 }
 0xa82   : > { %v5505_v19 = vpack.c.bf16 %v5427_v8, %v5424_v58  ;;  %v5115_v23 = vpop.f32.mrf.mxu0  ;;  %v5281_v8 = vld [vmem:[#allocation20 + $0x490] sm:$0xff]  ;;  %v5495_v3 = vpack.c.bf16 %v5408_v52, %v5405_v32  ;;  %v5280_v51 = vld [vmem:[#allocation20 + $0x488] sm:$0xff] }
 0xa83   : > { %v21447_v49 = vmul.f32 %v5272_v62, %v5115_v23  ;;  %v5414_v23 = vmul.f32 %v5264_v20, %v21429_v44  ;;  %v5406_v62 = vmul.f32 %v5256_v50, %v21408_v11  ;;  %v5400_v11 = vmul.f32 %v5250_v6, %v21384_v55  ;;  %v5246_v20 = vld [vmem:[#allocation20 + $0x378] sm:$0xff]  ;;  %v5243_v55 = vld [vmem:[#allocation20 + $0x360] sm:$0xff] }
 0xa84   : > { %5597 = vmatprep.subr.bf16.mxu1 %v5505_v19  ;;  %v16999_v57 = vpop.f32.mrf.mxu0  ;;  %v5499_v19 = vpack.c.bf16 %v5415_v16, %v5412_v1  ;;  %v5394_v1 = vmul.f32 %v5244_v9, %v21365_v46  ;;  %v23210_v9 = vpack.c.bf16 %v21341_v34, %v21335_v26  ;;  %v23213_v26 = vld [vmem:[#allocation140_spill] sm:$0xff]  ;;  %v23214_v34 = vld [vmem:[#allocation139_spill] sm:$0xff]  ;;  %v23223_v4 = vld [vmem:[#allocation149_spill] sm:$0xff] }
 0xa85   : > { %5598 = vmatpush1.bf16.msra.mxu1 %v5504_v63  ;;  %v5503_v42 = vpack.c.bf16 %v21447_v49, %v21445_v36  ;;  %v5411_v63 = vmul.f32 %v5261_v38, %v21421_v39  ;;  %v5496_v61 = vpack.c.bf16 %v5409_v40, %v5406_v62  ;;  %v4893_v39 = vpop.f32.mrf.mxu1  ;;  %v5493_v16 = vpack.c.bf16 %v5403_v29, %v5400_v11  ;;  %v5284_v57 = vld [vmem:[#allocation20 + $0x4a8] sm:$0xff]  ;;  %v5279_v29 = vld [vmem:[#allocation20 + $0x480] sm:$0xff]  ;;  %v23241_v45 = vld [vmem:[#allocation143_spill] sm:$0xff] }
 0xa86   : > { %5599 = vmatprep.subr.bf16.mxu1 %v5502_v33  ;;  %v21452_v58 = vpop.f32.mrf.mxu0  ;;  %v5490_v40 = vpack.c.bf16 %v5397_v7, %v5394_v1  ;;  %v5385_v62 = vmul.f32 %v5235_v18, %v21329_v37  ;;  %v5429_v32 = vmul.f32 %v5279_v29, %v4893_v39  ;;  %v23209_v11 = vpack.c.bf16 %v21326_v0, %v21324_v21  ;;  %v18855_v21 = vld [vmem:[#allocation22 + $0x4] ss:$16 sps:$4 sm:$0xff]   ;;  %v17758_v0 = vld [vmem:[#allocation25 + $0x68] sm:$0xff]   ;;  %v23265_v36 = vld [vmem:[#allocation158_spill] sm:$0xff] }
 0xa87   : > { %v5498_v44 = vpack.c.bf16 %v5414_v23, %v5411_v63  ;;  %v4895_v43 = vpop.f32.mrf.mxu1  ;;  %v5396_v23 = vmul.f32 %v5246_v20, %v21371_v13  ;;  %v5388_v63 = vmul.f32 %v5238_v22, %v21339_v30  ;;  %v23208_v30 = vpack.c.bf16 %v21350_v53, %v21348_v31  ;;  %v17756_v31 = vld [vmem:[#allocation25 + $0x30] sm:$0xff]   ;;  %v23216_v20 = vld [vmem:[#allocation152_spill] sm:$0xff]  ;;  %v23217_v7 = vld [vmem:[#allocation151_spill] sm:$0xff] }
 0xa88   : > { %v17002_v25 = vpop.f32.mrf.mxu0  ;;  %v23211_v53 = vpack.c.bf16 %v21218_v2, %v21212_v12  ;;  %v23212_v39 = vpack.c.bf16 %v21319_v48, %v21315_v10  ;;  %v23219_v12 = vld [vmem:[#allocation138_spill] sm:$0xff]  ;;  %v23220_v2 = vld [vmem:[#allocation137_spill] sm:$0xff]  ;;  %v23225_v48 = vld [vmem:[#allocation136_spill] sm:$0xff] }
 0xa89   : > { %5600 = vmatpush1.bf16.msra.mxu1 %v5501_v28  ;;  %v5492_v28 = vpack.c.bf16 %v5402_v5, %v5399_v24  ;;  %v5393_v25 = vmul.f32 %v5243_v55, %v21359_v59  ;;  %v4897_v60 = vpop.f32.mrf.mxu1  ;;  %v5487_v6 = vpack.c.bf16 %v5391_v41, %v5388_v63  ;;  %v5484_v59 = vpack.c.bf16 %v5385_v62, %v5382_v47  ;;  %v17759_v5 = vld [vmem:[#allocation25 + $0x28] sm:$0xff]   ;;  %v23226_v24 = vld [vmem:[#allocation135_spill] sm:$0xff]  ;;  %v23231_v22 = vld [vmem:[#allocation134_spill] sm:$0xff] }
 0xa8a   : > { %5601 = vmatprep.subr.bf16.mxu1 %v5499_v19  ;;  %v21458_v17 = vpop.f32.mrf.mxu0  ;;  %v23228_v55 = vld [vmem:[#allocation148_spill] sm:$0xff]  ;;  %v23229_v1 = vld [vmem:[#allocation147_spill] sm:$0xff]  ;;  %v23234_v41 = vld [vmem:[#allocation146_spill] sm:$0xff] }
 0xa8b   : > { %v5489_v13 = vpack.c.bf16 %v5396_v23, %v5393_v25  ;;  %v4899_v52 = vpop.f32.mrf.mxu1  ;;  %v23232_v23 = vld [vmem:[#allocation133_spill] sm:$0xff]  ;;  %v23237_v18 = vld [vmem:[#allocation132_spill] sm:$0xff]  ;;  %v23238_v25 = vld [vmem:[#allocation131_spill] sm:$0xff] }
 0xa8c   : > { %v17003_v56 = vpop.f32.mrf.mxu0  ;;  %v23240_v63 = vld [vmem:[#allocation144_spill] sm:$0xff]  ;;  %v23246_v47 = vld [vmem:[#allocation142_spill] sm:$0xff] }
 0xa8d   : > { %5602 = vmatpush1.bf16.msra.mxu1 %v5498_v44  ;;  %v5283_v44 = vld [vmem:[#allocation20 + $0x4a0] sm:$0xff]  ;;  %v5282_v56 = vld [vmem:[#allocation20 + $0x498] sm:$0xff] }
 0xa8e   : > { %5603 = vmatprep.subr.bf16.mxu1 %v5496_v61  ;;  %v5128_v14 = vpop.f32.mrf.mxu0  ;;  %v5430_v61 = vmul.f32 %v5280_v51, %v4895_v43  ;;  %v5433_v15 = vmul.f32 %v5283_v44, %v4899_v52  ;;  %v5432_v37 = vmul.f32 %v5282_v56, %v4897_v60  ;;  %v23227_v43 = vpack.c.bf16 %v23225_v48, %v23226_v24  ;;  %v5275_v62 = vld [vmem:[#allocation20 + $0x460] sm:$0xff]  ;;  %v23243_v51 = vld [vmem:[#allocation130_spill] sm:$0xff] }
 0xa8f   : > { %v21467_v38 = vmul.f32 %v5281_v8, %v5128_v14  ;;  %v21486_v14 = vld [vmem:[#allocation22 + $0x8] ss:$16 sps:$4 sm:$0xff]   ;;  %v23239_v60 = vpack.c.bf16 %v23237_v18, %v23238_v25  ;;  %v23264_v49 = vld [vmem:[#allocation160_spill] sm:$0xff]  ;;  %v23273_v48 = vmov 0.0   ;;  %v5514_v18 = vld [vmem:[#allocation23] sm:$0x7] }
 0xa90   : > { %v17006_v33 = vpop.f32.mrf.mxu0  ;;  %v5508_v27 = vpack.c.bf16 %v5433_v15, %v5430_v61  ;;  %v5507_v54 = vpack.c.bf16 %v5432_v37, %v5429_v32  ;;  %v17755_v8 = vld [vmem:[#allocation25 + $0x70] sm:$0xff]   ;;  %v5425_v61 = vmul.f32 %v5275_v62, %v21452_v58  ;;  %v23249_v15 = vld [vmem:[#allocation128_spill] sm:$0xff]  ;;  %v23252_v37 = vmov 0   ;;  %v23255_v58 = vld [vmem:[#allocation166_spill] sm:$0xff] }
 0xa91   : > { %5604 = vmatpush1.bf16.msra.mxu1 %v5495_v3  ;;  %16534 = vmatprep.subr.bf16.mxu0 %v17755_v8  ;;  %v23215_v3 = vpack.c.bf16 %v23213_v26, %v23214_v34  ;;  %v23221_v33 = vpack.c.bf16 %v23219_v12, %v23220_v2  ;;  %v23244_v52 = vld [vmem:[#allocation129_spill] sm:$0xff]  ;;  %v23267_v26 = vld [vmem:[#allocation156_spill] sm:$0xff]  ;;  %v23268_v34 = vld [vmem:[#allocation155_spill] sm:$0xff] }
 0xa92   : > { %5605 = vmatprep.subr.bf16.mxu1 %v5493_v16  ;;  %v5131_v50 = vpop.f32.mrf.mxu0  ;;  %16535 = vmatpush3.bf16.msra.mxu0 %v17756_v31  ;;  %v23218_v16 = vpack.c.bf16 %v23216_v20, %v23217_v7  ;;  %v23245_v44 = vpack.c.bf16 %v23243_v51, %v23244_v52  ;;  %v23259_v31 = vld [vmem:[#allocation163_spill] sm:$0xff]  ;;  %v17764_v7 = vld [vmem:[#allocation25 + $0x58] sm:$0xff]   ;;  %v23271_v12 = vld [vmem:[#allocation153_spill] sm:$0xff] }
 0xa93   : > { %v21471_v35 = vmul.f32 %v5284_v57, %v5131_v50  ;;  %16536 = vmatprep.subr.bf16.mxu0 %v17758_v0  ;;  %v23222_v57 = vld [vmem:[#allocation150_spill] sm:$0xff]  ;;  %v23230_v50 = vpack.c.bf16 %v23228_v55, %v23229_v1  ;;  %v23262_v0 = vld [vmem:[#allocation161_spill] sm:$0xff]  ;;  %v17762_v20 = vld [vmem:[#allocation25 + $0x20] sm:$0xff]  }
 0xa94   : > { %v17007_v19 = vpop.f32.mrf.mxu0  ;;  %v23224_v10 = vpack.c.bf16 %v23222_v57, %v23223_v4  ;;  %v17767_v57 = vld [vmem:[#allocation25 + $0x50] sm:$0xff]   ;;  %v17757_v4 = vld [vmem:[#allocation25 + $0xb8] sm:$0xff]   ;;  %v17770_v24 = vld [vmem:[#allocation25 + $0x48] sm:$0xff]  }
 0xa95   : > { %5606 = vmatpush1.bf16.msra.mxu1 %v5492_v28  ;;  %v5509_v46 = vpack.c.bf16 %v21471_v35, %v21467_v38  ;;  %v23233_v28 = vpack.c.bf16 %v23231_v22, %v23232_v23  ;;  %v17771_v55 = vld [vmem:[#allocation25 + $0x8] sm:$0xff]   ;;  %v17773_v38 = vld [vmem:[#allocation25 + $0x40] sm:$0xff]   ;;  %v17769_v1 = vld [vmem:[#allocation25 + $0x98] sm:$0xff]  }
 0xa96   : > { %5607 = vmatprep.subr.bf16.mxu1 %v5490_v40  ;;  %16537 = vmatpush3.bf16.msra.mxu0 %v17759_v5  ;;  %v23235_v40 = vld [vmem:[#allocation145_spill] sm:$0xff]  ;;  %v17761_v5 = vld [vmem:[#allocation25 + $0x60] sm:$0xff]   ;;  %v17763_v35 = vld [vmem:[#allocation25 + $0xa8] sm:$0xff]  }
 0xa97   : > { %v23236_v19 = vpack.c.bf16 %v23234_v41, %v23235_v40  ;;  %16538 = vmatprep.subr.bf16.mxu0 %v17761_v5  ;;  %v17775_v22 = vld [vmem:[#allocation25 + $0x88] sm:$0xff]   ;;  %v17776_v23 = vld [vmem:[#allocation25 + $0x80] sm:$0xff]  }
 0xa99   : > { %5608 = vmatpush1.bf16.msra.mxu1 %v5489_v13  ;;  %v23242_v13 = vpack.c.bf16 %v23240_v63, %v23241_v45  ;;  %v23275_v45 = vld [vmem:[#allocation125_spill] sm:$0xff] }
 0xa9a   : > { %5609 = vmatprep.subr.bf16.mxu1 %v5487_v6  ;;  %v5278_v6 = vld [vmem:[#allocation20 + $0x478] sm:$0xff]  ;;  %16539 = vmatpush3.bf16.msra.mxu0 %v17762_v20  ;;  %v23276_v20 = vld [vmem:[#allocation126_spill] sm:$0xff] }
 0xa9b   : > { %v5428_v56 = vmul.f32 %v5278_v6, %v21458_v17  ;;  %v23256_v17 = vld [vmem:[#allocation165_spill] sm:$0xff]  ;;  %16540 = vmatprep.subr.bf16.mxu0 %v17764_v7  ;;  %v5527_v7 = vrot.slane %v5514_v18, %v23276_v20 }
 0xa9c   : > { %v23257_v8 = vpack.c.bf16 %v23255_v58, %v23256_v17  ;;  %v17777_v17 = vld [vmem:[#allocation28 + $0xa8] ss:$12 sps:$4 sm:$0xff]  }
 0xa9d   : > { %5610 = vmatpush1.bf16.msra.mxu1 %v23208_v30  ;;  %v23250_v30 = vld [vmem:[#allocation127_spill] sm:$0xff] }
 0xa9e   : > { %5611 = vmatprep.subr.bf16.mxu1 %v5484_v59  ;;  %v23247_v59 = vld [vmem:[#allocation141_spill] sm:$0xff]  ;;  %v23251_v32 = vpack.c.bf16 %v23249_v15, %v23250_v30 }
 0xa9f   : > { %v23248_v29 = vpack.c.bf16 %v23246_v47, %v23247_v59 }
 0xaa1   : > { %5612 = vmatpush1.bf16.msra.mxu1 %v23209_v11  ;;  %v23253_v11 = vld [vmem:[#allocation157_spill] sm:$0xff] }
 0xaa2   : > { %5627 = vmatprep.subr.bf16.mxu1 %v5508_v27  ;;  %v5506_v27 = vpack.c.bf16 %v5428_v56, %v5425_v61 }
 0xaa5   : > { %5628 = vmatpush2.bf16.msra.mxu1 %v5507_v54  ;;  %v23254_v54 = vld [vmem:[#allocation159_spill] sm:$0xff] }
 0xaa6   : > { %16510 = vmatprep.subr.bf16.mxu1 %v23210_v9  ;;  %v23258_v9 = vld [vmem:[#allocation164_spill] sm:$0xff] }
 0xaa8   : > { %5630 = vmatmul.mubr.bf16.vlgmr.msra.gmra.mxu1 %v21486_v14 }
 0xaa9   : > { %16511 = vmatpush3.bf16.msra.mxu1 %v23211_v53  ;;  %5672 = vmatprep.mubr.bf16.mxu1 %v18855_v21  ;;  %v23260_v53 = vpack.c.bf16 %v23258_v9, %v23259_v31  ;;  %v23261_v21 = vld [vmem:[#allocation162_spill] sm:$0xff] }
 0xaaa   : > { %16512 = vmatprep.subr.bf16.mxu1 %v23212_v39  ;;  %v23263_v39 = vpack.c.bf16 %v23261_v21, %v23262_v0  ;;  %v17782_v9 = vld [vmem:[#allocation28 + $0x94] ss:$12 sps:$4 sm:$0xff]   ;;  %v17780_v31 = vld [vmem:[#allocation28 + $0x90] ss:$12 sps:$4 sm:$0xff]   ;;  %v17783_v21 = vld [vmem:[#allocation28 + $0x78] ss:$12 sps:$4 sm:$0xff]  }
 0xaab   : > { %v17788_v0 = vld [vmem:[#allocation28 + $0x64] ss:$12 sps:$4 sm:$0xff]  }
 0xaad   : > { %16513 = vmatpush3.bf16.msra.mxu1 %v23215_v3  ;;  %v23269_v3 = vpack.c.bf16 %v23267_v26, %v23268_v34 }
 0xaae   : > { %16514 = vmatprep.subr.bf16.mxu1 %v23218_v16  ;;  %v23270_v16 = vld [vmem:[#allocation154_spill] sm:$0xff] }
 0xaaf   : > { %v23272_v2 = vpack.c.bf16 %v23270_v16, %v23271_v12 }
 0xab1   : > { %16515 = vmatpush3.bf16.msra.mxu1 %v23221_v33  ;;  %v17765_v33 = vld [vmem:[#allocation25 + $0x18] sm:$0xff]  }
 0xab2   : > { %16516 = vmatprep.subr.bf16.mxu1 %v23224_v10  ;;  %16541 = vmatpush3.bf16.msra.mxu0 %v17765_v33  ;;  %v17768_v10 = vld [vmem:[#allocation25 + $0x10] sm:$0xff]  }
 0xab3   : > { %16542 = vmatprep.subr.bf16.mxu0 %v17767_v57 }
 0xab5   : > { %16517 = vmatpush3.bf16.msra.mxu1 %v23227_v43  ;;  %v17760_v43 = vld [vmem:[#allocation25 + $0xb0] sm:$0xff]  }
 0xab6   : > { %16518 = vmatprep.subr.bf16.mxu1 %v23230_v50  ;;  %16543 = vmatpush3.bf16.msra.mxu0 %v17768_v10  ;;  %v17772_v50 = vld [vmem:[#allocation25 + $0x90] sm:$0xff]  }
 0xab7   : > { %16544 = vmatprep.subr.bf16.mxu0 %v17770_v24 }
 0xab9   : > { %16519 = vmatpush3.bf16.msra.mxu1 %v23233_v28  ;;  %v17779_v28 = vld [vmem:[#allocation28 + $0xac] ss:$12 sps:$4 sm:$0xff]  }
 0xaba   : > { %16520 = vmatprep.subr.bf16.mxu1 %v23236_v19  ;;  %16545 = vmatpush3.bf16.msra.mxu0 %v17771_v55 }
 0xabb   : > { %16546 = vmatprep.subr.bf16.mxu0 %v17773_v38 }
 0xabd   : > { %16521 = vmatpush3.bf16.msra.mxu1 %v23239_v60  ;;  %v23274_v60 = vld [vmem:[#allocation124_spill] sm:$0xff] }
 0xabe   : > { %16522 = vmatprep.subr.bf16.mxu1 %v23242_v13  ;;  %v5519_v63 = vrot.slane %v5514_v18, %v23274_v60  ;;  %v5523_v13 = vrot.slane %v5514_v18, %v23275_v45  ;;  %v17807_v18 = vld [vmem:[#allocation28 + $0x20] ss:$12 sps:$4 sm:$0xff]  }
 0xac1   : > { %16523 = vmatpush3.bf16.msra.mxu1 %v23245_v44 }
 0xac2   : > { %16524 = vmatprep.subr.bf16.mxu1 %v23248_v29 }
 0xac5   : > { %16525 = vmatpush3.bf16.msra.mxu1 %v23251_v32 }
 0xac6   : > { %5681 = vmatprep.subr.bf16.mxu1 %v23252_v37 }
 0xac8   : > { %5673 = vmatmul.mubr.bf16.vlgmr.msra.gmra.mxu1 %v23253_v11 }
 0xac9   : > { %5682 = vmatpush1.bf16.msra.mxu1 %v5506_v27  ;;  %15436 = vmatprep.mubr.msk.bf16.mxu1 %vm5550_vm2, %v23254_v54 }
 0xaca   : > { %5683 = vmatprep.subr.bf16.mxu1 %v23252_v37 }
 0xacd   : > { %5684 = vmatpush1.bf16.msra.mxu1 %v5503_v42  ;;  %v23266_v42 = vpack.c.bf16 %v23264_v49, %v23265_v36  ;;  %v17791_v49 = vld [vmem:[#allocation28 + $0x4c] ss:$12 sps:$4 sm:$0xff]   ;;  %v17789_v36 = vld [vmem:[#allocation28 + $0x48] ss:$12 sps:$4 sm:$0xff]  }
 0xace   : > { %5685 = vmatprep.subr.bf16.mxu1 %v23252_v37 }
 0xad1   : > { %5686 = vmatpush1.bf16.msra.mxu1 %v23257_v8 }
 0xad2   : > { %5687 = vmatprep.subr.bf16.mxu1 %v23252_v37 }
 0xad5   : > { %5688 = vmatpush1.bf16.msra.mxu1 %v23260_v53  ;;  %v17785_v53 = vld [vmem:[#allocation28 + $0x7c] ss:$12 sps:$4 sm:$0xff]  }
 0xad6   : > { %5689 = vmatprep.subr.bf16.mxu1 %v23252_v37 }
 0xad9   : > { %5690 = vmatpush1.bf16.msra.mxu1 %v23263_v39  ;;  %v17786_v39 = vld [vmem:[#allocation28 + $0x60] ss:$12 sps:$4 sm:$0xff]  }
 0xada   : > { %5691 = vmatprep.subr.bf16.mxu1 %v23252_v37 }
 0xadd   : > { %5692 = vmatpush1.bf16.msra.mxu1 %v23266_v42 }
 0xade   : > { %5693 = vmatprep.subr.bf16.mxu1 %v23252_v37 }
 0xae1   : > { %5694 = vmatpush1.bf16.msra.mxu1 %v23269_v3 }
 0xae2   : > { %5695 = vmatprep.subr.bf16.mxu1 %v23252_v37 }
 0xae5   : > { %5696 = vmatpush1.bf16.msra.mxu1 %v23272_v2 }
 0xae6   : > { %5711 = vmatprep.subr.bf16.mxu1 %v23252_v37 }
 0xae9   : > { %5712 = vmatpush2.bf16.msra.mxu1 %v5509_v46  ;;  %v17774_v46 = vld [vmem:[#allocation25] sm:$0xff]  }
 0xaea   : > { %17008 = vmatprep.subr.bf16.mxu1 %v23273_v48  ;;  %16547 = vmatpush3.bf16.msra.mxu0 %v17774_v46 }
 0xaeb   : > { %6190 = vmatprep.subr.bf16.mxu0 %v17779_v28  ;;  %v17805_v28 = vld [vmem:[#allocation28 + $0x50] ss:$12 sps:$4 sm:$0xff]  }
 0xaec   : > { %5714 = vmatmul.mubr.bf16.vlgmr.msra.gmra.mxu1 %v21486_v14  ;;  %v17766_v14 = vld [vmem:[#allocation25 + $0xa0] sm:$0xff]  }
 0xaed   : > { %17009 = vmatpush3.bf16.msra.mxu1 %v17757_v4  ;;  %17024 = vmatprep.mubr.msk.bf16.mxu1 %vm19982_vm1, %v23273_v48 }
 0xaee   : > { %17010 = vmatprep.subr.bf16.mxu1 %v23273_v48 }
 0xaf1   : > { %17011 = vmatpush3.bf16.msra.mxu1 %v17760_v43 }
 0xaf2   : > { %17012 = vmatprep.subr.bf16.mxu1 %v23273_v48 }
 0xaf5   : > { %17013 = vmatpush3.bf16.msra.mxu1 %v17763_v35  ;;  %v17792_v35 = vld [vmem:[#allocation28 + $0xb0] ss:$12 sps:$4 sm:$0xff]  }
 0xaf6   : > { %17014 = vmatprep.subr.bf16.mxu1 %v23273_v48 }
 0xaf9   : > { %17015 = vmatpush3.bf16.msra.mxu1 %v17766_v14  ;;  %v17793_v14 = vld [vmem:[#allocation28 + $0x30] ss:$12 sps:$4 sm:$0xff]  }
 0xafa   : > { %17016 = vmatprep.subr.bf16.mxu1 %v23273_v48 }
 0xafd   : > { %17017 = vmatpush3.bf16.msra.mxu1 %v17769_v1  ;;  %v17795_v1 = vld [vmem:[#allocation28 + $0x34] ss:$12 sps:$4 sm:$0xff]  }
 0xafe   : > { %17018 = vmatprep.subr.bf16.mxu1 %v23273_v48 }
 0xb01   : > { %17019 = vmatpush3.bf16.msra.mxu1 %v17772_v50  ;;  %v17796_v50 = vld [vmem:[#allocation28 + $0x98] ss:$12 sps:$4 sm:$0xff]  }
 0xb02   : > { %17020 = vmatprep.subr.bf16.mxu1 %v23273_v48 }
 0xb05   : > { %17021 = vmatpush3.bf16.msra.mxu1 %v17775_v22  ;;  %v17800_v22 = vld [vmem:[#allocation28 + $0x80] ss:$12 sps:$4 sm:$0xff]  }
 0xb06   : > { %17022 = vmatprep.subr.bf16.mxu1 %v23273_v48 }
 0xb09   : > { %17023 = vmatpush3.bf16.msra.mxu1 %v17776_v23  ;;  %v17804_v23 = vld [vmem:[#allocation28 + $0x68] ss:$12 sps:$4 sm:$0xff]  }
 0xb0a   : > { %17028 = vmatprep.subr.bf16.mxu1 %v23273_v48 }
 0xb24   : > { %v5588_v41 = vpop.f32.mrf.mxu1 }
 0xb25   : > { %v5589_v44 = vadd.f32 %v5588_v41, %v5519_v63  ;;  %v17806_v41 = vld [vmem:[#allocation28 + $0x38] ss:$12 sps:$4 sm:$0xff]  }
 0xb26   : > { %v5590_v40 = vpop.f32.mrf.mxu1 }
 0xb27   : > { %v5591_v51 = vadd.f32 %v5590_v40, %v5523_v13  ;;  %v17799_v40 = vld [vmem:[#allocation28 + $0x1c] ss:$12 sps:$4 sm:$0xff]  }
 0xb28   : > { %v5592_v19 = vpop.f32.mrf.mxu1 }
 0xb29   : > { %v5593_v52 = vadd.f32 %v5592_v19, %v5519_v63  ;;  %v17797_v19 = vld [vmem:[#allocation28 + $0x18] ss:$12 sps:$4 sm:$0xff]   ;;  %v17801_v63 = vld [vmem:[#allocation28] ss:$12 sps:$4 sm:$0xff]  }
 0xb2a   : > { %v5594_v25 = vpop.f32.mrf.mxu1 }
 0xb2b   : > { %v5595_v59 = vadd.f32 %v5594_v25, %v5523_v13  ;;  %v17803_v25 = vld [vmem:[#allocation28 + $0x4] ss:$12 sps:$4 sm:$0xff]   ;;  %v17808_v13 = vld [vmem:[#allocation28 + $0x8] ss:$12 sps:$4 sm:$0xff]  }
 0xb68   : > { %v5631_v62 = vpop.f32.mrf.mxu1 }
 0xb69   : > { %v5632_v56 = vadd.f32 %v5631_v62, %v5589_v44 }
 0xb6a   : > { %v5633_v6 = vpop.f32.mrf.mxu1 }
 0xb6b   : > { %v5634_v29 = vadd.f32 %v5633_v6, %v5591_v51  ;;  %v5722_v54 = vmax.f32 %v5632_v56, 0.0 }
 0xb6c   : > { %v5635_v47 = vpop.f32.mrf.mxu1 }
 0xb6d   : > { %v5636_v61 = vadd.f32 %v5635_v47, %v5593_v52  ;;  %v5723_v27 = vmax.f32 %v5634_v29, 0.0 }
 0xb6e   : > { %v5637_v15 = vpop.f32.mrf.mxu1 }
 0xb6f   : > { %v5638_v30 = vadd.f32 %v5637_v15, %v5595_v59  ;;  %v5725_v32 = vmax.f32 %v5636_v61, 0.0  ;;  %v15437_v59 = vld [vmem:[#allocation26] ss:$0 sm:$0xff] }
 0xb71   : > { %v5726_v11 = vmax.f32 %v5638_v30, 0.0  ;;  %v5728_v8 = vpack.c.bf16 %v5725_v32, %v5722_v54 }
 0xb73   : > { %v5729_v58 = vpack.c.bf16 %v5726_v11, %v5723_v27 }
 0xb75   : > { %5962 = vmatprep.mubr.bf16.mxu0 %v5729_v58  ;;  %v6045_v58 = vld [vmem:[#allocation29] sm:$0x7] }
 0xb76   : > { %5963 = vmatmul.mubr.bf16.vlgmr.msra.gmra.mxu0 %v5728_v8 }
 0xb77   : > { %6191 = vmatpush1.bf16.msra.mxu0 %v17777_v17  ;;  %6222 = vmatprep.mubr.bf16.mxu0 %v23252_v37  ;;  %v6058_v17 = vrot.slane %v6045_v58, %v23276_v20 }
 0xb78   : > { %6192 = vmatprep.subr.bf16.mxu0 %v17782_v9 }
 0xb7b   : > { %6193 = vmatpush1.bf16.msra.mxu0 %v17780_v31  ;;  %v6054_v31 = vrot.slane %v6045_v58, %v23275_v45  ;;  %v6647_v45 = vld [vmem:[#allocation31 + $0x170] sm:$0xff] }
 0xb7c   : > { %6194 = vmatprep.subr.bf16.mxu0 %v17785_v53  ;;  %v6050_v53 = vrot.slane %v6045_v58, %v23274_v60  ;;  %v6644_v60 = vld [vmem:[#allocation31 + $0x158] sm:$0xff] }
 0xb7f   : > { %6195 = vmatpush1.bf16.msra.mxu0 %v17783_v21 }
 0xb80   : > { %6196 = vmatprep.subr.bf16.mxu0 %v17788_v0 }
 0xb83   : > { %6197 = vmatpush1.bf16.msra.mxu0 %v17786_v39 }
 0xb84   : > { %6198 = vmatprep.subr.bf16.mxu0 %v17791_v49 }
 0xb87   : > { %6199 = vmatpush1.bf16.msra.mxu0 %v17789_v36 }
 0xb88   : > { %v16526_v42 = vpop.f32.mrf.mxu1  ;;  %6200 = vmatprep.subr.bf16.mxu0 %v17795_v1  ;;  %v17813_v1 = vld [vmem:[%s23279_s6 + $0x20] sm:$0xff]  }
 0xb8a   : > { %v16527_v5 = vpop.f32.mrf.mxu1 }
 0xb8b   : > { %v16528_v3 = vadd.f32 %v16527_v5, %v16526_v42  ;;  %6201 = vmatpush1.bf16.msra.mxu0 %v17793_v14  ;;  %v17812_v14 = vld [vmem:[%s23279_s6 + $0x18] sm:$0xff]  }
 0xb8c   : > { %v16529_v26 = vpop.f32.mrf.mxu1  ;;  %6202 = vmatprep.subr.bf16.mxu0 %v17799_v40 }
 0xb8d   : > { %v5675_v2 = vadd.f32 %v16528_v3, %v5527_v7 }
 0xb8e   : > { %v16530_v34 = vpop.f32.mrf.mxu1 }
 0xb8f   : > { %v16531_v16 = vadd.f32 %v16530_v34, %v16529_v26  ;;  %6203 = vmatpush1.bf16.msra.mxu0 %v17797_v19  ;;  %v6603_v19 = vld [vmem:[#allocation31 + $0x10] sm:$0xff] }
 0xb90   : > { %6204 = vmatprep.subr.bf16.mxu0 %v17803_v25  ;;  %v6606_v25 = vld [vmem:[#allocation31 + $0x28] sm:$0xff] }
 0xb91   : > { %v5678_v4 = vadd.f32 %v16531_v16, %v5527_v7 }
 0xb93   : > { %6205 = vmatpush1.bf16.msra.mxu0 %v17801_v63 }
 0xbac   : > { %v5715_v12 = vpop.f32.mrf.mxu1 }
 0xbad   : > { %v5716_v57 = vadd.f32 %v5715_v12, %v5675_v2 }
 0xbae   : > { %v5717_v33 = vpop.f32.mrf.mxu1 }
 0xbaf   : > { %v5724_v55 = vmax.f32 %v5716_v57, 0.0 }
 0xbb0   : > { %v5718_v10 = vpop.f32.mrf.mxu1 }
 0xbb1   : > { %v5719_v24 = vadd.f32 %v5718_v10, %v5678_v4 }
 0xbb2   : > { %v5720_v43 = vpop.f32.mrf.mxu1 }
 0xbb3   : > { %v5727_v38 = vmax.f32 %v5719_v24, 0.0  ;;  %v17809_v43 = vld [vmem:[%s23279_s6] sm:$0xff]  }
 0xbb5   : > { %v5730_v46 = vpack.c.bf16 %v5727_v38, %v5724_v55 }
 0xbb7   : > { %17025 = vmatmul.mubr.bf16.vlgmr.msra.gmra.mxu1 %v5730_v46  ;;  %v17811_v46 = vld [vmem:[%s23279_s6 + $0x10] sm:$0xff]  }
 0xbb8   : > { %17029 = vmatpush3.bf16.msra.mxu1 %v17792_v35  ;;  %17044 = vmatprep.mubr.msk.bf16.mxu1 %vm19982_vm1, %v23273_v48  ;;  %v17810_v35 = vld [vmem:[%s23279_s6 + $0x8] sm:$0xff]  }
 0xbb9   : > { %17030 = vmatprep.subr.bf16.mxu1 %v23273_v48 }
 0xbbc   : > { %17031 = vmatpush3.bf16.msra.mxu1 %v17796_v50  ;;  %v17814_v50 = vld [vmem:[%s23279_s6 + $0x28] sm:$0xff]  }
 0xbbd   : > { %17032 = vmatprep.subr.bf16.mxu1 %v23273_v48 }
 0xbc0   : > { %17033 = vmatpush3.bf16.msra.mxu1 %v17800_v22  ;;  %v17815_v22 = vld [vmem:[%s23279_s6 + $0x30] sm:$0xff]  }
 0xbc1   : > { %17034 = vmatprep.subr.bf16.mxu1 %v23273_v48 }
 0xbc4   : > { %17035 = vmatpush3.bf16.msra.mxu1 %v17804_v23  ;;  %v17816_v23 = vld [vmem:[%s23279_s6 + $0x38] sm:$0xff]  }
 0xbc5   : > { %17036 = vmatprep.subr.bf16.mxu1 %v23273_v48 }
 0xbc8   : > { %17037 = vmatpush3.bf16.msra.mxu1 %v17805_v28  ;;  %v17817_v28 = vld [vmem:[%s23279_s6 + $0x40] sm:$0xff]  }
 0xbc9   : > { %17038 = vmatprep.subr.bf16.mxu1 %v23273_v48 }
 0xbcc   : > { %17039 = vmatpush3.bf16.msra.mxu1 %v17806_v41  ;;  %v17820_v41 = vld [vmem:[%s23280_s7 + $0x4] ss:$8 sps:$4 sm:$0xff]  }
 0xbcd   : > { %17040 = vmatprep.subr.bf16.mxu1 %v23273_v48 }
 0xbd0   : > { %17041 = vmatpush3.bf16.msra.mxu1 %v17807_v18 }
 0xbd1   : > { %17042 = vmatprep.subr.bf16.mxu1 %v23273_v48 }
 0xbd4   : > { %17043 = vmatpush3.bf16.msra.mxu1 %v17808_v13 }
 0xbd5   : > { %17048 = vmatprep.subr.bf16.mxu1 %v23273_v48 }
 0xc36   : > { %v16548_v62 = vpop.f32.mrf.mxu0 }
 0xc38   : > { %v16549_v6 = vpop.f32.mrf.mxu0 }
 0xc39   : > { %v16550_v44 = vadd.f32 %v16549_v6, %v16548_v62  ;;  %v6601_v6 = vld [vmem:[#allocation31] sm:$0xff] }
 0xc3a   : > { %v16551_v51 = vpop.f32.mrf.mxu0 }
 0xc3b   : > { %v5965_v56 = vadd.f32 %v16550_v44, %v15437_v59 }
 0xc3c   : > { %v16552_v52 = vpop.f32.mrf.mxu0 }
 0xc3d   : > { %v16553_v47 = vadd.f32 %v16552_v52, %v16551_v51  ;;  %v6604_v52 = vld [vmem:[#allocation31 + $0x18] sm:$0xff] }
 0xc3f   : > { %v5968_v15 = vadd.f32 %v16553_v47, %v15437_v59 }
 0xc77   : > { %v6005_v29 = vpop.f32.mrf.mxu1 }
 0xc78   : > { %v21601_v32 = vadd.f32 %v6005_v29, %v5965_v56 }
 0xc79   : > { %v17026_v61 = vpop.f32.mrf.mxu1 }
 0xc7a   : > { %23277 = vst [vmem:[#allocation140_spill] sm:$0xff] %v21601_v32 }
 0xc7b   : > { %v6008_v30 = vpop.f32.mrf.mxu1 }
 0xc7c   : > { %v21603_v27 = vadd.f32 %v6008_v30, %v5968_v15  ;;  %v6609_v30 = vld [vmem:[#allocation31 + $0x40] sm:$0xff] }
 0xc7d   : > { %v17027_v11 = vpop.f32.mrf.mxu1 }
 0xc7e   : > { %23278 = vst [vmem:[#allocation139_spill] sm:$0xff] %v21603_v27  ;;  %v6012_v54 = vpack.c.bf16 %v21603_v27, %v21601_v32  ;;  %v6641_v32 = vld [vmem:[#allocation31 + $0x140] sm:$0xff] }
 0xc80   : > { %6223 = vmatmul.mubr.bf16.vlgmr.msra.gmra.mxu0 %v6012_v54  ;;  %17045 = vmatmul.mubr.bf16.vlgmr.msra.gmra.mxu1 %v6012_v54 }
 0xc81   : > { %6405 = vmatprep.mubr.bf16.mxu0 %v23252_v37  ;;  %17050 = vmatprep.mubr.msk.bf16.mxu1 %vm19982_vm1, %v23273_v48 }
 0xd40   : > { %v6224_v8 = vpop.f32.mrf.mxu0  ;;  %v6267_v9 = vpop.f32.mrf.mxu1 }
 0xd41   : > { %v6268_v39 = vadd.f32 %v6267_v9, %v6058_v17  ;;  %v6225_v34 = vadd.f32 %v6224_v8, %v6050_v53 }
 0xd42   : > { %v6226_v21 = vpop.f32.mrf.mxu0  ;;  %v17046_v0 = vpop.f32.mrf.mxu1 }
 0xd43   : > { %v6227_v42 = vadd.f32 %v6226_v21, %v6054_v31  ;;  %v6276_v12 = vmax.f32 %v6268_v39, 0.0  ;;  %v6274_v24 = vmax.f32 %v6225_v34, 0.0  ;;  %v6610_v0 = vld [vmem:[#allocation31 + $0x48] sm:$0xff] }
 0xd44   : > { %v6228_v49 = vpop.f32.mrf.mxu0  ;;  %v6270_v36 = vpop.f32.mrf.mxu1 }
 0xd45   : > { %v6229_v5 = vadd.f32 %v6228_v49, %v6050_v53  ;;  %v6271_v26 = vadd.f32 %v6270_v36, %v6058_v17  ;;  %v6275_v57 = vmax.f32 %v6227_v42, 0.0  ;;  %v6612_v17 = vld [vmem:[#allocation31 + $0x58] sm:$0xff]  ;;  %v6607_v53 = vld [vmem:[#allocation31 + $0x30] sm:$0xff]  ;;  %v6646_v42 = vld [vmem:[#allocation31 + $0x168] sm:$0xff] }
 0xd46   : > { %v6230_v3 = vpop.f32.mrf.mxu0  ;;  %v17047_v7 = vpop.f32.mrf.mxu1 }
 0xd47   : > { %v6231_v16 = vadd.f32 %v6230_v3, %v6054_v31  ;;  %v6279_v2 = vmax.f32 %v6271_v26, 0.0  ;;  %v6277_v33 = vmax.f32 %v6229_v5, 0.0 }
 0xd49   : > { %v6278_v4 = vmax.f32 %v6231_v16, 0.0  ;;  %v6300_v10 = vpack.c.bf16 %v6279_v2, %v6276_v12  ;;  %v6298_v38 = vpack.c.bf16 %v6277_v33, %v6274_v24 }
 0xd4b   : > { %v6299_v55 = vpack.c.bf16 %v6278_v4, %v6275_v57  ;;  %17049 = vmatpush3.bf16.msra.mxu1 %v6300_v10 }
 0xd4c   : > { %6810 = vmatprep.subr.bf16.mxu1 %v23252_v37 }
 0xd4d   : > { %6387 = vmatprep.subr.bf16.mxu0 %v6299_v55 }
 0xd4e   : > { %6388 = vmatpush1.bf16.msra.mxu0 %v6298_v38  ;;  %17051 = vmatmul.mubr.msk.bf16.vlgmr.msra.gmra.mxu1 %vm5550_vm2, %v17809_v43 }
 0xd4f   : > { %17054 = vmatprep.mubr.msk.bf16.mxu1 %vm19982_vm1, %v23273_v48 }
 0xd51   : > { %15495 = vmatmul.mubr.msk.bf16.vlgmr.msra.gmra.mxu0 %vm5550_vm2, %v17809_v43 }
 0xd52   : > { %6415 = vmatprep.mubr.bf16.mxu0 %v23252_v37 }
 0xd56   : > { %17055 = vmatmul.mubr.msk.bf16.gmra.mxu1 %vm5550_vm2, %v17810_v35 }
 0xd57   : > { %17058 = vmatprep.mubr.msk.bf16.mxu1 %vm19982_vm1, %v23273_v48 }
 0xd59   : > { %15496 = vmatmul.mubr.msk.bf16.gmra.mxu0 %vm5550_vm2, %v17810_v35 }
 0xd5a   : > { %6425 = vmatprep.mubr.bf16.mxu0 %v23252_v37 }
 0xd5e   : > { %17059 = vmatmul.mubr.msk.bf16.gmra.mxu1 %vm5550_vm2, %v17811_v46 }
 0xd5f   : > { %17062 = vmatprep.mubr.msk.bf16.mxu1 %vm19982_vm1, %v23273_v48 }
 0xd61   : > { %15497 = vmatmul.mubr.msk.bf16.gmra.mxu0 %vm5550_vm2, %v17811_v46 }
 0xd62   : > { %6435 = vmatprep.mubr.bf16.mxu0 %v23252_v37 }
 0xd66   : > { %17063 = vmatmul.mubr.msk.bf16.gmra.mxu1 %vm5550_vm2, %v17812_v14 }
 0xd67   : > { %17066 = vmatprep.mubr.msk.bf16.mxu1 %vm19982_vm1, %v23273_v48 }
 0xd69   : > { %15498 = vmatmul.mubr.msk.bf16.gmra.mxu0 %vm5550_vm2, %v17812_v14 }
 0xd6a   : > { %6445 = vmatprep.mubr.bf16.mxu0 %v23252_v37 }
 0xd6e   : > { %17067 = vmatmul.mubr.msk.bf16.gmra.mxu1 %vm5550_vm2, %v17813_v1 }
 0xd6f   : > { %17070 = vmatprep.mubr.msk.bf16.mxu1 %vm19982_vm1, %v23273_v48 }
 0xd71   : > { %15499 = vmatmul.mubr.msk.bf16.gmra.mxu0 %vm5550_vm2, %v17813_v1 }
 0xd72   : > { %6455 = vmatprep.mubr.bf16.mxu0 %v23252_v37 }
 0xd76   : > { %17071 = vmatmul.mubr.msk.bf16.gmra.mxu1 %vm5550_vm2, %v17814_v50 }
 0xd77   : > { %17074 = vmatprep.mubr.msk.bf16.mxu1 %vm19982_vm1, %v23273_v48 }
 0xd79   : > { %15500 = vmatmul.mubr.msk.bf16.gmra.mxu0 %vm5550_vm2, %v17814_v50 }
 0xd7a   : > { %6465 = vmatprep.mubr.bf16.mxu0 %v23252_v37 }
 0xd7e   : > { %17075 = vmatmul.mubr.msk.bf16.gmra.mxu1 %vm5550_vm2, %v17815_v22 }
 0xd7f   : > { %17078 = vmatprep.mubr.msk.bf16.mxu1 %vm19982_vm1, %v23273_v48 }
 0xd81   : > { %15501 = vmatmul.mubr.msk.bf16.gmra.mxu0 %vm5550_vm2, %v17815_v22 }
 0xd82   : > { %6475 = vmatprep.mubr.bf16.mxu0 %v23252_v37 }
 0xd86   : > { %17079 = vmatmul.mubr.msk.bf16.gmra.mxu1 %vm5550_vm2, %v17816_v23 }
 0xd87   : > { %17082 = vmatprep.mubr.msk.bf16.mxu1 %vm19982_vm1, %v23273_v48  ;;  %v6636_v48 = vld [vmem:[#allocation31 + $0x118] sm:$0xff] }
 0xd89   : > { %15502 = vmatmul.mubr.msk.bf16.gmra.mxu0 %vm5550_vm2, %v17816_v23 }
 0xd8a   : > { %6485 = vmatprep.mubr.bf16.mxu0 %v23252_v37 }
 0xd8e   : > { %17083 = vmatmul.mubr.msk.bf16.gmra.mxu1 %vm5550_vm2, %v17817_v28 }
 0xd8f   : > { %15516 = vmatprep.mubr.msk.bf16.mxu1 %vm5550_vm2, %v17820_v41 }
 0xd91   : > { %15503 = vmatmul.mubr.msk.bf16.gmra.mxu0 %vm5550_vm2, %v17817_v28 }
 0xd92   : > { %15515 = vmatprep.mubr.msk.bf16.mxu0 %vm5550_vm2, %v17820_v41 }
 0xe0e   : > { %v6530_v40 = vpop.f32.mrf.mxu1 }
 0xe0f   : > { %v21668_v13 = vmul.f32 %v6603_v19, %v6530_v40 }
 0xe10   : > { %v17052_v18 = vpop.f32.mrf.mxu1 }
 0xe11   : > { %v6407_v63 = vpop.f32.mrf.mxu0  ;;  %23281 = vst [vmem:[#allocation152_spill] sm:$0xff] %v21668_v13  ;;  %v6627_v13 = vld [vmem:[#allocation31 + $0xd0] sm:$0xff] }
 0xe12   : > { %v6533_v62 = vpop.f32.mrf.mxu1  ;;  %v21676_v61 = vmul.f32 %v6601_v6, %v6407_v63 }
 0xe13   : > { %v21670_v51 = vpop.f32.mrf.mxu0  ;;  %v21672_v44 = vmul.f32 %v6606_v25, %v6533_v62 }
 0xe14   : > { %23282 = vst [vmem:[#allocation151_spill] sm:$0xff] %v21670_v51  ;;  %v17053_v47 = vpop.f32.mrf.mxu1  ;;  %23284 = vst [vmem:[#allocation137_spill] sm:$0xff] %v21676_v61  ;;  %v6633_v61 = vld [vmem:[#allocation31 + $0x100] sm:$0xff]  ;;  %v6630_v51 = vld [vmem:[#allocation31 + $0xe8] sm:$0xff] }
 0xe15   : > { %23283 = vst [vmem:[#allocation138_spill] sm:$0xff] %v21672_v44  ;;  %v6411_v59 = vpop.f32.mrf.mxu0  ;;  %v6637_v44 = vld [vmem:[#allocation31 + $0x120] sm:$0xff] }
 0xe16   : > { %v21678_v56 = vmul.f32 %v6604_v52, %v6411_v59  ;;  %v6538_v15 = vpop.f32.mrf.mxu1 }
 0xe17   : > { %v21680_v11 = vpop.f32.mrf.mxu0  ;;  %v21684_v9 = vmul.f32 %v6609_v30, %v6538_v15 }
 0xe18   : > { %23285 = vst [vmem:[#allocation150_spill] sm:$0xff] %v21678_v56  ;;  %23286 = vst [vmem:[#allocation149_spill] sm:$0xff] %v21680_v11  ;;  %v17056_v58 = vpop.f32.mrf.mxu1  ;;  %v6643_v56 = vld [vmem:[#allocation31 + $0x150] sm:$0xff] }
 0xe19   : > { %v6417_v8 = vpop.f32.mrf.mxu0  ;;  %23287 = vst [vmem:[#allocation136_spill] sm:$0xff] %v21684_v9 }
 0xe1a   : > { %v6541_v31 = vpop.f32.mrf.mxu1  ;;  %v21692_v5 = vmul.f32 %v6607_v53, %v6417_v8 }
 0xe1b   : > { %v21686_v21 = vpop.f32.mrf.mxu0  ;;  %v21688_v39 = vmul.f32 %v6612_v17, %v6541_v31 }
 0xe1c   : > { %v17057_v49 = vpop.f32.mrf.mxu1  ;;  %23288 = vst [vmem:[#allocation135_spill] sm:$0xff] %v21692_v5 }
 0xe1d   : > { %v6421_v36 = vpop.f32.mrf.mxu0 }
 0xe1e   : > { %v21694_v26 = vmul.f32 %v6610_v0, %v6421_v36  ;;  %v21696_v34 = vpop.f32.mrf.mxu1  ;;  %v6645_v36 = vld [vmem:[#allocation31 + $0x160] sm:$0xff] }
 0xe1f   : > { %v21698_v3 = vpop.f32.mrf.mxu0 }
 0xe20   : > { %23289 = vst [vmem:[#allocation148_spill] sm:$0xff] %v21694_v26  ;;  %v17060_v16 = vpop.f32.mrf.mxu1 }
 0xe21   : > { %v21702_v12 = vpop.f32.mrf.mxu0 }
 0xe22   : > { %v21704_v2 = vpop.f32.mrf.mxu1 }
 0xe23   : > { %v21706_v33 = vpop.f32.mrf.mxu0 }
 0xe24   : > { %v17061_v57 = vpop.f32.mrf.mxu1 }
 0xe25   : > { %v21708_v4 = vpop.f32.mrf.mxu0  ;;  %v6639_v57 = vld [vmem:[#allocation31 + $0x130] sm:$0xff] }
 0xe26   : > { %v21710_v10 = vpop.f32.mrf.mxu1 }
 0xe27   : > { %v21712_v24 = vpop.f32.mrf.mxu0 }
 0xe28   : > { %v17064_v43 = vpop.f32.mrf.mxu1 }
 0xe29   : > { %v21714_v55 = vpop.f32.mrf.mxu0  ;;  %v6642_v43 = vld [vmem:[#allocation31 + $0x148] sm:$0xff] }
 0xe2a   : > { %v21716_v38 = vpop.f32.mrf.mxu1 }
 0xe2b   : > { %v21718_v35 = vpop.f32.mrf.mxu0 }
 0xe2c   : > { %v17065_v46 = vpop.f32.mrf.mxu1 }
 0xe2d   : > { %v21720_v14 = vpop.f32.mrf.mxu0 }
 0xe2e   : > { %v21722_v1 = vpop.f32.mrf.mxu1 }
 0xe2f   : > { %v21724_v50 = vpop.f32.mrf.mxu0 }
 0xe30   : > { %v17068_v22 = vpop.f32.mrf.mxu1 }
 0xe31   : > { %v21726_v23 = vpop.f32.mrf.mxu0  ;;  %v6648_v22 = vld [vmem:[#allocation31 + $0x178] sm:$0xff] }
 0xe32   : > { %v21728_v28 = vpop.f32.mrf.mxu1 }
 0xe33   : > { %v21730_v41 = vpop.f32.mrf.mxu0 }
 0xe34   : > { %v17069_v40 = vpop.f32.mrf.mxu1 }
 0xe35   : > { %v21732_v19 = vpop.f32.mrf.mxu0 }
 0xe36   : > { %v6570_v18 = vpop.f32.mrf.mxu1 }
 0xe37   : > { %v21734_v25 = vpop.f32.mrf.mxu0 }
 0xe38   : > { %v17072_v63 = vpop.f32.mrf.mxu1 }
 0xe39   : > { %v21736_v62 = vpop.f32.mrf.mxu0 }
 0xe3a   : > { %v6573_v6 = vpop.f32.mrf.mxu1 }
 0xe3b   : > { %v21738_v52 = vpop.f32.mrf.mxu0 }
 0xe3c   : > { %v17073_v47 = vpop.f32.mrf.mxu1 }
 0xe3d   : > { %v21740_v59 = vpop.f32.mrf.mxu0 }
 0xe3e   : > { %v6578_v15 = vpop.f32.mrf.mxu1 }
 0xe3f   : > { %v6463_v30 = vpop.f32.mrf.mxu0  ;;  %v6693_v7 = vmul.f32 %v6639_v57, %v6578_v15  ;;  %v6640_v15 = vld [vmem:[#allocation31 + $0x138] sm:$0xff] }
 0xe40   : > { %v17076_v58 = vpop.f32.mrf.mxu1 }
 0xe41   : > { %v21742_v17 = vpop.f32.mrf.mxu0 }
 0xe42   : > { %v6581_v8 = vpop.f32.mrf.mxu1 }
 0xe43   : > { %v6469_v31 = vpop.f32.mrf.mxu0  ;;  %v6696_v29 = vmul.f32 %v6642_v43, %v6581_v8 }
 0xe44   : > { %v17077_v53 = vpop.f32.mrf.mxu1 }
 0xe45   : > { %v6471_v0 = vpop.f32.mrf.mxu0 }
 0xe46   : > { %v6586_v49 = vpop.f32.mrf.mxu1 }
 0xe47   : > { %v6473_v16 = vpop.f32.mrf.mxu0  ;;  %v6699_v63 = vmul.f32 %v6645_v36, %v6586_v49  ;;  %v6729_v36 = vpack.c.bf16 %v6696_v29, %v6693_v7  ;;  %v6632_v29 = vld [vmem:[#allocation31 + $0xf8] sm:$0xff] }
 0xe48   : > { %v17080_v46 = vpop.f32.mrf.mxu1  ;;  %v6695_v8 = vmul.f32 %v6641_v32, %v6473_v16  ;;  %v6686_v16 = vmul.f32 %v6632_v29, %v21738_v52  ;;  %v6616_v29 = vld [vmem:[#allocation31 + $0x78] sm:$0xff] }
 0xe49   : > { %v6477_v40 = vpop.f32.mrf.mxu0  ;;  %v6638_v46 = vld [vmem:[#allocation31 + $0x128] sm:$0xff] }
 0xe4a   : > { %v6589_v47 = vpop.f32.mrf.mxu1  ;;  %v6692_v11 = vmul.f32 %v6638_v46, %v6469_v31  ;;  %v6621_v31 = vld [vmem:[#allocation31 + $0xa0] sm:$0xff] }
 0xe4b   : > { %v6479_v54 = vpop.f32.mrf.mxu0  ;;  %v6702_v58 = vmul.f32 %v6648_v22, %v6589_v47  ;;  %v6635_v22 = vld [vmem:[#allocation31 + $0x110] sm:$0xff]  ;;  %v6687_v47 = vmul.f32 %v6633_v61, %v6570_v18  ;;  %v6684_v18 = vmul.f32 %v6630_v51, %v21728_v28  ;;  %v6625_v46 = vld [vmem:[#allocation31 + $0xc0] sm:$0xff] }
 0xe4c   : > { %v17081_v27 = vpop.f32.mrf.mxu1  ;;  %v6698_v57 = vmul.f32 %v6644_v60, %v6479_v54  ;;  %v6634_v60 = vld [vmem:[#allocation31 + $0x108] sm:$0xff]  ;;  %v6728_v32 = vpack.c.bf16 %v6695_v8, %v6692_v11  ;;  %v6691_v54 = vmul.f32 %v6637_v44, %v21742_v17  ;;  %v6623_v51 = vld [vmem:[#allocation31 + $0xb0] sm:$0xff]  ;;  %v6675_v44 = vmul.f32 %v6621_v31, %v21710_v10 }
 0xe4d   : > { %v6481_v53 = vpop.f32.mrf.mxu0  ;;  %v6732_v20 = vpack.c.bf16 %v6702_v58, %v6699_v63  ;;  %v6697_v63 = vmul.f32 %v6643_v56, %v6477_v40  ;;  %v6690_v58 = vmul.f32 %v6636_v48, %v6573_v6  ;;  %v6629_v56 = vld [vmem:[#allocation31 + $0xe0] sm:$0xff]  ;;  %v6681_v48 = vmul.f32 %v6627_v13, %v21722_v1  ;;  %v6626_v11 = vld [vmem:[#allocation31 + $0xc8] sm:$0xff]  ;;  %v6628_v40 = vld [vmem:[#allocation31 + $0xd8] sm:$0xff] }
 0xe4e   : > { %v21744_v5 = vpop.f32.mrf.mxu1  ;;  %v6700_v26 = vmul.f32 %v6646_v42, %v6481_v53  ;;  %v6683_v13 = vmul.f32 %v6629_v56, %v21734_v25  ;;  %v6615_v53 = vld [vmem:[#allocation31 + $0x70] sm:$0xff]  ;;  %v6682_v25 = vmul.f32 %v6628_v40, %v21732_v19  ;;  %v6622_v8 = vld [vmem:[#allocation31 + $0xa8] sm:$0xff]  ;;  %v6677_v10 = vmul.f32 %v6623_v51, %v21724_v50  ;;  %v6653_v40 = vld [vmem:[#allocation31 + $0x1a0] sm:$0xff] }
 0xe4f   : > { %v6483_v49 = vpop.f32.mrf.mxu0  ;;  %6811 = vmatpush1.bf16.msra.mxu1 %v6732_v20  ;;  %v6694_v20 = vmul.f32 %v6640_v15, %v6471_v0  ;;  %v6726_v6 = vpack.c.bf16 %v6690_v58, %v6687_v47  ;;  %v6631_v0 = vld [vmem:[#allocation31 + $0xf0] sm:$0xff]  ;;  %v6723_v52 = vpack.c.bf16 %v6684_v18, %v6681_v48  ;;  %v6676_v50 = vmul.f32 %v6622_v8, %v21720_v14  ;;  %v6602_v31 = vld [vmem:[#allocation31 + $0x8] sm:$0xff] }
 0xe50   : > { %v6701_v43 = vmul.f32 %v6647_v45, %v6483_v49  ;;  %6812 = vmatprep.subr.bf16.mxu1 %v23252_v37  ;;  %v17084_v27 = vpop.f32.mrf.mxu1  ;;  %v6730_v7 = vpack.c.bf16 %v6700_v26, %v6697_v63  ;;  %v6689_v45 = vmul.f32 %v6635_v22, %v6463_v30  ;;  %v6624_v26 = vld [vmem:[#allocation31 + $0xb8] sm:$0xff]  ;;  %v6685_v28 = vmul.f32 %v6631_v0, %v21736_v62  ;;  %v6619_v47 = vld [vmem:[#allocation31 + $0x90] sm:$0xff]  ;;  %v6614_v63 = vld [vmem:[#allocation31 + $0x68] sm:$0xff] }
 0xe51   : > { %v6727_v30 = vpack.c.bf16 %v6694_v20, %v6691_v54  ;;  %v6678_v17 = vmul.f32 %v6624_v26, %v21716_v38  ;;  %v6680_v49 = vmul.f32 %v6626_v11, %v21730_v41  ;;  %v6617_v38 = vld [vmem:[#allocation31 + $0x80] sm:$0xff]  ;;  %v6669_v62 = vmul.f32 %v6615_v53, %v21696_v34  ;;  %v6487_v22 = vpop.f32.mrf.mxu0  ;;  %v6651_v48 = vld [vmem:[#allocation31 + $0x190] sm:$0xff]  ;;  %v6654_v54 = vld [vmem:[#allocation31 + $0x1a8] sm:$0xff] }
 0xe52   : > { %v6731_v9 = vpack.c.bf16 %v6701_v43, %v6698_v57  ;;  %v21747_v42 = vpop.f32.mrf.mxu1  ;;  %v6725_v1 = vpack.c.bf16 %v6689_v45, %v6686_v16  ;;  %v6679_v43 = vmul.f32 %v6625_v46, %v21726_v23  ;;  %v6671_v20 = vmul.f32 %v6617_v38, %v21712_v24  ;;  %v6611_v23 = vld [vmem:[#allocation31 + $0x50] sm:$0xff]  ;;  %v6613_v45 = vld [vmem:[#allocation31 + $0x60] sm:$0xff] }
 0xe53   : > { %6813 = vmatpush1.bf16.msra.mxu1 %v6729_v36  ;;  %v6620_v36 = vld [vmem:[#allocation31 + $0x98] sm:$0xff]  ;;  %v6722_v57 = vpack.c.bf16 %v6683_v13, %v6680_v49  ;;  %v6720_v41 = vpack.c.bf16 %v6678_v17, %v6675_v44  ;;  %v6670_v14 = vmul.f32 %v6616_v29, %v21708_v4  ;;  %v6665_v24 = vmul.f32 %v6611_v23, %v21698_v3  ;;  %v23290_v26 = vld [vmem:[#allocation136_spill] sm:$0xff]  ;;  %v23292_v11 = vld [vmem:[#allocation149_spill] sm:$0xff] }
 0xe54   : > { %6767 = vmatprep.subr.bf16.mxu0 %v6731_v9  ;;  %6814 = vmatprep.subr.bf16.mxu1 %v23252_v37  ;;  %v17085_v61 = vpop.f32.mrf.mxu1  ;;  %v6688_v9 = vmul.f32 %v6634_v60, %v21740_v59  ;;  %v6618_v59 = vld [vmem:[#allocation31 + $0x88] sm:$0xff]  ;;  %v6674_v19 = vmul.f32 %v6620_v36, %v21718_v35  ;;  %v6721_v58 = vpack.c.bf16 %v6682_v25, %v6679_v43  ;;  %v6489_v60 = vpop.f32.mrf.mxu0  ;;  %v23293_v13 = vld [vmem:[#allocation151_spill] sm:$0xff]  ;;  %v23294_v51 = vld [vmem:[#allocation138_spill] sm:$0xff] }
 0xe55   : > { %6768 = vmatpush1.bf16.msra.mxu0 %v6730_v7  ;;  %v6672_v27 = vmul.f32 %v6618_v59, %v21704_v2  ;;  %v6673_v2 = vmul.f32 %v6619_v47, %v21714_v55  ;;  %v6668_v35 = vmul.f32 %v6614_v63, %v21706_v33  ;;  %v6605_v55 = vld [vmem:[#allocation31 + $0x20] sm:$0xff]  ;;  %v6667_v18 = vmul.f32 %v6613_v45, %v21702_v12  ;;  %v6650_v12 = vld [vmem:[#allocation31 + $0x188] sm:$0xff]  ;;  %v23301_v38 = vld [vmem:[#allocation150_spill] sm:$0xff] }
 0xe56   : > { %6769 = vmatprep.subr.bf16.mxu0 %v6728_v32  ;;  %v6724_v15 = vpack.c.bf16 %v6688_v9, %v6685_v28  ;;  %v6719_v34 = vpack.c.bf16 %v6677_v10, %v6674_v19  ;;  %v6608_v32 = vld [vmem:[#allocation31 + $0x38] sm:$0xff]  ;;  %v6705_v4 = vmul.f32 %v6651_v48, %v21744_v5  ;;  %v23291_v3 = vpack.c.bf16 %v21688_v39, %v23290_v26  ;;  %v23295_v44 = vld [vmem:[#allocation152_spill] sm:$0xff]  ;;  %v17825_v8 = vld [vmem:[#allocation34 + $0xb8] sm:$0xff]  }
 0xe57   : > { %6815 = vmatpush1.bf16.msra.mxu1 %v6726_v6  ;;  %v6717_v7 = vpack.c.bf16 %v6672_v27, %v6669_v62  ;;  %v6718_v61 = vpack.c.bf16 %v6676_v50, %v6673_v2  ;;  %v6716_v56 = vpack.c.bf16 %v6671_v20, %v6668_v35  ;;  %v6491_v6 = vpop.f32.mrf.mxu0  ;;  %v6662_v33 = vmul.f32 %v6608_v32, %v21686_v21  ;;  %v23297_v46 = vld [vmem:[#allocation148_spill] sm:$0xff]  ;;  %v23298_v59 = vld [vmem:[#allocation135_spill] sm:$0xff]  ;;  %v23302_v62 = vld [vmem:[#allocation137_spill] sm:$0xff] }
 0xe58   : > { %6816 = vmatprep.subr.bf16.mxu1 %v23252_v37  ;;  %v6715_v0 = vpack.c.bf16 %v6670_v14, %v6667_v18  ;;  %v6708_v16 = vmul.f32 %v6654_v54, %v21747_v42  ;;  %v6659_v9 = vmul.f32 %v6605_v55, %v23292_v11  ;;  %v23296_v39 = vpack.c.bf16 %v23294_v51, %v23295_v44  ;;  %v6649_v42 = vld [vmem:[#allocation31 + $0x180] sm:$0xff]  ;;  %v17821_v27 = vld [vmem:[#allocation34 + $0x78] sm:$0xff]   ;;  %v17829_v20 = vld [vmem:[#allocation34 + $0x60] sm:$0xff]  }
 0xe59   : > { %6770 = vmatpush1.bf16.msra.mxu0 %v6727_v30  ;;  %v6713_v30 = vpack.c.bf16 %v6665_v24, %v6662_v33  ;;  %v6493_v21 = vpop.f32.mrf.mxu0  ;;  %v6704_v17 = vmul.f32 %v6650_v12, %v6489_v60  ;;  %v23299_v49 = vpack.c.bf16 %v23297_v46, %v23298_v59  ;;  %v17818_v36 = vld [vmem:[%s23280_s7] ss:$8 sps:$4 sm:$0xff]   ;;  %v6703_v25 = vmul.f32 %v6649_v42, %v6487_v22  ;;  %v17822_v22 = vld [vmem:[#allocation34 + $0x38] sm:$0xff]   ;;  %v17841_v48 = vld [vmem:[#allocation34 + $0x40] sm:$0xff]  }
 0xe5a   : > { %6771 = vmatprep.subr.bf16.mxu0 %v6725_v1  ;;  %v6656_v1 = vmul.f32 %v6602_v31, %v23293_v13  ;;  %v6735_v5 = vpack.c.bf16 %v6708_v16, %v6705_v4  ;;  %v6707_v53 = vmul.f32 %v6653_v40, %v6493_v21  ;;  %v23303_v43 = vpack.c.bf16 %v23301_v38, %v23302_v62  ;;  %v17828_v47 = vld [vmem:[#allocation34 + $0xb0] sm:$0xff]   ;;  %v17831_v63 = vld [vmem:[#allocation34 + $0xa8] sm:$0xff]   ;;  %v17832_v23 = vld [vmem:[#allocation34 + $0x58] sm:$0xff]  }
 0xe5b   : > { %6817 = vmatpush1.bf16.msra.mxu1 %v6723_v52  ;;  %v6652_v52 = vld [vmem:[#allocation31 + $0x198] sm:$0xff]  ;;  %v17823_v19 = vld [vmem:[#allocation34 + $0x70] sm:$0xff]   ;;  %v17833_v2 = vld [vmem:[#allocation34 + $0x18] sm:$0xff]  }
 0xe5c   : > { %6818 = vmatprep.subr.bf16.mxu1 %v23252_v37  ;;  %v6710_v28 = vpack.c.bf16 %v6659_v9, %v6656_v1  ;;  %v6734_v10 = vpack.c.bf16 %v6707_v53, %v6704_v17  ;;  %v17824_v50 = vld [vmem:[#allocation34 + $0x30] sm:$0xff]   ;;  %v17827_v29 = vld [vmem:[#allocation34 + $0x28] sm:$0xff]   ;;  %v17837_v60 = vld [vmem:[#allocation34 + $0x98] sm:$0xff]  }
 0xe5d   : > { %6772 = vmatpush1.bf16.msra.mxu0 %v6724_v15  ;;  %v6706_v15 = vmul.f32 %v6652_v52, %v6491_v6  ;;  %v17840_v45 = vld [vmem:[#allocation34 + $0x90] sm:$0xff]   ;;  %v17843_v14 = vld [vmem:[#allocation34 + $0x88] sm:$0xff]   ;;  %v17842_v54 = vld [vmem:[#allocation34] sm:$0xff]  }
 0xe5e   : > { %6773 = vmatprep.subr.bf16.mxu0 %v6722_v57  ;;  %v23300_v57 = vmov 0.0   ;;  %v17835_v35 = vld [vmem:[#allocation34 + $0x50] sm:$0xff]   ;;  %v17839_v24 = vld [vmem:[#allocation34 + $0x8] sm:$0xff]   ;;  %v6738_v18 = vld [vmem:[#allocation32] sm:$0x7] }
 0xe5f   : > { %6819 = vmatpush1.bf16.msra.mxu1 %v6720_v41  ;;  %v6733_v41 = vpack.c.bf16 %v6706_v15, %v6703_v25  ;;  %v17836_v32 = vld [vmem:[#allocation34 + $0x10] sm:$0xff]   ;;  %v23304_v6 = vld [vmem:[#allocation126_spill] sm:$0xff]  ;;  %v17852_v52 = vld [vmem:[#allocation37 + $0x98] ss:$12 sps:$4 sm:$0xff]  }
 0xe60   : > { %6820 = vmatprep.subr.bf16.mxu1 %v23252_v37  ;;  %v17847_v55 = vld [vmem:[#allocation37 + $0xac] ss:$12 sps:$4 sm:$0xff]   ;;  %v6751_v33 = vrot.slane %v6738_v18, %v23304_v6  ;;  %v17851_v38 = vld [vmem:[#allocation37 + $0x94] ss:$12 sps:$4 sm:$0xff]  }
 0xe61   : > { %6774 = vmatpush1.bf16.msra.mxu0 %v6721_v58  ;;  %v17826_v58 = vld [vmem:[#allocation34 + $0x68] sm:$0xff]  }
 0xe62   : > { %6775 = vmatprep.subr.bf16.mxu0 %v6719_v34  ;;  %v17830_v34 = vld [vmem:[#allocation34 + $0x20] sm:$0xff]   ;;  %v23306_v40 = vld [vmem:[#allocation124_spill] sm:$0xff]  ;;  %v17860_v62 = vld [vmem:[#allocation37 + $0x68] ss:$12 sps:$4 sm:$0xff]  }
 0xe63   : > { %6821 = vmatpush1.bf16.msra.mxu1 %v6717_v7  ;;  %v17834_v7 = vld [vmem:[#allocation34 + $0xa0] sm:$0xff]   ;;  %v6743_v13 = vrot.slane %v6738_v18, %v23306_v40 }
 0xe64   : > { %6822 = vmatprep.subr.bf16.mxu1 %v23252_v37  ;;  %v17856_v25 = vld [vmem:[#allocation37 + $0x80] ss:$12 sps:$4 sm:$0xff]  }
 0xe65   : > { %6776 = vmatpush1.bf16.msra.mxu0 %v6718_v61  ;;  %v17838_v61 = vld [vmem:[#allocation34 + $0x48] sm:$0xff]  }
 0xe66   : > { %6777 = vmatprep.subr.bf16.mxu0 %v6716_v56  ;;  %v17844_v56 = vld [vmem:[#allocation34 + $0x80] sm:$0xff]  }
 0xe67   : > { %6823 = vmatpush1.bf16.msra.mxu1 %v23291_v3 }
 0xe68   : > { %6824 = vmatprep.subr.bf16.mxu1 %v23252_v37 }
 0xe69   : > { %6778 = vmatpush1.bf16.msra.mxu0 %v6715_v0 }
 0xe6a   : > { %6779 = vmatprep.subr.bf16.mxu0 %v6713_v30  ;;  %v23305_v30 = vld [vmem:[#allocation125_spill] sm:$0xff] }
 0xe6b   : > { %6825 = vmatpush1.bf16.msra.mxu1 %v23296_v39  ;;  %v6747_v12 = vrot.slane %v6738_v18, %v23305_v30 }
 0xe6c   : > { %6840 = vmatprep.subr.bf16.mxu1 %v23252_v37 }
 0xe6d   : > { %6780 = vmatpush1.bf16.msra.mxu0 %v23299_v49 }
 0xe6e   : > { %6781 = vmatprep.subr.bf16.mxu0 %v6710_v28 }
 0xe6f   : > { %6841 = vmatpush2.bf16.msra.mxu1 %v6735_v5  ;;  %v17848_v5 = vld [vmem:[#allocation37 + $0xb0] ss:$12 sps:$4 sm:$0xff]  }
 0xe70   : > { %17086 = vmatprep.subr.bf16.mxu1 %v23300_v57 }
 0xe71   : > { %6782 = vmatpush1.bf16.msra.mxu0 %v23303_v43  ;;  %v17849_v43 = vld [vmem:[#allocation37 + $0x90] ss:$12 sps:$4 sm:$0xff]  }
 0xe72   : > { %6797 = vmatprep.subr.bf16.mxu0 %v6734_v10  ;;  %6843 = vmatmul.mubr.bf16.vlgmr.msra.gmra.mxu1 %v17818_v36 }
 0xe73   : > { %17087 = vmatpush3.bf16.msra.mxu1 %v17825_v8  ;;  %17102 = vmatprep.mubr.msk.bf16.mxu1 %vm19982_vm1, %v23300_v57  ;;  %v17845_v8 = vld [vmem:[#allocation37 + $0xa8] ss:$12 sps:$4 sm:$0xff]  }
 0xe74   : > { %17088 = vmatprep.subr.bf16.mxu1 %v23300_v57 }
 0xe75   : > { %6798 = vmatpush2.bf16.msra.mxu0 %v6733_v41  ;;  %v17853_v41 = vld [vmem:[#allocation37 + $0x78] ss:$12 sps:$4 sm:$0xff]  }
 0xe76   : > { %16582 = vmatprep.subr.bf16.mxu0 %v17821_v27  ;;  %v17855_v27 = vld [vmem:[#allocation37 + $0x7c] ss:$12 sps:$4 sm:$0xff]  }
 0xe77   : > { %17089 = vmatpush3.bf16.msra.mxu1 %v17828_v47  ;;  %v17859_v47 = vld [vmem:[#allocation37 + $0x64] ss:$12 sps:$4 sm:$0xff]  }
 0xe78   : > { %6800 = vmatmul.mubr.bf16.vlgmr.msra.gmra.mxu0 %v17818_v36  ;;  %17090 = vmatprep.subr.bf16.mxu1 %v23300_v57 }
 0xe79   : > { %16583 = vmatpush3.bf16.msra.mxu0 %v17822_v22  ;;  %v17857_v22 = vld [vmem:[#allocation37 + $0x60] ss:$12 sps:$4 sm:$0xff]  }
 0xe7a   : > { %16584 = vmatprep.subr.bf16.mxu0 %v17823_v19  ;;  %v17863_v19 = vld [vmem:[#allocation37 + $0x4c] ss:$12 sps:$4 sm:$0xff]  }
 0xe7b   : > { %17091 = vmatpush3.bf16.msra.mxu1 %v17831_v63  ;;  %v17861_v63 = vld [vmem:[#allocation37 + $0x48] ss:$12 sps:$4 sm:$0xff]  }
 0xe7c   : > { %17092 = vmatprep.subr.bf16.mxu1 %v23300_v57 }
 0xe7d   : > { %16585 = vmatpush3.bf16.msra.mxu0 %v17824_v50  ;;  %v17864_v50 = vld [vmem:[#allocation37 + $0x50] ss:$12 sps:$4 sm:$0xff]  }
 0xe7e   : > { %16586 = vmatprep.subr.bf16.mxu0 %v17826_v58  ;;  %v17867_v58 = vld [vmem:[#allocation37 + $0x34] ss:$12 sps:$4 sm:$0xff]  }
 0xe7f   : > { %17093 = vmatpush3.bf16.msra.mxu1 %v17834_v7  ;;  %v17875_v7 = vld [vmem:[#allocation37 + $0x4] ss:$12 sps:$4 sm:$0xff]  }
 0xe80   : > { %17094 = vmatprep.subr.bf16.mxu1 %v23300_v57 }
 0xe81   : > { %16587 = vmatpush3.bf16.msra.mxu0 %v17827_v29  ;;  %v17865_v29 = vld [vmem:[#allocation37 + $0x30] ss:$12 sps:$4 sm:$0xff]  }
 0xe82   : > { %16588 = vmatprep.subr.bf16.mxu0 %v17829_v20  ;;  %v17868_v20 = vld [vmem:[#allocation37 + $0x38] ss:$12 sps:$4 sm:$0xff]  }
 0xe83   : > { %17095 = vmatpush3.bf16.msra.mxu1 %v17837_v60  ;;  %v17873_v60 = vld [vmem:[#allocation37] ss:$12 sps:$4 sm:$0xff]  }
 0xe84   : > { %17096 = vmatprep.subr.bf16.mxu1 %v23300_v57 }
 0xe85   : > { %16589 = vmatpush3.bf16.msra.mxu0 %v17830_v34  ;;  %v17871_v34 = vld [vmem:[#allocation37 + $0x1c] ss:$12 sps:$4 sm:$0xff]  }
 0xe86   : > { %16590 = vmatprep.subr.bf16.mxu0 %v17832_v23  ;;  %v17869_v23 = vld [vmem:[#allocation37 + $0x18] ss:$12 sps:$4 sm:$0xff]  }
 0xe87   : > { %17097 = vmatpush3.bf16.msra.mxu1 %v17840_v45  ;;  %v17876_v45 = vld [vmem:[#allocation37 + $0x8] ss:$12 sps:$4 sm:$0xff]  }
 0xe88   : > { %17098 = vmatprep.subr.bf16.mxu1 %v23300_v57 }
 0xe89   : > { %16591 = vmatpush3.bf16.msra.mxu0 %v17833_v2  ;;  %v17872_v2 = vld [vmem:[#allocation37 + $0x20] ss:$12 sps:$4 sm:$0xff]  }
 0xe8a   : > { %16592 = vmatprep.subr.bf16.mxu0 %v17835_v35 }
 0xe8b   : > { %17099 = vmatpush3.bf16.msra.mxu1 %v17843_v14 }
 0xe8c   : > { %17100 = vmatprep.subr.bf16.mxu1 %v23300_v57 }
 0xe8d   : > { %16593 = vmatpush3.bf16.msra.mxu0 %v17836_v32 }
 0xe8e   : > { %16594 = vmatprep.subr.bf16.mxu0 %v17838_v61 }
 0xe8f   : > { %17101 = vmatpush3.bf16.msra.mxu1 %v17844_v56 }
 0xe90   : > { %17106 = vmatprep.subr.bf16.mxu1 %v23300_v57 }
 0xe91   : > { %16595 = vmatpush3.bf16.msra.mxu0 %v17839_v24 }
 0xe92   : > { %16596 = vmatprep.subr.bf16.mxu0 %v17841_v48  ;;  %v15517_v48 = vld [vmem:[#allocation35] ss:$0 sm:$0xff] }
 0xe95   : > { %16597 = vmatpush3.bf16.msra.mxu0 %v17842_v54 }
 0xe96   : > { %7321 = vmatprep.subr.bf16.mxu0 %v17847_v55 }
 0xf32   : > { %v6844_v31 = vpop.f32.mrf.mxu1 }
 0xf33   : > { %v6845_v0 = vadd.f32 %v6844_v31, %v6751_v33 }
 0xf34   : > { %v6846_v4 = vpop.f32.mrf.mxu1 }
 0xf35   : > { %v6853_v3 = vmax.f32 %v6845_v0, 0.0 }
 0xf36   : > { %v6847_v26 = vpop.f32.mrf.mxu1 }
 0xf37   : > { %v6848_v16 = vadd.f32 %v6847_v26, %v6751_v33 }
 0xf38   : > { %v6801_v11 = vpop.f32.mrf.mxu0  ;;  %v6849_v9 = vpop.f32.mrf.mxu1 }
 0xf39   : > { %v6856_v21 = vmax.f32 %v6848_v16, 0.0  ;;  %v6802_v42 = vadd.f32 %v6801_v11, %v6743_v13  ;;  %v23308_v11 = vld [vmem:[#allocation139_spill] sm:$0xff] }
 0xf3a   : > { %v6803_v1 = vpop.f32.mrf.mxu0 }
 0xf3b   : > { %v6859_v51 = vpack.c.bf16 %v6856_v21, %v6853_v3  ;;  %v6804_v39 = vadd.f32 %v6803_v1, %v6747_v12  ;;  %v6851_v36 = vmax.f32 %v6802_v42, 0.0  ;;  %v23307_v3 = vld [vmem:[#allocation140_spill] sm:$0xff]  ;;  %v7176_v21 = vld [vmem:[#allocation38] sm:$0x7] }
 0xf3c   : > { %v6805_v44 = vpop.f32.mrf.mxu0 }
 0xf3d   : > { %v6806_v28 = vadd.f32 %v6805_v44, %v6743_v13  ;;  %17103 = vmatmul.mubr.bf16.vlgmr.msra.gmra.mxu1 %v6859_v51  ;;  %v6852_v59 = vmax.f32 %v6804_v39, 0.0  ;;  %v7181_v51 = vrot.slane %v7176_v21, %v23306_v40 }
 0xf3e   : > { %v6807_v17 = vpop.f32.mrf.mxu0  ;;  %17107 = vmatpush3.bf16.msra.mxu1 %v17848_v5  ;;  %17122 = vmatprep.mubr.msk.bf16.mxu1 %vm19982_vm1, %v23300_v57  ;;  %v7185_v5 = vrot.slane %v7176_v21, %v23305_v30 }
 0xf3f   : > { %v6808_v53 = vadd.f32 %v6807_v17, %v6747_v12  ;;  %17108 = vmatprep.subr.bf16.mxu1 %v23300_v57  ;;  %v6854_v46 = vmax.f32 %v6806_v28, 0.0 }
 0xf41   : > { %v6855_v49 = vmax.f32 %v6808_v53, 0.0  ;;  %v6857_v10 = vpack.c.bf16 %v6854_v46, %v6851_v36  ;;  %v7189_v46 = vrot.slane %v7176_v21, %v23304_v6 }
 0xf42   : > { %17109 = vmatpush3.bf16.msra.mxu1 %v17852_v52 }
 0xf43   : > { %v6858_v15 = vpack.c.bf16 %v6855_v49, %v6852_v59  ;;  %17110 = vmatprep.subr.bf16.mxu1 %v23300_v57 }
 0xf45   : > { %7091 = vmatprep.mubr.bf16.mxu0 %v6858_v15 }
 0xf46   : > { %7092 = vmatmul.mubr.bf16.vlgmr.msra.gmra.mxu0 %v6857_v10  ;;  %17111 = vmatpush3.bf16.msra.mxu1 %v17856_v25 }
 0xf47   : > { %7322 = vmatpush1.bf16.msra.mxu0 %v17845_v8  ;;  %17112 = vmatprep.subr.bf16.mxu1 %v23300_v57 }
 0xf48   : > { %7323 = vmatprep.subr.bf16.mxu0 %v17851_v38  ;;  %7353 = vmatprep.mubr.bf16.mxu0 %v23252_v37 }
 0xf4a   : > { %17113 = vmatpush3.bf16.msra.mxu1 %v17860_v62 }
 0xf4b   : > { %7324 = vmatpush1.bf16.msra.mxu0 %v17849_v43  ;;  %17114 = vmatprep.subr.bf16.mxu1 %v23300_v57 }
 0xf4c   : > { %7325 = vmatprep.subr.bf16.mxu0 %v17855_v27 }
 0xf4e   : > { %17115 = vmatpush3.bf16.msra.mxu1 %v17864_v50  ;;  %v17879_v50 = vld [vmem:[%s23309_s21 + $0x10] ss:$0 sps:$4 sm:$0x33]  }
 0xf4f   : > { %7326 = vmatpush1.bf16.msra.mxu0 %v17853_v41  ;;  %17116 = vmatprep.subr.bf16.mxu1 %v23300_v57 }
 0xf50   : > { %7327 = vmatprep.subr.bf16.mxu0 %v17859_v47  ;;  %v17877_v47 = vld [vmem:[%s23309_s21] sm:$0xff]  }
 0xf52   : > { %17117 = vmatpush3.bf16.msra.mxu1 %v17868_v20  ;;  %v17885_v20 = vld [vmem:[#allocation44 + $0x64] ss:$8 sps:$4 sm:$0xff]  }
 0xf53   : > { %7328 = vmatpush1.bf16.msra.mxu0 %v17857_v22  ;;  %17118 = vmatprep.subr.bf16.mxu1 %v23300_v57 }
 0xf54   : > { %7329 = vmatprep.subr.bf16.mxu0 %v17863_v19 }
 0xf56   : > { %17119 = vmatpush3.bf16.msra.mxu1 %v17872_v2  ;;  %v17886_v2 = vld [vmem:[#allocation44 + $0x50] ss:$8 sps:$4 sm:$0xff]  }
 0xf57   : > { %7330 = vmatpush1.bf16.msra.mxu0 %v17861_v63  ;;  %17120 = vmatprep.subr.bf16.mxu1 %v23300_v57  ;;  %v17878_v63 = vld [vmem:[%s23309_s21 + $0x8] sm:$0xff]  }
 0xf58   : > { %7331 = vmatprep.subr.bf16.mxu0 %v17867_v58  ;;  %v17880_v58 = vld [vmem:[#allocation44 + $0x70] ss:$8 sps:$4 sm:$0xff]  }
 0xf5a   : > { %17121 = vmatpush3.bf16.msra.mxu1 %v17876_v45  ;;  %v17894_v45 = vld [vmem:[#allocation44 + $0x34] ss:$8 sps:$4 sm:$0xff]  }
 0xf5b   : > { %7332 = vmatpush1.bf16.msra.mxu0 %v17865_v29  ;;  %v17882_v29 = vld [vmem:[#allocation44 + $0x74] ss:$8 sps:$4 sm:$0xff]  }
 0xf5c   : > { %7333 = vmatprep.subr.bf16.mxu0 %v17871_v34  ;;  %v17883_v34 = vld [vmem:[#allocation44 + $0x60] ss:$8 sps:$4 sm:$0xff]  }
 0xf5f   : > { %7334 = vmatpush1.bf16.msra.mxu0 %v17869_v23  ;;  %v17888_v23 = vld [vmem:[#allocation44 + $0x54] ss:$8 sps:$4 sm:$0xff]  }
 0xf60   : > { %7335 = vmatprep.subr.bf16.mxu0 %v17875_v7  ;;  %v17891_v7 = vld [vmem:[#allocation44 + $0x44] ss:$8 sps:$4 sm:$0xff]  }
 0xf63   : > { %7336 = vmatpush1.bf16.msra.mxu0 %v17873_v60  ;;  %v17889_v60 = vld [vmem:[#allocation44 + $0x40] ss:$8 sps:$4 sm:$0xff]  }
 0xffd   : > { %v7134_v35 = vpop.f32.mrf.mxu1 }
 0xfff   : > { %v17104_v32 = vpop.f32.mrf.mxu1 }
0x1000   : > { %v17897_v32 = vld [vmem:[#allocation44 + $0x24] ss:$8 sps:$4 sm:$0xff]  }
0x1001   : > { %v7137_v14 = vpop.f32.mrf.mxu1 }
0x1003   : > { %v17105_v61 = vpop.f32.mrf.mxu1 }
0x1004   : > { %v17900_v61 = vld [vmem:[#allocation44 + $0x14] ss:$8 sps:$4 sm:$0xff]  }
0x1006   : > { %v16598_v24 = vpop.f32.mrf.mxu0 }
0x1008   : > { %v16599_v56 = vpop.f32.mrf.mxu0 }
0x1009   : > { %v16600_v54 = vadd.f32 %v16599_v56, %v16598_v24  ;;  %v17898_v24 = vld [vmem:[#allocation44 + $0x10] ss:$8 sps:$4 sm:$0xff]   ;;  %v17903_v56 = vld [vmem:[#allocation44 + $0x4] ss:$8 sps:$4 sm:$0xff]  }
0x100a   : > { %v16601_v55 = vpop.f32.mrf.mxu0 }
0x100b   : > { %v7094_v18 = vadd.f32 %v16600_v54, %v15517_v48  ;;  %v17906_v54 = vld [vmem:[#allocation44 + $0xf4] ss:$8 sps:$4 sm:$0xff]  }
0x100c   : > { %v16602_v33 = vpop.f32.mrf.mxu0 }
0x100d   : > { %v16603_v31 = vadd.f32 %v16602_v33, %v16601_v55  ;;  %v7135_v0 = vadd.f32 %v7134_v35, %v7094_v18  ;;  %v17892_v35 = vld [vmem:[#allocation44 + $0x30] ss:$8 sps:$4 sm:$0xff]   ;;  %v17912_v18 = vld [vmem:[#allocation44 + $0xe4] ss:$8 sps:$4 sm:$0xff]   ;;  %v17910_v33 = vld [vmem:[#allocation44 + $0xe0] ss:$8 sps:$4 sm:$0xff]  }
0x100e   : > { %v17904_v55 = vld [vmem:[#allocation44 + $0xf0] ss:$8 sps:$4 sm:$0xff]  }
0x100f   : > { %v7097_v4 = vadd.f32 %v16603_v31, %v15517_v48  ;;  %v7141_v16 = vadd.f32 %v7135_v0, %v23307_v3  ;;  %v17901_v48 = vld [vmem:[#allocation44] ss:$8 sps:$4 sm:$0xff]   ;;  %v17918_v31 = vld [vmem:[#allocation44 + $0xd4] ss:$8 sps:$4 sm:$0xff]   ;;  %v17916_v0 = vld [vmem:[#allocation44 + $0xd0] ss:$8 sps:$4 sm:$0xff]  }
0x1010   : > { %v17930_v3 = vld [vmem:[#allocation44 + $0xb4] ss:$8 sps:$4 sm:$0xff]  }
0x1011   : > { %v7138_v26 = vadd.f32 %v7137_v14, %v7097_v4  ;;  %v17895_v14 = vld [vmem:[#allocation44 + $0x20] ss:$8 sps:$4 sm:$0xff]   ;;  %v17924_v4 = vld [vmem:[#allocation44 + $0xc4] ss:$8 sps:$4 sm:$0xff]  }
0x1013   : > { %v7142_v9 = vadd.f32 %v7138_v26, %v23308_v11  ;;  %v17922_v26 = vld [vmem:[#allocation44 + $0xc0] ss:$8 sps:$4 sm:$0xff]  }
0x1015   : > { %v7143_v12 = vpack.c.bf16 %v7142_v9, %v7141_v16  ;;  %v17928_v16 = vld [vmem:[#allocation44 + $0xb0] ss:$8 sps:$4 sm:$0xff]  }
0x1017   : > { %7354 = vmatmul.mubr.bf16.vlgmr.msra.gmra.mxu0 %v7143_v12  ;;  %17123 = vmatmul.mubr.bf16.vlgmr.msra.gmra.mxu1 %v7143_v12 }
0x1018   : > { %7473 = vmatprep.mubr.bf16.mxu0 %v23252_v37  ;;  %7661 = vmatprep.mubr.bf16.mxu1 %v23252_v37 }
0x10d7   : > { %v7355_v13 = vpop.f32.mrf.mxu0  ;;  %v7398_v1 = vpop.f32.mrf.mxu1 }
0x10d8   : > { %v7356_v53 = vadd.f32 %v7355_v13, %v7181_v51  ;;  %v7399_v62 = vadd.f32 %v7398_v1, %v7189_v46 }
0x10d9   : > { %v7357_v44 = vpop.f32.mrf.mxu0  ;;  %v17124_v39 = vpop.f32.mrf.mxu1 }
0x10da   : > { %v7358_v17 = vadd.f32 %v7357_v44, %v7185_v5  ;;  %v7405_v38 = vmax.f32 %v7356_v53, 0.0  ;;  %v7407_v22 = vmax.f32 %v7399_v62, 0.0  ;;  %v7570_v44 = vld [vmem:[#allocation40 + $0x60] sm:$0xf]  ;;  %v7568_v39 = vld [vmem:[#allocation40 + $0x50] sm:$0xff]  ;;  %v7559_v62 = vld [vmem:[#allocation40 + $0x8] sm:$0xff] }
0x10db   : > { %v7359_v28 = vpop.f32.mrf.mxu0  ;;  %v7401_v42 = vpop.f32.mrf.mxu1 }
0x10dc   : > { %v7360_v52 = vadd.f32 %v7359_v28, %v7181_v51  ;;  %v7402_v15 = vadd.f32 %v7401_v42, %v7189_v46  ;;  %v7406_v8 = vmax.f32 %v7358_v17, 0.0  ;;  %v7571_v42 = vld [vmem:[#allocation40 + $0x68] sm:$0xf] }
0x10dd   : > { %v7361_v59 = vpop.f32.mrf.mxu0  ;;  %v17125_v49 = vpop.f32.mrf.mxu1  ;;  %v7567_v46 = vld [vmem:[#allocation40 + $0x48] sm:$0xff] }
0x10de   : > { %v7362_v36 = vadd.f32 %v7361_v59, %v7185_v5  ;;  %v7408_v25 = vmax.f32 %v7360_v52, 0.0  ;;  %v7410_v41 = vmax.f32 %v7402_v15, 0.0  ;;  %v7565_v52 = vld [vmem:[#allocation40 + $0x38] sm:$0xff] }
0x10e0   : > { %v7409_v10 = vmax.f32 %v7362_v36, 0.0  ;;  %v7416_v27 = vpack.c.bf16 %v7408_v25, %v7405_v38  ;;  %v7418_v19 = vpack.c.bf16 %v7410_v41, %v7407_v22  ;;  %v7562_v25 = vld [vmem:[#allocation40 + $0x20] sm:$0xff]  ;;  %v7561_v41 = vld [vmem:[#allocation40 + $0x18] sm:$0xff] }
0x10e2   : > { %v7417_v43 = vpack.c.bf16 %v7409_v10, %v7406_v8  ;;  %v7564_v8 = vld [vmem:[#allocation40 + $0x30] sm:$0xff] }
0x10e4   : > { %7455 = vmatprep.subr.bf16.mxu0 %v7417_v43 }
0x10e5   : > { %7456 = vmatpush1.bf16.msra.mxu0 %v7416_v27 }
0x10e6   : > { %17126 = vmatprep.subr.bf16.mxu0 %v23300_v57 }
0x10e8   : > { %15569 = vmatmul.mubr.msk.bf16.vlgmr.msra.gmra.mxu0 %vm5550_vm2, %v17877_v47 }
0x10e9   : > { %17127 = vmatpush3.bf16.msra.mxu0 %v7418_v19  ;;  %7483 = vmatprep.mubr.bf16.mxu0 %v23252_v37 }
0x10ea   : > { %8016 = vmatprep.subr.bf16.mxu0 %v17882_v29 }
0x10f0   : > { %15570 = vmatmul.mubr.msk.bf16.gmra.mxu0 %vm5550_vm2, %v17878_v63 }
0x10f1   : > { %7493 = vmatprep.mubr.bf16.mxu0 %v23252_v37 }
0x10f8   : > { %15571 = vmatmul.mubr.msk.bf16.gmra.mxu0 %vm5550_vm2, %v17879_v50 }
0x10f9   : > { %17128 = vmatprep.mubr.msk.bf16.mxu0 %vm19982_vm1, %v23300_v57 }
0x1100   : > { %17129 = vmatmul.mubr.msk.bf16.vlgmr.msra.gmra.mxu0 %vm5550_vm2, %v17877_v47 }
0x1101   : > { %17132 = vmatprep.mubr.msk.bf16.mxu0 %vm19982_vm1, %v23300_v57  ;;  %8017 = vmatpush1.bf16.msra.mxu0 %v17880_v58  ;;  %v7558_v58 = vld [vmem:[#allocation40] sm:$0xff] }
0x1102   : > { %8018 = vmatprep.subr.bf16.mxu0 %v17885_v20 }
0x1105   : > { %8019 = vmatpush1.bf16.msra.mxu0 %v17883_v34 }
0x1106   : > { %8020 = vmatprep.subr.bf16.mxu0 %v17888_v23 }
0x1108   : > { %17133 = vmatmul.mubr.msk.bf16.gmra.mxu0 %vm5550_vm2, %v17878_v63 }
0x1109   : > { %17136 = vmatprep.mubr.msk.bf16.mxu0 %vm19982_vm1, %v23300_v57  ;;  %8021 = vmatpush1.bf16.msra.mxu0 %v17886_v2 }
0x110a   : > { %8022 = vmatprep.subr.bf16.mxu0 %v17891_v7 }
0x110d   : > { %8023 = vmatpush1.bf16.msra.mxu0 %v17889_v60 }
0x110e   : > { %8024 = vmatprep.subr.bf16.mxu0 %v17894_v45 }
0x1110   : > { %17137 = vmatmul.mubr.msk.bf16.gmra.mxu0 %vm5550_vm2, %v17879_v50 }
0x1111   : > { %8025 = vmatpush1.bf16.msra.mxu0 %v17892_v35 }
0x1112   : > { %8026 = vmatprep.subr.bf16.mxu0 %v17897_v32 }
0x1115   : > { %8027 = vmatpush1.bf16.msra.mxu0 %v17895_v14  ;;  %v7597_v14 = vld [vmem:[#allocation41] sm:$0x3] }
0x1116   : > { %8028 = vmatprep.subr.bf16.mxu0 %v17900_v61 }
0x1119   : > { %8029 = vmatpush1.bf16.msra.mxu0 %v17898_v24 }
0x111a   : > { %8030 = vmatprep.subr.bf16.mxu0 %v17903_v56 }
0x111d   : > { %8031 = vmatpush1.bf16.msra.mxu0 %v17901_v48  ;;  %v7572_v48 = vld [vmem:[#allocation40 + $0x70] sm:$0xf] }
0x111e   : > { %8032 = vmatprep.subr.bf16.mxu0 %v17906_v54 }
0x1121   : > { %8033 = vmatpush2.bf16.msra.mxu0 %v17904_v55  ;;  %v7569_v55 = vld [vmem:[#allocation40 + $0x58] sm:$0xff] }
0x1122   : > { %8034 = vmatprep.subr.bf16.mxu0 %v17912_v18 }
0x1125   : > { %8035 = vmatpush2.bf16.msra.mxu0 %v17910_v33 }
0x1126   : > { %8036 = vmatprep.subr.bf16.mxu0 %v17918_v31  ;;  %v7566_v31 = vld [vmem:[#allocation40 + $0x40] sm:$0xff] }
0x1129   : > { %8037 = vmatpush2.bf16.msra.mxu0 %v17916_v0 }
0x112a   : > { %8038 = vmatprep.subr.bf16.mxu0 %v17924_v4 }
0x112d   : > { %8039 = vmatpush2.bf16.msra.mxu0 %v17922_v26 }
0x112e   : > { %8040 = vmatprep.subr.bf16.mxu0 %v17930_v3  ;;  %v7563_v3 = vld [vmem:[#allocation40 + $0x28] sm:$0xff] }
0x1131   : > { %8041 = vmatpush2.bf16.msra.mxu0 %v17928_v16 }
0x11a8   : > { %v7475_v11 = vpop.f32.mrf.mxu0 }
0x11a9   : > { %v7573_v7 = vmul.f32 %v7558_v58, %v7475_v11 }
0x11aa   : > { %v7477_v9 = vpop.f32.mrf.mxu0 }
0x11ab   : > { %v7574_v29 = vmul.f32 %v7559_v62, %v7477_v9  ;;  %v17946_v62 = vld [vmem:[#allocation44 + $0x80] ss:$8 sps:$4 sm:$0xff]  }
0x11ac   : > { %v7479_v12 = vpop.f32.mrf.mxu0 }
0x11ad   : > { %v7576_v20 = vmul.f32 %v7561_v41, %v7479_v12  ;;  %v7560_v12 = vld [vmem:[#allocation40 + $0x10] sm:$0xff]  ;;  %v17949_v41 = vld [vmem:[#allocation44 + $0x100] ss:$8 sps:$4 sm:$0xff]  }
0x11ae   : > { %v7481_v21 = vpop.f32.mrf.mxu0 }
0x11af   : > { %v7577_v47 = vmul.f32 %v7562_v25, %v7481_v21  ;;  %v7588_v45 = vpack.c.bf16 %v7576_v20, %v7573_v7  ;;  %v17940_v25 = vld [vmem:[#allocation44 + $0x90] ss:$8 sps:$4 sm:$0xff]  }
0x11b0   : > { %v7485_v13 = vpop.f32.mrf.mxu0 }
0x11b1   : > { %v7579_v63 = vmul.f32 %v7564_v8, %v7485_v13  ;;  %v7589_v2 = vpack.c.bf16 %v7577_v47, %v7574_v29  ;;  %v17937_v8 = vld [vmem:[#allocation44 + $0x120] ss:$8 sps:$4 sm:$0xff]  }
0x11b2   : > { %v7487_v1 = vpop.f32.mrf.mxu0  ;;  %v17954_v47 = vld [vmem:[%s23310_s1 + $0x2a4] ss:$48 sps:$4 sm:$0xff]  }
0x11b3   : > { %v7580_v10 = vmul.f32 %v7565_v52, %v7487_v1  ;;  %v17927_v52 = vld [vmem:[#allocation44 + $0x144] ss:$8 sps:$4 sm:$0xff]  }
0x11b4   : > { %v7489_v5 = vpop.f32.mrf.mxu0 }
0x11b5   : > { %v7582_v43 = vmul.f32 %v7567_v46, %v7489_v5  ;;  %v17909_v5 = vld [vmem:[#allocation44 + $0x174] ss:$8 sps:$4 sm:$0xff]   ;;  %v17931_v46 = vld [vmem:[#allocation44 + $0x130] ss:$8 sps:$4 sm:$0xff]  }
0x11b6   : > { %v7491_v51 = vpop.f32.mrf.mxu0 }
0x11b7   : > { %v7583_v59 = vmul.f32 %v7568_v39, %v7491_v51  ;;  %v7591_v34 = vpack.c.bf16 %v7582_v43, %v7579_v63  ;;  %v17915_v39 = vld [vmem:[#allocation44 + $0x164] ss:$8 sps:$4 sm:$0xff]   ;;  %v17943_v43 = vld [vmem:[#allocation44 + $0x110] ss:$8 sps:$4 sm:$0xff]  }
0x11b8   : > { %v7495_v28 = vpop.f32.mrf.mxu0 }
0x11b9   : > { %v7585_v17 = vmul.f32 %v7570_v44, %v7495_v28  ;;  %v7592_v22 = vpack.c.bf16 %v7583_v59, %v7580_v10  ;;  %v17907_v44 = vld [vmem:[#allocation44 + $0x170] ss:$8 sps:$4 sm:$0xff]   ;;  %v17913_v28 = vld [vmem:[#allocation44 + $0x160] ss:$8 sps:$4 sm:$0xff]   ;;  %v17936_v59 = vld [vmem:[#allocation44 + $0xa4] ss:$8 sps:$4 sm:$0xff]  }
0x11ba   : > { %v7497_v53 = vpop.f32.mrf.mxu0  ;;  %8042 = vmatprep.subr.bf16.mxu0 %v17936_v59  ;;  %v17939_v10 = vld [vmem:[#allocation44 + $0x124] ss:$8 sps:$4 sm:$0xff]  }
0x11bb   : > { %v7594_v49 = vpack.c.bf16 %v7585_v17, %v7585_v17  ;;  %v7586_v36 = vmul.f32 %v7571_v42, %v7497_v53  ;;  %v17921_v42 = vld [vmem:[#allocation44 + $0x154] ss:$8 sps:$4 sm:$0xff]   ;;  %v17919_v17 = vld [vmem:[#allocation44 + $0x150] ss:$8 sps:$4 sm:$0xff]  }
0x11bc   : > { %v7499_v15 = vpop.f32.mrf.mxu0  ;;  %v17933_v53 = vld [vmem:[#allocation44 + $0x134] ss:$8 sps:$4 sm:$0xff]  }
0x11bd   : > { %v7595_v38 = vpack.c.bf16 %v7586_v36, %v7586_v36  ;;  %v7621_v19 = vsel %vm7619_vm3, %v7594_v49, 0  ;;  %v17934_v49 = vld [vmem:[#allocation44 + $0xa0] ss:$8 sps:$4 sm:$0xff]   ;;  %v17942_v36 = vld [vmem:[#allocation44 + $0x94] ss:$8 sps:$4 sm:$0xff]  }
0x11be   : > { %v7500_v27 = vpop.f32.mrf.mxu0  ;;  %8043 = vmatpush2.bf16.msra.mxu0 %v17934_v49  ;;  %v17948_v15 = vld [vmem:[#allocation44 + $0x84] ss:$8 sps:$4 sm:$0xff]  }
0x11bf   : > { %15575 = vmatprep.subr.msk.bf16.mxu1 %vm7619_vm3, %v7595_v38  ;;  %8044 = vmatprep.subr.bf16.mxu0 %v17942_v36  ;;  %v17945_v38 = vld [vmem:[#allocation44 + $0x114] ss:$8 sps:$4 sm:$0xff]   ;;  %v17951_v27 = vld [vmem:[#allocation44 + $0x104] ss:$8 sps:$4 sm:$0xff]  }
0x11c0   : > { %v7536_v50 = vpop.f32.mrf.mxu0  ;;  %7640 = vmatpush1.bf16.msra.mxu1 %v7621_v19  ;;  %v7598_v19 = vld [vmem:[#allocation43] sm:$0x7]  ;;  %v18014_v59 = vld [vmem:[%s23310_s1 + $0x54c] ss:$48 sps:$4 sm:$0xff]   ;;  %v17973_v49 = vld [vmem:[%s23310_s1 + $0x120] ss:$48 sps:$4 sm:$0xff]  }
0x11c1   : > { %7641 = vmatprep.subr.bf16.mxu1 %v7592_v22  ;;  %v7575_v1 = vmul.f32 %v7560_v12, %v7536_v50  ;;  %v17960_v22 = vld [vmem:[%s23310_s1 + $0x2ac] ss:$48 sps:$4 sm:$0xff]   ;;  %v7603_v63 = vrot.slane %v7598_v19, %v23306_v40  ;;  %v7607_v50 = vrot.slane %v7598_v19, %v23305_v30  ;;  %v17957_v12 = vld [vmem:[%s23310_s1 + $0x244] ss:$48 sps:$4 sm:$0xff]  }
0x11c2   : > { %v17130_v23 = vpop.f32.mrf.mxu0  ;;  %8045 = vmatpush2.bf16.msra.mxu0 %v17940_v25  ;;  %v17981_v36 = vld [vmem:[%s23310_s1 + $0xc4] ss:$48 sps:$4 sm:$0xff]   ;;  %v18012_v25 = vld [vmem:[%s23310_s1 + $0x548] ss:$48 sps:$4 sm:$0xff]  }
0x11c3   : > { %8046 = vmatprep.subr.bf16.mxu0 %v17948_v15  ;;  %v18020_v15 = vld [vmem:[%s23310_s1 + $0x4ec] ss:$48 sps:$4 sm:$0xff]  }
0x11c4   : > { %v7539_v60 = vpop.f32.mrf.mxu0  ;;  %7642 = vmatpush1.bf16.msra.mxu1 %v7591_v34 }
0x11c5   : > { %7643 = vmatprep.subr.bf16.mxu1 %v7589_v2  ;;  %v7578_v21 = vmul.f32 %v7563_v3, %v7539_v60 }
0x11c6   : > { %v17131_v35 = vpop.f32.mrf.mxu0  ;;  %8047 = vmatpush2.bf16.msra.mxu0 %v17946_v62  ;;  %v18026_v62 = vld [vmem:[%s23310_s1 + $0x48c] ss:$48 sps:$4 sm:$0xff]  }
0x11c7   : > { %v7590_v51 = vpack.c.bf16 %v7578_v21, %v7575_v1  ;;  %9357 = vmatprep.subr.bf16.mxu0 %v17960_v22  ;;  %v17988_v21 = vld [vmem:[%s23310_s1 + $0xc8] ss:$48 sps:$4 sm:$0xff]   ;;  %v17996_v1 = vld [vmem:[%s23310_s1 + $0x6c] ss:$48 sps:$4 sm:$0xff]   ;;  %v17999_v22 = vld [vmem:[%s23310_s1 + $0x5a4] ss:$48 sps:$4 sm:$0xff]  }
0x11c8   : > { %v7544_v32 = vpop.f32.mrf.mxu0  ;;  %7644 = vmatpush1.bf16.msra.mxu1 %v7588_v45 }
0x11c9   : > { %17140 = vmatprep.subr.bf16.mxu1 %v23300_v57  ;;  %v7581_v11 = vmul.f32 %v7566_v31, %v7544_v32  ;;  %v17958_v32 = vld [vmem:[%s23310_s1 + $0x2a8] ss:$48 sps:$4 sm:$0xff]  }
0x11ca   : > { %v17134_v61 = vpop.f32.mrf.mxu0 }
0x11cb   : > { %15576 = vmatmul.mubr.msk.bf16.vlgmr.msra.gmra.mxu1 %vm7615_vm4, %v7597_v14  ;;  %v17964_v61 = vld [vmem:[%s23310_s1 + $0x248] ss:$48 sps:$4 sm:$0xff]  }
0x11cc   : > { %v7547_v24 = vpop.f32.mrf.mxu0  ;;  %17146 = vmatprep.mubr.msk.bf16.mxu1 %vm19982_vm1, %v23300_v57 }
0x11cd   : > { %v7584_v4 = vmul.f32 %v7569_v55, %v7547_v24  ;;  %v17972_v24 = vld [vmem:[%s23310_s1 + $0x1ec] ss:$48 sps:$4 sm:$0xff]   ;;  %v17976_v55 = vld [vmem:[%s23310_s1 + $0x188] ss:$48 sps:$4 sm:$0xff]  }
0x11ce   : > { %v17135_v56 = vpop.f32.mrf.mxu0 }
0x11cf   : > { %v7593_v13 = vpack.c.bf16 %v7584_v4, %v7581_v11  ;;  %v17970_v56 = vld [vmem:[%s23310_s1 + $0x1e8] ss:$48 sps:$4 sm:$0xff]  }
0x11d0   : > { %v7552_v54 = vpop.f32.mrf.mxu0 }
0x11d1   : > { %v7587_v18 = vmul.f32 %v7572_v48, %v7552_v54  ;;  %v17978_v48 = vld [vmem:[%s23310_s1 + $0x18c] ss:$48 sps:$4 sm:$0xff]   ;;  %v7611_v54 = vrot.slane %v7598_v19, %v23304_v6  ;;  %v17997_v19 = vld [vmem:[%s23310_s1 + $0x5a0] ss:$48 sps:$4 sm:$0xff]  }
0x11d2   : > { %v17138_v33 = vpop.f32.mrf.mxu0 }
0x11d3   : > { %v7596_v0 = vpack.c.bf16 %v7587_v18, %v7587_v18  ;;  %v17984_v18 = vld [vmem:[%s23310_s1 + $0x12c] ss:$48 sps:$4 sm:$0xff]  }
0x11d4   : > { %v7555_v26 = vpop.f32.mrf.mxu0 }
0x11d5   : > { %v7627_v16 = vsel %vm7619_vm3, %v7596_v0, 0  ;;  %v17982_v0 = vld [vmem:[%s23310_s1 + $0x128] ss:$48 sps:$4 sm:$0xff]   ;;  %v17990_v26 = vld [vmem:[%s23310_s1 + $0xcc] ss:$48 sps:$4 sm:$0xff]  }
0x11d6   : > { %17141 = vmatpush3.bf16.msra.mxu1 %v7627_v16  ;;  %v17139_v9 = vpop.f32.mrf.mxu0  ;;  %v17952_v16 = vld [vmem:[%s23310_s1 + $0x2a0] ss:$48 sps:$4 sm:$0xff]  }
0x11d7   : > { %17142 = vmatprep.subr.bf16.mxu1 %v23300_v57 }
0x11da   : > { %17143 = vmatpush3.bf16.msra.mxu1 %v7593_v13 }
0x11db   : > { %17144 = vmatprep.subr.bf16.mxu1 %v23300_v57  ;;  %v17925_v57 = vld [vmem:[#allocation44 + $0x140] ss:$8 sps:$4 sm:$0xff]  }
0x11de   : > { %17145 = vmatpush3.bf16.msra.mxu1 %v7590_v51  ;;  %v17963_v51 = vld [vmem:[%s23310_s1 + $0x1e4] ss:$48 sps:$4 sm:$0xff]  }
0x11df   : > { %8057 = vmatprep.subr.bf16.mxu1 %v17909_v5  ;;  %v17955_v5 = vld [vmem:[%s23310_s1 + $0x240] ss:$48 sps:$4 sm:$0xff]  }
0x11e1   : > { %17147 = vmatmul.mubr.msk.bf16.vlgmr.msra.gmra.mxu1 %vm7615_vm4, %v7597_v14  ;;  %v17966_v14 = vld [vmem:[%s23310_s1 + $0x24c] ss:$48 sps:$4 sm:$0xff]  }
0x11e2   : > { %8058 = vmatpush1.bf16.msra.mxu1 %v17907_v44  ;;  %8089 = vmatprep.mubr.bf16.mxu1 %v23252_v37  ;;  %v17994_v44 = vld [vmem:[%s23310_s1 + $0x68] ss:$48 sps:$4 sm:$0xff]  }
0x11e3   : > { %8059 = vmatprep.subr.bf16.mxu1 %v17915_v39  ;;  %v18002_v39 = vld [vmem:[%s23310_s1 + $0xc] ss:$48 sps:$4 sm:$0xff]  }
0x11e6   : > { %8060 = vmatpush1.bf16.msra.mxu1 %v17913_v28  ;;  %v17961_v28 = vld [vmem:[%s23310_s1 + $0x1e0] ss:$48 sps:$4 sm:$0xff]  }
0x11e7   : > { %8061 = vmatprep.subr.bf16.mxu1 %v17921_v42  ;;  %v17969_v42 = vld [vmem:[%s23310_s1 + $0x184] ss:$48 sps:$4 sm:$0xff]  }
0x11ea   : > { %8062 = vmatpush1.bf16.msra.mxu1 %v17919_v17  ;;  %v18000_v17 = vld [vmem:[%s23310_s1 + $0x8] ss:$48 sps:$4 sm:$0xff]  }
0x11eb   : > { %8063 = vmatprep.subr.bf16.mxu1 %v17927_v52  ;;  %v18008_v52 = vld [vmem:[%s23310_s1 + $0x5ac] ss:$48 sps:$4 sm:$0xff]  }
0x11ee   : > { %8064 = vmatpush1.bf16.msra.mxu1 %v17925_v57  ;;  %v17967_v57 = vld [vmem:[%s23310_s1 + $0x180] ss:$48 sps:$4 sm:$0xff]  }
0x11ef   : > { %8065 = vmatprep.subr.bf16.mxu1 %v17933_v53  ;;  %v17975_v53 = vld [vmem:[%s23310_s1 + $0x124] ss:$48 sps:$4 sm:$0xff]  }
0x11f2   : > { %8066 = vmatpush1.bf16.msra.mxu1 %v17931_v46  ;;  %v18006_v46 = vld [vmem:[%s23310_s1 + $0x5a8] ss:$48 sps:$4 sm:$0xff]  }
0x11f3   : > { %8067 = vmatprep.subr.bf16.mxu1 %v17939_v10  ;;  %v17987_v10 = vld [vmem:[%s23310_s1 + $0x64] ss:$48 sps:$4 sm:$0xff]  }
0x11f6   : > { %8068 = vmatpush1.bf16.msra.mxu1 %v17937_v8  ;;  %v17979_v8 = vld [vmem:[%s23310_s1 + $0xc0] ss:$48 sps:$4 sm:$0xff]  }
0x11f7   : > { %8069 = vmatprep.subr.bf16.mxu1 %v17945_v38  ;;  %v18018_v38 = vld [vmem:[%s23310_s1 + $0x4e8] ss:$48 sps:$4 sm:$0xff]  }
0x11fa   : > { %8070 = vmatpush1.bf16.msra.mxu1 %v17943_v43  ;;  %v17985_v43 = vld [vmem:[%s23310_s1 + $0x60] ss:$48 sps:$4 sm:$0xff]  }
0x11fb   : > { %8071 = vmatprep.subr.bf16.mxu1 %v17951_v27  ;;  %v17993_v27 = vld [vmem:[%s23310_s1 + $0x4] ss:$48 sps:$4 sm:$0xff]  }
0x11fe   : > { %8072 = vmatpush1.bf16.msra.mxu1 %v17949_v41  ;;  %v18024_v41 = vld [vmem:[%s23310_s1 + $0x488] ss:$48 sps:$4 sm:$0xff]  }
0x11ff   : > { %9316 = vmatprep.subr.bf16.mxu1 %v17954_v47  ;;  %v17991_v47 = vld [vmem:[%s23310_s1] ss:$48 sps:$4 sm:$0xff]  }
0x128b   : > { %v7663_v58 = vpop.f32.mrf.mxu1 }
0x128c   : > { %v7664_v29 = vadd.f32 %v7663_v58, %v7603_v63  ;;  %v18005_v63 = vld [vmem:[%s23310_s1 + $0x544] ss:$48 sps:$4 sm:$0xff]  }
0x128d   : > { %v7665_v20 = vpop.f32.mrf.mxu1  ;;  %v18011_v58 = vld [vmem:[%s23310_s1 + $0x4e4] ss:$48 sps:$4 sm:$0xff]  }
0x128e   : > { %v7710_v34 = vmax.f32 %v7664_v29, 0.0  ;;  %v7666_v23 = vadd.f32 %v7665_v20, %v7607_v50  ;;  %v18003_v50 = vld [vmem:[%s23310_s1 + $0x540] ss:$48 sps:$4 sm:$0xff]   ;;  %v18017_v20 = vld [vmem:[%s23310_s1 + $0x484] ss:$48 sps:$4 sm:$0xff]  }
0x128f   : > { %v7667_v2 = vpop.f32.mrf.mxu1  ;;  %v18009_v29 = vld [vmem:[%s23310_s1 + $0x4e0] ss:$48 sps:$4 sm:$0xff]  }
0x1290   : > { %v7711_v7 = vmax.f32 %v7666_v23, 0.0  ;;  %v7713_v60 = vpack.c.bf16 %v7710_v34, %v7710_v34  ;;  %v18015_v34 = vld [vmem:[%s23310_s1 + $0x480] ss:$48 sps:$4 sm:$0xff]   ;;  %v18023_v23 = vld [vmem:[%s23310_s1 + $0x424] ss:$48 sps:$4 sm:$0xff]  }
0x1291   : > { %v7668_v45 = vpop.f32.mrf.mxu1  ;;  %v18021_v2 = vld [vmem:[%s23310_s1 + $0x420] ss:$48 sps:$4 sm:$0xff]  }
0x1292   : > { %v7714_v35 = vpack.c.bf16 %v7711_v7, %v7711_v7  ;;  %v18029_v7 = vld [vmem:[%s23310_s1 + $0x3c4] ss:$48 sps:$4 sm:$0xff]   ;;  %v18032_v45 = vld [vmem:[%s23310_s1 + $0x42c] ss:$48 sps:$4 sm:$0xff]  }
0x1294   : > { %8048 = vmatprep.mubr.bf16.mxu0 %v7714_v35  ;;  %v18027_v35 = vld [vmem:[%s23310_s1 + $0x3c0] ss:$48 sps:$4 sm:$0xff]  }
0x1295   : > { %8049 = vmatmul.mubr.bf16.vlgmr.msra.gmra.mxu0 %v7713_v60  ;;  %v18030_v60 = vld [vmem:[%s23310_s1 + $0x428] ss:$48 sps:$4 sm:$0xff]  }
0x1296   : > { %9358 = vmatpush1.bf16.msra.mxu0 %v17958_v32  ;;  %v18038_v32 = vld [vmem:[%s23310_s1 + $0x3cc] ss:$48 sps:$4 sm:$0xff]  }
0x1297   : > { %9359 = vmatprep.subr.bf16.mxu0 %v17966_v14  ;;  %v18036_v14 = vld [vmem:[%s23310_s1 + $0x3c8] ss:$48 sps:$4 sm:$0xff]  }
0x129a   : > { %9360 = vmatpush1.bf16.msra.mxu0 %v17964_v61  ;;  %v18035_v61 = vld [vmem:[%s23310_s1 + $0x364] ss:$48 sps:$4 sm:$0xff]  }
0x129b   : > { %9361 = vmatprep.subr.bf16.mxu0 %v17972_v24  ;;  %v18044_v24 = vld [vmem:[%s23310_s1 + $0x36c] ss:$48 sps:$4 sm:$0xff]  }
0x129e   : > { %9362 = vmatpush1.bf16.msra.mxu0 %v17970_v56  ;;  %v18033_v56 = vld [vmem:[%s23310_s1 + $0x360] ss:$48 sps:$4 sm:$0xff]  }
0x129f   : > { %9363 = vmatprep.subr.bf16.mxu0 %v17978_v48  ;;  %v18042_v48 = vld [vmem:[%s23310_s1 + $0x368] ss:$48 sps:$4 sm:$0xff]  }
0x12a1   : > { %v7704_v33 = vpop.f32.mrf.mxu1 }
0x12a2   : > { %v7705_v31 = vadd.f32 %v7704_v33, %v7611_v54  ;;  %9364 = vmatpush1.bf16.msra.mxu0 %v17976_v55  ;;  %v18041_v54 = vld [vmem:[%s23310_s1 + $0x304] ss:$48 sps:$4 sm:$0xff]   ;;  %v18047_v55 = vld [vmem:[%s23310_s1 + $0x30c] ss:$48 sps:$4 sm:$0xff]   ;;  %v18045_v33 = vld [vmem:[%s23310_s1 + $0x308] ss:$48 sps:$4 sm:$0xff]  }
0x12a3   : > { %v17148_v4 = vpop.f32.mrf.mxu1  ;;  %9365 = vmatprep.subr.bf16.mxu0 %v17984_v18  ;;  %v18039_v18 = vld [vmem:[%s23310_s1 + $0x300] ss:$48 sps:$4 sm:$0xff]  }
0x12a4   : > { %v7712_v3 = vmax.f32 %v7705_v31, 0.0  ;;  %v18050_v31 = vld [vmem:[%s23310_s1 + $0x2b4] ss:$48 sps:$4 sm:$0xff]  }
0x12a5   : > { %v7707_v11 = vpop.f32.mrf.mxu1 }
0x12a6   : > { %v7715_v9 = vpack.c.bf16 %v7712_v3, %v7712_v3  ;;  %9366 = vmatpush1.bf16.msra.mxu0 %v17982_v0  ;;  %v18053_v0 = vld [vmem:[%s23310_s1 + $0x2bc] ss:$48 sps:$4 sm:$0xff]   ;;  %v7764_v11 = vld [vmem:[#allocation46] sm:$0x3] }
0x12a7   : > { %v17149_v13 = vpop.f32.mrf.mxu1  ;;  %9367 = vmatprep.subr.bf16.mxu0 %v17990_v26 }
0x12a8   : > { %8090 = vmatmul.mubr.bf16.vlgmr.msra.gmra.mxu1 %v7715_v9  ;;  %v7769_v9 = vrot.slane %v7764_v11, %v23306_v40 }
0x12a9   : > { %9317 = vmatpush1.bf16.msra.mxu1 %v17952_v16 }
0x12aa   : > { %9318 = vmatprep.subr.bf16.mxu1 %v17957_v12  ;;  %9368 = vmatpush1.bf16.msra.mxu0 %v17988_v21  ;;  %v7773_v12 = vrot.slane %v7764_v11, %v23305_v30  ;;  %v18125_v11 = vld [vmem:[%s23310_s1 + $0x43c] ss:$48 sps:$4 sm:$0xff]  }
0x12ab   : > { %9369 = vmatprep.subr.bf16.mxu0 %v17996_v1 }
0x12ad   : > { %9319 = vmatpush1.bf16.msra.mxu1 %v17955_v5 }
0x12ae   : > { %9320 = vmatprep.subr.bf16.mxu1 %v17963_v51  ;;  %9370 = vmatpush1.bf16.msra.mxu0 %v17994_v44 }
0x12af   : > { %9371 = vmatprep.subr.bf16.mxu0 %v18002_v39 }
0x12b1   : > { %9321 = vmatpush1.bf16.msra.mxu1 %v17961_v28 }
0x12b2   : > { %9322 = vmatprep.subr.bf16.mxu1 %v17969_v42  ;;  %9372 = vmatpush1.bf16.msra.mxu0 %v18000_v17  ;;  %v18048_v42 = vld [vmem:[%s23310_s1 + $0x2b0] ss:$48 sps:$4 sm:$0xff]   ;;  %v18051_v17 = vld [vmem:[%s23310_s1 + $0x2b8] ss:$48 sps:$4 sm:$0xff]  }
0x12b3   : > { %9373 = vmatprep.subr.bf16.mxu0 %v18008_v52 }
0x12b5   : > { %9323 = vmatpush1.bf16.msra.mxu1 %v17967_v57  ;;  %v18056_v57 = vld [vmem:[%s23310_s1 + $0x254] ss:$48 sps:$4 sm:$0xff]  }
0x12b6   : > { %9324 = vmatprep.subr.bf16.mxu1 %v17975_v53  ;;  %9374 = vmatpush2.bf16.msra.mxu0 %v18006_v46  ;;  %v18059_v53 = vld [vmem:[%s23310_s1 + $0x25c] ss:$48 sps:$4 sm:$0xff]  }
0x12b7   : > { %9375 = vmatprep.subr.bf16.mxu0 %v18014_v59  ;;  %v18054_v59 = vld [vmem:[%s23310_s1 + $0x250] ss:$48 sps:$4 sm:$0xff]  }
0x12b9   : > { %9325 = vmatpush1.bf16.msra.mxu1 %v17973_v49  ;;  %v18057_v49 = vld [vmem:[%s23310_s1 + $0x258] ss:$48 sps:$4 sm:$0xff]  }
0x12ba   : > { %9326 = vmatprep.subr.bf16.mxu1 %v17981_v36  ;;  %9376 = vmatpush2.bf16.msra.mxu0 %v18012_v25  ;;  %v18062_v36 = vld [vmem:[%s23310_s1 + $0x1f4] ss:$48 sps:$4 sm:$0xff]   ;;  %v18065_v25 = vld [vmem:[%s23310_s1 + $0x1fc] ss:$48 sps:$4 sm:$0xff]  }
0x12bb   : > { %9377 = vmatprep.subr.bf16.mxu0 %v18020_v15  ;;  %v18060_v15 = vld [vmem:[%s23310_s1 + $0x1f0] ss:$48 sps:$4 sm:$0xff]  }
0x12bd   : > { %9327 = vmatpush1.bf16.msra.mxu1 %v17979_v8  ;;  %v18063_v8 = vld [vmem:[%s23310_s1 + $0x1f8] ss:$48 sps:$4 sm:$0xff]  }
0x12be   : > { %9328 = vmatprep.subr.bf16.mxu1 %v17987_v10  ;;  %9378 = vmatpush2.bf16.msra.mxu0 %v18018_v38  ;;  %v18068_v10 = vld [vmem:[%s23310_s1 + $0x194] ss:$48 sps:$4 sm:$0xff]   ;;  %v18071_v38 = vld [vmem:[%s23310_s1 + $0x19c] ss:$48 sps:$4 sm:$0xff]  }
0x12bf   : > { %9379 = vmatprep.subr.bf16.mxu0 %v18026_v62  ;;  %v18066_v62 = vld [vmem:[%s23310_s1 + $0x190] ss:$48 sps:$4 sm:$0xff]  }
0x12c1   : > { %9329 = vmatpush1.bf16.msra.mxu1 %v17985_v43  ;;  %v18069_v43 = vld [vmem:[%s23310_s1 + $0x198] ss:$48 sps:$4 sm:$0xff]  }
0x12c2   : > { %9330 = vmatprep.subr.bf16.mxu1 %v17993_v27  ;;  %9380 = vmatpush2.bf16.msra.mxu0 %v18024_v41  ;;  %v18074_v27 = vld [vmem:[%s23310_s1 + $0x134] ss:$48 sps:$4 sm:$0xff]   ;;  %v18077_v41 = vld [vmem:[%s23310_s1 + $0x13c] ss:$48 sps:$4 sm:$0xff]  }
0x12c3   : > { %9381 = vmatprep.subr.bf16.mxu0 %v18032_v45  ;;  %v18093_v45 = vld [vmem:[%s23310_s1 + $0x18] ss:$48 sps:$4 sm:$0xff]  }
0x12c5   : > { %9331 = vmatpush1.bf16.msra.mxu1 %v17991_v47  ;;  %v18072_v47 = vld [vmem:[%s23310_s1 + $0x130] ss:$48 sps:$4 sm:$0xff]  }
0x12c6   : > { %9332 = vmatprep.subr.bf16.mxu1 %v17999_v22  ;;  %9382 = vmatpush2.bf16.msra.mxu0 %v18030_v60  ;;  %v18075_v22 = vld [vmem:[%s23310_s1 + $0x138] ss:$48 sps:$4 sm:$0xff]   ;;  %v18090_v60 = vld [vmem:[%s23310_s1 + $0x10] ss:$48 sps:$4 sm:$0xff]  }
0x12c7   : > { %9383 = vmatprep.subr.bf16.mxu0 %v18038_v32  ;;  %v18101_v32 = vld [vmem:[%s23310_s1 + $0x5bc] ss:$48 sps:$4 sm:$0xff]  }
0x12c9   : > { %9333 = vmatpush2.bf16.msra.mxu1 %v17997_v19  ;;  %v18080_v19 = vld [vmem:[%s23310_s1 + $0xd4] ss:$48 sps:$4 sm:$0xff]  }
0x12ca   : > { %9334 = vmatprep.subr.bf16.mxu1 %v18005_v63  ;;  %9384 = vmatpush2.bf16.msra.mxu0 %v18036_v14  ;;  %v18083_v63 = vld [vmem:[%s23310_s1 + $0xdc] ss:$48 sps:$4 sm:$0xff]   ;;  %v18096_v14 = vld [vmem:[%s23310_s1 + $0x5b0] ss:$48 sps:$4 sm:$0xff]  }
0x12cb   : > { %9385 = vmatprep.subr.bf16.mxu0 %v18044_v24  ;;  %v18104_v24 = vld [vmem:[%s23310_s1 + $0x554] ss:$48 sps:$4 sm:$0xff]  }
0x12cd   : > { %9335 = vmatpush2.bf16.msra.mxu1 %v18003_v50  ;;  %v18078_v50 = vld [vmem:[%s23310_s1 + $0xd0] ss:$48 sps:$4 sm:$0xff]  }
0x12ce   : > { %9336 = vmatprep.subr.bf16.mxu1 %v18011_v58  ;;  %9386 = vmatpush2.bf16.msra.mxu0 %v18042_v48  ;;  %v18081_v58 = vld [vmem:[%s23310_s1 + $0xd8] ss:$48 sps:$4 sm:$0xff]   ;;  %v18102_v48 = vld [vmem:[%s23310_s1 + $0x550] ss:$48 sps:$4 sm:$0xff]  }
0x12cf   : > { %9387 = vmatprep.subr.bf16.mxu0 %v18047_v55  ;;  %v18110_v55 = vld [vmem:[%s23310_s1 + $0x4f4] ss:$48 sps:$4 sm:$0xff]  }
0x12d1   : > { %9337 = vmatpush2.bf16.msra.mxu1 %v18009_v29  ;;  %v18086_v29 = vld [vmem:[%s23310_s1 + $0x74] ss:$48 sps:$4 sm:$0xff]  }
0x12d2   : > { %9338 = vmatprep.subr.bf16.mxu1 %v18017_v20  ;;  %9388 = vmatpush2.bf16.msra.mxu0 %v18045_v33  ;;  %v18089_v20 = vld [vmem:[%s23310_s1 + $0x7c] ss:$48 sps:$4 sm:$0xff]   ;;  %v18108_v33 = vld [vmem:[%s23310_s1 + $0x4f0] ss:$48 sps:$4 sm:$0xff]  }
0x12d3   : > { %9439 = vmatprep.subr.bf16.mxu0 %v18053_v0  ;;  %v18116_v0 = vld [vmem:[%s23310_s1 + $0x494] ss:$48 sps:$4 sm:$0xff]  }
0x12d5   : > { %9339 = vmatpush2.bf16.msra.mxu1 %v18015_v34  ;;  %v18084_v34 = vld [vmem:[%s23310_s1 + $0x70] ss:$48 sps:$4 sm:$0xff]  }
0x12d6   : > { %9340 = vmatprep.subr.bf16.mxu1 %v18023_v23  ;;  %v18087_v23 = vld [vmem:[%s23310_s1 + $0x78] ss:$48 sps:$4 sm:$0xff]  }
0x12d9   : > { %9341 = vmatpush2.bf16.msra.mxu1 %v18021_v2  ;;  %v18092_v2 = vld [vmem:[%s23310_s1 + $0x14] ss:$48 sps:$4 sm:$0xff]  }
0x12da   : > { %9342 = vmatprep.subr.bf16.mxu1 %v18029_v7  ;;  %v18095_v7 = vld [vmem:[%s23310_s1 + $0x1c] ss:$48 sps:$4 sm:$0xff]  }
0x12dd   : > { %9343 = vmatpush2.bf16.msra.mxu1 %v18027_v35  ;;  %v18098_v35 = vld [vmem:[%s23310_s1 + $0x5b4] ss:$48 sps:$4 sm:$0xff]  }
0x12de   : > { %9344 = vmatprep.subr.bf16.mxu1 %v18035_v61  ;;  %v18099_v61 = vld [vmem:[%s23310_s1 + $0x5b8] ss:$48 sps:$4 sm:$0xff]  }
0x12e1   : > { %9345 = vmatpush2.bf16.msra.mxu1 %v18033_v56  ;;  %v18107_v56 = vld [vmem:[%s23310_s1 + $0x55c] ss:$48 sps:$4 sm:$0xff]  }
0x12e2   : > { %9346 = vmatprep.subr.bf16.mxu1 %v18041_v54  ;;  %v18105_v54 = vld [vmem:[%s23310_s1 + $0x558] ss:$48 sps:$4 sm:$0xff]  }
0x12e5   : > { %9347 = vmatpush2.bf16.msra.mxu1 %v18039_v18  ;;  %v18113_v18 = vld [vmem:[%s23310_s1 + $0x4fc] ss:$48 sps:$4 sm:$0xff]  }
0x12e6   : > { %9398 = vmatprep.subr.bf16.mxu1 %v18050_v31  ;;  %v18111_v31 = vld [vmem:[%s23310_s1 + $0x4f8] ss:$48 sps:$4 sm:$0xff]  }
0x1355   : > { %v8050_v4 = vpop.f32.mrf.mxu0 }
0x1356   : > { %v8051_v21 = vadd.f32 %v8050_v4, %v7769_v9  ;;  %v18119_v4 = vld [vmem:[%s23310_s1 + $0x49c] ss:$48 sps:$4 sm:$0xff]   ;;  %v18120_v9 = vld [vmem:[%s23310_s1 + $0x430] ss:$48 sps:$4 sm:$0xff]  }
0x1357   : > { %v8052_v26 = vpop.f32.mrf.mxu0 }
0x1358   : > { %v8053_v1 = vadd.f32 %v8052_v26, %v7773_v12  ;;  %v18114_v26 = vld [vmem:[%s23310_s1 + $0x490] ss:$48 sps:$4 sm:$0xff]   ;;  %v18123_v12 = vld [vmem:[%s23310_s1 + $0x438] ss:$48 sps:$4 sm:$0xff]  }
0x1359   : > { %v8054_v3 = vpop.f32.mrf.mxu0 }
0x135a   : > { %v18117_v3 = vld [vmem:[%s23310_s1 + $0x498] ss:$48 sps:$4 sm:$0xff]  }
0x135b   : > { %v8055_v16 = vpop.f32.mrf.mxu0 }
0x135c   : > { %v18122_v16 = vld [vmem:[%s23310_s1 + $0x434] ss:$48 sps:$4 sm:$0xff]  }
0x1368   : > { %v8091_v13 = vpop.f32.mrf.mxu1 }
0x1369   : > { %v21928_v5 = vadd.f32 %v8091_v13, %v8051_v21  ;;  %v18128_v21 = vld [vmem:[%s23310_s1 + $0x3d4] ss:$48 sps:$4 sm:$0xff]   ;;  %v18131_v13 = vld [vmem:[%s23310_s1 + $0x3dc] ss:$48 sps:$4 sm:$0xff]  }
0x136a   : > { %v8093_v51 = vpop.f32.mrf.mxu1 }
0x136b   : > { %23311 = vst [vmem:[#allocation147_spill] sm:$0xff] %v21928_v5  ;;  %v21930_v44 = vadd.f32 %v8093_v51, %v8053_v1  ;;  %v21940_v52 = vpack.c.bf16 %v21928_v5, %v21928_v5  ;;  %v18126_v1 = vld [vmem:[%s23310_s1 + $0x3d0] ss:$48 sps:$4 sm:$0xff]   ;;  %v18129_v51 = vld [vmem:[%s23310_s1 + $0x3d8] ss:$48 sps:$4 sm:$0xff]  }
0x136c   : > { %v8095_v39 = vpop.f32.mrf.mxu1 }
0x136d   : > { %23312 = vst [vmem:[#allocation134_spill] sm:$0xff] %v21930_v44  ;;  %v21934_v28 = vpack.c.bf16 %v21930_v44, %v21930_v44  ;;  %v18134_v39 = vld [vmem:[%s23310_s1 + $0x374] ss:$48 sps:$4 sm:$0xff]  }
0x136e   : > { %v8096_v46 = vpop.f32.mrf.mxu1 }
0x136f   : > { %9348 = vmatprep.mubr.bf16.mxu1 %v21934_v28  ;;  %9389 = vmatprep.mubr.bf16.mxu0 %v21934_v28  ;;  %v18143_v46 = vld [vmem:[%s23310_s1 + $0x31c] ss:$48 sps:$4 sm:$0xff]  }
0x1370   : > { %9349 = vmatmul.mubr.bf16.vlgmr.msra.gmra.mxu1 %v21940_v52  ;;  %9390 = vmatmul.mubr.bf16.vlgmr.msra.gmra.mxu0 %v21940_v52 }
0x1371   : > { %9399 = vmatpush1.bf16.msra.mxu1 %v18048_v42  ;;  %9440 = vmatpush1.bf16.msra.mxu0 %v18051_v17  ;;  %v18137_v42 = vld [vmem:[%s23310_s1 + $0x37c] ss:$48 sps:$4 sm:$0xff]   ;;  %v18132_v17 = vld [vmem:[%s23310_s1 + $0x370] ss:$48 sps:$4 sm:$0xff]  }
0x1372   : > { %9400 = vmatprep.subr.bf16.mxu1 %v18056_v57  ;;  %9441 = vmatprep.subr.bf16.mxu0 %v18059_v53  ;;  %v18135_v57 = vld [vmem:[%s23310_s1 + $0x378] ss:$48 sps:$4 sm:$0xff]   ;;  %v18140_v53 = vld [vmem:[%s23310_s1 + $0x314] ss:$48 sps:$4 sm:$0xff]  }
0x1373   : > { %9430 = vmatprep.mubr.bf16.mxu1 %v21934_v28  ;;  %9471 = vmatprep.mubr.bf16.mxu0 %v21934_v28 }
0x1375   : > { %9401 = vmatpush1.bf16.msra.mxu1 %v18054_v59  ;;  %9442 = vmatpush1.bf16.msra.mxu0 %v18057_v49  ;;  %v18138_v59 = vld [vmem:[%s23310_s1 + $0x310] ss:$48 sps:$4 sm:$0xff]   ;;  %v18141_v49 = vld [vmem:[%s23310_s1 + $0x318] ss:$48 sps:$4 sm:$0xff]  }
0x1376   : > { %9402 = vmatprep.subr.bf16.mxu1 %v18062_v36  ;;  %9443 = vmatprep.subr.bf16.mxu0 %v18065_v25  ;;  %v18146_v36 = vld [vmem:[%s23310_s1 + $0x2c4] ss:$48 sps:$4 sm:$0xff]   ;;  %v18149_v25 = vld [vmem:[%s23310_s1 + $0x2cc] ss:$48 sps:$4 sm:$0xff]  }
0x1379   : > { %9403 = vmatpush1.bf16.msra.mxu1 %v18060_v15  ;;  %9444 = vmatpush1.bf16.msra.mxu0 %v18063_v8  ;;  %v18144_v15 = vld [vmem:[%s23310_s1 + $0x2c0] ss:$48 sps:$4 sm:$0xff]   ;;  %v18147_v8 = vld [vmem:[%s23310_s1 + $0x2c8] ss:$48 sps:$4 sm:$0xff]  }
0x137a   : > { %9404 = vmatprep.subr.bf16.mxu1 %v18068_v10  ;;  %9445 = vmatprep.subr.bf16.mxu0 %v18071_v38  ;;  %v18152_v10 = vld [vmem:[%s23310_s1 + $0x264] ss:$48 sps:$4 sm:$0xff]   ;;  %v18155_v38 = vld [vmem:[%s23310_s1 + $0x26c] ss:$48 sps:$4 sm:$0xff]  }
0x137d   : > { %9405 = vmatpush1.bf16.msra.mxu1 %v18066_v62  ;;  %9446 = vmatpush1.bf16.msra.mxu0 %v18069_v43  ;;  %v18150_v62 = vld [vmem:[%s23310_s1 + $0x260] ss:$48 sps:$4 sm:$0xff]   ;;  %v18153_v43 = vld [vmem:[%s23310_s1 + $0x268] ss:$48 sps:$4 sm:$0xff]  }
0x137e   : > { %9406 = vmatprep.subr.bf16.mxu1 %v18074_v27  ;;  %9447 = vmatprep.subr.bf16.mxu0 %v18077_v41  ;;  %v18158_v27 = vld [vmem:[%s23310_s1 + $0x204] ss:$48 sps:$4 sm:$0xff]   ;;  %v18161_v41 = vld [vmem:[%s23310_s1 + $0x20c] ss:$48 sps:$4 sm:$0xff]  }
0x1381   : > { %9407 = vmatpush1.bf16.msra.mxu1 %v18072_v47  ;;  %9448 = vmatpush1.bf16.msra.mxu0 %v18075_v22  ;;  %v18156_v47 = vld [vmem:[%s23310_s1 + $0x200] ss:$48 sps:$4 sm:$0xff]   ;;  %v18159_v22 = vld [vmem:[%s23310_s1 + $0x208] ss:$48 sps:$4 sm:$0xff]  }
0x1382   : > { %9408 = vmatprep.subr.bf16.mxu1 %v18080_v19  ;;  %9449 = vmatprep.subr.bf16.mxu0 %v18083_v63  ;;  %v18164_v19 = vld [vmem:[%s23310_s1 + $0x1a4] ss:$48 sps:$4 sm:$0xff]   ;;  %v18167_v63 = vld [vmem:[%s23310_s1 + $0x1ac] ss:$48 sps:$4 sm:$0xff]  }
0x1385   : > { %9409 = vmatpush1.bf16.msra.mxu1 %v18078_v50  ;;  %9450 = vmatpush1.bf16.msra.mxu0 %v18081_v58  ;;  %v18162_v50 = vld [vmem:[%s23310_s1 + $0x1a0] ss:$48 sps:$4 sm:$0xff]   ;;  %v18165_v58 = vld [vmem:[%s23310_s1 + $0x1a8] ss:$48 sps:$4 sm:$0xff]  }
0x1386   : > { %9410 = vmatprep.subr.bf16.mxu1 %v18086_v29  ;;  %9451 = vmatprep.subr.bf16.mxu0 %v18089_v20  ;;  %v18173_v29 = vld [vmem:[%s23310_s1 + $0x14c] ss:$48 sps:$4 sm:$0xff]   ;;  %v18168_v20 = vld [vmem:[%s23310_s1 + $0x140] ss:$48 sps:$4 sm:$0xff]  }
0x1389   : > { %9411 = vmatpush1.bf16.msra.mxu1 %v18084_v34  ;;  %9452 = vmatpush1.bf16.msra.mxu0 %v18087_v23  ;;  %v18171_v34 = vld [vmem:[%s23310_s1 + $0x148] ss:$48 sps:$4 sm:$0xff]   ;;  %v18176_v23 = vld [vmem:[%s23310_s1 + $0xe4] ss:$48 sps:$4 sm:$0xff]  }
0x138a   : > { %9412 = vmatprep.subr.bf16.mxu1 %v18092_v2  ;;  %9453 = vmatprep.subr.bf16.mxu0 %v18095_v7  ;;  %v18179_v2 = vld [vmem:[%s23310_s1 + $0xec] ss:$48 sps:$4 sm:$0xff]   ;;  %v18174_v7 = vld [vmem:[%s23310_s1 + $0xe0] ss:$48 sps:$4 sm:$0xff]  }
0x138d   : > { %9413 = vmatpush1.bf16.msra.mxu1 %v18090_v60  ;;  %9454 = vmatpush1.bf16.msra.mxu0 %v18093_v45  ;;  %v18177_v60 = vld [vmem:[%s23310_s1 + $0xe8] ss:$48 sps:$4 sm:$0xff]   ;;  %v18182_v45 = vld [vmem:[%s23310_s1 + $0x84] ss:$48 sps:$4 sm:$0xff]  }
0x138e   : > { %9414 = vmatprep.subr.bf16.mxu1 %v18098_v35  ;;  %9455 = vmatprep.subr.bf16.mxu0 %v18101_v32  ;;  %v18185_v35 = vld [vmem:[%s23310_s1 + $0x8c] ss:$48 sps:$4 sm:$0xff]   ;;  %v18180_v32 = vld [vmem:[%s23310_s1 + $0x80] ss:$48 sps:$4 sm:$0xff]  }
0x1391   : > { %9415 = vmatpush2.bf16.msra.mxu1 %v18096_v14  ;;  %9456 = vmatpush2.bf16.msra.mxu0 %v18099_v61  ;;  %v18183_v14 = vld [vmem:[%s23310_s1 + $0x88] ss:$48 sps:$4 sm:$0xff]   ;;  %v18188_v61 = vld [vmem:[%s23310_s1 + $0x24] ss:$48 sps:$4 sm:$0xff]  }
0x1392   : > { %9416 = vmatprep.subr.bf16.mxu1 %v18104_v24  ;;  %9457 = vmatprep.subr.bf16.mxu0 %v18107_v56  ;;  %v18191_v24 = vld [vmem:[%s23310_s1 + $0x2c] ss:$48 sps:$4 sm:$0xff]   ;;  %v18186_v56 = vld [vmem:[%s23310_s1 + $0x20] ss:$48 sps:$4 sm:$0xff]  }
0x1395   : > { %9417 = vmatpush2.bf16.msra.mxu1 %v18102_v48  ;;  %9458 = vmatpush2.bf16.msra.mxu0 %v18105_v54  ;;  %v18189_v48 = vld [vmem:[%s23310_s1 + $0x28] ss:$48 sps:$4 sm:$0xff]   ;;  %v18194_v54 = vld [vmem:[%s23310_s1 + $0x5c4] ss:$48 sps:$4 sm:$0xff]  }
0x1396   : > { %9418 = vmatprep.subr.bf16.mxu1 %v18110_v55  ;;  %9459 = vmatprep.subr.bf16.mxu0 %v18113_v18  ;;  %v18197_v55 = vld [vmem:[%s23310_s1 + $0x5cc] ss:$48 sps:$4 sm:$0xff]   ;;  %v18192_v18 = vld [vmem:[%s23310_s1 + $0x5c0] ss:$48 sps:$4 sm:$0xff]  }
0x1399   : > { %9419 = vmatpush2.bf16.msra.mxu1 %v18108_v33  ;;  %9460 = vmatpush2.bf16.msra.mxu0 %v18111_v31  ;;  %v18195_v33 = vld [vmem:[%s23310_s1 + $0x5c8] ss:$48 sps:$4 sm:$0xff]   ;;  %v18200_v31 = vld [vmem:[%s23310_s1 + $0x564] ss:$48 sps:$4 sm:$0xff]  }
0x139a   : > { %9420 = vmatprep.subr.bf16.mxu1 %v18116_v0  ;;  %9461 = vmatprep.subr.bf16.mxu0 %v18119_v4  ;;  %v18203_v0 = vld [vmem:[%s23310_s1 + $0x56c] ss:$48 sps:$4 sm:$0xff]   ;;  %v18198_v4 = vld [vmem:[%s23310_s1 + $0x560] ss:$48 sps:$4 sm:$0xff]  }
0x139d   : > { %9421 = vmatpush2.bf16.msra.mxu1 %v18114_v26  ;;  %9462 = vmatpush2.bf16.msra.mxu0 %v18117_v3  ;;  %v18201_v26 = vld [vmem:[%s23310_s1 + $0x568] ss:$48 sps:$4 sm:$0xff]   ;;  %v18206_v3 = vld [vmem:[%s23310_s1 + $0x504] ss:$48 sps:$4 sm:$0xff]  }
0x139e   : > { %9422 = vmatprep.subr.bf16.mxu1 %v18122_v16  ;;  %9463 = vmatprep.subr.bf16.mxu0 %v18125_v11  ;;  %v18209_v16 = vld [vmem:[%s23310_s1 + $0x50c] ss:$48 sps:$4 sm:$0xff]   ;;  %v18204_v11 = vld [vmem:[%s23310_s1 + $0x500] ss:$48 sps:$4 sm:$0xff]  }
0x13a1   : > { %9423 = vmatpush2.bf16.msra.mxu1 %v18120_v9  ;;  %9464 = vmatpush2.bf16.msra.mxu0 %v18123_v12  ;;  %v18207_v9 = vld [vmem:[%s23310_s1 + $0x508] ss:$48 sps:$4 sm:$0xff]   ;;  %v18212_v12 = vld [vmem:[%s23310_s1 + $0x4a4] ss:$48 sps:$4 sm:$0xff]  }
0x13a2   : > { %9424 = vmatprep.subr.bf16.mxu1 %v18128_v21  ;;  %9465 = vmatprep.subr.bf16.mxu0 %v18131_v13  ;;  %v18215_v21 = vld [vmem:[%s23310_s1 + $0x4ac] ss:$48 sps:$4 sm:$0xff]   ;;  %v18210_v13 = vld [vmem:[%s23310_s1 + $0x4a0] ss:$48 sps:$4 sm:$0xff]  }
0x13a5   : > { %9425 = vmatpush2.bf16.msra.mxu1 %v18126_v1  ;;  %9466 = vmatpush2.bf16.msra.mxu0 %v18129_v51  ;;  %v18213_v1 = vld [vmem:[%s23310_s1 + $0x4a8] ss:$48 sps:$4 sm:$0xff]   ;;  %v18218_v51 = vld [vmem:[%s23310_s1 + $0x444] ss:$48 sps:$4 sm:$0xff]  }
0x13a6   : > { %9426 = vmatprep.subr.bf16.mxu1 %v18134_v39  ;;  %9467 = vmatprep.subr.bf16.mxu0 %v18137_v42  ;;  %v18221_v39 = vld [vmem:[%s23310_s1 + $0x44c] ss:$48 sps:$4 sm:$0xff]   ;;  %v18216_v42 = vld [vmem:[%s23310_s1 + $0x440] ss:$48 sps:$4 sm:$0xff]  }
0x13a9   : > { %9427 = vmatpush2.bf16.msra.mxu1 %v18132_v17  ;;  %9468 = vmatpush2.bf16.msra.mxu0 %v18135_v57  ;;  %v18219_v17 = vld [vmem:[%s23310_s1 + $0x448] ss:$48 sps:$4 sm:$0xff]   ;;  %v18224_v57 = vld [vmem:[%s23310_s1 + $0x3e4] ss:$48 sps:$4 sm:$0xff]  }
0x13aa   : > { %9428 = vmatprep.subr.bf16.mxu1 %v18140_v53  ;;  %9469 = vmatprep.subr.bf16.mxu0 %v18143_v46  ;;  %v18227_v53 = vld [vmem:[%s23310_s1 + $0x3ec] ss:$48 sps:$4 sm:$0xff]   ;;  %v18222_v46 = vld [vmem:[%s23310_s1 + $0x3e0] ss:$48 sps:$4 sm:$0xff]  }
0x13ad   : > { %9429 = vmatpush2.bf16.msra.mxu1 %v18138_v59  ;;  %9470 = vmatpush2.bf16.msra.mxu0 %v18141_v49  ;;  %v18225_v59 = vld [vmem:[%s23310_s1 + $0x3e8] ss:$48 sps:$4 sm:$0xff]   ;;  %v18230_v49 = vld [vmem:[%s23310_s1 + $0x384] ss:$48 sps:$4 sm:$0xff]  }
0x13ae   : > { %9480 = vmatprep.subr.bf16.mxu1 %v18146_v36  ;;  %9521 = vmatprep.subr.bf16.mxu0 %v18149_v25  ;;  %v18233_v36 = vld [vmem:[%s23310_s1 + $0x38c] ss:$48 sps:$4 sm:$0xff]   ;;  %v18228_v25 = vld [vmem:[%s23310_s1 + $0x380] ss:$48 sps:$4 sm:$0xff]  }
0x13b0   : > { %9431 = vmatmul.mubr.bf16.vlgmr.msra.gmra.mxu1 %v21940_v52  ;;  %9472 = vmatmul.mubr.bf16.vlgmr.msra.gmra.mxu0 %v21940_v52 }
0x13b1   : > { %9481 = vmatpush1.bf16.msra.mxu1 %v18144_v15  ;;  %9522 = vmatpush1.bf16.msra.mxu0 %v18147_v8  ;;  %v18231_v15 = vld [vmem:[%s23310_s1 + $0x388] ss:$48 sps:$4 sm:$0xff]   ;;  %v18236_v8 = vld [vmem:[%s23310_s1 + $0x324] ss:$48 sps:$4 sm:$0xff]  }
0x13b2   : > { %9482 = vmatprep.subr.bf16.mxu1 %v18152_v10  ;;  %9523 = vmatprep.subr.bf16.mxu0 %v18155_v38  ;;  %v18239_v10 = vld [vmem:[%s23310_s1 + $0x32c] ss:$48 sps:$4 sm:$0xff]   ;;  %v18234_v38 = vld [vmem:[%s23310_s1 + $0x320] ss:$48 sps:$4 sm:$0xff]  }
0x13b3   : > { %9512 = vmatprep.mubr.bf16.mxu1 %v21934_v28  ;;  %9553 = vmatprep.mubr.bf16.mxu0 %v21934_v28  ;;  %v18170_v28 = vld [vmem:[%s23310_s1 + $0x144] ss:$48 sps:$4 sm:$0xff]  }
0x13b5   : > { %9483 = vmatpush1.bf16.msra.mxu1 %v18150_v62  ;;  %9524 = vmatpush1.bf16.msra.mxu0 %v18153_v43  ;;  %v18237_v62 = vld [vmem:[%s23310_s1 + $0x328] ss:$48 sps:$4 sm:$0xff]   ;;  %v22080_v43 = vld [vmem:[#allocation47] sm:$0xff] }
0x13b6   : > { %9484 = vmatprep.subr.bf16.mxu1 %v18158_v27  ;;  %9525 = vmatprep.subr.bf16.mxu0 %v18161_v41  ;;  %v23313_v27 = vld [vmem:[#allocation123_spill] sm:$0xff] }
0x13b7   : > { %v22083_v41 = vsub.s32 3, %v23313_v27 }
0x13b9   : > { %9485 = vmatpush1.bf16.msra.mxu1 %v18156_v47  ;;  %9526 = vmatpush1.bf16.msra.mxu0 %v18159_v22  ;;  %23314 = vst [vmem:[#allocation133_spill] sm:$0xff] %v22083_v41  ;;  %v8299_v47 = vrot.slane %v22080_v43, %v23306_v40  ;;  %v8307_v22 = vrot.slane %v22080_v43, %v23304_v6 }
0x13ba   : > { %9486 = vmatprep.subr.bf16.mxu1 %v18164_v19  ;;  %9527 = vmatprep.subr.bf16.mxu0 %v18167_v63  ;;  %v8303_v19 = vrot.slane %v22080_v43, %v23305_v30 }
0x13bd   : > { %9487 = vmatpush1.bf16.msra.mxu1 %v18162_v50  ;;  %9528 = vmatpush1.bf16.msra.mxu0 %v18165_v58 }
0x13be   : > { %9488 = vmatprep.subr.bf16.mxu1 %v18170_v28  ;;  %9529 = vmatprep.subr.bf16.mxu0 %v18173_v29 }
0x13c1   : > { %9489 = vmatpush1.bf16.msra.mxu1 %v18168_v20  ;;  %9530 = vmatpush1.bf16.msra.mxu0 %v18171_v34 }
0x13c2   : > { %9490 = vmatprep.subr.bf16.mxu1 %v18176_v23  ;;  %9531 = vmatprep.subr.bf16.mxu0 %v18179_v2 }
0x13c5   : > { %9491 = vmatpush1.bf16.msra.mxu1 %v18174_v7  ;;  %9532 = vmatpush1.bf16.msra.mxu0 %v18177_v60 }
0x13c6   : > { %9492 = vmatprep.subr.bf16.mxu1 %v18182_v45  ;;  %9533 = vmatprep.subr.bf16.mxu0 %v18185_v35 }
0x13c9   : > { %9493 = vmatpush1.bf16.msra.mxu1 %v18180_v32  ;;  %9534 = vmatpush1.bf16.msra.mxu0 %v18183_v14 }
0x13ca   : > { %9494 = vmatprep.subr.bf16.mxu1 %v18188_v61  ;;  %9535 = vmatprep.subr.bf16.mxu0 %v18191_v24 }
0x13cd   : > { %9495 = vmatpush1.bf16.msra.mxu1 %v18186_v56  ;;  %9536 = vmatpush1.bf16.msra.mxu0 %v18189_v48 }
0x13ce   : > { %9496 = vmatprep.subr.bf16.mxu1 %v18194_v54  ;;  %9537 = vmatprep.subr.bf16.mxu0 %v18197_v55 }
0x13d1   : > { %9497 = vmatpush2.bf16.msra.mxu1 %v18192_v18  ;;  %9538 = vmatpush2.bf16.msra.mxu0 %v18195_v33  ;;  %v22096_v18 = vld [vmem:[%s23315_s23] sm:$0xff]   ;;  %v22100_v33 = vld [vmem:[%s23316_s12 + $0x8] sm:$0xff]  }
0x13d2   : > { %9498 = vmatprep.subr.bf16.mxu1 %v18200_v31  ;;  %9539 = vmatprep.subr.bf16.mxu0 %v18203_v0  ;;  %v22111_v0 = vld [vmem:[%s23316_s12 + $0x10] sm:$0xff]  }
0x13d5   : > { %9499 = vmatpush2.bf16.msra.mxu1 %v18198_v4  ;;  %9540 = vmatpush2.bf16.msra.mxu0 %v18201_v26  ;;  %v22120_v4 = vld [vmem:[%s23316_s12 + $0x18] sm:$0xff]   ;;  %v22129_v26 = vld [vmem:[%s23316_s12 + $0x20] sm:$0xff]  }
0x13d6   : > { %9500 = vmatprep.subr.bf16.mxu1 %v18206_v3  ;;  %9541 = vmatprep.subr.bf16.mxu0 %v18209_v16  ;;  %v22138_v3 = vld [vmem:[%s23316_s12 + $0x28] sm:$0xff]   ;;  %v22147_v16 = vld [vmem:[%s23316_s12 + $0x30] ss:$0 sps:$4 sm:$0x33]  }
0x13d9   : > { %9501 = vmatpush2.bf16.msra.mxu1 %v18204_v11  ;;  %9542 = vmatpush2.bf16.msra.mxu0 %v18207_v9  ;;  %v22156_v11 = vsub.s32 4, %v23313_v27  ;;  %v22159_v9 = vsub.s32 6, %v23313_v27 }
0x13da   : > { %9502 = vmatprep.subr.bf16.mxu1 %v18212_v12  ;;  %9543 = vmatprep.subr.bf16.mxu0 %v18215_v21  ;;  %v22162_v12 = vsub.s32 5, %v23313_v27  ;;  %v22165_v21 = vsub.s32 7, %v23313_v27 }
0x13db   : > { %23317 = vst [vmem:[#allocation146_spill] sm:$0xff] %v22156_v11  ;;  %23318 = vst [vmem:[#allocation145_spill] sm:$0xff] %v22159_v9 }
0x13dc   : > { %23319 = vst [vmem:[#allocation132_spill] sm:$0xff] %v22162_v12  ;;  %23320 = vst [vmem:[#allocation131_spill] sm:$0xff] %v22165_v21 }
0x13dd   : > { %9503 = vmatpush2.bf16.msra.mxu1 %v18210_v13  ;;  %9544 = vmatpush2.bf16.msra.mxu0 %v18213_v1  ;;  %v8315_v13 = vrot.slane %v22080_v43, %v22156_v11  ;;  %v8323_v1 = vrot.slane %v22080_v43, %v22159_v9  ;;  %v10393_v9 = vld [vmem:[%s23321_s8 + $0x308] sm:$0xff] }
0x13de   : > { %9504 = vmatprep.subr.bf16.mxu1 %v18218_v51  ;;  %9545 = vmatprep.subr.bf16.mxu0 %v18221_v39  ;;  %v8319_v51 = vrot.slane %v22080_v43, %v22162_v12  ;;  %v8327_v39 = vrot.slane %v22080_v43, %v22165_v21  ;;  %v10405_v21 = vld [vmem:[%s23321_s8 + $0x368] sm:$0xff] }
0x13e1   : > { %9505 = vmatpush2.bf16.msra.mxu1 %v18216_v42  ;;  %9546 = vmatpush2.bf16.msra.mxu0 %v18219_v17 }
0x13e2   : > { %9506 = vmatprep.subr.bf16.mxu1 %v18224_v57  ;;  %9547 = vmatprep.subr.bf16.mxu0 %v18227_v53 }
0x13e5   : > { %9507 = vmatpush2.bf16.msra.mxu1 %v18222_v46  ;;  %9548 = vmatpush2.bf16.msra.mxu0 %v18225_v59 }
0x13e6   : > { %9508 = vmatprep.subr.bf16.mxu1 %v18230_v49  ;;  %9549 = vmatprep.subr.bf16.mxu0 %v18233_v36 }
0x13e9   : > { %9509 = vmatpush2.bf16.msra.mxu1 %v18228_v25  ;;  %9550 = vmatpush2.bf16.msra.mxu0 %v18231_v15 }
0x13ea   : > { %9510 = vmatprep.subr.bf16.mxu1 %v18236_v8  ;;  %9551 = vmatprep.subr.bf16.mxu0 %v18239_v10 }
0x13ed   : > { %9511 = vmatpush2.bf16.msra.mxu1 %v18234_v38  ;;  %9552 = vmatpush2.bf16.msra.mxu0 %v18237_v62 }
0x13f0   : > { %9513 = vmatmul.mubr.bf16.vlgmr.msra.gmra.mxu1 %v21940_v52  ;;  %9554 = vmatmul.mubr.bf16.vlgmr.msra.gmra.mxu0 %v21940_v52  ;;  %v8311_v52 = vrot.slane %v22080_v43, %v22083_v41 }
0x13f1   : > { %9722 = vmatprep.mubr.bf16.mxu0 %v23252_v37  ;;  %9732 = vmatprep.mubr.bf16.mxu1 %v23252_v37 }
0x1430   : > { %v9350_v63 = vpop.f32.mrf.mxu1  ;;  %v9391_v50 = vpop.f32.mrf.mxu0 }
0x1431   : > { %v9351_v58 = vadd.f32 %v9350_v63, %v8299_v47  ;;  %v9392_v28 = vadd.f32 %v9391_v50, %v8307_v22 }
0x1432   : > { %v9352_v29 = vpop.f32.mrf.mxu1  ;;  %v9393_v20 = vpop.f32.mrf.mxu0 }
0x1433   : > { %v9562_v34 = vmax.f32 %v9351_v58, 0.0  ;;  %v9353_v23 = vadd.f32 %v9352_v29, %v8303_v19  ;;  %v9394_v2 = vadd.f32 %v9393_v20, %v8311_v52  ;;  %v9564_v32 = vmax.f32 %v9392_v28, 0.0  ;;  %v8293_v58 = vld [vmem:[#allocation47 + $0x8] sm:$0xf] }
0x1434   : > { %v9354_v7 = vpop.f32.mrf.mxu1  ;;  %v9395_v60 = vpop.f32.mrf.mxu0  ;;  %v8331_v28 = vrot.slane %v8293_v58, %v23306_v40  ;;  %v8339_v29 = vrot.slane %v8293_v58, %v23304_v6  ;;  %v8335_v20 = vrot.slane %v8293_v58, %v23305_v30  ;;  %v10409_v30 = vld [vmem:[%s23321_s8 + $0x388] sm:$0xff] }
0x1435   : > { %v9587_v45 = vpack.c.bf16 %v9562_v34, %v9562_v34  ;;  %v9563_v35 = vmax.f32 %v9353_v23, 0.0  ;;  %v9565_v14 = vmax.f32 %v9394_v2, 0.0  ;;  %v9589_v48 = vpack.c.bf16 %v9564_v32, %v9564_v32 }
0x1436   : > { %v9355_v61 = vpop.f32.mrf.mxu1  ;;  %v9396_v24 = vpop.f32.mrf.mxu0  ;;  %v8343_v34 = vrot.slane %v8293_v58, %v22083_v41 }
0x1437   : > { %v9588_v56 = vpack.c.bf16 %v9563_v35, %v9563_v35  ;;  %v9590_v54 = vpack.c.bf16 %v9565_v14, %v9565_v14  ;;  %v9655_v55 = vsel %vm7619_vm3, %v9587_v45, 0  ;;  %v9661_v31 = vsel %vm7619_vm3, %v9589_v48, 0 }
0x1439   : > { %15825 = vmatprep.subr.msk.bf16.mxu0 %vm7619_vm3, %v9588_v56  ;;  %17150 = vmatprep.subr.msk.bf16.mxu1 %vm7619_vm3, %v9588_v56 }
0x143a   : > { %9705 = vmatpush1.bf16.msra.mxu0 %v9655_v55  ;;  %17151 = vmatpush1.bf16.msra.mxu1 %v9655_v55 }
0x143b   : > { %15833 = vmatprep.subr.msk.bf16.mxu0 %vm7619_vm3, %v9590_v54 }
0x143d   : > { %15826 = vmatmul.mubr.msk.bf16.vlgmr.msra.gmra.mxu0 %vm9632_vm5, %v22096_v18  ;;  %15827 = vmatmul.mubr.msk.bf16.vlgmr.msra.gmra.mxu1 %vm9632_vm5, %v22100_v33 }
0x143e   : > { %9806 = vmatpush1.bf16.msra.mxu0 %v9661_v31  ;;  %9823 = vmatprep.mubr.bf16.mxu0 %v23252_v37 }
0x143f   : > { %9742 = vmatprep.mubr.bf16.mxu1 %v23252_v37 }
0x1445   : > { %15834 = vmatmul.mubr.msk.bf16.vlgmr.msra.gmra.mxu0 %vm9632_vm5, %v22096_v18  ;;  %15828 = vmatmul.mubr.msk.bf16.gmra.mxu1 %vm9632_vm5, %v22111_v0 }
0x1446   : > { %9833 = vmatprep.mubr.bf16.mxu0 %v23252_v37  ;;  %9752 = vmatprep.mubr.bf16.mxu1 %v23252_v37 }
0x144d   : > { %15835 = vmatmul.mubr.msk.bf16.gmra.mxu0 %vm9632_vm5, %v22100_v33  ;;  %15829 = vmatmul.mubr.msk.bf16.gmra.mxu1 %vm9632_vm5, %v22120_v4 }
0x144e   : > { %9843 = vmatprep.mubr.bf16.mxu0 %v23252_v37  ;;  %9762 = vmatprep.mubr.bf16.mxu1 %v23252_v37 }
0x1455   : > { %15836 = vmatmul.mubr.msk.bf16.gmra.mxu0 %vm9632_vm5, %v22111_v0  ;;  %15830 = vmatmul.mubr.msk.bf16.gmra.mxu1 %vm9632_vm5, %v22129_v26 }
0x1456   : > { %9853 = vmatprep.mubr.bf16.mxu0 %v23252_v37  ;;  %9772 = vmatprep.mubr.bf16.mxu1 %v23252_v37 }
0x145d   : > { %15837 = vmatmul.mubr.msk.bf16.gmra.mxu0 %vm9632_vm5, %v22120_v4  ;;  %15831 = vmatmul.mubr.msk.bf16.gmra.mxu1 %vm9632_vm5, %v22138_v3 }
0x145e   : > { %9863 = vmatprep.mubr.bf16.mxu0 %v23252_v37  ;;  %9782 = vmatprep.mubr.bf16.mxu1 %v23252_v37 }
0x1465   : > { %15838 = vmatmul.mubr.msk.bf16.gmra.mxu0 %vm9632_vm5, %v22129_v26  ;;  %15832 = vmatmul.mubr.msk.bf16.gmra.mxu1 %vm9632_vm5, %v22147_v16 }
0x1466   : > { %9873 = vmatprep.mubr.bf16.mxu0 %v23252_v37  ;;  %9924 = vmatprep.mubr.bf16.mxu1 %v23252_v37 }
0x146d   : > { %15839 = vmatmul.mubr.msk.bf16.gmra.mxu0 %vm9632_vm5, %v22138_v3 }
0x146e   : > { %9883 = vmatprep.mubr.bf16.mxu0 %v23252_v37 }
0x1470   : > { %v9432_v42 = vpop.f32.mrf.mxu1  ;;  %v9473_v17 = vpop.f32.mrf.mxu0 }
0x1471   : > { %v9433_v57 = vadd.f32 %v9432_v42, %v8315_v13  ;;  %v9474_v53 = vadd.f32 %v9473_v17, %v8323_v1 }
0x1472   : > { %v9434_v46 = vpop.f32.mrf.mxu1  ;;  %v9475_v59 = vpop.f32.mrf.mxu0 }
0x1473   : > { %v9566_v49 = vmax.f32 %v9433_v57, 0.0  ;;  %v9435_v36 = vadd.f32 %v9434_v46, %v8319_v51  ;;  %v9568_v25 = vmax.f32 %v9474_v53, 0.0  ;;  %v9476_v15 = vadd.f32 %v9475_v59, %v8327_v39 }
0x1474   : > { %v9436_v8 = vpop.f32.mrf.mxu1  ;;  %v9477_v10 = vpop.f32.mrf.mxu0 }
0x1475   : > { %15840 = vmatmul.mubr.msk.bf16.gmra.mxu0 %vm9632_vm5, %v22147_v16  ;;  %v9591_v38 = vpack.c.bf16 %v9566_v49, %v9566_v49  ;;  %v9567_v62 = vmax.f32 %v9435_v36, 0.0  ;;  %v9593_v27 = vpack.c.bf16 %v9568_v25, %v9568_v25  ;;  %v9569_v47 = vmax.f32 %v9476_v15, 0.0  ;;  %v10298_v49 = vld [vmem:[%s23321_s8 + $0x10] sm:$0xff] }
0x1476   : > { %10025 = vmatprep.mubr.bf16.mxu0 %v23252_v37  ;;  %v9437_v43 = vpop.f32.mrf.mxu1  ;;  %v9478_v22 = vpop.f32.mrf.mxu0  ;;  %v10310_v25 = vld [vmem:[%s23321_s8 + $0x70] sm:$0xff] }
0x1477   : > { %v9592_v19 = vpack.c.bf16 %v9567_v62, %v9567_v62  ;;  %v9594_v52 = vpack.c.bf16 %v9569_v47, %v9569_v47  ;;  %v9667_v63 = vsel %vm7619_vm3, %v9591_v38, 0  ;;  %v9673_v50 = vsel %vm7619_vm3, %v9593_v27, 0 }
0x1479   : > { %15841 = vmatprep.subr.msk.bf16.mxu1 %vm7619_vm3, %v9592_v19  ;;  %15849 = vmatprep.subr.msk.bf16.mxu0 %vm7619_vm3, %v9594_v52 }
0x147a   : > { %9907 = vmatpush1.bf16.msra.mxu1 %v9667_v63  ;;  %10008 = vmatpush1.bf16.msra.mxu0 %v9673_v50 }
0x147d   : > { %15842 = vmatmul.mubr.msk.bf16.vlgmr.msra.gmra.mxu1 %vm9632_vm5, %v22096_v18  ;;  %15850 = vmatmul.mubr.msk.bf16.vlgmr.msra.gmra.mxu0 %vm9632_vm5, %v22096_v18 }
0x147e   : > { %9934 = vmatprep.mubr.bf16.mxu1 %v23252_v37  ;;  %10035 = vmatprep.mubr.bf16.mxu0 %v23252_v37 }
0x1485   : > { %15843 = vmatmul.mubr.msk.bf16.gmra.mxu1 %vm9632_vm5, %v22100_v33  ;;  %15851 = vmatmul.mubr.msk.bf16.gmra.mxu0 %vm9632_vm5, %v22100_v33 }
0x1486   : > { %9944 = vmatprep.mubr.bf16.mxu1 %v23252_v37  ;;  %10045 = vmatprep.mubr.bf16.mxu0 %v23252_v37 }
0x148d   : > { %15844 = vmatmul.mubr.msk.bf16.gmra.mxu1 %vm9632_vm5, %v22111_v0  ;;  %15852 = vmatmul.mubr.msk.bf16.gmra.mxu0 %vm9632_vm5, %v22111_v0 }
0x148e   : > { %9954 = vmatprep.mubr.bf16.mxu1 %v23252_v37  ;;  %10055 = vmatprep.mubr.bf16.mxu0 %v23252_v37 }
0x1495   : > { %15845 = vmatmul.mubr.msk.bf16.gmra.mxu1 %vm9632_vm5, %v22120_v4  ;;  %15853 = vmatmul.mubr.msk.bf16.gmra.mxu0 %vm9632_vm5, %v22120_v4 }
0x1496   : > { %9964 = vmatprep.mubr.bf16.mxu1 %v23252_v37  ;;  %10065 = vmatprep.mubr.bf16.mxu0 %v23252_v37 }
0x149d   : > { %15846 = vmatmul.mubr.msk.bf16.gmra.mxu1 %vm9632_vm5, %v22129_v26  ;;  %15854 = vmatmul.mubr.msk.bf16.gmra.mxu0 %vm9632_vm5, %v22129_v26 }
0x149e   : > { %9974 = vmatprep.mubr.bf16.mxu1 %v23252_v37  ;;  %10075 = vmatprep.mubr.bf16.mxu0 %v23252_v37 }
0x14a5   : > { %15847 = vmatmul.mubr.msk.bf16.gmra.mxu1 %vm9632_vm5, %v22138_v3  ;;  %15855 = vmatmul.mubr.msk.bf16.gmra.mxu0 %vm9632_vm5, %v22138_v3 }
0x14a6   : > { %9984 = vmatprep.mubr.bf16.mxu1 %v23252_v37  ;;  %10085 = vmatprep.mubr.bf16.mxu0 %v23252_v37 }
0x14ad   : > { %15848 = vmatmul.mubr.msk.bf16.gmra.mxu1 %vm9632_vm5, %v22147_v16  ;;  %15856 = vmatmul.mubr.msk.bf16.gmra.mxu0 %vm9632_vm5, %v22147_v16 }
0x14ae   : > { %10126 = vmatprep.mubr.bf16.mxu1 %v23252_v37  ;;  %10227 = vmatprep.mubr.bf16.mxu0 %v23252_v37 }
0x14b0   : > { %v9514_v23 = vpop.f32.mrf.mxu1  ;;  %v9555_v2 = vpop.f32.mrf.mxu0 }
0x14b1   : > { %v9515_v7 = vadd.f32 %v9514_v23, %v8331_v28  ;;  %v9556_v60 = vadd.f32 %v9555_v2, %v8339_v29 }
0x14b2   : > { %v9516_v45 = vpop.f32.mrf.mxu1  ;;  %v9557_v35 = vpop.f32.mrf.mxu0 }
0x14b3   : > { %v9570_v32 = vmax.f32 %v9515_v7, 0.0  ;;  %v9517_v14 = vadd.f32 %v9516_v45, %v8335_v20  ;;  %v9572_v61 = vmax.f32 %v9556_v60, 0.0  ;;  %v9558_v24 = vadd.f32 %v9557_v35, %v8343_v34 }
0x14b4   : > { %v9518_v56 = vpop.f32.mrf.mxu1  ;;  %v9559_v48 = vpop.f32.mrf.mxu0 }
0x14b5   : > { %v9595_v54 = vpack.c.bf16 %v9570_v32, %v9570_v32  ;;  %v9571_v55 = vmax.f32 %v9517_v14, 0.0  ;;  %v9597_v31 = vpack.c.bf16 %v9572_v61, %v9572_v61  ;;  %v9573_v13 = vmax.f32 %v9558_v24, 0.0 }
0x14b6   : > { %v9519_v1 = vpop.f32.mrf.mxu1  ;;  %v9560_v51 = vpop.f32.mrf.mxu0 }
0x14b7   : > { %v9596_v39 = vpack.c.bf16 %v9571_v55, %v9571_v55  ;;  %v9598_v42 = vpack.c.bf16 %v9573_v13, %v9573_v13  ;;  %v9679_v17 = vsel %vm7619_vm3, %v9595_v54, 0  ;;  %v9685_v57 = vsel %vm7619_vm3, %v9597_v31, 0  ;;  %v10417_v55 = vld [vmem:[%s23321_s8 + $0x3c8] sm:$0xff]  ;;  %v10440_v1 = vld [vmem:[%s23321_s8 + $0x480] sm:$0xf] }
0x14b8   : > { %v10429_v13 = vld [vmem:[%s23321_s8 + $0x428] sm:$0xff] }
0x14b9   : > { %15857 = vmatprep.subr.msk.bf16.mxu1 %vm7619_vm3, %v9596_v39  ;;  %15865 = vmatprep.subr.msk.bf16.mxu0 %vm7619_vm3, %v9598_v42  ;;  %v10441_v42 = vld [vmem:[%s23321_s8 + $0x488] sm:$0xf] }
0x14ba   : > { %10109 = vmatpush1.bf16.msra.mxu1 %v9679_v17  ;;  %10210 = vmatpush1.bf16.msra.mxu0 %v9685_v57  ;;  %v10416_v17 = vld [vmem:[%s23321_s8 + $0x3c0] sm:$0xff] }
0x14bd   : > { %15858 = vmatmul.mubr.msk.bf16.vlgmr.msra.gmra.mxu1 %vm9632_vm5, %v22096_v18  ;;  %15866 = vmatmul.mubr.msk.bf16.vlgmr.msra.gmra.mxu0 %vm9632_vm5, %v22096_v18 }
0x14be   : > { %10136 = vmatprep.mubr.bf16.mxu1 %v23252_v37  ;;  %10237 = vmatprep.mubr.bf16.mxu0 %v23252_v37 }
0x14c5   : > { %15859 = vmatmul.mubr.msk.bf16.gmra.mxu1 %vm9632_vm5, %v22100_v33  ;;  %15867 = vmatmul.mubr.msk.bf16.gmra.mxu0 %vm9632_vm5, %v22100_v33 }
0x14c6   : > { %10146 = vmatprep.mubr.bf16.mxu1 %v23252_v37  ;;  %10247 = vmatprep.mubr.bf16.mxu0 %v23252_v37 }
0x14cd   : > { %15860 = vmatmul.mubr.msk.bf16.gmra.mxu1 %vm9632_vm5, %v22111_v0  ;;  %15868 = vmatmul.mubr.msk.bf16.gmra.mxu0 %vm9632_vm5, %v22111_v0 }
0x14ce   : > { %10156 = vmatprep.mubr.bf16.mxu1 %v23252_v37  ;;  %10257 = vmatprep.mubr.bf16.mxu0 %v23252_v37 }
0x14d5   : > { %15861 = vmatmul.mubr.msk.bf16.gmra.mxu1 %vm9632_vm5, %v22120_v4  ;;  %15869 = vmatmul.mubr.msk.bf16.gmra.mxu0 %vm9632_vm5, %v22120_v4 }
0x14d6   : > { %10166 = vmatprep.mubr.bf16.mxu1 %v23252_v37  ;;  %10267 = vmatprep.mubr.bf16.mxu0 %v23252_v37 }
0x14dd   : > { %15862 = vmatmul.mubr.msk.bf16.gmra.mxu1 %vm9632_vm5, %v22129_v26  ;;  %15870 = vmatmul.mubr.msk.bf16.gmra.mxu0 %vm9632_vm5, %v22129_v26 }
0x14de   : > { %10176 = vmatprep.mubr.bf16.mxu1 %v23252_v37  ;;  %10277 = vmatprep.mubr.bf16.mxu0 %v23252_v37 }
0x14e5   : > { %15863 = vmatmul.mubr.msk.bf16.gmra.mxu1 %vm9632_vm5, %v22138_v3  ;;  %15871 = vmatmul.mubr.msk.bf16.gmra.mxu0 %vm9632_vm5, %v22138_v3 }
0x14e6   : > { %10186 = vmatprep.mubr.bf16.mxu1 %v23252_v37  ;;  %10287 = vmatprep.mubr.bf16.mxu0 %v23252_v37 }
0x14ed   : > { %15864 = vmatmul.mubr.msk.bf16.gmra.mxu1 %vm9632_vm5, %v22147_v16  ;;  %15872 = vmatmul.mubr.msk.bf16.gmra.mxu0 %vm9632_vm5, %v22147_v16 }
0x14ee   : > { %10829 = vmatprep.mubr.bf16.mxu1 %v23252_v37  ;;  %10870 = vmatprep.mubr.bf16.mxu0 %v23252_v37 }
0x14fd   : > { %v22277_v18 = vpop.f32.mrf.mxu0  ;;  %v22279_v33 = vpop.f32.mrf.mxu1 }
0x14ff   : > { %v22281_v0 = vpop.f32.mrf.mxu0  ;;  %v22283_v4 = vpop.f32.mrf.mxu1 }
0x1501   : > { %v22285_v26 = vpop.f32.mrf.mxu0  ;;  %v22287_v3 = vpop.f32.mrf.mxu1 }
0x1503   : > { %v22289_v53 = vpop.f32.mrf.mxu0  ;;  %v22291_v46 = vpop.f32.mrf.mxu1 }
0x1505   : > { %v9825_v16 = vpop.f32.mrf.mxu0  ;;  %v22293_v59 = vpop.f32.mrf.mxu1 }
0x1506   : > { %v22303_v38 = vmul.f32 %v10298_v49, %v9825_v16  ;;  %v10428_v16 = vld [vmem:[%s23321_s8 + $0x420] sm:$0xff] }
0x1507   : > { %v22296_v36 = vpop.f32.mrf.mxu0  ;;  %v22299_v15 = vpop.f32.mrf.mxu1 }
0x1509   : > { %v9829_v8 = vpop.f32.mrf.mxu0  ;;  %v22301_v10 = vpop.f32.mrf.mxu1 }
0x150a   : > { %v22305_v62 = vmul.f32 %v10310_v25, %v9829_v8 }
0x150b   : > { %v22307_v27 = vpop.f32.mrf.mxu0  ;;  %v22309_v47 = vpop.f32.mrf.mxu1 }
0x150d   : > { %v22313_v22 = vpop.f32.mrf.mxu0  ;;  %v22315_v19 = vpop.f32.mrf.mxu1 }
0x150f   : > { %v22317_v52 = vpop.f32.mrf.mxu0  ;;  %v9756_v63 = vpop.f32.mrf.mxu1 }
0x1511   : > { %v22319_v50 = vpop.f32.mrf.mxu0  ;;  %v22321_v58 = vpop.f32.mrf.mxu1 }
0x1513   : > { %v22323_v28 = vpop.f32.mrf.mxu0  ;;  %v9760_v29 = vpop.f32.mrf.mxu1 }
0x1515   : > { %v22325_v20 = vpop.f32.mrf.mxu0  ;;  %v9764_v34 = vpop.f32.mrf.mxu1 }
0x1517   : > { %v22327_v23 = vpop.f32.mrf.mxu0  ;;  %v9766_v2 = vpop.f32.mrf.mxu1 }
0x1519   : > { %v22329_v7 = vpop.f32.mrf.mxu0  ;;  %v9768_v60 = vpop.f32.mrf.mxu1 }
0x151b   : > { %v22331_v45 = vpop.f32.mrf.mxu0  ;;  %v9770_v35 = vpop.f32.mrf.mxu1 }
0x151d   : > { %v22333_v32 = vpop.f32.mrf.mxu0  ;;  %v9774_v14 = vpop.f32.mrf.mxu1 }
0x151e   : > { %v10572_v11 = vmul.f32 %v10416_v17, %v9774_v14  ;;  %v10369_v14 = vld [vmem:[%s23321_s8 + $0x248] sm:$0xff] }
0x151f   : > { %v22335_v61 = vpop.f32.mrf.mxu0  ;;  %v9776_v24 = vpop.f32.mrf.mxu1 }
0x1520   : > { %v10573_v57 = vmul.f32 %v10417_v55, %v9776_v24 }
0x1521   : > { %v22337_v56 = vpop.f32.mrf.mxu0  ;;  %v9778_v48 = vpop.f32.mrf.mxu1 }
0x1522   : > { %v10584_v41 = vmul.f32 %v10428_v16, %v9778_v48  ;;  %v10381_v48 = vld [vmem:[%s23321_s8 + $0x2a8] sm:$0xff]  ;;  %v10368_v16 = vld [vmem:[%s23321_s8 + $0x240] sm:$0xff] }
0x1523   : > { %v22339_v54 = vpop.f32.mrf.mxu0  ;;  %v9780_v31 = vpop.f32.mrf.mxu1 }
0x1524   : > { %v10585_v49 = vmul.f32 %v10429_v13, %v9780_v31  ;;  %v10668_v17 = vpack.c.bf16 %v10584_v41, %v10572_v11  ;;  %v10321_v41 = vld [vmem:[%s23321_s8 + $0xc8] sm:$0xff]  ;;  %v10524_v11 = vmul.f32 %v10368_v16, %v22315_v19  ;;  %v10443_v19 = vld [vmem:[%s23321_s8 + $0x498] sm:$0xf] }
0x1525   : > { %v22344_v51 = vpop.f32.mrf.mxu0  ;;  %v9784_v39 = vpop.f32.mrf.mxu1 }
0x1526   : > { %v10596_v25 = vmul.f32 %v10440_v1, %v9784_v39  ;;  %v10669_v24 = vpack.c.bf16 %v10585_v49, %v10573_v57  ;;  %v10392_v39 = vld [vmem:[%s23321_s8 + $0x300] sm:$0xff]  ;;  %v10345_v49 = vld [vmem:[%s23321_s8 + $0x188] sm:$0xff] }
0x1527   : > { %v22349_v8 = vpop.f32.mrf.mxu0  ;;  %v9786_v43 = vpop.f32.mrf.mxu1 }
0x1528   : > { %v10680_v44 = vpack.c.bf16 %v10596_v25, %v10596_v25  ;;  %v10597_v5 = vmul.f32 %v10441_v42, %v9786_v43  ;;  %v10549_v43 = vmul.f32 %v10393_v9, %v9766_v2  ;;  %v10404_v42 = vld [vmem:[%s23321_s8 + $0x360] sm:$0xff]  ;;  %v10561_v25 = vmul.f32 %v10405_v21, %v9770_v35 }
0x1529   : > { %v22353_v12 = vpop.f32.mrf.mxu0  ;;  %v9788_v6 = vpop.f32.mrf.mxu1  ;;  %v10525_v9 = vmul.f32 %v10369_v14, %v9756_v63  ;;  %v10380_v21 = vld [vmem:[%s23321_s8 + $0x2a0] sm:$0xff]  ;;  %v10537_v2 = vmul.f32 %v10381_v48, %v9760_v29  ;;  %v10333_v29 = vld [vmem:[%s23321_s8 + $0x128] sm:$0xff]  ;;  %v10431_v14 = vld [vmem:[%s23321_s8 + $0x438] sm:$0xff] }
0x152a   : > { %v10762_v55 = vsel %vm7619_vm3, %v10680_v44, 0  ;;  %v10681_v31 = vpack.c.bf16 %v10597_v5, %v10597_v5  ;;  %v10548_v5 = vmul.f32 %v10392_v39, %v9764_v34  ;;  %v10560_v44 = vmul.f32 %v10404_v42, %v9768_v60 }
0x152b   : > { %v22356_v13 = vpop.f32.mrf.mxu0  ;;  %v9789_v1 = vpop.f32.mrf.mxu1  ;;  %v10657_v35 = vpack.c.bf16 %v10561_v25, %v10549_v43  ;;  %v10536_v34 = vmul.f32 %v10380_v21, %v22321_v58  ;;  %v10501_v39 = vmul.f32 %v10345_v49, %v22299_v15  ;;  %v10356_v43 = vld [vmem:[%s23321_s8 + $0x1e0] sm:$0xff]  ;;  %v10645_v25 = vpack.c.bf16 %v10537_v2, %v10525_v9  ;;  %v10419_v2 = vld [vmem:[%s23321_s8 + $0x3d8] sm:$0xff]  ;;  %v10309_v49 = vld [vmem:[%s23321_s8 + $0x68] sm:$0xff] }
0x152c   : > { %15873 = vmatprep.subr.msk.bf16.mxu1 %vm7619_vm3, %v10681_v31  ;;  %v10357_v31 = vld [vmem:[%s23321_s8 + $0x1e8] sm:$0xff]  ;;  %v10656_v60 = vpack.c.bf16 %v10560_v44, %v10548_v5  ;;  %v10296_v58 = vld [vmem:[%s23321_s8] sm:$0xff]  ;;  %v10489_v16 = vmul.f32 %v10333_v29, %v22291_v46  ;;  %v10512_v9 = vmul.f32 %v10356_v43, %v22301_v10  ;;  %v10407_v46 = vld [vmem:[%s23321_s8 + $0x378] sm:$0xff] }
0x152d   : > { %v22363_v6 = vpop.f32.mrf.mxu0  ;;  %10800 = vmatpush1.bf16.msra.mxu1 %v10762_v55  ;;  %v10344_v55 = vld [vmem:[%s23321_s8 + $0x180] sm:$0xff]  ;;  %v10513_v42 = vmul.f32 %v10357_v31, %v22309_v47  ;;  %v10644_v21 = vpack.c.bf16 %v10536_v34, %v10524_v11  ;;  %v10418_v34 = vld [vmem:[%s23321_s8 + $0x3d0] sm:$0xff] }
0x152e   : > { %10801 = vmatprep.subr.bf16.mxu1 %v10669_v24  ;;  %v10442_v24 = vld [vmem:[%s23321_s8 + $0x490] sm:$0xf]  ;;  %v10308_v44 = vld [vmem:[%s23321_s8 + $0x60] sm:$0xff]  ;;  %v10500_v47 = vmul.f32 %v10344_v55, %v22293_v59 }
0x152f   : > { %v9877_v57 = vpop.f32.mrf.mxu0  ;;  %v10320_v15 = vld [vmem:[%s23321_s8 + $0xc0] sm:$0xff]  ;;  %v22396_v10 = vmul.f32 %v10308_v44, %v22285_v26  ;;  %v10383_v26 = vld [vmem:[%s23321_s8 + $0x2b8] sm:$0xff] }
0x1530   : > { %v10332_v31 = vld [vmem:[%s23321_s8 + $0x120] sm:$0xff]  ;;  %v10476_v11 = vmul.f32 %v10320_v15, %v22279_v33  ;;  %v10575_v29 = vmul.f32 %v10419_v2, %v9877_v57  ;;  %v10632_v43 = vpack.c.bf16 %v10512_v9, %v10500_v47  ;;  %v10406_v33 = vld [vmem:[%s23321_s8 + $0x370] sm:$0xff]  ;;  %v10563_v57 = vmul.f32 %v10407_v46, %v22356_v13  ;;  %v10371_v47 = vld [vmem:[%s23321_s8 + $0x258] sm:$0xff] }
0x1531   : > { %v9879_v1 = vpop.f32.mrf.mxu0  ;;  %10802 = vmatpush1.bf16.msra.mxu1 %v10668_v17  ;;  %v10477_v17 = vmul.f32 %v10321_v41, %v22283_v4  ;;  %v10430_v4 = vld [vmem:[%s23321_s8 + $0x430] sm:$0xff]  ;;  %v10300_v15 = vld [vmem:[%s23321_s8 + $0x20] sm:$0xff] }
0x1532   : > { %10803 = vmatprep.subr.bf16.mxu1 %v10657_v35  ;;  %v10394_v9 = vld [vmem:[%s23321_s8 + $0x310] sm:$0xff] }
0x1533   : > { %v9881_v63 = vpop.f32.mrf.mxu0 }
0x1534   : > { %v10587_v41 = vmul.f32 %v10431_v14, %v9881_v63  ;;  %v10297_v63 = vld [vmem:[%s23321_s8 + $0x8] sm:$0xff]  ;;  %v10586_v14 = vmul.f32 %v10430_v4, %v9879_v1 }
0x1535   : > { %v9885_v48 = vpop.f32.mrf.mxu0  ;;  %10804 = vmatpush1.bf16.msra.mxu1 %v10656_v60  ;;  %v10633_v60 = vpack.c.bf16 %v10513_v42, %v10501_v39  ;;  %v10465_v39 = vmul.f32 %v10309_v49, %v22289_v53  ;;  %v10395_v42 = vld [vmem:[%s23321_s8 + $0x318] sm:$0xff]  ;;  %v10562_v49 = vmul.f32 %v10406_v33, %v22353_v12  ;;  %v10527_v12 = vmul.f32 %v10371_v47, %v22335_v61 }
0x1536   : > { %v10598_v5 = vmul.f32 %v10442_v24, %v9885_v48  ;;  %10805 = vmatprep.subr.bf16.mxu1 %v10645_v25  ;;  %v22392_v48 = vmul.f32 %v10296_v58, %v22277_v18  ;;  %v10488_v18 = vmul.f32 %v10332_v31, %v22287_v3  ;;  %v10621_v58 = vpack.c.bf16 %v10489_v16, %v10477_v17  ;;  %v10302_v17 = vld [vmem:[%s23321_s8 + $0x30] sm:$0xff]  ;;  %v10347_v61 = vld [vmem:[%s23321_s8 + $0x198] sm:$0xff] }
0x1537   : > { %v9887_v35 = vpop.f32.mrf.mxu0  ;;  %v10574_v3 = vmul.f32 %v10418_v34, %v22363_v6  ;;  %v10453_v16 = vmul.f32 %v10297_v63, %v22281_v0  ;;  %v10551_v6 = vmul.f32 %v10395_v42, %v22349_v8  ;;  %v10382_v8 = vld [vmem:[%s23321_s8 + $0x2b0] sm:$0xff]  ;;  %v10315_v63 = vld [vmem:[%s23321_s8 + $0x98] sm:$0xff]  ;;  %v10503_v47 = vmul.f32 %v10347_v61, %v22327_v23 }
0x1538   : > { %v10682_v24 = vpack.c.bf16 %v10598_v5, %v10598_v5  ;;  %v10599_v25 = vmul.f32 %v10443_v19, %v9887_v35  ;;  %v10671_v5 = vpack.c.bf16 %v10587_v41, %v10575_v29  ;;  %v10608_v13 = vpack.c.bf16 %v22396_v10, %v22392_v48  ;;  %v10303_v41 = vld [vmem:[%s23321_s8 + $0x38] sm:$0xff]  ;;  %v10313_v29 = vld [vmem:[%s23321_s8 + $0x88] sm:$0xff] }
0x1539   : > { %v9889_v59 = vpop.f32.mrf.mxu0  ;;  %10806 = vmatpush1.bf16.msra.mxu1 %v10644_v21  ;;  %v10301_v21 = vld [vmem:[%s23321_s8 + $0x28] sm:$0xff]  ;;  %v10620_v2 = vpack.c.bf16 %v10488_v18, %v10476_v11  ;;  %v10539_v35 = vmul.f32 %v10383_v26, %v22339_v54  ;;  %v10670_v31 = vpack.c.bf16 %v10586_v14, %v10574_v3  ;;  %v10359_v48 = vld [vmem:[%s23321_s8 + $0x1f8] sm:$0xff]  ;;  %v10659_v46 = vpack.c.bf16 %v10563_v57, %v10551_v6  ;;  %v10358_v57 = vld [vmem:[%s23321_s8 + $0x1f0] sm:$0xff] }
0x153a   : > { %v10683_v55 = vpack.c.bf16 %v10599_v25, %v10599_v25  ;;  %10807 = vmatprep.subr.bf16.mxu1 %v10633_v60  ;;  %v10768_v44 = vsel %vm7619_vm3, %v10682_v24, 0  ;;  %v10312_v60 = vld [vmem:[%s23321_s8 + $0x80] sm:$0xff]  ;;  %v10314_v24 = vld [vmem:[%s23321_s8 + $0x90] sm:$0xff]  ;;  %v10609_v25 = vpack.c.bf16 %v10465_v39, %v10453_v16  ;;  %v10550_v54 = vmul.f32 %v10394_v9, %v22344_v51  ;;  %v10323_v6 = vld [vmem:[%s23321_s8 + $0xd8] sm:$0xff] }
0x153b   : > { %v9890_v19 = vpop.f32.mrf.mxu0  ;;  %v10370_v39 = vld [vmem:[%s23321_s8 + $0x250] sm:$0xff]  ;;  %v10515_v51 = vmul.f32 %v10359_v48, %v22331_v45  ;;  %v10538_v14 = vmul.f32 %v10382_v8, %v22337_v56  ;;  %v10335_v45 = vld [vmem:[%s23321_s8 + $0x138] sm:$0xff] }
0x153c   : > { %15875 = vmatprep.subr.msk.bf16.mxu0 %vm7619_vm3, %v10683_v55  ;;  %v10647_v19 = vpack.c.bf16 %v10539_v35, %v10527_v12  ;;  %v10526_v56 = vmul.f32 %v10370_v39, %v22333_v32  ;;  %v10346_v16 = vld [vmem:[%s23321_s8 + $0x190] sm:$0xff]  ;;  %v10491_v23 = vmul.f32 %v10335_v45, %v22323_v28  ;;  %v10397_v32 = vld [vmem:[%s23321_s8 + $0x328] sm:$0xff]  ;;  %v10399_v9 = vld [vmem:[%s23321_s8 + $0x338] sm:$0xff] }
0x153d   : > { %10841 = vmatpush1.bf16.msra.mxu0 %v10768_v44  ;;  %v9926_v53 = vpop.f32.mrf.mxu1  ;;  %v10027_v1 = vpop.f32.mrf.mxu0  ;;  %10808 = vmatpush1.bf16.msra.mxu1 %v10632_v43 }
0x153e   : > { %10842 = vmatprep.subr.bf16.mxu0 %v10671_v5  ;;  %10809 = vmatprep.subr.bf16.mxu1 %v10621_v58  ;;  %v22426_v59 = vmul.f32 %v10300_v15, %v9926_v53  ;;  %v22428_v10 = vmul.f32 %v10302_v17, %v10027_v1  ;;  %v10658_v58 = vpack.c.bf16 %v10562_v49, %v10550_v54  ;;  %v22461_v17 = vld [vmem:[#allocation49] sm:$0x3]  ;;  %v10334_v49 = vld [vmem:[%s23321_s8 + $0x130] sm:$0xff]  ;;  %v10447_v5 = vld [vmem:[%s23321_s8 + $0x4b8] sm:$0xf] }
0x153f   : > { %v9928_v0 = vpop.f32.mrf.mxu1  ;;  %v10029_v4 = vpop.f32.mrf.mxu0  ;;  %23330 = vst [vmem:[#allocation157_spill] sm:$0xff] %v22461_v17  ;;  %v10490_v28 = vmul.f32 %v10334_v49, %v22319_v50 }
0x1540   : > { %23322 = vst [vmem:[#allocation144_spill] sm:$0xff] %v22426_v59  ;;  %23323 = vst [vmem:[#allocation143_spill] sm:$0xff] %v22428_v10  ;;  %v22432_v11 = vmul.f32 %v10301_v21, %v9928_v0  ;;  %v22439_v43 = vmul.f32 %v10303_v41, %v10029_v4  ;;  %v10514_v21 = vmul.f32 %v10358_v57, %v22329_v7  ;;  %v10311_v0 = vld [vmem:[%s23321_s8 + $0x78] sm:$0xff]  ;;  %v10322_v41 = vld [vmem:[%s23321_s8 + $0xd0] sm:$0xff] }
0x1541   : > { %10843 = vmatpush1.bf16.msra.mxu0 %v10670_v31  ;;  %v9930_v34 = vpop.f32.mrf.mxu1  ;;  %v10031_v55 = vpop.f32.mrf.mxu0  ;;  %10810 = vmatpush1.bf16.msra.mxu1 %v10620_v2  ;;  %v10646_v2 = vpack.c.bf16 %v10538_v14, %v10526_v56  ;;  %v10635_v31 = vpack.c.bf16 %v10515_v51, %v10503_v47  ;;  %v10478_v54 = vmul.f32 %v10322_v41, %v22313_v22 }
0x1542   : > { %23324 = vst [vmem:[#allocation130_spill] sm:$0xff] %v22432_v11  ;;  %10844 = vmatprep.subr.bf16.mxu0 %v10659_v46  ;;  %v22437_v18 = vmul.f32 %v10312_v60, %v9930_v34  ;;  %23326 = vst [vmem:[#allocation142_spill] sm:$0xff] %v22439_v43  ;;  %v22441_v42 = vmul.f32 %v10314_v24, %v10031_v55  ;;  %10811 = vmatprep.subr.bf16.mxu1 %v10609_v25  ;;  %v10299_v25 = vld [vmem:[%s23321_s8 + $0x18] sm:$0xff]  ;;  %v10422_v11 = vld [vmem:[%s23321_s8 + $0x3f0] sm:$0xff] }
0x1543   : > { %v9932_v26 = vpop.f32.mrf.mxu1  ;;  %v10033_v33 = vpop.f32.mrf.mxu0  ;;  %v10502_v60 = vmul.f32 %v10346_v16, %v22325_v20  ;;  %v10479_v24 = vmul.f32 %v10323_v6, %v22317_v52  ;;  %v10467_v20 = vmul.f32 %v10311_v0, %v22307_v27  ;;  %v10455_v52 = vmul.f32 %v10299_v25, %v22296_v36  ;;  %v10421_v25 = vld [vmem:[%s23321_s8 + $0x3e8] sm:$0xff] }
0x1544   : > { %23325 = vst [vmem:[#allocation129_spill] sm:$0xff] %v22437_v18  ;;  %23327 = vst [vmem:[#allocation141_spill] sm:$0xff] %v22441_v42  ;;  %v22449_v44 = vmul.f32 %v10313_v29, %v9932_v26  ;;  %v22453_v53 = vmul.f32 %v10315_v63, %v10033_v33  ;;  %v10622_v55 = vpack.c.bf16 %v10490_v28, %v10478_v54  ;;  %v10423_v54 = vld [vmem:[%s23321_s8 + $0x3f8] sm:$0xff] }
0x1545   : > { %10845 = vmatpush1.bf16.msra.mxu0 %v10658_v58  ;;  %v22457_v15 = vpop.f32.mrf.mxu1  ;;  %v22459_v1 = vpop.f32.mrf.mxu0  ;;  %10812 = vmatpush1.bf16.msra.mxu1 %v10608_v13  ;;  %v10634_v48 = vpack.c.bf16 %v10514_v21, %v10502_v60  ;;  %v10623_v12 = vpack.c.bf16 %v10491_v23, %v10479_v24  ;;  %v10611_v39 = vpack.c.bf16 %v10467_v20, %v10455_v52  ;;  %v10433_v52 = vld [vmem:[%s23321_s8 + $0x448] sm:$0xff] }
0x1546   : > { %23328 = vst [vmem:[#allocation128_spill] sm:$0xff] %v22449_v44  ;;  %23329 = vst [vmem:[#allocation127_spill] sm:$0xff] %v22453_v53  ;;  %10846 = vmatprep.subr.bf16.mxu0 %v10647_v19  ;;  %v23335_v36 = vpack.c.bf16 %v22305_v62, %v22303_v38  ;;  %v10432_v44 = vld [vmem:[%s23321_s8 + $0x440] sm:$0xff] }
0x1547   : > { %v22471_v13 = vpop.f32.mrf.mxu1  ;;  %v22473_v35 = vpop.f32.mrf.mxu0 }
0x1548   : > { %15874 = vmatmul.mubr.msk.bf16.vlgmr.msra.gmra.mxu1 %vm10757_vm6, %v22461_v17 }
0x1549   : > { %10847 = vmatpush1.bf16.msra.mxu0 %v10646_v2  ;;  %v22481_v4 = vpop.f32.mrf.mxu1  ;;  %v22483_v7 = vpop.f32.mrf.mxu0  ;;  %10911 = vmatprep.mubr.bf16.mxu1 %v23252_v37 }
0x154a   : > { %23331 = vst [vmem:[#allocation159_spill] sm:$0xff] %v22481_v4  ;;  %23332 = vst [vmem:[#allocation166_spill] sm:$0xff] %v22483_v7  ;;  %10848 = vmatprep.subr.bf16.mxu0 %v10635_v31  ;;  %v10434_v7 = vld [vmem:[%s23321_s8 + $0x450] sm:$0xff] }
0x154b   : > { %v22490_v8 = vpop.f32.mrf.mxu1  ;;  %v22492_v46 = vpop.f32.mrf.mxu0 }
0x154c   : > { %23333 = vst [vmem:[#allocation165_spill] sm:$0xff] %v22492_v46 }
0x154d   : > { %10849 = vmatpush1.bf16.msra.mxu0 %v10634_v48  ;;  %v22496_v34 = vpop.f32.mrf.mxu1  ;;  %v22498_v29 = vpop.f32.mrf.mxu0  ;;  %v10444_v48 = vld [vmem:[%s23321_s8 + $0x4a0] sm:$0xf] }
0x154e   : > { %10850 = vmatprep.subr.bf16.mxu0 %v10623_v12  ;;  %v10446_v12 = vld [vmem:[%s23321_s8 + $0x4b0] sm:$0xf] }
0x154f   : > { %v22501_v50 = vpop.f32.mrf.mxu1  ;;  %v22503_v63 = vpop.f32.mrf.mxu0 }
0x1551   : > { %10851 = vmatpush1.bf16.msra.mxu0 %v10622_v55  ;;  %v22505_v61 = vpop.f32.mrf.mxu1  ;;  %v22507_v27 = vpop.f32.mrf.mxu0  ;;  %v10435_v55 = vld [vmem:[%s23321_s8 + $0x458] sm:$0xff] }
0x1552   : > { %23334 = vst [vmem:[#allocation164_spill] sm:$0xff] %v22507_v27  ;;  %10852 = vmatprep.subr.bf16.mxu0 %v10611_v39 }
0x1553   : > { %v22509_v22 = vpop.f32.mrf.mxu1  ;;  %v22511_v51 = vpop.f32.mrf.mxu0 }
0x1555   : > { %10853 = vmatpush1.bf16.msra.mxu0 %v23335_v36  ;;  %v22516_v14 = vpop.f32.mrf.mxu1  ;;  %v22518_v19 = vpop.f32.mrf.mxu0  ;;  %v10445_v36 = vld [vmem:[%s23321_s8 + $0x4a8] sm:$0xf] }
0x1557   : > { %v22520_v58 = vpop.f32.mrf.mxu1  ;;  %v22522_v26 = vpop.f32.mrf.mxu0 }
0x1558   : > { %15876 = vmatmul.mubr.msk.bf16.vlgmr.msra.gmra.mxu0 %vm10757_vm6, %v22461_v17  ;;  %v10420_v17 = vld [vmem:[%s23321_s8 + $0x3e0] sm:$0xff] }
0x1559   : > { %v22526_v33 = vpop.f32.mrf.mxu1  ;;  %v22528_v57 = vpop.f32.mrf.mxu0  ;;  %10952 = vmatprep.mubr.bf16.mxu0 %v23252_v37 }
0x155b   : > { %v22531_v45 = vpop.f32.mrf.mxu1  ;;  %v22533_v38 = vpop.f32.mrf.mxu0 }
0x155d   : > { %v22535_v62 = vpop.f32.mrf.mxu1  ;;  %v22537_v56 = vpop.f32.mrf.mxu0 }
0x155f   : > { %v9968_v16 = vpop.f32.mrf.mxu1  ;;  %v10069_v47 = vpop.f32.mrf.mxu0 }
0x1561   : > { %v22539_v6 = vpop.f32.mrf.mxu1  ;;  %v22541_v21 = vpop.f32.mrf.mxu0 }
0x1563   : > { %v9972_v2 = vpop.f32.mrf.mxu1  ;;  %v10073_v49 = vpop.f32.mrf.mxu0 }
0x1565   : > { %v9976_v23 = vpop.f32.mrf.mxu1  ;;  %v10077_v31 = vpop.f32.mrf.mxu0 }
0x1567   : > { %v9978_v0 = vpop.f32.mrf.mxu1  ;;  %v10079_v60 = vpop.f32.mrf.mxu0 }
0x1568   : > { %v10577_v10 = vmul.f32 %v10421_v25, %v9978_v0  ;;  %v10579_v42 = vmul.f32 %v10423_v54, %v10079_v60  ;;  %v22560_v0 = vmul.f32 %v10399_v9, %v10069_v47  ;;  %v10565_v60 = vmul.f32 %v10409_v30, %v9972_v2  ;;  %v10411_v25 = vld [vmem:[%s23321_s8 + $0x398] sm:$0xff]  ;;  %v10408_v2 = vld [vmem:[%s23321_s8 + $0x380] sm:$0xff] }
0x1569   : > { %v9980_v41 = vpop.f32.mrf.mxu1  ;;  %v10081_v24 = vpop.f32.mrf.mxu0  ;;  %v10578_v9 = vmul.f32 %v10422_v11, %v10077_v31  ;;  %v10564_v31 = vmul.f32 %v10408_v2, %v22539_v6 }
0x156a   : > { %v10588_v30 = vmul.f32 %v10432_v44, %v9980_v41  ;;  %v10385_v44 = vld [vmem:[%s23321_s8 + $0x2c8] sm:$0xff] }
0x156b   : > { %v9982_v28 = vpop.f32.mrf.mxu1  ;;  %v10083_v20 = vpop.f32.mrf.mxu0 }
0x156c   : > { %v10589_v59 = vmul.f32 %v10433_v52, %v9982_v28  ;;  %v10591_v18 = vmul.f32 %v10435_v55, %v10083_v20  ;;  %v10375_v55 = vld [vmem:[%s23321_s8 + $0x278] sm:$0xff] }
0x156d   : > { %v9986_v39 = vpop.f32.mrf.mxu1  ;;  %v10087_v3 = vpop.f32.mrf.mxu0 }
0x156e   : > { %v10600_v40 = vmul.f32 %v10444_v48, %v9986_v39  ;;  %v10602_v37 = vmul.f32 %v10446_v12, %v10087_v3  ;;  %v22558_v3 = vmul.f32 %v10397_v32, %v9968_v16  ;;  %v10373_v12 = vld [vmem:[%s23321_s8 + $0x268] sm:$0xff]  ;;  %v10590_v32 = vmul.f32 %v10434_v7, %v10081_v24  ;;  %v10410_v39 = vld [vmem:[%s23321_s8 + $0x390] sm:$0xff]  ;;  %v10324_v7 = vld [vmem:[%s23321_s8 + $0xe0] sm:$0xff] }
0x156f   : > { %v9988_v43 = vpop.f32.mrf.mxu1  ;;  %v10089_v53 = vpop.f32.mrf.mxu0  ;;  %v22574_v11 = vmul.f32 %v10373_v12, %v22520_v58  ;;  %v10372_v58 = vld [vmem:[%s23321_s8 + $0x260] sm:$0xff]  ;;  %v10566_v41 = vmul.f32 %v10410_v39, %v22541_v21  ;;  %v22595_v6 = vmul.f32 %v10324_v7, %v22457_v15  ;;  %v10363_v12 = vld [vmem:[%s23321_s8 + $0x218] sm:$0xff] }
0x1570   : > { %v10684_v46 = vpack.c.bf16 %v10600_v40, %v10600_v40  ;;  %v10601_v4 = vmul.f32 %v10445_v36, %v9988_v43  ;;  %v10686_v27 = vpack.c.bf16 %v10602_v37, %v10602_v37  ;;  %v10603_v48 = vmul.f32 %v10447_v5, %v10089_v53  ;;  %v10396_v37 = vld [vmem:[%s23321_s8 + $0x320] sm:$0xff]  ;;  %v10398_v5 = vld [vmem:[%s23321_s8 + $0x330] sm:$0xff] }
0x1571   : > { %v9990_v28 = vpop.f32.mrf.mxu1  ;;  %v10091_v20 = vpop.f32.mrf.mxu0  ;;  %v10576_v53 = vmul.f32 %v10420_v17, %v9976_v23  ;;  %v10387_v17 = vld [vmem:[%s23321_s8 + $0x2d8] sm:$0xff]  ;;  %v10374_v23 = vld [vmem:[%s23321_s8 + $0x270] sm:$0xff]  ;;  %v10384_v36 = vld [vmem:[%s23321_s8 + $0x2c0] sm:$0xff] }
0x1572   : > { %v10774_v54 = vsel %vm7619_vm3, %v10684_v46, 0  ;;  %v10685_v52 = vpack.c.bf16 %v10601_v4, %v10601_v4  ;;  %v10780_v40 = vsel %vm7619_vm3, %v10686_v27, 0  ;;  %v10687_v43 = vpack.c.bf16 %v10603_v48, %v10603_v48  ;;  %v10361_v20 = vld [vmem:[%s23321_s8 + $0x208] sm:$0xff]  ;;  %v10316_v7 = vld [vmem:[%s23321_s8 + $0xa0] sm:$0xff] }
0x1573   : > { %v9991_v16 = vpop.f32.mrf.mxu1  ;;  %v10092_v47 = vpop.f32.mrf.mxu0  ;;  %v10567_v46 = vmul.f32 %v10411_v25, %v10073_v49  ;;  %v10673_v4 = vpack.c.bf16 %v10589_v59, %v10577_v10  ;;  %v10675_v27 = vpack.c.bf16 %v10591_v18, %v10579_v42  ;;  %v10349_v49 = vld [vmem:[%s23321_s8 + $0x1a8] sm:$0xff]  ;;  %v10531_v59 = vmul.f32 %v10375_v55, %v22522_v26  ;;  %v10351_v42 = vld [vmem:[%s23321_s8 + $0x1b8] sm:$0xff] }
0x1574   : > { %15877 = vmatprep.subr.msk.bf16.mxu1 %vm7619_vm3, %v10685_v52  ;;  %15879 = vmatprep.subr.msk.bf16.mxu0 %vm7619_vm3, %v10687_v43  ;;  %v10552_v10 = vmul.f32 %v10396_v37, %v22535_v62  ;;  %v10554_v18 = vmul.f32 %v10398_v5, %v22537_v56  ;;  %v10672_v24 = vpack.c.bf16 %v10588_v30, %v10576_v53  ;;  %v10386_v56 = vld [vmem:[%s23321_s8 + $0x2d0] sm:$0xff]  ;;  %v10360_v5 = vld [vmem:[%s23321_s8 + $0x200] sm:$0xff] }
0x1575   : > { %10882 = vmatpush1.bf16.msra.mxu1 %v10774_v54  ;;  %10923 = vmatpush1.bf16.msra.mxu0 %v10780_v40  ;;  %v10674_v26 = vpack.c.bf16 %v10590_v32, %v10578_v9  ;;  %v10541_v62 = vmul.f32 %v10385_v44, %v22531_v45  ;;  %v10543_v48 = vmul.f32 %v10387_v17, %v22533_v38  ;;  %v10325_v45 = vld [vmem:[%s23321_s8 + $0xe8] sm:$0xff]  ;;  %v10326_v38 = vld [vmem:[%s23321_s8 + $0xf0] sm:$0xff]  ;;  %v10304_v16 = vld [vmem:[%s23321_s8 + $0x40] sm:$0xff] }
0x1576   : > { %10883 = vmatprep.subr.bf16.mxu1 %v10673_v4  ;;  %10924 = vmatprep.subr.bf16.mxu0 %v10675_v27  ;;  %v10661_v25 = vpack.c.bf16 %v10565_v60, %v22558_v3  ;;  %v10663_v28 = vpack.c.bf16 %v10567_v46, %v22560_v0  ;;  %v22598_v21 = vmul.f32 %v10349_v49, %v22501_v50  ;;  %v10327_v3 = vld [vmem:[%s23321_s8 + $0xf8] sm:$0xff]  ;;  %v10337_v54 = vld [vmem:[%s23321_s8 + $0x148] sm:$0xff]  ;;  %v10348_v50 = vld [vmem:[%s23321_s8 + $0x1a0] sm:$0xff] }
0x1577   : > { %v10507_v60 = vmul.f32 %v10351_v42, %v22503_v63  ;;  %v10528_v0 = vmul.f32 %v10372_v58, %v22516_v14  ;;  %v10530_v15 = vmul.f32 %v10374_v23, %v22518_v19  ;;  %v10350_v52 = vld [vmem:[%s23321_s8 + $0x1b0] sm:$0xff]  ;;  %v10540_v40 = vmul.f32 %v10384_v36, %v22526_v33  ;;  %v23336_v4 = vld [vmem:[#allocation164_spill] sm:$0xff] }
0x1578   : > { %v10542_v43 = vmul.f32 %v10386_v56, %v22528_v57  ;;  %v10660_v55 = vpack.c.bf16 %v10564_v31, %v10552_v10  ;;  %v10662_v37 = vpack.c.bf16 %v10566_v41, %v10554_v18  ;;  %v10517_v63 = vmul.f32 %v10361_v20, %v22509_v22  ;;  %v10362_v14 = vld [vmem:[%s23321_s8 + $0x210] sm:$0xff] }
0x1579   : > { %10884 = vmatpush1.bf16.msra.mxu1 %v10672_v24  ;;  %10925 = vmatpush1.bf16.msra.mxu0 %v10674_v26  ;;  %v10519_v19 = vmul.f32 %v10363_v12, %v22511_v51  ;;  %v10649_v53 = vpack.c.bf16 %v10541_v62, %v22574_v11  ;;  %v10651_v9 = vpack.c.bf16 %v10543_v48, %v10531_v59  ;;  %v10306_v47 = vld [vmem:[%s23321_s8 + $0x50] sm:$0xff]  ;;  %v10336_v51 = vld [vmem:[%s23321_s8 + $0x140] sm:$0xff]  ;;  %v10317_v26 = vld [vmem:[%s23321_s8 + $0xa8] sm:$0xff] }
0x157a   : > { %10885 = vmatprep.subr.bf16.mxu1 %v10661_v25  ;;  %10926 = vmatprep.subr.bf16.mxu0 %v10663_v28  ;;  %v10481_v30 = vmul.f32 %v10325_v45, %v22471_v13  ;;  %v22620_v33 = vmul.f32 %v10326_v38, %v22459_v1  ;;  %v22623_v57 = vmul.f32 %v10327_v3, %v22473_v35  ;;  %v10339_v1 = vld [vmem:[%s23321_s8 + $0x158] sm:$0xff]  ;;  %v10305_v35 = vld [vmem:[%s23321_s8 + $0x48] sm:$0xff]  ;;  %v10318_v59 = vld [vmem:[%s23321_s8 + $0xb0] sm:$0xff] }
0x157b   : > { %v10493_v2 = vmul.f32 %v10337_v54, %v22490_v8  ;;  %v10504_v13 = vmul.f32 %v10348_v50, %v22496_v34  ;;  %v10506_v39 = vmul.f32 %v10350_v52, %v22498_v29  ;;  %v10516_v46 = vmul.f32 %v10360_v5, %v22505_v61  ;;  %v10307_v8 = vld [vmem:[%s23321_s8 + $0x58] sm:$0xff]  ;;  %v10338_v34 = vld [vmem:[%s23321_s8 + $0x150] sm:$0xff] }
0x157c   : > { %v10518_v27 = vmul.f32 %v10362_v14, %v23336_v4  ;;  %v10648_v11 = vpack.c.bf16 %v10540_v40, %v10528_v0  ;;  %v10650_v44 = vpack.c.bf16 %v10542_v43, %v10530_v15  ;;  %v10637_v10 = vpack.c.bf16 %v10517_v63, %v22598_v21  ;;  %v23339_v61 = vld [vmem:[#allocation159_spill] sm:$0xff]  ;;  %v23340_v23 = vld [vmem:[#allocation165_spill] sm:$0xff]  ;;  %v23345_v21 = vld [vmem:[#allocation166_spill] sm:$0xff] }
0x157d   : > { %v10128_v32 = vpop.f32.mrf.mxu1  ;;  %10886 = vmatpush1.bf16.msra.mxu1 %v10660_v55  ;;  %v10229_v22 = vpop.f32.mrf.mxu0  ;;  %10927 = vmatpush1.bf16.msra.mxu0 %v10662_v37  ;;  %v10639_v29 = vpack.c.bf16 %v10519_v19, %v10507_v60  ;;  %v10492_v58 = vmul.f32 %v10336_v51, %v23339_v61  ;;  %v10495_v31 = vmul.f32 %v10339_v1, %v23340_v23  ;;  %v10319_v62 = vld [vmem:[%s23321_s8 + $0xb8] sm:$0xff]  ;;  %v23358_v51 = vld [vmem:[#allocation129_spill] sm:$0xff] }
0x157e   : > { %10887 = vmatprep.subr.bf16.mxu1 %v10649_v53  ;;  %10928 = vmatprep.subr.bf16.mxu0 %v10651_v9  ;;  %v22640_v18 = vmul.f32 %v10304_v16, %v10128_v32  ;;  %v22642_v42 = vmul.f32 %v10306_v47, %v10229_v22  ;;  %v10625_v28 = vpack.c.bf16 %v10493_v2, %v10481_v30  ;;  %v23352_v9 = vld [vmem:[#allocation128_spill] sm:$0xff]  ;;  %v23353_v30 = vld [vmem:[#allocation130_spill] sm:$0xff]  ;;  %v23355_v32 = vld [vmem:[#allocation127_spill] sm:$0xff] }
0x157f   : > { %v10130_v17 = vpop.f32.mrf.mxu1  ;;  %v10231_v49 = vpop.f32.mrf.mxu0  ;;  %v10494_v20 = vmul.f32 %v10338_v34, %v23345_v21  ;;  %v10636_v12 = vpack.c.bf16 %v10516_v46, %v10504_v13  ;;  %v10638_v45 = vpack.c.bf16 %v10518_v27, %v10506_v39  ;;  %v10627_v50 = vpack.c.bf16 %v10495_v31, %v22623_v57  ;;  %v23356_v16 = vld [vmem:[#allocation142_spill] sm:$0xff]  ;;  %v23359_v2 = vld [vmem:[#allocation144_spill] sm:$0xff]  ;;  %v23361_v39 = vld [vmem:[#allocation141_spill] sm:$0xff] }
0x1580   : > { %23337 = vst [vmem:[#allocation163_spill] sm:$0xff] %v22640_v18  ;;  %23338 = vst [vmem:[#allocation162_spill] sm:$0xff] %v22642_v42  ;;  %v22646_v41 = vmul.f32 %v10305_v35, %v10130_v17  ;;  %v22652_v48 = vmul.f32 %v10307_v8, %v10231_v49  ;;  %v10624_v37 = vpack.c.bf16 %v10492_v58, %v22595_v6  ;;  %v23362_v35 = vld [vmem:[#allocation143_spill] sm:$0xff]  ;;  %v10413_v60 = vld [vmem:[%s23321_s8 + $0x3a8] sm:$0xff] }
0x1581   : > { %v10132_v24 = vpop.f32.mrf.mxu1  ;;  %10888 = vmatpush1.bf16.msra.mxu1 %v10648_v11  ;;  %v10233_v36 = vpop.f32.mrf.mxu0  ;;  %10929 = vmatpush1.bf16.msra.mxu0 %v10650_v44  ;;  %v10626_v5 = vpack.c.bf16 %v10494_v20, %v22620_v33  ;;  %v23354_v57 = vpack.c.bf16 %v23352_v9, %v23353_v30  ;;  %v23357_v6 = vpack.c.bf16 %v23355_v32, %v23356_v16  ;;  %v23364_v11 = vld [vmem:[#allocation157_spill] sm:$0xff]  ;;  %v10403_v15 = vld [vmem:[%s23321_s8 + $0x358] sm:$0xff] }
0x1582   : > { %23341 = vst [vmem:[#allocation161_spill] sm:$0xff] %v22646_v41  ;;  %v22650_v56 = vmul.f32 %v10316_v7, %v10132_v24  ;;  %23343 = vst [vmem:[#allocation158_spill] sm:$0xff] %v22652_v48  ;;  %v22654_v25 = vmul.f32 %v10318_v59, %v10233_v36  ;;  %10889 = vmatprep.subr.bf16.mxu1 %v10637_v10  ;;  %10930 = vmatprep.subr.bf16.mxu0 %v10639_v29  ;;  %v23365_v7 = vmov 0   ;;  %v10425_v9 = vld [vmem:[%s23321_s8 + $0x408] sm:$0xff]  ;;  %v10450_v16 = vld [vmem:[%s23321_s8 + $0x4d0] sm:$0xf] }
0x1583   : > { %v10134_v38 = vpop.f32.mrf.mxu1  ;;  %v10235_v3 = vpop.f32.mrf.mxu0  ;;  %v23360_v13 = vpack.c.bf16 %v23358_v51, %v23359_v2  ;;  %v23363_v46 = vpack.c.bf16 %v23361_v39, %v23362_v35  ;;  %v10437_v51 = vld [vmem:[%s23321_s8 + $0x468] sm:$0xff]  ;;  %v10439_v2 = vld [vmem:[%s23321_s8 + $0x478] sm:$0xff]  ;;  %v10426_v41 = vld [vmem:[%s23321_s8 + $0x410] sm:$0xff] }
0x1584   : > { %23342 = vst [vmem:[#allocation160_spill] sm:$0xff] %v22650_v56  ;;  %23344 = vst [vmem:[#allocation156_spill] sm:$0xff] %v22654_v25  ;;  %v22659_v0 = vmul.f32 %v10317_v26, %v10134_v38  ;;  %v22663_v54 = vmul.f32 %v10319_v62, %v10235_v3  ;;  %v10449_v39 = vld [vmem:[%s23321_s8 + $0x4c8] sm:$0xf] }
0x1585   : > { %v22666_v52 = vpop.f32.mrf.mxu1  ;;  %10890 = vmatpush1.bf16.msra.mxu1 %v10636_v12  ;;  %v22668_v40 = vpop.f32.mrf.mxu0  ;;  %10931 = vmatpush1.bf16.msra.mxu0 %v10638_v45 }
0x1586   : > { %23346 = vst [vmem:[#allocation155_spill] sm:$0xff] %v22659_v0  ;;  %23347 = vst [vmem:[#allocation154_spill] sm:$0xff] %v22663_v54  ;;  %10891 = vmatprep.subr.bf16.mxu1 %v10625_v28  ;;  %10932 = vmatprep.subr.bf16.mxu0 %v10627_v50  ;;  %v10436_v0 = vld [vmem:[%s23321_s8 + $0x460] sm:$0xff] }
0x1587   : > { %23348 = vst [vmem:[#allocation153_spill] sm:$0xff] %v22666_v52  ;;  %23349 = vst [vmem:[#allocation136_spill] sm:$0xff] %v22668_v40  ;;  %v22676_v63 = vpop.f32.mrf.mxu1  ;;  %v22678_v14 = vpop.f32.mrf.mxu0 }
0x1589   : > { %v22680_v19 = vpop.f32.mrf.mxu1  ;;  %10892 = vmatpush1.bf16.msra.mxu1 %v10624_v37  ;;  %v22682_v53 = vpop.f32.mrf.mxu0  ;;  %10933 = vmatpush1.bf16.msra.mxu0 %v10626_v5 }
0x158a   : > { %23350 = vst [vmem:[#allocation149_spill] sm:$0xff] %v22680_v19  ;;  %23351 = vst [vmem:[#allocation151_spill] sm:$0xff] %v22682_v53  ;;  %10893 = vmatprep.subr.bf16.mxu1 %v23354_v57  ;;  %10934 = vmatprep.subr.bf16.mxu0 %v23357_v6  ;;  %v10448_v57 = vld [vmem:[%s23321_s8 + $0x4c0] sm:$0xf]  ;;  %v10427_v6 = vld [vmem:[%s23321_s8 + $0x418] sm:$0xff] }
0x158b   : > { %v22690_v33 = vpop.f32.mrf.mxu1  ;;  %v22692_v22 = vpop.f32.mrf.mxu0  ;;  %v10438_v53 = vld [vmem:[%s23321_s8 + $0x470] sm:$0xff] }
0x158d   : > { %v22694_v47 = vpop.f32.mrf.mxu1  ;;  %10894 = vmatpush1.bf16.msra.mxu1 %v23360_v13  ;;  %v22699_v1 = vpop.f32.mrf.mxu0  ;;  %10935 = vmatpush1.bf16.msra.mxu0 %v23363_v46  ;;  %v10451_v46 = vld [vmem:[%s23321_s8 + $0x4d8] sm:$0xf] }
0x158f   : > { %v22704_v4 = vpop.f32.mrf.mxu1  ;;  %v22706_v27 = vpop.f32.mrf.mxu0 }
0x1590   : > { %15878 = vmatmul.mubr.msk.bf16.vlgmr.msra.gmra.mxu1 %vm10757_vm6, %v23364_v11  ;;  %15880 = vmatmul.mubr.msk.bf16.vlgmr.msra.gmra.mxu0 %vm10757_vm6, %v23364_v11  ;;  %v10424_v11 = vld [vmem:[%s23321_s8 + $0x400] sm:$0xff] }
0x1591   : > { %v22712_v44 = vpop.f32.mrf.mxu1  ;;  %v22714_v17 = vpop.f32.mrf.mxu0  ;;  %10993 = vmatprep.mubr.bf16.mxu1 %v23365_v7  ;;  %11034 = vmatprep.mubr.bf16.mxu0 %v23365_v7  ;;  %v10401_v7 = vld [vmem:[%s23321_s8 + $0x348] sm:$0xff] }
0x1593   : > { %v22718_v49 = vpop.f32.mrf.mxu1  ;;  %v22720_v8 = vpop.f32.mrf.mxu0 }
0x1595   : > { %v22722_v59 = vpop.f32.mrf.mxu1  ;;  %v22724_v34 = vpop.f32.mrf.mxu0 }
0x1597   : > { %v22726_v10 = vpop.f32.mrf.mxu1  ;;  %v22728_v29 = vpop.f32.mrf.mxu0 }
0x1599   : > { %v22730_v61 = vpop.f32.mrf.mxu1  ;;  %v22732_v58 = vpop.f32.mrf.mxu0 }
0x159b   : > { %v22734_v23 = vpop.f32.mrf.mxu1  ;;  %v22736_v31 = vpop.f32.mrf.mxu0 }
0x159d   : > { %v22738_v24 = vpop.f32.mrf.mxu1  ;;  %v22740_v26 = vpop.f32.mrf.mxu0 }
0x159f   : > { %v10170_v36 = vpop.f32.mrf.mxu1  ;;  %v10271_v62 = vpop.f32.mrf.mxu0 }
0x15a1   : > { %v22742_v28 = vpop.f32.mrf.mxu1  ;;  %v22744_v21 = vpop.f32.mrf.mxu0 }
0x15a3   : > { %v10174_v20 = vpop.f32.mrf.mxu1  ;;  %v10275_v12 = vpop.f32.mrf.mxu0 }
0x15a5   : > { %v10178_v45 = vpop.f32.mrf.mxu1  ;;  %v10279_v38 = vpop.f32.mrf.mxu0 }
0x15a7   : > { %v10180_v3 = vpop.f32.mrf.mxu1  ;;  %v10281_v50 = vpop.f32.mrf.mxu0 }
0x15a8   : > { %v10581_v42 = vmul.f32 %v10425_v9, %v10180_v3  ;;  %v10583_v25 = vmul.f32 %v10427_v6, %v10281_v50  ;;  %v10569_v3 = vmul.f32 %v10413_v60, %v10174_v20  ;;  %v10415_v9 = vld [vmem:[%s23321_s8 + $0x3b8] sm:$0xff] }
0x15a9   : > { %v10182_v37 = vpop.f32.mrf.mxu1  ;;  %v10283_v5 = vpop.f32.mrf.mxu0 }
0x15aa   : > { %v10592_v60 = vmul.f32 %v10436_v0, %v10182_v37  ;;  %v10391_v0 = vld [vmem:[%s23321_s8 + $0x2f8] sm:$0xff] }
0x15ab   : > { %v10184_v30 = vpop.f32.mrf.mxu1  ;;  %v10285_v32 = vpop.f32.mrf.mxu0 }
0x15ac   : > { %v10593_v18 = vmul.f32 %v10437_v51, %v10184_v30  ;;  %v10595_v56 = vmul.f32 %v10439_v2, %v10285_v32  ;;  %v10377_v32 = vld [vmem:[%s23321_s8 + $0x288] sm:$0xff] }
0x15ad   : > { %v10188_v13 = vpop.f32.mrf.mxu1  ;;  %v10289_v35 = vpop.f32.mrf.mxu0 }
0x15ae   : > { %v10604_v55 = vmul.f32 %v10448_v57, %v10188_v13  ;;  %v10606_v43 = vmul.f32 %v10450_v16, %v10289_v35  ;;  %v10557_v16 = vmul.f32 %v10401_v7, %v10170_v36  ;;  %v10559_v13 = vmul.f32 %v10403_v15, %v10271_v62  ;;  %v10379_v35 = vld [vmem:[%s23321_s8 + $0x298] sm:$0xff] }
0x15af   : > { %v10190_v48 = vpop.f32.mrf.mxu1  ;;  %v10291_v54 = vpop.f32.mrf.mxu0  ;;  %v10582_v15 = vmul.f32 %v10426_v41, %v10279_v38  ;;  %v10594_v36 = vmul.f32 %v10438_v53, %v10283_v5  ;;  %v10571_v7 = vmul.f32 %v10415_v9, %v10275_v12  ;;  %v10389_v41 = vld [vmem:[%s23321_s8 + $0x2e8] sm:$0xff]  ;;  %v10388_v5 = vld [vmem:[%s23321_s8 + $0x2e0] sm:$0xff] }
0x15b0   : > { %v10688_v19 = vpack.c.bf16 %v10604_v55, %v10604_v55  ;;  %v10605_v40 = vmul.f32 %v10449_v39, %v10190_v48  ;;  %v10690_v52 = vpack.c.bf16 %v10606_v43, %v10606_v43  ;;  %v10607_v57 = vmul.f32 %v10451_v46, %v10291_v54  ;;  %v10400_v48 = vld [vmem:[%s23321_s8 + $0x340] sm:$0xff]  ;;  %v10402_v43 = vld [vmem:[%s23321_s8 + $0x350] sm:$0xff]  ;;  %v10353_v53 = vld [vmem:[%s23321_s8 + $0x1c8] sm:$0xff] }
0x15b1   : > { %v10192_v50 = vpop.f32.mrf.mxu1  ;;  %v10293_v30 = vpop.f32.mrf.mxu0  ;;  %v10580_v54 = vmul.f32 %v10424_v11, %v10178_v45  ;;  %v10412_v39 = vld [vmem:[%s23321_s8 + $0x3a0] sm:$0xff]  ;;  %v10414_v46 = vld [vmem:[%s23321_s8 + $0x3b0] sm:$0xff]  ;;  %v10535_v11 = vmul.f32 %v10379_v35, %v22728_v29  ;;  %v10678_v37 = vpack.c.bf16 %v10594_v36, %v10582_v15  ;;  %v10545_v29 = vmul.f32 %v10389_v41, %v22734_v23  ;;  %v10343_v15 = vld [vmem:[%s23321_s8 + $0x178] sm:$0xff] }
0x15b2   : > { %v10786_v6 = vsel %vm7619_vm3, %v10688_v19, 0  ;;  %v10689_v51 = vpack.c.bf16 %v10605_v40, %v10605_v40  ;;  %v10792_v2 = vsel %vm7619_vm3, %v10690_v52, 0  ;;  %v10691_v55 = vpack.c.bf16 %v10607_v57, %v10607_v57  ;;  %v10365_v30 = vld [vmem:[%s23321_s8 + $0x228] sm:$0xff] }
0x15b3   : > { %v10193_v62 = vpop.f32.mrf.mxu1  ;;  %v10294_v20 = vpop.f32.mrf.mxu0  ;;  %v10677_v40 = vpack.c.bf16 %v10593_v18, %v10581_v42  ;;  %v10679_v52 = vpack.c.bf16 %v10595_v56, %v10583_v25  ;;  %v10533_v19 = vmul.f32 %v10377_v32, %v22726_v10  ;;  %v10556_v18 = vmul.f32 %v10400_v48, %v22738_v24  ;;  %v10355_v56 = vld [vmem:[%s23321_s8 + $0x1d8] sm:$0xff]  ;;  %v10376_v25 = vld [vmem:[%s23321_s8 + $0x280] sm:$0xff]  ;;  %v10378_v10 = vld [vmem:[%s23321_s8 + $0x290] sm:$0xff] }
0x15b4   : > { %15881 = vmatprep.subr.msk.bf16.mxu1 %vm7619_vm3, %v10689_v51  ;;  %15883 = vmatprep.subr.msk.bf16.mxu0 %vm7619_vm3, %v10691_v55  ;;  %v10558_v42 = vmul.f32 %v10402_v43, %v22740_v26  ;;  %v10568_v12 = vmul.f32 %v10412_v39, %v22742_v28  ;;  %v10570_v45 = vmul.f32 %v10414_v46, %v22744_v21  ;;  %v10390_v24 = vld [vmem:[%s23321_s8 + $0x2f0] sm:$0xff]  ;;  %v10367_v32 = vld [vmem:[%s23321_s8 + $0x238] sm:$0xff]  ;;  %v10329_v28 = vld [vmem:[%s23321_s8 + $0x108] sm:$0xff] }
0x15b5   : > { %10964 = vmatpush1.bf16.msra.mxu1 %v10786_v6  ;;  %11005 = vmatpush1.bf16.msra.mxu0 %v10792_v2  ;;  %v10676_v38 = vpack.c.bf16 %v10592_v60, %v10580_v54  ;;  %v10547_v26 = vmul.f32 %v10391_v0, %v22736_v31  ;;  %v10665_v57 = vpack.c.bf16 %v10569_v3, %v10557_v16  ;;  %v10331_v31 = vld [vmem:[%s23321_s8 + $0x118] sm:$0xff]  ;;  %v10352_v16 = vld [vmem:[%s23321_s8 + $0x1c0] sm:$0xff]  ;;  %v10341_v54 = vld [vmem:[%s23321_s8 + $0x168] sm:$0xff] }
0x15b6   : > { %10965 = vmatprep.subr.bf16.mxu1 %v10677_v40  ;;  %11006 = vmatprep.subr.bf16.mxu0 %v10679_v52  ;;  %v10667_v9 = vpack.c.bf16 %v10571_v7, %v10559_v13  ;;  %v10509_v50 = vmul.f32 %v10353_v53, %v22704_v4  ;;  %v10511_v21 = vmul.f32 %v10355_v56, %v22706_v27  ;;  %v10354_v4 = vld [vmem:[%s23321_s8 + $0x1d0] sm:$0xff]  ;;  %v10364_v55 = vld [vmem:[%s23321_s8 + $0x220] sm:$0xff] }
0x15b7   : > { %v10532_v23 = vmul.f32 %v10376_v25, %v22722_v59  ;;  %v10534_v6 = vmul.f32 %v10378_v10, %v22724_v34  ;;  %v10544_v13 = vmul.f32 %v10388_v5, %v22730_v61  ;;  %v10546_v3 = vmul.f32 %v10390_v24, %v22732_v58  ;;  %v10366_v59 = vld [vmem:[%s23321_s8 + $0x230] sm:$0xff]  ;;  %v10328_v60 = vld [vmem:[%s23321_s8 + $0x100] sm:$0xff] }
0x15b8   : > { %v10664_v51 = vpack.c.bf16 %v10568_v12, %v10556_v18  ;;  %v10666_v2 = vpack.c.bf16 %v10570_v45, %v10558_v42  ;;  %v10521_v27 = vmul.f32 %v10365_v30, %v22718_v49  ;;  %v10523_v34 = vmul.f32 %v10367_v32, %v22720_v8  ;;  %v10330_v8 = vld [vmem:[%s23321_s8 + $0x110] sm:$0xff]  ;;  %v10340_v39 = vld [vmem:[%s23321_s8 + $0x160] sm:$0xff] }
0x15b9   : > { %10966 = vmatpush1.bf16.msra.mxu1 %v10676_v38  ;;  %11007 = vmatpush1.bf16.msra.mxu0 %v10678_v37  ;;  %v10653_v35 = vpack.c.bf16 %v10545_v29, %v10533_v19  ;;  %v10655_v48 = vpack.c.bf16 %v10547_v26, %v10535_v11  ;;  %v10485_v43 = vmul.f32 %v10329_v28, %v22676_v63  ;;  %v10342_v7 = vld [vmem:[%s23321_s8 + $0x170] sm:$0xff]  ;;  %v23367_v19 = vld [vmem:[#allocation136_spill] sm:$0xff]  ;;  %v23369_v0 = vld [vmem:[#allocation151_spill] sm:$0xff] }
0x15ba   : > { %10967 = vmatprep.subr.bf16.mxu1 %v10665_v57  ;;  %11008 = vmatprep.subr.bf16.mxu0 %v10667_v9  ;;  %v10487_v61 = vmul.f32 %v10331_v31, %v22678_v14  ;;  %v10508_v58 = vmul.f32 %v10352_v16, %v22694_v47  ;;  %v10510_v49 = vmul.f32 %v10354_v4, %v22699_v1  ;;  %v23366_v1 = vld [vmem:[#allocation153_spill] sm:$0xff]  ;;  %v23370_v25 = vld [vmem:[#allocation155_spill] sm:$0xff]  ;;  %v23373_v45 = vld [vmem:[#allocation154_spill] sm:$0xff] }
0x15bb   : > { %v10520_v36 = vmul.f32 %v10364_v55, %v22712_v44  ;;  %v10522_v63 = vmul.f32 %v10366_v59, %v22714_v17  ;;  %v10652_v62 = vpack.c.bf16 %v10544_v13, %v10532_v23  ;;  %v10654_v20 = vpack.c.bf16 %v10546_v3, %v10534_v6  ;;  %v23368_v44 = vld [vmem:[#allocation149_spill] sm:$0xff]  ;;  %v23374_v38 = vld [vmem:[#allocation158_spill] sm:$0xff]  ;;  %v23376_v24 = vld [vmem:[#allocation160_spill] sm:$0xff] }
0x15bc   : > { %v10497_v46 = vmul.f32 %v10341_v54, %v22690_v33  ;;  %v10499_v14 = vmul.f32 %v10343_v15, %v22692_v22  ;;  %v10641_v40 = vpack.c.bf16 %v10521_v27, %v10509_v50  ;;  %v10643_v47 = vpack.c.bf16 %v10523_v34, %v10511_v21  ;;  %v23371_v10 = vld [vmem:[#allocation161_spill] sm:$0xff]  ;;  %v23377_v26 = vld [vmem:[#allocation163_spill] sm:$0xff]  ;;  %v23379_v9 = vld [vmem:[#allocation156_spill] sm:$0xff] }
0x15bd   : > { %10968 = vmatpush1.bf16.msra.mxu1 %v10664_v51  ;;  %11009 = vmatpush1.bf16.msra.mxu0 %v10666_v2  ;;  %v10484_v52 = vmul.f32 %v10328_v60, %v23366_v1  ;;  %v10486_v41 = vmul.f32 %v10330_v8, %v23367_v19  ;;  %v10496_v17 = vmul.f32 %v10340_v39, %v23368_v44  ;;  %v18249_v5 = vld [vmem:[#allocation52 + $0x74] ss:$8 sps:$4 sm:$0xff]   ;;  %v18247_v32 = vld [vmem:[#allocation52 + $0x70] ss:$8 sps:$4 sm:$0xff]   ;;  %v18255_v21 = vld [vmem:[#allocation52 + $0x64] ss:$8 sps:$4 sm:$0xff]  }
0x15be   : > { %10969 = vmatprep.subr.bf16.mxu1 %v10653_v35  ;;  %11010 = vmatprep.subr.bf16.mxu0 %v10655_v48  ;;  %v10498_v53 = vmul.f32 %v10342_v7, %v23369_v0  ;;  %v10640_v11 = vpack.c.bf16 %v10520_v36, %v10508_v58  ;;  %v10642_v18 = vpack.c.bf16 %v10522_v63, %v10510_v49  ;;  %v18252_v29 = vld [vmem:[#allocation52 + $0x174] ss:$8 sps:$4 sm:$0xff]   ;;  %v18250_v28 = vld [vmem:[#allocation52 + $0x170] ss:$8 sps:$4 sm:$0xff]   ;;  %v18258_v23 = vld [vmem:[#allocation52 + $0x164] ss:$8 sps:$4 sm:$0xff]  }
0x15bf   : > { %v10629_v33 = vpack.c.bf16 %v10497_v46, %v10485_v43  ;;  %v10631_v42 = vpack.c.bf16 %v10499_v14, %v10487_v61  ;;  %v10628_v22 = vpack.c.bf16 %v10496_v17, %v10484_v52  ;;  %v23372_v12 = vpack.c.bf16 %v23370_v25, %v23371_v10  ;;  %v23380_v50 = vld [vmem:[#allocation162_spill] sm:$0xff]  ;;  %v23382_v6 = vld [vmem:[#allocation157_spill] sm:$0xff] }
0x15c0   : > { %v10630_v56 = vpack.c.bf16 %v10498_v53, %v10486_v41  ;;  %v23375_v37 = vpack.c.bf16 %v23373_v45, %v23374_v38  ;;  %v23378_v57 = vpack.c.bf16 %v23376_v24, %v23377_v26  ;;  %v23381_v30 = vpack.c.bf16 %v23379_v9, %v23380_v50  ;;  %v18253_v31 = vld [vmem:[#allocation52 + $0x60] ss:$8 sps:$4 sm:$0xff]   ;;  %v18261_v4 = vld [vmem:[#allocation52 + $0x54] ss:$8 sps:$4 sm:$0xff]   ;;  %v18259_v3 = vld [vmem:[#allocation52 + $0x50] ss:$8 sps:$4 sm:$0xff]  }
0x15c1   : > { %10970 = vmatpush1.bf16.msra.mxu1 %v10652_v62  ;;  %11011 = vmatpush1.bf16.msra.mxu0 %v10654_v20  ;;  %v18256_v16 = vld [vmem:[#allocation52 + $0x160] ss:$8 sps:$4 sm:$0xff]   ;;  %v18264_v13 = vld [vmem:[#allocation52 + $0x154] ss:$8 sps:$4 sm:$0xff]   ;;  %v18262_v51 = vld [vmem:[#allocation52 + $0x150] ss:$8 sps:$4 sm:$0xff]  }
0x15c2   : > { %10971 = vmatprep.subr.bf16.mxu1 %v10641_v40  ;;  %11012 = vmatprep.subr.bf16.mxu0 %v10643_v47  ;;  %v18267_v2 = vld [vmem:[#allocation52 + $0x44] ss:$8 sps:$4 sm:$0xff]   ;;  %v18265_v27 = vld [vmem:[#allocation52 + $0x40] ss:$8 sps:$4 sm:$0xff]   ;;  %v18273_v34 = vld [vmem:[#allocation52 + $0x34] ss:$8 sps:$4 sm:$0xff]  }
0x15c3   : > { %v18270_v55 = vld [vmem:[#allocation52 + $0x144] ss:$8 sps:$4 sm:$0xff]   ;;  %v18268_v59 = vld [vmem:[#allocation52 + $0x140] ss:$8 sps:$4 sm:$0xff]   ;;  %v18276_v35 = vld [vmem:[#allocation52 + $0x134] ss:$8 sps:$4 sm:$0xff]  }
0x15c4   : > { %v18271_v48 = vld [vmem:[#allocation52 + $0x30] ss:$8 sps:$4 sm:$0xff]   ;;  %v18279_v54 = vld [vmem:[#allocation52 + $0x24] ss:$8 sps:$4 sm:$0xff]   ;;  %v18277_v61 = vld [vmem:[#allocation52 + $0x20] ss:$8 sps:$4 sm:$0xff]  }
0x15c5   : > { %10972 = vmatpush1.bf16.msra.mxu1 %v10640_v11  ;;  %11013 = vmatpush1.bf16.msra.mxu0 %v10642_v18  ;;  %v18274_v43 = vld [vmem:[#allocation52 + $0x130] ss:$8 sps:$4 sm:$0xff]   ;;  %v18282_v15 = vld [vmem:[#allocation52 + $0x124] ss:$8 sps:$4 sm:$0xff]   ;;  %v18280_v58 = vld [vmem:[#allocation52 + $0x120] ss:$8 sps:$4 sm:$0xff]  }
0x15c6   : > { %10973 = vmatprep.subr.bf16.mxu1 %v10629_v33  ;;  %11014 = vmatprep.subr.bf16.mxu0 %v10631_v42  ;;  %v18285_v49 = vld [vmem:[#allocation52 + $0x14] ss:$8 sps:$4 sm:$0xff]   ;;  %v18283_v8 = vld [vmem:[#allocation52 + $0x10] ss:$8 sps:$4 sm:$0xff]   ;;  %v18291_v63 = vld [vmem:[#allocation52 + $0x4] ss:$8 sps:$4 sm:$0xff]  }
0x15c7   : > { %v18288_v60 = vld [vmem:[#allocation52 + $0x114] ss:$8 sps:$4 sm:$0xff]   ;;  %v18286_v36 = vld [vmem:[#allocation52 + $0x110] ss:$8 sps:$4 sm:$0xff]   ;;  %v18294_v62 = vld [vmem:[#allocation52 + $0x104] ss:$8 sps:$4 sm:$0xff]  }
0x15c8   : > { %v18289_v20 = vld [vmem:[#allocation52] ss:$8 sps:$4 sm:$0xff]   ;;  %v18297_v46 = vld [vmem:[#allocation52 + $0xf4] ss:$8 sps:$4 sm:$0xff]   ;;  %v18295_v14 = vld [vmem:[#allocation52 + $0xf0] ss:$8 sps:$4 sm:$0xff]  }
0x15c9   : > { %10974 = vmatpush1.bf16.msra.mxu1 %v10628_v22  ;;  %11015 = vmatpush1.bf16.msra.mxu0 %v10630_v56  ;;  %v18292_v39 = vld [vmem:[#allocation52 + $0x100] ss:$8 sps:$4 sm:$0xff]   ;;  %v18300_v7 = vld [vmem:[#allocation52 + $0x1f4] ss:$8 sps:$4 sm:$0xff]   ;;  %v18298_v40 = vld [vmem:[#allocation52 + $0x1f0] ss:$8 sps:$4 sm:$0xff]  }
0x15ca   : > { %10975 = vmatprep.subr.bf16.mxu1 %v23372_v12  ;;  %11016 = vmatprep.subr.bf16.mxu0 %v23375_v37  ;;  %v18303_v47 = vld [vmem:[#allocation52 + $0xe4] ss:$8 sps:$4 sm:$0xff]   ;;  %v18301_v52 = vld [vmem:[#allocation52 + $0xe0] ss:$8 sps:$4 sm:$0xff]   ;;  %v18309_v41 = vld [vmem:[#allocation52 + $0xd4] ss:$8 sps:$4 sm:$0xff]  }
0x15cb   : > { %v18306_v1 = vld [vmem:[#allocation52 + $0x1e4] ss:$8 sps:$4 sm:$0xff]   ;;  %v18304_v19 = vld [vmem:[#allocation52 + $0x1e0] ss:$8 sps:$4 sm:$0xff]   ;;  %v18312_v44 = vld [vmem:[#allocation52 + $0x1d4] ss:$8 sps:$4 sm:$0xff]  }
0x15cc   : > { %v18307_v17 = vld [vmem:[#allocation52 + $0xd0] ss:$8 sps:$4 sm:$0xff]   ;;  %v18315_v53 = vld [vmem:[#allocation52 + $0xc4] ss:$8 sps:$4 sm:$0xff]   ;;  %v18313_v18 = vld [vmem:[#allocation52 + $0xc0] ss:$8 sps:$4 sm:$0xff]  }
0x15cd   : > { %10976 = vmatpush1.bf16.msra.mxu1 %v23378_v57  ;;  %11017 = vmatpush1.bf16.msra.mxu0 %v23381_v30  ;;  %v18310_v0 = vld [vmem:[#allocation52 + $0x1d0] ss:$8 sps:$4 sm:$0xff]   ;;  %v18318_v11 = vld [vmem:[#allocation52 + $0x1c4] ss:$8 sps:$4 sm:$0xff]   ;;  %v18316_v33 = vld [vmem:[#allocation52 + $0x1c0] ss:$8 sps:$4 sm:$0xff]  }
0x15ce   : > { %12231 = vmatprep.subr.bf16.mxu1 %v18249_v5  ;;  %12272 = vmatprep.subr.bf16.mxu0 %v18252_v29  ;;  %v18321_v42 = vld [vmem:[#allocation52 + $0xb4] ss:$8 sps:$4 sm:$0xff]   ;;  %v18319_v56 = vld [vmem:[#allocation52 + $0xb0] ss:$8 sps:$4 sm:$0xff]   ;;  %v18327_v10 = vld [vmem:[#allocation52 + $0xa4] ss:$8 sps:$4 sm:$0xff]  }
0x15cf   : > { %v18324_v22 = vld [vmem:[#allocation52 + $0x1b4] ss:$8 sps:$4 sm:$0xff]   ;;  %v18322_v25 = vld [vmem:[#allocation52 + $0x1b0] ss:$8 sps:$4 sm:$0xff]   ;;  %v18330_v12 = vld [vmem:[#allocation52 + $0x1a4] ss:$8 sps:$4 sm:$0xff]  }
0x15d0   : > { %15882 = vmatmul.mubr.msk.bf16.vlgmr.msra.gmra.mxu1 %vm10757_vm6, %v23382_v6  ;;  %15884 = vmatmul.mubr.msk.bf16.vlgmr.msra.gmra.mxu0 %vm10757_vm6, %v23382_v6  ;;  %v18325_v45 = vld [vmem:[#allocation52 + $0xa0] ss:$8 sps:$4 sm:$0xff]   ;;  %v22838_v37 = vld [vmem:[#allocation50] sm:$0xff]  ;;  %v18339_v50 = vld [vmem:[#allocation52 + $0x84] ss:$8 sps:$4 sm:$0xff]  }
0x15d1   : > { %12232 = vmatpush1.bf16.msra.mxu1 %v18247_v32  ;;  %12273 = vmatpush1.bf16.msra.mxu0 %v18250_v28  ;;  %v18328_v38 = vld [vmem:[#allocation52 + $0x1a0] ss:$8 sps:$4 sm:$0xff]   ;;  %v18333_v5 = vld [vmem:[#allocation52 + $0x94] ss:$8 sps:$4 sm:$0xff]   ;;  %v18331_v57 = vld [vmem:[#allocation52 + $0x90] ss:$8 sps:$4 sm:$0xff]  }
0x15d2   : > { %12233 = vmatprep.subr.bf16.mxu1 %v18255_v21  ;;  %12274 = vmatprep.subr.bf16.mxu0 %v18258_v23  ;;  %v18336_v29 = vld [vmem:[#allocation52 + $0x194] ss:$8 sps:$4 sm:$0xff]   ;;  %v18334_v9 = vld [vmem:[#allocation52 + $0x190] ss:$8 sps:$4 sm:$0xff]   ;;  %v18342_v30 = vld [vmem:[#allocation52 + $0x184] ss:$8 sps:$4 sm:$0xff]  }
0x15d3   : > { %v23383_v24 = vld [vmem:[#allocation124_spill] sm:$0xff]  ;;  %v23384_v32 = vld [vmem:[#allocation125_spill] sm:$0xff]  ;;  %v18337_v6 = vld [vmem:[#allocation52 + $0x80] ss:$8 sps:$4 sm:$0xff]  }
0x15d4   : > { %v10700_v26 = vrot.slane %v22838_v37, %v23383_v24  ;;  %v10704_v28 = vrot.slane %v22838_v37, %v23384_v32 }
0x15d5   : > { %12234 = vmatpush1.bf16.msra.mxu1 %v18253_v31  ;;  %12275 = vmatpush1.bf16.msra.mxu0 %v18256_v16  ;;  %v18340_v31 = vld [vmem:[#allocation52 + $0x180] ss:$8 sps:$4 sm:$0xff]  }
0x15d6   : > { %12235 = vmatprep.subr.bf16.mxu1 %v18261_v4  ;;  %12276 = vmatprep.subr.bf16.mxu0 %v18264_v13  ;;  %v18345_v4 = vld [vmem:[#allocation52 + $0x274] ss:$8 sps:$4 sm:$0xff]  }
0x15d7   : > { %v18348_v13 = vld [vmem:[#allocation52 + $0x374] ss:$8 sps:$4 sm:$0xff]  }
0x15d9   : > { %12236 = vmatpush1.bf16.msra.mxu1 %v18259_v3  ;;  %12277 = vmatpush1.bf16.msra.mxu0 %v18262_v51 }
0x15da   : > { %12237 = vmatprep.subr.bf16.mxu1 %v18267_v2  ;;  %12278 = vmatprep.subr.bf16.mxu0 %v18270_v55 }
0x15dd   : > { %12238 = vmatpush1.bf16.msra.mxu1 %v18265_v27  ;;  %12279 = vmatpush1.bf16.msra.mxu0 %v18268_v59 }
0x15de   : > { %12239 = vmatprep.subr.bf16.mxu1 %v18273_v34  ;;  %12280 = vmatprep.subr.bf16.mxu0 %v18276_v35  ;;  %v18343_v35 = vld [vmem:[#allocation52 + $0x270] ss:$8 sps:$4 sm:$0xff]  }
0x15e1   : > { %12240 = vmatpush1.bf16.msra.mxu1 %v18271_v48  ;;  %12281 = vmatpush1.bf16.msra.mxu0 %v18274_v43  ;;  %v18351_v48 = vld [vmem:[#allocation52 + $0x264] ss:$8 sps:$4 sm:$0xff]   ;;  %v18349_v43 = vld [vmem:[#allocation52 + $0x260] ss:$8 sps:$4 sm:$0xff]  }
0x15e2   : > { %12241 = vmatprep.subr.bf16.mxu1 %v18279_v54  ;;  %12282 = vmatprep.subr.bf16.mxu0 %v18282_v15  ;;  %v18357_v54 = vld [vmem:[#allocation52 + $0x254] ss:$8 sps:$4 sm:$0xff]  }
0x15e3   : > { %v23385_v15 = vld [vmem:[#allocation126_spill] sm:$0xff] }
0x15e5   : > { %12242 = vmatpush1.bf16.msra.mxu1 %v18277_v61  ;;  %12283 = vmatpush1.bf16.msra.mxu0 %v18280_v58  ;;  %v10708_v61 = vrot.slane %v22838_v37, %v23385_v15  ;;  %v23386_v58 = vld [vmem:[#allocation133_spill] sm:$0xff] }
0x15e6   : > { %12243 = vmatprep.subr.bf16.mxu1 %v18285_v49  ;;  %12284 = vmatprep.subr.bf16.mxu0 %v18288_v60  ;;  %v10712_v49 = vrot.slane %v22838_v37, %v23386_v58  ;;  %v18355_v60 = vld [vmem:[#allocation52 + $0x250] ss:$8 sps:$4 sm:$0xff]  }
0x15e9   : > { %12244 = vmatpush1.bf16.msra.mxu1 %v18283_v8  ;;  %12285 = vmatpush1.bf16.msra.mxu0 %v18286_v36  ;;  %v18363_v36 = vld [vmem:[#allocation52 + $0x244] ss:$8 sps:$4 sm:$0xff]  }
0x15ea   : > { %12245 = vmatprep.subr.bf16.mxu1 %v18291_v63  ;;  %12286 = vmatprep.subr.bf16.mxu0 %v18294_v62 }
0x15ed   : > { %12246 = vmatpush1.bf16.msra.mxu1 %v18289_v20  ;;  %12287 = vmatpush1.bf16.msra.mxu0 %v18292_v39  ;;  %v18361_v39 = vld [vmem:[#allocation52 + $0x240] ss:$8 sps:$4 sm:$0xff]  }
0x15ee   : > { %12247 = vmatprep.subr.bf16.mxu1 %v18297_v46  ;;  %12288 = vmatprep.subr.bf16.mxu0 %v18300_v7  ;;  %v18369_v7 = vld [vmem:[#allocation52 + $0x234] ss:$8 sps:$4 sm:$0xff]  }
0x15f1   : > { %12248 = vmatpush2.bf16.msra.mxu1 %v18295_v14  ;;  %12289 = vmatpush2.bf16.msra.mxu0 %v18298_v40 }
0x15f2   : > { %12249 = vmatprep.subr.bf16.mxu1 %v18303_v47  ;;  %12290 = vmatprep.subr.bf16.mxu0 %v18306_v1 }
0x15f5   : > { %12250 = vmatpush2.bf16.msra.mxu1 %v18301_v52  ;;  %12291 = vmatpush2.bf16.msra.mxu0 %v18304_v19  ;;  %v18346_v52 = vld [vmem:[#allocation52 + $0x370] ss:$8 sps:$4 sm:$0xff]  }
0x15f6   : > { %12251 = vmatprep.subr.bf16.mxu1 %v18309_v41  ;;  %12292 = vmatprep.subr.bf16.mxu0 %v18312_v44  ;;  %v18367_v19 = vld [vmem:[#allocation52 + $0x230] ss:$8 sps:$4 sm:$0xff]   ;;  %v18354_v44 = vld [vmem:[#allocation52 + $0x364] ss:$8 sps:$4 sm:$0xff]  }
0x15f9   : > { %12252 = vmatpush2.bf16.msra.mxu1 %v18307_v17  ;;  %12293 = vmatpush2.bf16.msra.mxu0 %v18310_v0  ;;  %v18375_v17 = vld [vmem:[#allocation52 + $0x224] ss:$8 sps:$4 sm:$0xff]   ;;  %v18352_v0 = vld [vmem:[#allocation52 + $0x360] ss:$8 sps:$4 sm:$0xff]  }
0x15fa   : > { %12253 = vmatprep.subr.bf16.mxu1 %v18315_v53  ;;  %12294 = vmatprep.subr.bf16.mxu0 %v18318_v11  ;;  %v18373_v53 = vld [vmem:[#allocation52 + $0x220] ss:$8 sps:$4 sm:$0xff]   ;;  %v18360_v11 = vld [vmem:[#allocation52 + $0x354] ss:$8 sps:$4 sm:$0xff]  }
0x15fd   : > { %12254 = vmatpush2.bf16.msra.mxu1 %v18313_v18  ;;  %12295 = vmatpush2.bf16.msra.mxu0 %v18316_v33  ;;  %v18381_v18 = vld [vmem:[#allocation52 + $0x214] ss:$8 sps:$4 sm:$0xff]   ;;  %v18358_v33 = vld [vmem:[#allocation52 + $0x350] ss:$8 sps:$4 sm:$0xff]  }
0x15fe   : > { %12255 = vmatprep.subr.bf16.mxu1 %v18321_v42  ;;  %12296 = vmatprep.subr.bf16.mxu0 %v18324_v22  ;;  %v18379_v42 = vld [vmem:[#allocation52 + $0x210] ss:$8 sps:$4 sm:$0xff]   ;;  %v18366_v22 = vld [vmem:[#allocation52 + $0x344] ss:$8 sps:$4 sm:$0xff]  }
0x1601   : > { %12256 = vmatpush2.bf16.msra.mxu1 %v18319_v56  ;;  %12297 = vmatpush2.bf16.msra.mxu0 %v18322_v25  ;;  %v18387_v56 = vld [vmem:[#allocation52 + $0x204] ss:$8 sps:$4 sm:$0xff]   ;;  %v18364_v25 = vld [vmem:[#allocation52 + $0x340] ss:$8 sps:$4 sm:$0xff]  }
0x1602   : > { %12257 = vmatprep.subr.bf16.mxu1 %v18327_v10  ;;  %12298 = vmatprep.subr.bf16.mxu0 %v18330_v12  ;;  %v18385_v10 = vld [vmem:[#allocation52 + $0x200] ss:$8 sps:$4 sm:$0xff]   ;;  %v18372_v12 = vld [vmem:[#allocation52 + $0x334] ss:$8 sps:$4 sm:$0xff]  }
0x1605   : > { %12258 = vmatpush2.bf16.msra.mxu1 %v18325_v45  ;;  %12299 = vmatpush2.bf16.msra.mxu0 %v18328_v38  ;;  %v18393_v45 = vld [vmem:[#allocation52 + $0x2f4] ss:$8 sps:$4 sm:$0xff]   ;;  %v18370_v38 = vld [vmem:[#allocation52 + $0x330] ss:$8 sps:$4 sm:$0xff]  }
0x1606   : > { %12259 = vmatprep.subr.bf16.mxu1 %v18333_v5  ;;  %12300 = vmatprep.subr.bf16.mxu0 %v18336_v29  ;;  %v18391_v5 = vld [vmem:[#allocation52 + $0x2f0] ss:$8 sps:$4 sm:$0xff]   ;;  %v18378_v29 = vld [vmem:[#allocation52 + $0x324] ss:$8 sps:$4 sm:$0xff]  }
0x1608   : > { %v10831_v21 = vpop.f32.mrf.mxu1 }
0x1609   : > { %v10832_v23 = vadd.f32 %v10831_v21, %v10700_v26  ;;  %12260 = vmatpush2.bf16.msra.mxu1 %v18331_v57  ;;  %12301 = vmatpush2.bf16.msra.mxu0 %v18334_v9  ;;  %v18399_v26 = vld [vmem:[#allocation52 + $0x2e4] ss:$8 sps:$4 sm:$0xff]   ;;  %v18376_v57 = vld [vmem:[#allocation52 + $0x320] ss:$8 sps:$4 sm:$0xff]   ;;  %v18403_v21 = vld [vmem:[#allocation52 + $0x2d0] ss:$8 sps:$4 sm:$0xff]  }
0x160a   : > { %v10833_v16 = vpop.f32.mrf.mxu1  ;;  %12261 = vmatprep.subr.bf16.mxu1 %v18339_v50  ;;  %12302 = vmatprep.subr.bf16.mxu0 %v18342_v30  ;;  %v18397_v9 = vld [vmem:[#allocation52 + $0x2e0] ss:$8 sps:$4 sm:$0xff]   ;;  %v18384_v50 = vld [vmem:[#allocation52 + $0x314] ss:$8 sps:$4 sm:$0xff]  }
0x160b   : > { %v11043_v3 = vmax.f32 %v10832_v23, 0.0  ;;  %v10834_v51 = vadd.f32 %v10833_v16, %v10704_v28  ;;  %v18405_v30 = vld [vmem:[#allocation52 + $0x2d4] ss:$8 sps:$4 sm:$0xff]   ;;  %v18382_v28 = vld [vmem:[#allocation52 + $0x310] ss:$8 sps:$4 sm:$0xff]  }
0x160c   : > { %v10835_v2 = vpop.f32.mrf.mxu1  ;;  %v18390_v23 = vld [vmem:[#allocation52 + $0x304] ss:$8 sps:$4 sm:$0xff]   ;;  %v18409_v16 = vld [vmem:[#allocation52 + $0x2c0] ss:$8 sps:$4 sm:$0xff]  }
0x160d   : > { %v11044_v55 = vmax.f32 %v10834_v51, 0.0  ;;  %12262 = vmatpush2.bf16.msra.mxu1 %v18337_v6  ;;  %12303 = vmatpush2.bf16.msra.mxu0 %v18340_v31  ;;  %v11055_v27 = vpack.c.bf16 %v11043_v3, %v11043_v3  ;;  %v18411_v6 = vld [vmem:[#allocation52 + $0x2c4] ss:$8 sps:$4 sm:$0xff]   ;;  %v18388_v31 = vld [vmem:[#allocation52 + $0x300] ss:$8 sps:$4 sm:$0xff]  }
0x160e   : > { %12313 = vmatprep.subr.bf16.mxu1 %v18345_v4  ;;  %12354 = vmatprep.subr.bf16.mxu0 %v18348_v13  ;;  %v10836_v59 = vpop.f32.mrf.mxu1  ;;  %v18396_v4 = vld [vmem:[#allocation52 + $0x3f4] ss:$8 sps:$4 sm:$0xff]   ;;  %v18394_v3 = vld [vmem:[#allocation52 + $0x3f0] ss:$8 sps:$4 sm:$0xff]   ;;  %v18402_v2 = vld [vmem:[#allocation52 + $0x3e4] ss:$8 sps:$4 sm:$0xff]  }
0x160f   : > { %v11056_v34 = vpack.c.bf16 %v11044_v55, %v11044_v55  ;;  %v18417_v13 = vld [vmem:[#allocation52 + $0x2b4] ss:$8 sps:$4 sm:$0xff]   ;;  %v18415_v51 = vld [vmem:[#allocation52 + $0x2b0] ss:$8 sps:$4 sm:$0xff]   ;;  %v18423_v55 = vld [vmem:[#allocation52 + $0x2a4] ss:$8 sps:$4 sm:$0xff]  }
0x1610   : > { %v18421_v59 = vld [vmem:[#allocation52 + $0x2a0] ss:$8 sps:$4 sm:$0xff]  }
0x1611   : > { %12263 = vmatprep.mubr.bf16.mxu1 %v11056_v34  ;;  %v18408_v34 = vld [vmem:[#allocation52 + $0x3d4] ss:$8 sps:$4 sm:$0xff]  }
0x1612   : > { %12264 = vmatmul.mubr.bf16.vlgmr.msra.gmra.mxu1 %v11055_v27  ;;  %v18400_v27 = vld [vmem:[#allocation52 + $0x3e0] ss:$8 sps:$4 sm:$0xff]  }
0x1613   : > { %12314 = vmatpush1.bf16.msra.mxu1 %v18343_v35  ;;  %v18429_v35 = vld [vmem:[#allocation52 + $0x294] ss:$8 sps:$4 sm:$0xff]  }
0x1614   : > { %12315 = vmatprep.subr.bf16.mxu1 %v18351_v48  ;;  %v18406_v48 = vld [vmem:[#allocation52 + $0x3d0] ss:$8 sps:$4 sm:$0xff]  }
0x1617   : > { %12316 = vmatpush1.bf16.msra.mxu1 %v18349_v43  ;;  %v18427_v43 = vld [vmem:[#allocation52 + $0x290] ss:$8 sps:$4 sm:$0xff]  }
0x1618   : > { %v10872_v8 = vpop.f32.mrf.mxu0  ;;  %12317 = vmatprep.subr.bf16.mxu1 %v18357_v54  ;;  %v18414_v54 = vld [vmem:[#allocation52 + $0x3c4] ss:$8 sps:$4 sm:$0xff]  }
0x1619   : > { %v10873_v63 = vadd.f32 %v10872_v8, %v10708_v61  ;;  %v18435_v61 = vld [vmem:[#allocation52 + $0x284] ss:$8 sps:$4 sm:$0xff]   ;;  %v18420_v8 = vld [vmem:[#allocation52 + $0x3b4] ss:$8 sps:$4 sm:$0xff]  }
0x161a   : > { %v10874_v62 = vpop.f32.mrf.mxu0 }
0x161b   : > { %v10875_v20 = vadd.f32 %v10874_v62, %v10712_v49  ;;  %12318 = vmatpush1.bf16.msra.mxu1 %v18355_v60  ;;  %v11045_v46 = vmax.f32 %v10873_v63, 0.0  ;;  %v18412_v49 = vld [vmem:[#allocation52 + $0x3c0] ss:$8 sps:$4 sm:$0xff]  }
0x161c   : > { %12319 = vmatprep.subr.bf16.mxu1 %v18363_v36  ;;  %v10876_v14 = vpop.f32.mrf.mxu0  ;;  %v18433_v60 = vld [vmem:[#allocation52 + $0x280] ss:$8 sps:$4 sm:$0xff]   ;;  %v18441_v36 = vld [vmem:[#allocation52 + $0x474] ss:$8 sps:$4 sm:$0xff]  }
0x161d   : > { %v11046_v40 = vmax.f32 %v10875_v20, 0.0  ;;  %v11057_v41 = vpack.c.bf16 %v11045_v46, %v11045_v46  ;;  %v23387_v63 = vld [vmem:[#allocation146_spill] sm:$0xff]  ;;  %v18418_v20 = vld [vmem:[#allocation52 + $0x3b0] ss:$8 sps:$4 sm:$0xff]  }
0x161e   : > { %v10877_v47 = vpop.f32.mrf.mxu0  ;;  %v10716_v62 = vrot.slane %v22838_v37, %v23387_v63 }
0x161f   : > { %v11058_v1 = vpack.c.bf16 %v11046_v40, %v11046_v40  ;;  %12320 = vmatpush1.bf16.msra.mxu1 %v18361_v39  ;;  %v23388_v39 = vld [vmem:[#allocation132_spill] sm:$0xff] }
0x1620   : > { %12321 = vmatprep.subr.bf16.mxu1 %v18369_v7  ;;  %v10720_v46 = vrot.slane %v22838_v37, %v23388_v39  ;;  %v23389_v7 = vld [vmem:[#allocation131_spill] sm:$0xff] }
0x1621   : > { %12304 = vmatprep.mubr.bf16.mxu0 %v11058_v1  ;;  %v10728_v14 = vrot.slane %v22838_v37, %v23389_v7  ;;  %v18426_v40 = vld [vmem:[#allocation52 + $0x3a4] ss:$8 sps:$4 sm:$0xff]  }
0x1622   : > { %12305 = vmatmul.mubr.bf16.vlgmr.msra.gmra.mxu0 %v11057_v41 }
0x1623   : > { %12355 = vmatpush1.bf16.msra.mxu0 %v18346_v52  ;;  %12322 = vmatpush1.bf16.msra.mxu1 %v18367_v19 }
0x1624   : > { %12356 = vmatprep.subr.bf16.mxu0 %v18354_v44  ;;  %12323 = vmatprep.subr.bf16.mxu1 %v18375_v17  ;;  %v18424_v44 = vld [vmem:[#allocation52 + $0x3a0] ss:$8 sps:$4 sm:$0xff]  }
0x1627   : > { %12357 = vmatpush1.bf16.msra.mxu0 %v18352_v0  ;;  %12324 = vmatpush1.bf16.msra.mxu1 %v18373_v53 }
0x1628   : > { %12358 = vmatprep.subr.bf16.mxu0 %v18360_v11  ;;  %12325 = vmatprep.subr.bf16.mxu1 %v18381_v18  ;;  %v23390_v11 = vld [vmem:[#allocation145_spill] sm:$0xff] }
0x1629   : > { %v10724_v18 = vrot.slane %v22838_v37, %v23390_v11  ;;  %v18436_v37 = vld [vmem:[#allocation52 + $0x380] ss:$8 sps:$4 sm:$0xff]  }
0x162b   : > { %12359 = vmatpush1.bf16.msra.mxu0 %v18358_v33  ;;  %12326 = vmatpush1.bf16.msra.mxu1 %v18379_v42  ;;  %v18432_v33 = vld [vmem:[#allocation52 + $0x394] ss:$8 sps:$4 sm:$0xff]  }
0x162c   : > { %12360 = vmatprep.subr.bf16.mxu0 %v18366_v22  ;;  %12327 = vmatprep.subr.bf16.mxu1 %v18387_v56 }
0x162f   : > { %12361 = vmatpush1.bf16.msra.mxu0 %v18364_v25  ;;  %12328 = vmatpush1.bf16.msra.mxu1 %v18385_v10 }
0x1630   : > { %12362 = vmatprep.subr.bf16.mxu0 %v18372_v12  ;;  %12329 = vmatprep.subr.bf16.mxu1 %v18393_v45 }
0x1633   : > { %12363 = vmatpush1.bf16.msra.mxu0 %v18370_v38  ;;  %12330 = vmatpush2.bf16.msra.mxu1 %v18391_v5  ;;  %v18430_v5 = vld [vmem:[#allocation52 + $0x390] ss:$8 sps:$4 sm:$0xff]  }
0x1634   : > { %12364 = vmatprep.subr.bf16.mxu0 %v18378_v29  ;;  %12331 = vmatprep.subr.bf16.mxu1 %v18399_v26  ;;  %v18439_v26 = vld [vmem:[#allocation52 + $0x470] ss:$8 sps:$4 sm:$0xff]  }
0x1637   : > { %12365 = vmatpush1.bf16.msra.mxu0 %v18376_v57  ;;  %12332 = vmatpush2.bf16.msra.mxu1 %v18397_v9  ;;  %v18438_v9 = vld [vmem:[#allocation52 + $0x384] ss:$8 sps:$4 sm:$0xff]  }
0x1638   : > { %12366 = vmatprep.subr.bf16.mxu0 %v18384_v50  ;;  %12333 = vmatprep.subr.bf16.mxu1 %v18405_v30  ;;  %v18447_v50 = vld [vmem:[#allocation52 + $0x464] ss:$8 sps:$4 sm:$0xff]   ;;  %v18445_v30 = vld [vmem:[#allocation52 + $0x460] ss:$8 sps:$4 sm:$0xff]  }
0x163b   : > { %12367 = vmatpush1.bf16.msra.mxu0 %v18382_v28  ;;  %12334 = vmatpush2.bf16.msra.mxu1 %v18403_v21  ;;  %v18444_v21 = vld [vmem:[#allocation52 + $0x574] ss:$8 sps:$4 sm:$0xff]  }
0x163c   : > { %12368 = vmatprep.subr.bf16.mxu0 %v18390_v23  ;;  %12335 = vmatprep.subr.bf16.mxu1 %v18411_v6  ;;  %v18453_v23 = vld [vmem:[#allocation52 + $0x454] ss:$8 sps:$4 sm:$0xff]   ;;  %v18442_v6 = vld [vmem:[#allocation52 + $0x570] ss:$8 sps:$4 sm:$0xff]  }
0x163f   : > { %12369 = vmatpush1.bf16.msra.mxu0 %v18388_v31  ;;  %12336 = vmatpush2.bf16.msra.mxu1 %v18409_v16  ;;  %v18451_v31 = vld [vmem:[#allocation52 + $0x450] ss:$8 sps:$4 sm:$0xff]  }
0x1640   : > { %12370 = vmatprep.subr.bf16.mxu0 %v18396_v4  ;;  %12337 = vmatprep.subr.bf16.mxu1 %v18417_v13  ;;  %v18450_v4 = vld [vmem:[#allocation52 + $0x564] ss:$8 sps:$4 sm:$0xff]  }
0x1641   : > { %v18459_v13 = vld [vmem:[#allocation52 + $0x444] ss:$8 sps:$4 sm:$0xff]  }
0x1643   : > { %12371 = vmatpush2.bf16.msra.mxu0 %v18394_v3  ;;  %12338 = vmatpush2.bf16.msra.mxu1 %v18415_v51  ;;  %v18448_v3 = vld [vmem:[#allocation52 + $0x560] ss:$8 sps:$4 sm:$0xff]  }
0x1644   : > { %12372 = vmatprep.subr.bf16.mxu0 %v18402_v2  ;;  %12339 = vmatprep.subr.bf16.mxu1 %v18423_v55  ;;  %v18457_v51 = vld [vmem:[#allocation52 + $0x440] ss:$8 sps:$4 sm:$0xff]   ;;  %v18456_v2 = vld [vmem:[#allocation52 + $0x554] ss:$8 sps:$4 sm:$0xff]  }
0x1645   : > { %v18465_v55 = vld [vmem:[#allocation52 + $0x434] ss:$8 sps:$4 sm:$0xff]  }
0x1647   : > { %12373 = vmatpush2.bf16.msra.mxu0 %v18400_v27  ;;  %12340 = vmatpush2.bf16.msra.mxu1 %v18421_v59  ;;  %v18454_v27 = vld [vmem:[#allocation52 + $0x550] ss:$8 sps:$4 sm:$0xff]  }
0x1648   : > { %12374 = vmatprep.subr.bf16.mxu0 %v18408_v34  ;;  %12341 = vmatprep.subr.bf16.mxu1 %v18429_v35  ;;  %v18463_v59 = vld [vmem:[#allocation52 + $0x430] ss:$8 sps:$4 sm:$0xff]   ;;  %v18462_v34 = vld [vmem:[#allocation52 + $0x544] ss:$8 sps:$4 sm:$0xff]  }
0x1649   : > { %v18471_v35 = vld [vmem:[#allocation52 + $0x424] ss:$8 sps:$4 sm:$0xff]  }
0x164b   : > { %12375 = vmatpush2.bf16.msra.mxu0 %v18406_v48  ;;  %12342 = vmatpush2.bf16.msra.mxu1 %v18427_v43  ;;  %v18460_v48 = vld [vmem:[#allocation52 + $0x540] ss:$8 sps:$4 sm:$0xff]  }
0x164c   : > { %12376 = vmatprep.subr.bf16.mxu0 %v18414_v54  ;;  %12343 = vmatprep.subr.bf16.mxu1 %v18435_v61  ;;  %v18469_v43 = vld [vmem:[#allocation52 + $0x420] ss:$8 sps:$4 sm:$0xff]   ;;  %v18468_v54 = vld [vmem:[#allocation52 + $0x534] ss:$8 sps:$4 sm:$0xff]  }
0x164d   : > { %v18477_v61 = vld [vmem:[#allocation52 + $0x414] ss:$8 sps:$4 sm:$0xff]  }
0x164f   : > { %12377 = vmatpush2.bf16.msra.mxu0 %v18412_v49  ;;  %12344 = vmatpush2.bf16.msra.mxu1 %v18433_v60  ;;  %v18466_v49 = vld [vmem:[#allocation52 + $0x530] ss:$8 sps:$4 sm:$0xff]  }
0x1650   : > { %12378 = vmatprep.subr.bf16.mxu0 %v18420_v8  ;;  %v10913_v47 = vpop.f32.mrf.mxu1  ;;  %v10954_v1 = vpop.f32.mrf.mxu0  ;;  %12395 = vmatprep.subr.bf16.mxu1 %v18441_v36  ;;  %v18475_v60 = vld [vmem:[#allocation52 + $0x410] ss:$8 sps:$4 sm:$0xff]   ;;  %v18474_v8 = vld [vmem:[#allocation52 + $0x524] ss:$8 sps:$4 sm:$0xff]  }
0x1651   : > { %v10914_v52 = vadd.f32 %v10913_v47, %v10716_v62  ;;  %v10955_v57 = vadd.f32 %v10954_v1, %v10724_v18  ;;  %v18483_v36 = vld [vmem:[#allocation52 + $0x404] ss:$8 sps:$4 sm:$0xff]   ;;  %v18472_v62 = vld [vmem:[#allocation52 + $0x520] ss:$8 sps:$4 sm:$0xff]   ;;  %v18487_v47 = vld [vmem:[#allocation52 + $0x4f0] ss:$8 sps:$4 sm:$0xff]  }
0x1652   : > { %v10915_v19 = vpop.f32.mrf.mxu1  ;;  %v10956_v41 = vpop.f32.mrf.mxu0  ;;  %v18486_v1 = vld [vmem:[#allocation52 + $0x504] ss:$8 sps:$4 sm:$0xff]  }
0x1653   : > { %12379 = vmatpush2.bf16.msra.mxu0 %v18418_v20  ;;  %v11047_v17 = vmax.f32 %v10914_v52, 0.0  ;;  %v10916_v0 = vadd.f32 %v10915_v19, %v10720_v46  ;;  %v10957_v53 = vadd.f32 %v10956_v41, %v10728_v14  ;;  %v11049_v28 = vmax.f32 %v10955_v57, 0.0  ;;  %v18481_v20 = vld [vmem:[#allocation52 + $0x400] ss:$8 sps:$4 sm:$0xff]   ;;  %v18480_v46 = vld [vmem:[#allocation52 + $0x514] ss:$8 sps:$4 sm:$0xff]  }
0x1654   : > { %12380 = vmatprep.subr.bf16.mxu0 %v18426_v40  ;;  %v10917_v42 = vpop.f32.mrf.mxu1  ;;  %v10958_v22 = vpop.f32.mrf.mxu0  ;;  %v18489_v14 = vld [vmem:[#allocation52 + $0x4f4] ss:$8 sps:$4 sm:$0xff]   ;;  %v18478_v40 = vld [vmem:[#allocation52 + $0x510] ss:$8 sps:$4 sm:$0xff]   ;;  %v18495_v52 = vld [vmem:[#allocation52 + $0x4e4] ss:$8 sps:$4 sm:$0xff]  }
0x1655   : > { %v11048_v56 = vmax.f32 %v10916_v0, 0.0  ;;  %v11050_v25 = vmax.f32 %v10957_v53, 0.0  ;;  %v11059_v10 = vpack.c.bf16 %v11047_v17, %v11047_v17  ;;  %v11061_v16 = vpack.c.bf16 %v11049_v28, %v11049_v28  ;;  %v18484_v19 = vld [vmem:[#allocation52 + $0x500] ss:$8 sps:$4 sm:$0xff]   ;;  %v18501_v17 = vld [vmem:[#allocation52 + $0x4d4] ss:$8 sps:$4 sm:$0xff]  }
0x1656   : > { %v10918_v12 = vpop.f32.mrf.mxu1  ;;  %v10959_v45 = vpop.f32.mrf.mxu0  ;;  %v18493_v41 = vld [vmem:[#allocation52 + $0x4e0] ss:$8 sps:$4 sm:$0xff]   ;;  %v18490_v0 = vld [vmem:[#allocation52 + $0x5f0] ss:$8 sps:$4 sm:$0xff]   ;;  %v18498_v18 = vld [vmem:[#allocation52 + $0x5e4] ss:$8 sps:$4 sm:$0xff]  }
0x1657   : > { %12381 = vmatpush2.bf16.msra.mxu0 %v18424_v44  ;;  %v11060_v38 = vpack.c.bf16 %v11048_v56, %v11048_v56  ;;  %v11062_v29 = vpack.c.bf16 %v11050_v25, %v11050_v25  ;;  %v18492_v44 = vld [vmem:[#allocation52 + $0x5f4] ss:$8 sps:$4 sm:$0xff]   ;;  %v18499_v53 = vld [vmem:[#allocation52 + $0x4d0] ss:$8 sps:$4 sm:$0xff]   ;;  %v18496_v42 = vld [vmem:[#allocation52 + $0x5e0] ss:$8 sps:$4 sm:$0xff]  }
0x1658   : > { %12382 = vmatprep.subr.bf16.mxu0 %v18432_v33  ;;  %v18507_v33 = vld [vmem:[#allocation52 + $0x4c4] ss:$8 sps:$4 sm:$0xff]   ;;  %v18505_v22 = vld [vmem:[#allocation52 + $0x4c0] ss:$8 sps:$4 sm:$0xff]   ;;  %v18504_v56 = vld [vmem:[#allocation52 + $0x5d4] ss:$8 sps:$4 sm:$0xff]  }
0x1659   : > { %12345 = vmatprep.mubr.bf16.mxu1 %v11060_v38  ;;  %12386 = vmatprep.mubr.bf16.mxu0 %v11062_v29  ;;  %v18513_v25 = vld [vmem:[#allocation52 + $0x4b4] ss:$8 sps:$4 sm:$0xff]   ;;  %v18511_v12 = vld [vmem:[#allocation52 + $0x4b0] ss:$8 sps:$4 sm:$0xff]   ;;  %v18510_v45 = vld [vmem:[#allocation52 + $0x5c4] ss:$8 sps:$4 sm:$0xff]  }
0x165a   : > { %12346 = vmatmul.mubr.bf16.vlgmr.msra.gmra.mxu1 %v11059_v10  ;;  %v18502_v10 = vld [vmem:[#allocation52 + $0x5d0] ss:$8 sps:$4 sm:$0xff]   ;;  %v18519_v38 = vld [vmem:[#allocation52 + $0x4a4] ss:$8 sps:$4 sm:$0xff]   ;;  %v18508_v29 = vld [vmem:[#allocation52 + $0x5c0] ss:$8 sps:$4 sm:$0xff]  }
0x165b   : > { %12383 = vmatpush2.bf16.msra.mxu0 %v18430_v5  ;;  %12396 = vmatpush1.bf16.msra.mxu1 %v18439_v26  ;;  %v10694_v5 = vld [vmem:[#allocation50 + $0x8] sm:$0xf]  ;;  %v18517_v26 = vld [vmem:[#allocation52 + $0x4a0] ss:$8 sps:$4 sm:$0xff]   ;;  %v18523_v28 = vld [vmem:[#allocation52 + $0x490] ss:$8 sps:$4 sm:$0xff]  }
0x165c   : > { %12384 = vmatprep.subr.bf16.mxu0 %v18438_v9  ;;  %12397 = vmatprep.subr.bf16.mxu1 %v18447_v50  ;;  %v18516_v57 = vld [vmem:[#allocation52 + $0x5b4] ss:$8 sps:$4 sm:$0xff]   ;;  %v10732_v50 = vrot.slane %v10694_v5, %v23383_v24 }
0x165d   : > { %v18525_v9 = vld [vmem:[#allocation52 + $0x494] ss:$8 sps:$4 sm:$0xff]  }
0x165f   : > { %12385 = vmatpush2.bf16.msra.mxu0 %v18436_v37  ;;  %12398 = vmatpush1.bf16.msra.mxu1 %v18445_v30  ;;  %v18514_v37 = vld [vmem:[#allocation52 + $0x5b0] ss:$8 sps:$4 sm:$0xff]   ;;  %v10736_v30 = vrot.slane %v10694_v5, %v23384_v32 }
0x1660   : > { %12436 = vmatprep.subr.bf16.mxu0 %v18444_v21  ;;  %12399 = vmatprep.subr.bf16.mxu1 %v18453_v23  ;;  %v10744_v21 = vrot.slane %v10694_v5, %v23386_v58 }
0x1662   : > { %12387 = vmatmul.mubr.bf16.vlgmr.msra.gmra.mxu0 %v11061_v16  ;;  %v18531_v16 = vld [vmem:[#allocation52 + $0x484] ss:$8 sps:$4 sm:$0xff]  }
0x1663   : > { %12437 = vmatpush1.bf16.msra.mxu0 %v18442_v6  ;;  %12400 = vmatpush1.bf16.msra.mxu1 %v18451_v31  ;;  %v18522_v6 = vld [vmem:[#allocation52 + $0x5a4] ss:$8 sps:$4 sm:$0xff]  }
0x1664   : > { %12438 = vmatprep.subr.bf16.mxu0 %v18450_v4  ;;  %12401 = vmatprep.subr.bf16.mxu1 %v18459_v13 }
0x1667   : > { %12439 = vmatpush1.bf16.msra.mxu0 %v18448_v3  ;;  %12402 = vmatpush1.bf16.msra.mxu1 %v18457_v51 }
0x1668   : > { %12440 = vmatprep.subr.bf16.mxu0 %v18456_v2  ;;  %12403 = vmatprep.subr.bf16.mxu1 %v18465_v55  ;;  %v18520_v2 = vld [vmem:[#allocation52 + $0x5a0] ss:$8 sps:$4 sm:$0xff]  }
0x166b   : > { %12441 = vmatpush1.bf16.msra.mxu0 %v18454_v27  ;;  %12404 = vmatpush1.bf16.msra.mxu1 %v18463_v59  ;;  %v18529_v59 = vld [vmem:[#allocation52 + $0x480] ss:$8 sps:$4 sm:$0xff]  }
0x166c   : > { %12442 = vmatprep.subr.bf16.mxu0 %v18462_v34  ;;  %12405 = vmatprep.subr.bf16.mxu1 %v18471_v35  ;;  %v10740_v34 = vrot.slane %v10694_v5, %v23385_v15  ;;  %v18528_v35 = vld [vmem:[#allocation52 + $0x594] ss:$8 sps:$4 sm:$0xff]   ;;  %v18567_v5 = vld [vmem:[#allocation55 + $0xa4] ss:$40 sps:$4 sm:$0xff]  }
0x166f   : > { %12443 = vmatpush1.bf16.msra.mxu0 %v18460_v48  ;;  %12406 = vmatpush1.bf16.msra.mxu1 %v18469_v43  ;;  %v18537_v48 = vld [vmem:[#allocation55 + $0x234] ss:$40 sps:$4 sm:$0xff]  }
0x1670   : > { %12444 = vmatprep.subr.bf16.mxu0 %v18468_v54  ;;  %12407 = vmatprep.subr.bf16.mxu1 %v18477_v61 }
0x1673   : > { %12445 = vmatpush1.bf16.msra.mxu0 %v18466_v49  ;;  %12408 = vmatpush1.bf16.msra.mxu1 %v18475_v60 }
0x1674   : > { %12446 = vmatprep.subr.bf16.mxu0 %v18474_v8  ;;  %12409 = vmatprep.subr.bf16.mxu1 %v18483_v36 }
0x1677   : > { %12447 = vmatpush1.bf16.msra.mxu0 %v18472_v62  ;;  %12410 = vmatpush1.bf16.msra.mxu1 %v18481_v20 }
0x1678   : > { %12448 = vmatprep.subr.bf16.mxu0 %v18480_v46  ;;  %12411 = vmatprep.subr.bf16.mxu1 %v18489_v14  ;;  %v18526_v46 = vld [vmem:[#allocation52 + $0x590] ss:$8 sps:$4 sm:$0xff]  }
0x1679   : > { %v18535_v14 = vld [vmem:[#allocation55 + $0x230] ss:$40 sps:$4 sm:$0xff]  }
0x167b   : > { %12449 = vmatpush1.bf16.msra.mxu0 %v18478_v40  ;;  %12412 = vmatpush2.bf16.msra.mxu1 %v18487_v47  ;;  %v18534_v47 = vld [vmem:[#allocation52 + $0x584] ss:$8 sps:$4 sm:$0xff]  }
0x167c   : > { %12450 = vmatprep.subr.bf16.mxu0 %v18486_v1  ;;  %12413 = vmatprep.subr.bf16.mxu1 %v18495_v52  ;;  %v18543_v1 = vld [vmem:[#allocation55 + $0x1e4] ss:$40 sps:$4 sm:$0xff]  }
0x167d   : > { %v18532_v52 = vld [vmem:[#allocation52 + $0x580] ss:$8 sps:$4 sm:$0xff]  }
0x167f   : > { %12451 = vmatpush1.bf16.msra.mxu0 %v18484_v19  ;;  %12414 = vmatpush2.bf16.msra.mxu1 %v18493_v41  ;;  %v18541_v19 = vld [vmem:[#allocation55 + $0x1e0] ss:$40 sps:$4 sm:$0xff]  }
0x1680   : > { %12452 = vmatprep.subr.bf16.mxu0 %v18492_v44  ;;  %12415 = vmatprep.subr.bf16.mxu1 %v18501_v17  ;;  %v18540_v44 = vld [vmem:[#allocation55 + $0x23c] ss:$40 sps:$4 sm:$0xff]  }
0x1681   : > { %v18549_v17 = vld [vmem:[#allocation55 + $0x194] ss:$40 sps:$4 sm:$0xff]  }
0x1683   : > { %12453 = vmatpush2.bf16.msra.mxu0 %v18490_v0  ;;  %12416 = vmatpush2.bf16.msra.mxu1 %v18499_v53  ;;  %v18538_v0 = vld [vmem:[#allocation55 + $0x238] ss:$40 sps:$4 sm:$0xff]  }
0x1684   : > { %12454 = vmatprep.subr.bf16.mxu0 %v18498_v18  ;;  %12417 = vmatprep.subr.bf16.mxu1 %v18507_v33  ;;  %v18547_v53 = vld [vmem:[#allocation55 + $0x190] ss:$40 sps:$4 sm:$0xff]   ;;  %v18546_v33 = vld [vmem:[#allocation55 + $0x1ec] ss:$40 sps:$4 sm:$0xff]  }
0x1687   : > { %12455 = vmatpush2.bf16.msra.mxu0 %v18496_v42  ;;  %12418 = vmatpush2.bf16.msra.mxu1 %v18505_v22  ;;  %v18555_v42 = vld [vmem:[#allocation55 + $0x144] ss:$40 sps:$4 sm:$0xff]   ;;  %v18544_v22 = vld [vmem:[#allocation55 + $0x1e8] ss:$40 sps:$4 sm:$0xff]  }
0x1688   : > { %12456 = vmatprep.subr.bf16.mxu0 %v18504_v56  ;;  %12419 = vmatprep.subr.bf16.mxu1 %v18513_v25  ;;  %v18553_v56 = vld [vmem:[#allocation55 + $0x140] ss:$40 sps:$4 sm:$0xff]   ;;  %v18552_v25 = vld [vmem:[#allocation55 + $0x19c] ss:$40 sps:$4 sm:$0xff]  }
0x168b   : > { %12457 = vmatpush2.bf16.msra.mxu0 %v18502_v10  ;;  %12420 = vmatpush2.bf16.msra.mxu1 %v18511_v12  ;;  %v18561_v10 = vld [vmem:[#allocation55 + $0xf4] ss:$40 sps:$4 sm:$0xff]   ;;  %v18550_v12 = vld [vmem:[#allocation55 + $0x198] ss:$40 sps:$4 sm:$0xff]  }
0x168c   : > { %12458 = vmatprep.subr.bf16.mxu0 %v18510_v45  ;;  %12421 = vmatprep.subr.bf16.mxu1 %v18519_v38  ;;  %v18559_v45 = vld [vmem:[#allocation55 + $0xf0] ss:$40 sps:$4 sm:$0xff]   ;;  %v18558_v38 = vld [vmem:[#allocation55 + $0x14c] ss:$40 sps:$4 sm:$0xff]  }
0x168f   : > { %12459 = vmatpush2.bf16.msra.mxu0 %v18508_v29  ;;  %12422 = vmatpush2.bf16.msra.mxu1 %v18517_v26  ;;  %v18556_v29 = vld [vmem:[#allocation55 + $0x148] ss:$40 sps:$4 sm:$0xff]  }
0x1690   : > { %12460 = vmatprep.subr.bf16.mxu0 %v18516_v57  ;;  %v10995_v23 = vpop.f32.mrf.mxu1  ;;  %v11036_v31 = vpop.f32.mrf.mxu0  ;;  %12423 = vmatprep.subr.bf16.mxu1 %v18525_v9  ;;  %v18565_v26 = vld [vmem:[#allocation55 + $0xa0] ss:$40 sps:$4 sm:$0xff]   ;;  %v18564_v57 = vld [vmem:[#allocation55 + $0xfc] ss:$40 sps:$4 sm:$0xff]  }
0x1691   : > { %v10996_v4 = vadd.f32 %v10995_v23, %v10732_v50  ;;  %v11037_v40 = vadd.f32 %v11036_v31, %v10740_v34  ;;  %v18573_v9 = vld [vmem:[#allocation55 + $0x54] ss:$40 sps:$4 sm:$0xff]   ;;  %v18562_v50 = vld [vmem:[#allocation55 + $0xf8] ss:$40 sps:$4 sm:$0xff]  }
0x1692   : > { %v10997_v13 = vpop.f32.mrf.mxu1  ;;  %v11038_v3 = vpop.f32.mrf.mxu0  ;;  %v18577_v23 = vld [vmem:[#allocation55] ss:$40 sps:$4 sm:$0xff]   ;;  %v18585_v31 = vld [vmem:[#allocation55 + $0x4b4] ss:$40 sps:$4 sm:$0xff]   ;;  %v18595_v34 = vld [vmem:[#allocation55 + $0x410] ss:$40 sps:$4 sm:$0xff]  }
0x1693   : > { %12461 = vmatpush2.bf16.msra.mxu0 %v18514_v37  ;;  %v11051_v51 = vmax.f32 %v10996_v4, 0.0  ;;  %v10998_v55 = vadd.f32 %v10997_v13, %v10736_v30  ;;  %12424 = vmatpush2.bf16.msra.mxu1 %v18523_v28  ;;  %v11039_v27 = vadd.f32 %v11038_v3, %v10744_v21  ;;  %v11053_v41 = vmax.f32 %v11037_v40, 0.0  ;;  %v18571_v37 = vld [vmem:[#allocation55 + $0x50] ss:$40 sps:$4 sm:$0xff]   ;;  %v18570_v30 = vld [vmem:[#allocation55 + $0xac] ss:$40 sps:$4 sm:$0xff]  }
0x1694   : > { %12462 = vmatprep.subr.bf16.mxu0 %v18522_v6  ;;  %12425 = vmatprep.subr.bf16.mxu1 %v18531_v16  ;;  %v10999_v43 = vpop.f32.mrf.mxu1  ;;  %v11040_v54 = vpop.f32.mrf.mxu0  ;;  %v18579_v28 = vld [vmem:[#allocation55 + $0x4] ss:$40 sps:$4 sm:$0xff]   ;;  %v18568_v21 = vld [vmem:[#allocation55 + $0xa8] ss:$40 sps:$4 sm:$0xff]   ;;  %v18574_v16 = vld [vmem:[#allocation55 + $0x58] ss:$40 sps:$4 sm:$0xff]  }
0x1695   : > { %v11052_v61 = vmax.f32 %v10998_v55, 0.0  ;;  %v11054_v49 = vmax.f32 %v11039_v27, 0.0  ;;  %v11063_v60 = vpack.c.bf16 %v11051_v51, %v11051_v51  ;;  %v11065_v18 = vpack.c.bf16 %v11053_v41, %v11053_v41  ;;  %v18576_v6 = vld [vmem:[#allocation55 + $0x5c] ss:$40 sps:$4 sm:$0xff]   ;;  %v18583_v4 = vld [vmem:[#allocation55 + $0x4b0] ss:$40 sps:$4 sm:$0xff]  }
0x1696   : > { %v11000_v8 = vpop.f32.mrf.mxu1  ;;  %v11041_v36 = vpop.f32.mrf.mxu0  ;;  %v18582_v13 = vld [vmem:[#allocation55 + $0xc] ss:$40 sps:$4 sm:$0xff]   ;;  %v18580_v51 = vld [vmem:[#allocation55 + $0x8] ss:$40 sps:$4 sm:$0xff]   ;;  %v18588_v55 = vld [vmem:[#allocation55 + $0x4bc] ss:$40 sps:$4 sm:$0xff]  }
0x1697   : > { %12463 = vmatpush2.bf16.msra.mxu0 %v18520_v2  ;;  %v11064_v62 = vpack.c.bf16 %v11052_v61, %v11052_v61  ;;  %v11066_v20 = vpack.c.bf16 %v11054_v49, %v11054_v49  ;;  %12426 = vmatpush2.bf16.msra.mxu1 %v18529_v59  ;;  %v18591_v3 = vld [vmem:[#allocation55 + $0x464] ss:$40 sps:$4 sm:$0xff]   ;;  %v18589_v2 = vld [vmem:[#allocation55 + $0x460] ss:$40 sps:$4 sm:$0xff]   ;;  %v18597_v27 = vld [vmem:[#allocation55 + $0x414] ss:$40 sps:$4 sm:$0xff]  }
0x1698   : > { %12464 = vmatprep.subr.bf16.mxu0 %v18528_v35  ;;  %13495 = vmatprep.subr.bf16.mxu1 %v18537_v48  ;;  %v18586_v59 = vld [vmem:[#allocation55 + $0x4b8] ss:$40 sps:$4 sm:$0xff]   ;;  %v18594_v35 = vld [vmem:[#allocation55 + $0x46c] ss:$40 sps:$4 sm:$0xff]   ;;  %v18592_v43 = vld [vmem:[#allocation55 + $0x468] ss:$40 sps:$4 sm:$0xff]  }
0x1699   : > { %12427 = vmatprep.mubr.bf16.mxu1 %v11064_v62  ;;  %12468 = vmatprep.mubr.bf16.mxu0 %v11066_v20  ;;  %v18603_v48 = vld [vmem:[#allocation55 + $0x3c4] ss:$40 sps:$4 sm:$0xff]   ;;  %v18601_v54 = vld [vmem:[#allocation55 + $0x3c0] ss:$40 sps:$4 sm:$0xff]   ;;  %v18609_v49 = vld [vmem:[#allocation55 + $0x374] ss:$40 sps:$4 sm:$0xff]  }
0x169a   : > { %12428 = vmatmul.mubr.bf16.vlgmr.msra.gmra.mxu1 %v11063_v60  ;;  %v18600_v61 = vld [vmem:[#allocation55 + $0x41c] ss:$40 sps:$4 sm:$0xff]   ;;  %v18598_v60 = vld [vmem:[#allocation55 + $0x418] ss:$40 sps:$4 sm:$0xff]   ;;  %v18606_v36 = vld [vmem:[#allocation55 + $0x3cc] ss:$40 sps:$4 sm:$0xff]  }
0x169b   : > { %12465 = vmatpush2.bf16.msra.mxu0 %v18526_v46  ;;  %13496 = vmatpush1.bf16.msra.mxu1 %v18535_v14  ;;  %v18607_v8 = vld [vmem:[#allocation55 + $0x370] ss:$40 sps:$4 sm:$0xff]   ;;  %v18615_v62 = vld [vmem:[#allocation55 + $0x324] ss:$40 sps:$4 sm:$0xff]   ;;  %v18613_v46 = vld [vmem:[#allocation55 + $0x320] ss:$40 sps:$4 sm:$0xff]  }
0x169c   : > { %12466 = vmatprep.subr.bf16.mxu0 %v18534_v47  ;;  %13497 = vmatprep.subr.bf16.mxu1 %v18543_v1  ;;  %v18604_v20 = vld [vmem:[#allocation55 + $0x3c8] ss:$40 sps:$4 sm:$0xff]   ;;  %v18612_v14 = vld [vmem:[#allocation55 + $0x37c] ss:$40 sps:$4 sm:$0xff]   ;;  %v18610_v40 = vld [vmem:[#allocation55 + $0x378] ss:$40 sps:$4 sm:$0xff]  }
0x169d   : > { %v18618_v47 = vld [vmem:[#allocation55 + $0x32c] ss:$40 sps:$4 sm:$0xff]  }
0x169f   : > { %12467 = vmatpush2.bf16.msra.mxu0 %v18532_v52  ;;  %13498 = vmatpush1.bf16.msra.mxu1 %v18541_v19  ;;  %v18616_v52 = vld [vmem:[#allocation55 + $0x328] ss:$40 sps:$4 sm:$0xff]  }
0x16a0   : > { %13536 = vmatprep.subr.bf16.mxu0 %v18540_v44  ;;  %13499 = vmatprep.subr.bf16.mxu1 %v18549_v17  ;;  %v11259_v17 = vld [vmem:[#allocation53] sm:$0x3] }
0x16a2   : > { %12469 = vmatmul.mubr.bf16.vlgmr.msra.gmra.mxu0 %v11065_v18 }
0x16a3   : > { %13537 = vmatpush1.bf16.msra.mxu0 %v18538_v0  ;;  %13500 = vmatpush1.bf16.msra.mxu1 %v18547_v53  ;;  %v11264_v0 = vrot.slane %v11259_v17, %v23383_v24  ;;  %v11268_v53 = vrot.slane %v11259_v17, %v23384_v32  ;;  %v18640_v17 = vld [vmem:[#allocation55 + $0x1f8] ss:$40 sps:$4 sm:$0xff]  }
0x16a4   : > { %13538 = vmatprep.subr.bf16.mxu0 %v18546_v33  ;;  %13501 = vmatprep.subr.bf16.mxu1 %v18555_v42 }
0x16a7   : > { %13539 = vmatpush1.bf16.msra.mxu0 %v18544_v22  ;;  %13502 = vmatpush1.bf16.msra.mxu1 %v18553_v56  ;;  %v18621_v56 = vld [vmem:[#allocation55 + $0x2d4] ss:$40 sps:$4 sm:$0xff]  }
0x16a8   : > { %13540 = vmatprep.subr.bf16.mxu0 %v18552_v25  ;;  %13503 = vmatprep.subr.bf16.mxu1 %v18561_v10  ;;  %v18624_v25 = vld [vmem:[#allocation55 + $0x2dc] ss:$40 sps:$4 sm:$0xff]  }
0x16ab   : > { %13541 = vmatpush1.bf16.msra.mxu0 %v18550_v12  ;;  %13504 = vmatpush1.bf16.msra.mxu1 %v18559_v45  ;;  %v18619_v12 = vld [vmem:[#allocation55 + $0x2d0] ss:$40 sps:$4 sm:$0xff]  }
0x16ac   : > { %13542 = vmatprep.subr.bf16.mxu0 %v18558_v38  ;;  %13505 = vmatprep.subr.bf16.mxu1 %v18567_v5  ;;  %v18622_v45 = vld [vmem:[#allocation55 + $0x2d8] ss:$40 sps:$4 sm:$0xff]  }
0x16af   : > { %13543 = vmatpush1.bf16.msra.mxu0 %v18556_v29  ;;  %13506 = vmatpush1.bf16.msra.mxu1 %v18565_v26  ;;  %v18627_v29 = vld [vmem:[#allocation55 + $0x284] ss:$40 sps:$4 sm:$0xff]  }
0x16b0   : > { %13544 = vmatprep.subr.bf16.mxu0 %v18564_v57  ;;  %13507 = vmatprep.subr.bf16.mxu1 %v18573_v9  ;;  %v18630_v26 = vld [vmem:[#allocation55 + $0x28c] ss:$40 sps:$4 sm:$0xff]   ;;  %v18625_v9 = vld [vmem:[#allocation55 + $0x280] ss:$40 sps:$4 sm:$0xff]  }
0x16b3   : > { %13545 = vmatpush1.bf16.msra.mxu0 %v18562_v50  ;;  %13508 = vmatpush1.bf16.msra.mxu1 %v18571_v37  ;;  %v18628_v50 = vld [vmem:[#allocation55 + $0x288] ss:$40 sps:$4 sm:$0xff]   ;;  %v18633_v37 = vld [vmem:[#allocation55 + $0x244] ss:$40 sps:$4 sm:$0xff]  }
0x16b4   : > { %13546 = vmatprep.subr.bf16.mxu0 %v18570_v30  ;;  %13509 = vmatprep.subr.bf16.mxu1 %v18579_v28  ;;  %v18636_v30 = vld [vmem:[#allocation55 + $0x24c] ss:$40 sps:$4 sm:$0xff]  }
0x16b7   : > { %13547 = vmatpush1.bf16.msra.mxu0 %v18568_v21  ;;  %13510 = vmatpush1.bf16.msra.mxu1 %v18577_v23 }
0x16b8   : > { %13548 = vmatprep.subr.bf16.mxu0 %v18576_v6  ;;  %13511 = vmatprep.subr.bf16.mxu1 %v18585_v31 }
0x16bb   : > { %13549 = vmatpush1.bf16.msra.mxu0 %v18574_v16  ;;  %13512 = vmatpush2.bf16.msra.mxu1 %v18583_v4 }
0x16bc   : > { %13550 = vmatprep.subr.bf16.mxu0 %v18582_v13  ;;  %13513 = vmatprep.subr.bf16.mxu1 %v18591_v3 }
0x16bf   : > { %13551 = vmatpush1.bf16.msra.mxu0 %v18580_v51  ;;  %13514 = vmatpush2.bf16.msra.mxu1 %v18589_v2 }
0x16c0   : > { %13552 = vmatprep.subr.bf16.mxu0 %v18588_v55  ;;  %13515 = vmatprep.subr.bf16.mxu1 %v18597_v27 }
0x16c3   : > { %13553 = vmatpush2.bf16.msra.mxu0 %v18586_v59  ;;  %13516 = vmatpush2.bf16.msra.mxu1 %v18595_v34 }
0x16c4   : > { %13554 = vmatprep.subr.bf16.mxu0 %v18594_v35  ;;  %13517 = vmatprep.subr.bf16.mxu1 %v18603_v48 }
0x16c7   : > { %13555 = vmatpush2.bf16.msra.mxu0 %v18592_v43  ;;  %13518 = vmatpush2.bf16.msra.mxu1 %v18601_v54 }
0x16c8   : > { %13556 = vmatprep.subr.bf16.mxu0 %v18600_v61  ;;  %13519 = vmatprep.subr.bf16.mxu1 %v18609_v49 }
0x16cb   : > { %13557 = vmatpush2.bf16.msra.mxu0 %v18598_v60  ;;  %13520 = vmatpush2.bf16.msra.mxu1 %v18607_v8  ;;  %v23391_v8 = vld [vmem:[#allocation147_spill] sm:$0xff] }
0x16cc   : > { %13558 = vmatprep.subr.bf16.mxu0 %v18606_v36  ;;  %13521 = vmatprep.subr.bf16.mxu1 %v18615_v62 }
0x16cf   : > { %13559 = vmatpush2.bf16.msra.mxu0 %v18604_v20  ;;  %13522 = vmatpush2.bf16.msra.mxu1 %v18613_v46  ;;  %v23392_v20 = vld [vmem:[#allocation134_spill] sm:$0xff] }
0x16d0   : > { %13560 = vmatprep.subr.bf16.mxu0 %v18612_v14  ;;  %13523 = vmatprep.subr.bf16.mxu1 %v18621_v56  ;;  %v18649_v56 = vld [vmem:[#allocation55 + $0x150] ss:$40 sps:$4 sm:$0xff]  }
0x16d2   : > { %v12265_v1 = vpop.f32.mrf.mxu1 }
0x16d3   : > { %13561 = vmatpush2.bf16.msra.mxu0 %v18610_v40  ;;  %v12266_v18 = vadd.f32 %v12265_v1, %v11264_v0  ;;  %13524 = vmatpush2.bf16.msra.mxu1 %v18619_v12  ;;  %v18634_v1 = vld [vmem:[#allocation55 + $0x248] ss:$40 sps:$4 sm:$0xff]   ;;  %v18645_v0 = vld [vmem:[#allocation55 + $0x1a4] ss:$40 sps:$4 sm:$0xff]  }
0x16d4   : > { %v12267_v19 = vpop.f32.mrf.mxu1  ;;  %13562 = vmatprep.subr.bf16.mxu0 %v18618_v47  ;;  %13525 = vmatprep.subr.bf16.mxu1 %v18627_v29  ;;  %v18631_v47 = vld [vmem:[#allocation55 + $0x240] ss:$40 sps:$4 sm:$0xff]   ;;  %v18660_v12 = vld [vmem:[#allocation55 + $0x10c] ss:$40 sps:$4 sm:$0xff]   ;;  %v18666_v29 = vld [vmem:[#allocation55 + $0xbc] ss:$40 sps:$4 sm:$0xff]  }
0x16d5   : > { %v12268_v42 = vadd.f32 %v12267_v19, %v11268_v53  ;;  %v18639_v19 = vld [vmem:[#allocation55 + $0x1f4] ss:$40 sps:$4 sm:$0xff]  }
0x16d6   : > { %v12269_v41 = vpop.f32.mrf.mxu1  ;;  %v18648_v53 = vld [vmem:[#allocation55 + $0x1ac] ss:$40 sps:$4 sm:$0xff]  }
0x16d7   : > { %13563 = vmatpush2.bf16.msra.mxu0 %v18616_v52  ;;  %13526 = vmatpush2.bf16.msra.mxu1 %v18625_v9  ;;  %v18642_v41 = vld [vmem:[#allocation55 + $0x1fc] ss:$40 sps:$4 sm:$0xff]  }
0x16d8   : > { %v12270_v44 = vpop.f32.mrf.mxu1  ;;  %13564 = vmatprep.subr.bf16.mxu0 %v18624_v25  ;;  %13577 = vmatprep.subr.bf16.mxu1 %v18633_v37  ;;  %v18652_v25 = vld [vmem:[#allocation55 + $0x158] ss:$40 sps:$4 sm:$0xff]   ;;  %v18669_v9 = vld [vmem:[#allocation55 + $0x64] ss:$40 sps:$4 sm:$0xff]  }
0x16d9   : > { %v18637_v44 = vld [vmem:[#allocation55 + $0x1f0] ss:$40 sps:$4 sm:$0xff]   ;;  %v18667_v37 = vld [vmem:[#allocation55 + $0x60] ss:$40 sps:$4 sm:$0xff]  }
0x16db   : > { %13565 = vmatpush2.bf16.msra.mxu0 %v18622_v45  ;;  %v18655_v45 = vld [vmem:[#allocation55 + $0x100] ss:$40 sps:$4 sm:$0xff]  }
0x16dc   : > { %13566 = vmatprep.subr.bf16.mxu0 %v18630_v26  ;;  %v18661_v26 = vld [vmem:[#allocation55 + $0xb0] ss:$40 sps:$4 sm:$0xff]  }
0x16df   : > { %13567 = vmatpush2.bf16.msra.mxu0 %v18628_v50  ;;  %v18672_v50 = vld [vmem:[#allocation55 + $0x6c] ss:$40 sps:$4 sm:$0xff]  }
0x16e0   : > { %13618 = vmatprep.subr.bf16.mxu0 %v18636_v30  ;;  %v18670_v30 = vld [vmem:[#allocation55 + $0x68] ss:$40 sps:$4 sm:$0xff]  }
0x16e2   : > { %v12306_v33 = vpop.f32.mrf.mxu0 }
0x16e3   : > { %v12307_v22 = vadd.f32 %v12306_v33, %v12266_v18  ;;  %v18643_v18 = vld [vmem:[#allocation55 + $0x1a0] ss:$40 sps:$4 sm:$0xff]  }
0x16e4   : > { %v12308_v10 = vpop.f32.mrf.mxu0  ;;  %v18646_v33 = vld [vmem:[#allocation55 + $0x1a8] ss:$40 sps:$4 sm:$0xff]  }
0x16e5   : > { %v12309_v38 = vadd.f32 %v12308_v10, %v12268_v42  ;;  %v18651_v42 = vld [vmem:[#allocation55 + $0x154] ss:$40 sps:$4 sm:$0xff]   ;;  %v18657_v10 = vld [vmem:[#allocation55 + $0x104] ss:$40 sps:$4 sm:$0xff]  }
0x16e6   : > { %v12310_v5 = vpop.f32.mrf.mxu0 }
0x16e7   : > { %v18663_v5 = vld [vmem:[#allocation55 + $0xb4] ss:$40 sps:$4 sm:$0xff]  }
0x16e8   : > { %v12311_v57 = vpop.f32.mrf.mxu0 }
0x16e9   : > { %v18664_v57 = vld [vmem:[#allocation55 + $0xb8] ss:$40 sps:$4 sm:$0xff]  }
0x171a   : > { %v12347_v28 = vpop.f32.mrf.mxu1 }
0x171b   : > { %v12348_v21 = vadd.f32 %v12347_v28, %v12307_v22  ;;  %v18654_v22 = vld [vmem:[#allocation55 + $0x15c] ss:$40 sps:$4 sm:$0xff]  }
0x171c   : > { %v12349_v23 = vpop.f32.mrf.mxu1  ;;  %v18675_v28 = vld [vmem:[#allocation55 + $0x14] ss:$40 sps:$4 sm:$0xff]  }
0x171d   : > { %v12350_v6 = vadd.f32 %v12349_v23, %v12309_v38  ;;  %v18658_v38 = vld [vmem:[#allocation55 + $0x108] ss:$40 sps:$4 sm:$0xff]  }
0x171e   : > { %v12351_v31 = vpop.f32.mrf.mxu1  ;;  %v18673_v23 = vld [vmem:[#allocation55 + $0x10] ss:$40 sps:$4 sm:$0xff]  }
0x171f   : > { %v18681_v31 = vld [vmem:[#allocation55 + $0x4c4] ss:$40 sps:$4 sm:$0xff]  }
0x1720   : > { %v12352_v16 = vpop.f32.mrf.mxu1 }
0x1721   : > { %v18684_v16 = vld [vmem:[#allocation55 + $0x4cc] ss:$40 sps:$4 sm:$0xff]  }
0x1722   : > { %v12388_v4 = vpop.f32.mrf.mxu0 }
0x1723   : > { %v12389_v59 = vadd.f32 %v12388_v4, %v12348_v21  ;;  %v18678_v21 = vld [vmem:[#allocation55 + $0x1c] ss:$40 sps:$4 sm:$0xff]   ;;  %v18679_v4 = vld [vmem:[#allocation55 + $0x4c0] ss:$40 sps:$4 sm:$0xff]  }
0x1724   : > { %v12390_v13 = vpop.f32.mrf.mxu0 }
0x1725   : > { %v12391_v35 = vadd.f32 %v12390_v13, %v12350_v6  ;;  %v18676_v6 = vld [vmem:[#allocation55 + $0x18] ss:$40 sps:$4 sm:$0xff]   ;;  %v18682_v13 = vld [vmem:[#allocation55 + $0x4c8] ss:$40 sps:$4 sm:$0xff]  }
0x1726   : > { %v12392_v3 = vpop.f32.mrf.mxu0 }
0x1727   : > { %v18687_v3 = vld [vmem:[#allocation55 + $0x474] ss:$40 sps:$4 sm:$0xff]  }
0x1728   : > { %v12393_v51 = vpop.f32.mrf.mxu0 }
0x1729   : > { %v18690_v51 = vld [vmem:[#allocation55 + $0x47c] ss:$40 sps:$4 sm:$0xff]  }
0x175a   : > { %v12429_v2 = vpop.f32.mrf.mxu1 }
0x175b   : > { %v12430_v48 = vadd.f32 %v12429_v2, %v12389_v59  ;;  %v18685_v2 = vld [vmem:[#allocation55 + $0x470] ss:$40 sps:$4 sm:$0xff]   ;;  %v18696_v59 = vld [vmem:[#allocation55 + $0x42c] ss:$40 sps:$4 sm:$0xff]  }
0x175c   : > { %v12431_v55 = vpop.f32.mrf.mxu1 }
0x175d   : > { %v12432_v54 = vadd.f32 %v12431_v55, %v12391_v35  ;;  %v18688_v55 = vld [vmem:[#allocation55 + $0x478] ss:$40 sps:$4 sm:$0xff]   ;;  %v18694_v35 = vld [vmem:[#allocation55 + $0x428] ss:$40 sps:$4 sm:$0xff]  }
0x175e   : > { %v12433_v27 = vpop.f32.mrf.mxu1 }
0x175f   : > { %v18693_v27 = vld [vmem:[#allocation55 + $0x424] ss:$40 sps:$4 sm:$0xff]  }
0x1760   : > { %v12434_v34 = vpop.f32.mrf.mxu1 }
0x1761   : > { %v18691_v34 = vld [vmem:[#allocation55 + $0x420] ss:$40 sps:$4 sm:$0xff]  }
0x1762   : > { %v12470_v43 = vpop.f32.mrf.mxu0 }
0x1763   : > { %v12471_v61 = vadd.f32 %v12470_v43, %v12430_v48  ;;  %v18699_v48 = vld [vmem:[#allocation55 + $0x3d4] ss:$40 sps:$4 sm:$0xff]  }
0x1764   : > { %v12472_v49 = vpop.f32.mrf.mxu0  ;;  %v18702_v43 = vld [vmem:[#allocation55 + $0x3dc] ss:$40 sps:$4 sm:$0xff]  }
0x1765   : > { %v12473_v60 = vadd.f32 %v12472_v49, %v12432_v54  ;;  %v12477_v36 = vadd.f32 %v12471_v61, %v23391_v8  ;;  %v18697_v54 = vld [vmem:[#allocation55 + $0x3d0] ss:$40 sps:$4 sm:$0xff]   ;;  %v18705_v49 = vld [vmem:[#allocation55 + $0x384] ss:$40 sps:$4 sm:$0xff]   ;;  %v18703_v8 = vld [vmem:[#allocation55 + $0x380] ss:$40 sps:$4 sm:$0xff]  }
0x1766   : > { %v12474_v62 = vpop.f32.mrf.mxu0  ;;  %v18700_v61 = vld [vmem:[#allocation55 + $0x3d8] ss:$40 sps:$4 sm:$0xff]  }
0x1767   : > { %v12478_v46 = vadd.f32 %v12473_v60, %v23392_v20  ;;  %v22866_v52 = vpack.c.bf16 %v12477_v36, %v12477_v36  ;;  %v18708_v60 = vld [vmem:[#allocation55 + $0x38c] ss:$40 sps:$4 sm:$0xff]   ;;  %v18706_v36 = vld [vmem:[#allocation55 + $0x388] ss:$40 sps:$4 sm:$0xff]   ;;  %v18714_v20 = vld [vmem:[#allocation55 + $0x33c] ss:$40 sps:$4 sm:$0xff]  }
0x1768   : > { %v12475_v14 = vpop.f32.mrf.mxu0  ;;  %v18711_v62 = vld [vmem:[#allocation55 + $0x334] ss:$40 sps:$4 sm:$0xff]  }
0x1769   : > { %v22864_v40 = vpack.c.bf16 %v12478_v46, %v12478_v46  ;;  %v18709_v46 = vld [vmem:[#allocation55 + $0x330] ss:$40 sps:$4 sm:$0xff]  }
0x176a   : > { %v18712_v14 = vld [vmem:[#allocation55 + $0x338] ss:$40 sps:$4 sm:$0xff]  }
0x176b   : > { %13527 = vmatprep.mubr.bf16.mxu1 %v22864_v40  ;;  %13568 = vmatprep.mubr.bf16.mxu0 %v22864_v40 }
0x176c   : > { %13528 = vmatmul.mubr.bf16.vlgmr.msra.gmra.mxu1 %v22866_v52  ;;  %13569 = vmatmul.mubr.bf16.vlgmr.msra.gmra.mxu0 %v22866_v52 }
0x176d   : > { %13578 = vmatpush1.bf16.msra.mxu1 %v18631_v47  ;;  %13619 = vmatpush1.bf16.msra.mxu0 %v18634_v1  ;;  %v18717_v47 = vld [vmem:[#allocation55 + $0x2e4] ss:$40 sps:$4 sm:$0xff]  }
0x176e   : > { %13609 = vmatprep.mubr.bf16.mxu1 %v22864_v40  ;;  %13650 = vmatprep.mubr.bf16.mxu0 %v22864_v40  ;;  %v18720_v1 = vld [vmem:[#allocation55 + $0x2ec] ss:$40 sps:$4 sm:$0xff]  }
0x176f   : > { %13579 = vmatprep.subr.bf16.mxu1 %v18639_v19  ;;  %13620 = vmatprep.subr.bf16.mxu0 %v18642_v41  ;;  %v18715_v19 = vld [vmem:[#allocation55 + $0x2e0] ss:$40 sps:$4 sm:$0xff]  }
0x1770   : > { %v18718_v41 = vld [vmem:[#allocation55 + $0x2e8] ss:$40 sps:$4 sm:$0xff]  }
0x1771   : > { %13580 = vmatpush1.bf16.msra.mxu1 %v18637_v44  ;;  %13621 = vmatpush1.bf16.msra.mxu0 %v18640_v17  ;;  %v18723_v44 = vld [vmem:[#allocation55 + $0x294] ss:$40 sps:$4 sm:$0xff]  }
0x1772   : > { %13581 = vmatprep.subr.bf16.mxu1 %v18645_v0  ;;  %13622 = vmatprep.subr.bf16.mxu0 %v18648_v53  ;;  %v18726_v17 = vld [vmem:[#allocation55 + $0x29c] ss:$40 sps:$4 sm:$0xff]   ;;  %v18721_v0 = vld [vmem:[#allocation55 + $0x290] ss:$40 sps:$4 sm:$0xff]  }
0x1773   : > { %v18724_v53 = vld [vmem:[#allocation55 + $0x298] ss:$40 sps:$4 sm:$0xff]  }
0x1775   : > { %13582 = vmatpush1.bf16.msra.mxu1 %v18643_v18  ;;  %13623 = vmatpush1.bf16.msra.mxu0 %v18646_v33  ;;  %v18729_v18 = vld [vmem:[#allocation55 + $0x254] ss:$40 sps:$4 sm:$0xff]  }
0x1776   : > { %13583 = vmatprep.subr.bf16.mxu1 %v18651_v42  ;;  %13624 = vmatprep.subr.bf16.mxu0 %v18654_v22  ;;  %v18775_v33 = vld [vmem:[#allocation56 + $0x78] sm:$0xff]   ;;  %v18732_v22 = vld [vmem:[#allocation55 + $0x204] ss:$40 sps:$4 sm:$0xff]  }
0x1777   : > { %v18727_v42 = vld [vmem:[#allocation55 + $0x250] ss:$40 sps:$4 sm:$0xff]  }
0x1779   : > { %13584 = vmatpush1.bf16.msra.mxu1 %v18649_v56  ;;  %13625 = vmatpush1.bf16.msra.mxu0 %v18652_v25  ;;  %v18776_v56 = vld [vmem:[#allocation56 + $0x38] sm:$0xff]   ;;  %v18777_v25 = vld [vmem:[#allocation56 + $0x70] sm:$0xff]  }
0x177a   : > { %13585 = vmatprep.subr.bf16.mxu1 %v18657_v10  ;;  %13626 = vmatprep.subr.bf16.mxu0 %v18660_v12  ;;  %v18730_v10 = vld [vmem:[#allocation55 + $0x200] ss:$40 sps:$4 sm:$0xff]   ;;  %v18735_v12 = vld [vmem:[#allocation55 + $0x1b4] ss:$40 sps:$4 sm:$0xff]  }
0x177d   : > { %13586 = vmatpush1.bf16.msra.mxu1 %v18655_v45  ;;  %13627 = vmatpush1.bf16.msra.mxu0 %v18658_v38  ;;  %v18778_v45 = vld [vmem:[#allocation56 + $0x30] sm:$0xff]   ;;  %v18779_v38 = vld [vmem:[#allocation56 + $0x68] sm:$0xff]  }
0x177e   : > { %13587 = vmatprep.subr.bf16.mxu1 %v18663_v5  ;;  %13628 = vmatprep.subr.bf16.mxu0 %v18666_v29  ;;  %v18733_v5 = vld [vmem:[#allocation55 + $0x1b0] ss:$40 sps:$4 sm:$0xff]   ;;  %v18738_v29 = vld [vmem:[#allocation55 + $0x164] ss:$40 sps:$4 sm:$0xff]  }
0x1781   : > { %13588 = vmatpush1.bf16.msra.mxu1 %v18661_v26  ;;  %13629 = vmatpush1.bf16.msra.mxu0 %v18664_v57  ;;  %v18780_v26 = vld [vmem:[#allocation56 + $0x28] sm:$0xff]   ;;  %v18781_v57 = vld [vmem:[#allocation56 + $0x60] sm:$0xff]  }
0x1782   : > { %13589 = vmatprep.subr.bf16.mxu1 %v18669_v9  ;;  %13630 = vmatprep.subr.bf16.mxu0 %v18672_v50  ;;  %v18736_v9 = vld [vmem:[#allocation55 + $0x160] ss:$40 sps:$4 sm:$0xff]   ;;  %v18741_v50 = vld [vmem:[#allocation55 + $0x114] ss:$40 sps:$4 sm:$0xff]  }
0x1785   : > { %13590 = vmatpush1.bf16.msra.mxu1 %v18667_v37  ;;  %13631 = vmatpush1.bf16.msra.mxu0 %v18670_v30  ;;  %v18783_v37 = vld [vmem:[#allocation56 + $0x58] sm:$0xff]  }
0x1786   : > { %13591 = vmatprep.subr.bf16.mxu1 %v18675_v28  ;;  %13632 = vmatprep.subr.bf16.mxu0 %v18678_v21  ;;  %v18739_v30 = vld [vmem:[#allocation55 + $0x110] ss:$40 sps:$4 sm:$0xff]   ;;  %v18744_v28 = vld [vmem:[#allocation55 + $0xc4] ss:$40 sps:$4 sm:$0xff]  }
0x1787   : > { %v18784_v21 = vld [vmem:[#allocation56 + $0x18] sm:$0xff]  }
0x1789   : > { %13592 = vmatpush1.bf16.msra.mxu1 %v18673_v23  ;;  %13633 = vmatpush1.bf16.msra.mxu0 %v18676_v6  ;;  %v18785_v23 = vld [vmem:[#allocation56 + $0x50] sm:$0xff]   ;;  %v18742_v6 = vld [vmem:[#allocation55 + $0xc0] ss:$40 sps:$4 sm:$0xff]  }
0x178a   : > { %13593 = vmatprep.subr.bf16.mxu1 %v18681_v31  ;;  %13634 = vmatprep.subr.bf16.mxu0 %v18684_v16  ;;  %v18747_v31 = vld [vmem:[#allocation55 + $0x74] ss:$40 sps:$4 sm:$0xff]  }
0x178b   : > { %v18786_v16 = vld [vmem:[#allocation56 + $0x10] sm:$0xff]  }
0x178d   : > { %13594 = vmatpush2.bf16.msra.mxu1 %v18679_v4  ;;  %13635 = vmatpush2.bf16.msra.mxu0 %v18682_v13  ;;  %v18787_v4 = vld [vmem:[#allocation56 + $0x48] sm:$0xff]   ;;  %v18745_v13 = vld [vmem:[#allocation55 + $0x70] ss:$40 sps:$4 sm:$0xff]  }
0x178e   : > { %13595 = vmatprep.subr.bf16.mxu1 %v18687_v3  ;;  %13636 = vmatprep.subr.bf16.mxu0 %v18690_v51  ;;  %v18750_v3 = vld [vmem:[#allocation55 + $0x24] ss:$40 sps:$4 sm:$0xff]  }
0x178f   : > { %v18788_v51 = vld [vmem:[#allocation56 + $0x8] sm:$0xff]  }
0x1791   : > { %13596 = vmatpush2.bf16.msra.mxu1 %v18685_v2  ;;  %13637 = vmatpush2.bf16.msra.mxu0 %v18688_v55  ;;  %v18789_v2 = vld [vmem:[#allocation56 + $0x40] sm:$0xff]  }
0x1792   : > { %13597 = vmatprep.subr.bf16.mxu1 %v18693_v27  ;;  %13638 = vmatprep.subr.bf16.mxu0 %v18696_v59  ;;  %v18748_v55 = vld [vmem:[#allocation55 + $0x20] ss:$40 sps:$4 sm:$0xff]   ;;  %v18753_v27 = vld [vmem:[#allocation55 + $0x4d4] ss:$40 sps:$4 sm:$0xff]  }
0x1793   : > { %v18790_v59 = vld [vmem:[#allocation56] sm:$0xff]  }
0x1795   : > { %13598 = vmatpush2.bf16.msra.mxu1 %v18691_v34  ;;  %13639 = vmatpush2.bf16.msra.mxu0 %v18694_v35  ;;  %v18791_v34 = vld [vmem:[#allocation56 + $0xf8] sm:$0xff]  }
0x1796   : > { %13599 = vmatprep.subr.bf16.mxu1 %v18699_v48  ;;  %13640 = vmatprep.subr.bf16.mxu0 %v18702_v43  ;;  %v18751_v35 = vld [vmem:[#allocation55 + $0x4d0] ss:$40 sps:$4 sm:$0xff]   ;;  %v18756_v48 = vld [vmem:[#allocation55 + $0x484] ss:$40 sps:$4 sm:$0xff]   ;;  %v18754_v43 = vld [vmem:[#allocation55 + $0x480] ss:$40 sps:$4 sm:$0xff]  }
0x1799   : > { %13600 = vmatpush2.bf16.msra.mxu1 %v18697_v54  ;;  %13641 = vmatpush2.bf16.msra.mxu0 %v18700_v61  ;;  %v18759_v54 = vld [vmem:[#allocation55 + $0x434] ss:$40 sps:$4 sm:$0xff]   ;;  %v18757_v61 = vld [vmem:[#allocation55 + $0x430] ss:$40 sps:$4 sm:$0xff]  }
0x179a   : > { %13601 = vmatprep.subr.bf16.mxu1 %v18705_v49  ;;  %13642 = vmatprep.subr.bf16.mxu0 %v18708_v60  ;;  %v18762_v49 = vld [vmem:[#allocation55 + $0x3e4] ss:$40 sps:$4 sm:$0xff]   ;;  %v18760_v60 = vld [vmem:[#allocation55 + $0x3e0] ss:$40 sps:$4 sm:$0xff]  }
0x179d   : > { %13602 = vmatpush2.bf16.msra.mxu1 %v18703_v8  ;;  %13643 = vmatpush2.bf16.msra.mxu0 %v18706_v36  ;;  %v18765_v8 = vld [vmem:[#allocation55 + $0x394] ss:$40 sps:$4 sm:$0xff]   ;;  %v18763_v36 = vld [vmem:[#allocation55 + $0x390] ss:$40 sps:$4 sm:$0xff]  }
0x179e   : > { %13603 = vmatprep.subr.bf16.mxu1 %v18711_v62  ;;  %13644 = vmatprep.subr.bf16.mxu0 %v18714_v20  ;;  %v18768_v62 = vld [vmem:[#allocation55 + $0x344] ss:$40 sps:$4 sm:$0xff]   ;;  %v18766_v20 = vld [vmem:[#allocation55 + $0x340] ss:$40 sps:$4 sm:$0xff]  }
0x17a1   : > { %13604 = vmatpush2.bf16.msra.mxu1 %v18709_v46  ;;  %13645 = vmatpush2.bf16.msra.mxu0 %v18712_v14  ;;  %v18771_v46 = vld [vmem:[#allocation55 + $0x2f4] ss:$40 sps:$4 sm:$0xff]   ;;  %v18769_v14 = vld [vmem:[#allocation55 + $0x2f0] ss:$40 sps:$4 sm:$0xff]  }
0x17a2   : > { %13605 = vmatprep.subr.bf16.mxu1 %v18717_v47  ;;  %13646 = vmatprep.subr.bf16.mxu0 %v18720_v1  ;;  %v18774_v47 = vld [vmem:[#allocation55 + $0x2a4] ss:$40 sps:$4 sm:$0xff]   ;;  %v18772_v1 = vld [vmem:[#allocation55 + $0x2a0] ss:$40 sps:$4 sm:$0xff]  }
0x17a5   : > { %13606 = vmatpush2.bf16.msra.mxu1 %v18715_v19  ;;  %13647 = vmatpush2.bf16.msra.mxu0 %v18718_v41  ;;  %v18807_v19 = vld [vmem:[#allocation56 + $0x178] sm:$0xff]  }
0x17a6   : > { %13607 = vmatprep.subr.bf16.mxu1 %v18723_v44  ;;  %13648 = vmatprep.subr.bf16.mxu0 %v18726_v17  ;;  %v18809_v41 = vld [vmem:[#allocation56 + $0x138] sm:$0xff]   ;;  %v18811_v44 = vld [vmem:[#allocation56 + $0x170] sm:$0xff]  }
0x17a7   : > { %v18813_v17 = vld [vmem:[#allocation56 + $0x130] sm:$0xff]  }
0x17a9   : > { %13608 = vmatpush2.bf16.msra.mxu1 %v18721_v0  ;;  %13649 = vmatpush2.bf16.msra.mxu0 %v18724_v53  ;;  %v18815_v0 = vld [vmem:[#allocation56 + $0x168] sm:$0xff]  }
0x17aa   : > { %13659 = vmatprep.subr.bf16.mxu1 %v18729_v18  ;;  %16630 = vmatprep.subr.bf16.mxu0 %v18775_v33  ;;  %v18817_v53 = vld [vmem:[#allocation56 + $0x128] sm:$0xff]   ;;  %v18819_v18 = vld [vmem:[#allocation56 + $0x160] sm:$0xff]  }
0x17ab   : > { %v18821_v33 = vld [vmem:[#allocation56 + $0x120] sm:$0xff]  }
0x17ac   : > { %13610 = vmatmul.mubr.bf16.vlgmr.msra.gmra.mxu1 %v22866_v52  ;;  %13651 = vmatmul.mubr.bf16.vlgmr.msra.gmra.mxu0 %v22866_v52 }
0x17ad   : > { %13660 = vmatpush1.bf16.msra.mxu1 %v18727_v42  ;;  %13691 = vmatprep.mubr.bf16.mxu1 %v22864_v40  ;;  %v18782_v40 = vld [vmem:[#allocation56 + $0x20] sm:$0xff]   ;;  %v18823_v42 = vld [vmem:[#allocation56 + $0x158] sm:$0xff]  }
0x17ae   : > { %13661 = vmatprep.subr.bf16.mxu1 %v18732_v22  ;;  %16631 = vmatpush3.bf16.msra.mxu0 %v18776_v56  ;;  %v18825_v22 = vld [vmem:[#allocation56 + $0x118] sm:$0xff]   ;;  %v18827_v56 = vld [vmem:[#allocation56 + $0x150] sm:$0xff]  }
0x17af   : > { %16632 = vmatprep.subr.bf16.mxu0 %v18777_v25  ;;  %v18829_v25 = vld [vmem:[#allocation56 + $0x110] sm:$0xff]  }
0x17b1   : > { %13662 = vmatpush1.bf16.msra.mxu1 %v18730_v10  ;;  %v18833_v10 = vld [vmem:[#allocation56 + $0x108] sm:$0xff]  }
0x17b2   : > { %13663 = vmatprep.subr.bf16.mxu1 %v18735_v12  ;;  %16633 = vmatpush3.bf16.msra.mxu0 %v18778_v45  ;;  %v18835_v12 = vld [vmem:[#allocation56 + $0x140] sm:$0xff]  }
0x17b3   : > { %16634 = vmatprep.subr.bf16.mxu0 %v18779_v38  ;;  %v18837_v45 = vld [vmem:[#allocation56 + $0x100] sm:$0xff]   ;;  %v18839_v38 = vld [vmem:[#allocation56 + $0x278] sm:$0xff]  }
0x17b5   : > { %13664 = vmatpush1.bf16.msra.mxu1 %v18733_v5  ;;  %v22879_v5 = vld [vmem:[%s20212_s25] sm:$0xff] }
0x17b6   : > { %13665 = vmatprep.subr.bf16.mxu1 %v18738_v29  ;;  %16635 = vmatpush3.bf16.msra.mxu0 %v18780_v26  ;;  %v12648_v29 = vrot.slane %v22879_v5, %v23383_v24  ;;  %v12652_v26 = vrot.slane %v22879_v5, %v23384_v32 }
0x17b7   : > { %16636 = vmatprep.subr.bf16.mxu0 %v18781_v57  ;;  %v12660_v57 = vrot.slane %v22879_v5, %v23386_v58 }
0x17b9   : > { %13666 = vmatpush1.bf16.msra.mxu1 %v18736_v9 }
0x17ba   : > { %13667 = vmatprep.subr.bf16.mxu1 %v18741_v50  ;;  %16637 = vmatpush3.bf16.msra.mxu0 %v18782_v40 }
0x17bb   : > { %16638 = vmatprep.subr.bf16.mxu0 %v18783_v37 }
0x17bd   : > { %13668 = vmatpush1.bf16.msra.mxu1 %v18739_v30 }
0x17be   : > { %13669 = vmatprep.subr.bf16.mxu1 %v18744_v28  ;;  %16639 = vmatpush3.bf16.msra.mxu0 %v18784_v21 }
0x17bf   : > { %16640 = vmatprep.subr.bf16.mxu0 %v18785_v23 }
0x17c1   : > { %13670 = vmatpush1.bf16.msra.mxu1 %v18742_v6 }
0x17c2   : > { %13671 = vmatprep.subr.bf16.mxu1 %v18747_v31  ;;  %16641 = vmatpush3.bf16.msra.mxu0 %v18786_v16 }
0x17c3   : > { %16642 = vmatprep.subr.bf16.mxu0 %v18787_v4 }
0x17c5   : > { %13672 = vmatpush1.bf16.msra.mxu1 %v18745_v13 }
0x17c6   : > { %13673 = vmatprep.subr.bf16.mxu1 %v18750_v3  ;;  %16643 = vmatpush3.bf16.msra.mxu0 %v18788_v51 }
0x17c7   : > { %16644 = vmatprep.subr.bf16.mxu0 %v18789_v2 }
0x17c9   : > { %13674 = vmatpush1.bf16.msra.mxu1 %v18748_v55 }
0x17ca   : > { %13675 = vmatprep.subr.bf16.mxu1 %v18753_v27  ;;  %16645 = vmatpush3.bf16.msra.mxu0 %v18790_v59 }
0x17cb   : > { %16652 = vmatprep.subr.bf16.mxu0 %v18791_v34 }
0x17cd   : > { %13676 = vmatpush2.bf16.msra.mxu1 %v18751_v35 }
0x17ce   : > { %13677 = vmatprep.subr.bf16.mxu1 %v18756_v48 }
0x17d1   : > { %13678 = vmatpush2.bf16.msra.mxu1 %v18754_v43 }
0x17d2   : > { %13679 = vmatprep.subr.bf16.mxu1 %v18759_v54 }
0x17d5   : > { %13680 = vmatpush2.bf16.msra.mxu1 %v18757_v61  ;;  %v12656_v61 = vrot.slane %v22879_v5, %v23385_v15 }
0x17d6   : > { %13681 = vmatprep.subr.bf16.mxu1 %v18762_v49 }
0x17d9   : > { %13682 = vmatpush2.bf16.msra.mxu1 %v18760_v60 }
0x17da   : > { %13683 = vmatprep.subr.bf16.mxu1 %v18765_v8 }
0x17dd   : > { %13684 = vmatpush2.bf16.msra.mxu1 %v18763_v36 }
0x17de   : > { %13685 = vmatprep.subr.bf16.mxu1 %v18768_v62 }
0x17e1   : > { %13686 = vmatpush2.bf16.msra.mxu1 %v18766_v20 }
0x17e2   : > { %13687 = vmatprep.subr.bf16.mxu1 %v18771_v46 }
0x17e5   : > { %13688 = vmatpush2.bf16.msra.mxu1 %v18769_v14 }
0x17e6   : > { %13689 = vmatprep.subr.bf16.mxu1 %v18774_v47 }
0x17e9   : > { %13690 = vmatpush2.bf16.msra.mxu1 %v18772_v1 }
0x17ea   : > { %16674 = vmatprep.subr.bf16.mxu1 %v18807_v19 }
0x17ec   : > { %13692 = vmatmul.mubr.bf16.vlgmr.msra.gmra.mxu1 %v22866_v52  ;;  %v18831_v52 = vld [vmem:[#allocation56 + $0x148] sm:$0xff]  }
0x17ed   : > { %16675 = vmatpush3.bf16.msra.mxu1 %v18809_v41 }
0x17ee   : > { %16676 = vmatprep.subr.bf16.mxu1 %v18811_v44 }
0x17f1   : > { %16677 = vmatpush3.bf16.msra.mxu1 %v18813_v17 }
0x17f2   : > { %16678 = vmatprep.subr.bf16.mxu1 %v18815_v0 }
0x17f5   : > { %16679 = vmatpush3.bf16.msra.mxu1 %v18817_v53 }
0x17f6   : > { %16680 = vmatprep.subr.bf16.mxu1 %v18819_v18  ;;  %v18792_v18 = vld [vmem:[#allocation56 + $0xb8] sm:$0xff]  }
0x17f9   : > { %16681 = vmatpush3.bf16.msra.mxu1 %v18821_v33 }
0x17fa   : > { %16682 = vmatprep.subr.bf16.mxu1 %v18823_v42  ;;  %v18793_v42 = vld [vmem:[#allocation56 + $0xf0] sm:$0xff]  }
0x17fd   : > { %16683 = vmatpush3.bf16.msra.mxu1 %v18825_v22 }
0x17fe   : > { %16684 = vmatprep.subr.bf16.mxu1 %v18827_v56  ;;  %v18794_v56 = vld [vmem:[#allocation56 + $0xb0] sm:$0xff]  }
0x1801   : > { %16685 = vmatpush3.bf16.msra.mxu1 %v18829_v25 }
0x1802   : > { %16686 = vmatprep.subr.bf16.mxu1 %v18831_v52  ;;  %v18795_v52 = vld [vmem:[#allocation56 + $0xe8] sm:$0xff]  }
0x1805   : > { %16687 = vmatpush3.bf16.msra.mxu1 %v18833_v10  ;;  %v18796_v10 = vld [vmem:[#allocation56 + $0xa8] sm:$0xff]  }
0x1806   : > { %16688 = vmatprep.subr.bf16.mxu1 %v18835_v12 }
0x1809   : > { %16689 = vmatpush3.bf16.msra.mxu1 %v18837_v45  ;;  %v18797_v45 = vld [vmem:[#allocation56 + $0xe0] sm:$0xff]  }
0x180a   : > { %16718 = vmatprep.subr.bf16.mxu1 %v18839_v38  ;;  %v18798_v38 = vld [vmem:[#allocation56 + $0xa0] sm:$0xff]  }
0x182c   : > { %v13529_v9 = vpop.f32.mrf.mxu1  ;;  %v13570_v50 = vpop.f32.mrf.mxu0 }
0x182d   : > { %v13530_v40 = vadd.f32 %v13529_v9, %v12648_v29  ;;  %v13571_v46 = vadd.f32 %v13570_v50, %v12656_v61  ;;  %v18801_v50 = vld [vmem:[#allocation56 + $0xd0] sm:$0xff]  }
0x182e   : > { %v13531_v37 = vpop.f32.mrf.mxu1  ;;  %v13572_v30 = vpop.f32.mrf.mxu0 }
0x182f   : > { %v13700_v28 = vmax.f32 %v13530_v40, 0.0  ;;  %v13532_v21 = vadd.f32 %v13531_v37, %v12652_v26  ;;  %v13573_v23 = vadd.f32 %v13572_v30, %v12660_v57  ;;  %v13702_v44 = vmax.f32 %v13571_v46, 0.0  ;;  %v18799_v26 = vld [vmem:[#allocation56 + $0xd8] sm:$0xff]   ;;  %v18802_v40 = vld [vmem:[#allocation56 + $0x90] sm:$0xff]   ;;  %v18803_v30 = vld [vmem:[#allocation56 + $0xc8] sm:$0xff]  }
0x1830   : > { %v13533_v6 = vpop.f32.mrf.mxu1  ;;  %v13574_v31 = vpop.f32.mrf.mxu0  ;;  %v18800_v57 = vld [vmem:[#allocation56 + $0x98] sm:$0xff]  }
0x1831   : > { %v13711_v16 = vsel %vm13710_vm7, %v13700_v28, 0.0  ;;  %v13701_v4 = vmax.f32 %v13532_v21, 0.0  ;;  %v13703_v13 = vmax.f32 %v13573_v23, 0.0  ;;  %v13725_v15 = vsel %vm13710_vm7, %v13702_v44, 0.0  ;;  %v18804_v28 = vld [vmem:[#allocation56 + $0x88] sm:$0xff]   ;;  %v18805_v23 = vld [vmem:[#allocation56 + $0xc0] sm:$0xff]  }
0x1832   : > { %v13712_v3 = vrot.slane %v13711_v16, 4  ;;  %v13534_v51 = vpop.f32.mrf.mxu1  ;;  %v13575_v2 = vpop.f32.mrf.mxu0  ;;  %v13726_v25 = vrot.slane %v13725_v15, 4  ;;  %v18806_v6 = vld [vmem:[#allocation56 + $0x80] sm:$0xff]  }
0x1833   : > { %v13718_v58 = vsel %vm13710_vm7, %v13701_v4, 0.0  ;;  %v13732_v55 = vsel %vm13710_vm7, %v13703_v13, 0.0  ;;  %v18810_v4 = vld [vmem:[#allocation56 + $0x1b8] sm:$0xff]   ;;  %v18814_v51 = vld [vmem:[#allocation56 + $0x1b0] sm:$0xff]   ;;  %v18816_v2 = vld [vmem:[#allocation56 + $0x1e8] sm:$0xff]  }
0x1834   : > { %v13713_v27 = vadd.f32 %v13712_v3, %v13711_v16  ;;  %v13719_v59 = vrot.slane %v13718_v58, 4  ;;  %v13733_v34 = vrot.slane %v13732_v55, 4  ;;  %v13727_v12 = vadd.f32 %v13726_v25, %v13725_v15  ;;  %v18808_v16 = vld [vmem:[#allocation56 + $0x1f8] sm:$0xff]   ;;  %v18812_v3 = vld [vmem:[#allocation56 + $0x1f0] sm:$0xff]  }
0x1836   : > { %v13714_v35 = vrot.slane %v13713_v27, 2  ;;  %v13720_v48 = vadd.f32 %v13719_v59, %v13718_v58  ;;  %v13734_v43 = vadd.f32 %v13733_v34, %v13732_v55  ;;  %v13728_v29 = vrot.slane %v13727_v12, 2 }
0x1837   : > { %v12664_v58 = vrot.slane %v22879_v5, %v23387_v63  ;;  %v12672_v55 = vrot.slane %v22879_v5, %v23390_v11  ;;  %v12668_v59 = vrot.slane %v22879_v5, %v23388_v39  ;;  %v12676_v34 = vrot.slane %v22879_v5, %v23389_v7  ;;  %v18822_v63 = vld [vmem:[#allocation56 + $0x1a0] sm:$0xff]  }
0x1838   : > { %v13715_v54 = vadd.f32 %v13714_v35, %v13713_v27  ;;  %v13721_v49 = vrot.slane %v13720_v48, 2  ;;  %v13735_v60 = vrot.slane %v13734_v43, 2  ;;  %v13729_v9 = vadd.f32 %v13728_v29, %v13727_v12  ;;  %v18818_v27 = vld [vmem:[#allocation56 + $0x1a8] sm:$0xff]   ;;  %v18820_v35 = vld [vmem:[#allocation56 + $0x1e0] sm:$0xff]   ;;  %v18830_v12 = vld [vmem:[#allocation56 + $0x190] sm:$0xff]  }
0x183a   : > { %v13716_v8 = vrot.slane %v13715_v54, 1  ;;  %v13722_v36 = vadd.f32 %v13721_v49, %v13720_v48  ;;  %v13736_v62 = vadd.f32 %v13735_v60, %v13734_v43  ;;  %v13730_v37 = vrot.slane %v13729_v9, 1 }
0x183c   : > { %v13717_v20 = vadd.f32 %v13716_v8, %v13715_v54  ;;  %v13723_v14 = vrot.slane %v13722_v36, 1  ;;  %v13737_v47 = vrot.slane %v13736_v62, 1  ;;  %v13731_v21 = vadd.f32 %v13730_v37, %v13729_v9 }
0x183e   : > { %v13724_v1 = vadd.f32 %v13723_v14, %v13722_v36  ;;  %v13738_v19 = vadd.f32 %v13737_v47, %v13736_v62  ;;  %v13781_v41 = vmul.f32 0.25, %v13717_v20  ;;  %v13783_v31 = vmul.f32 0.25, %v13731_v21  ;;  %v18824_v20 = vld [vmem:[#allocation56 + $0x1d8] sm:$0xff]  }
0x1840   : > { %v13782_v17 = vmul.f32 0.25, %v13724_v1  ;;  %v13784_v0 = vmul.f32 0.25, %v13738_v19  ;;  %v13791_v33 = vpack.c.bf16 %v13781_v41, %v13781_v41  ;;  %v13793_v13 = vpack.c.bf16 %v13783_v31, %v13783_v31 }
0x1842   : > { %v13792_v53 = vpack.c.bf16 %v13782_v17, %v13782_v17  ;;  %v13794_v22 = vpack.c.bf16 %v13784_v0, %v13784_v0  ;;  %v18826_v17 = vld [vmem:[#allocation56 + $0x198] sm:$0xff]  }
0x1844   : > { %14474 = vmatprep.mubr.bf16.mxu0 %v13792_v53 }
0x1845   : > { %14475 = vmatmul.mubr.bf16.vlgmr.msra.gmra.mxu0 %v13791_v33 }
0x1846   : > { %16653 = vmatpush3.bf16.msra.mxu0 %v18792_v18  ;;  %14514 = vmatprep.mubr.bf16.mxu0 %v13794_v22  ;;  %v18828_v18 = vld [vmem:[#allocation56 + $0x1d0] sm:$0xff]  }
0x1847   : > { %16654 = vmatprep.subr.bf16.mxu0 %v18793_v42 }
0x184a   : > { %16655 = vmatpush3.bf16.msra.mxu0 %v18794_v56 }
0x184b   : > { %16656 = vmatprep.subr.bf16.mxu0 %v18795_v52 }
0x184e   : > { %16657 = vmatpush3.bf16.msra.mxu0 %v18796_v10 }
0x184f   : > { %16658 = vmatprep.subr.bf16.mxu0 %v18797_v45  ;;  %v18832_v45 = vld [vmem:[#allocation56 + $0x1c8] sm:$0xff]  }
0x1852   : > { %16659 = vmatpush3.bf16.msra.mxu0 %v18798_v38 }
0x1853   : > { %16660 = vmatprep.subr.bf16.mxu0 %v18799_v26 }
0x1856   : > { %16661 = vmatpush3.bf16.msra.mxu0 %v18800_v57 }
0x1857   : > { %16662 = vmatprep.subr.bf16.mxu0 %v18801_v50 }
0x185a   : > { %16663 = vmatpush3.bf16.msra.mxu0 %v18802_v40 }
0x185b   : > { %16664 = vmatprep.subr.bf16.mxu0 %v18803_v30  ;;  %v18834_v30 = vld [vmem:[#allocation56 + $0x188] sm:$0xff]  }
0x185e   : > { %16665 = vmatpush3.bf16.msra.mxu0 %v18804_v28  ;;  %v18836_v28 = vld [vmem:[#allocation56 + $0x1c0] sm:$0xff]  }
0x185f   : > { %16666 = vmatprep.subr.bf16.mxu0 %v18805_v23 }
0x1862   : > { %16667 = vmatpush3.bf16.msra.mxu0 %v18806_v6 }
0x1863   : > { %16696 = vmatprep.subr.bf16.mxu0 %v18808_v16  ;;  %v18838_v16 = vld [vmem:[#allocation56 + $0x180] sm:$0xff]  }
0x1865   : > { %14515 = vmatmul.mubr.bf16.vlgmr.msra.gmra.mxu0 %v13793_v13 }
0x1866   : > { %16697 = vmatpush3.bf16.msra.mxu0 %v18810_v4 }
0x1867   : > { %16698 = vmatprep.subr.bf16.mxu0 %v18812_v3 }
0x186a   : > { %16699 = vmatpush3.bf16.msra.mxu0 %v18814_v51 }
0x186b   : > { %16700 = vmatprep.subr.bf16.mxu0 %v18816_v2 }
0x186c   : > { %v13611_v48 = vpop.f32.mrf.mxu1  ;;  %v13652_v43 = vpop.f32.mrf.mxu0 }
0x186d   : > { %v13612_v54 = vadd.f32 %v13611_v48, %v12664_v58  ;;  %v13653_v61 = vadd.f32 %v13652_v43, %v12672_v55  ;;  %v18841_v48 = vld [vmem:[#allocation56 + $0x270] sm:$0xff]  }
0x186e   : > { %v13613_v49 = vpop.f32.mrf.mxu1  ;;  %v13654_v60 = vpop.f32.mrf.mxu0  ;;  %16701 = vmatpush3.bf16.msra.mxu0 %v18818_v27  ;;  %v18842_v43 = vld [vmem:[#allocation56 + $0x230] sm:$0xff]  }
0x186f   : > { %v13704_v8 = vmax.f32 %v13612_v54, 0.0  ;;  %v13706_v11 = vmax.f32 %v13653_v61, 0.0  ;;  %v13614_v36 = vadd.f32 %v13613_v49, %v12668_v59  ;;  %v13655_v62 = vadd.f32 %v13654_v60, %v12676_v34  ;;  %16702 = vmatprep.subr.bf16.mxu0 %v18820_v35  ;;  %v18840_v59 = vld [vmem:[#allocation56 + $0x238] sm:$0xff]   ;;  %v18843_v54 = vld [vmem:[#allocation56 + $0x268] sm:$0xff]   ;;  %v18845_v49 = vld [vmem:[#allocation56 + $0x260] sm:$0xff]  }
0x1870   : > { %v13615_v46 = vpop.f32.mrf.mxu1  ;;  %v13656_v39 = vpop.f32.mrf.mxu0  ;;  %v18844_v61 = vld [vmem:[#allocation56 + $0x228] sm:$0xff]   ;;  %v18846_v60 = vld [vmem:[#allocation56 + $0x220] sm:$0xff]  }
0x1871   : > { %v13739_v14 = vsel %vm13710_vm7, %v13704_v8, 0.0  ;;  %v13753_v7 = vsel %vm13710_vm7, %v13706_v11, 0.0  ;;  %v13705_v5 = vmax.f32 %v13614_v36, 0.0  ;;  %v13707_v47 = vmax.f32 %v13655_v62, 0.0  ;;  %v18848_v8 = vld [vmem:[#allocation56 + $0x218] sm:$0xff]   ;;  %v18849_v11 = vld [vmem:[#allocation56 + $0x250] sm:$0xff]  }
0x1872   : > { %v13740_v1 = vrot.slane %v13739_v14, 4  ;;  %v13754_v19 = vrot.slane %v13753_v7, 4  ;;  %v13616_v41 = vpop.f32.mrf.mxu1  ;;  %v13657_v44 = vpop.f32.mrf.mxu0  ;;  %16703 = vmatpush3.bf16.msra.mxu0 %v18822_v63  ;;  %v18847_v63 = vld [vmem:[#allocation56 + $0x258] sm:$0xff]   ;;  %v18850_v36 = vld [vmem:[#allocation56 + $0x210] sm:$0xff]   ;;  %v18851_v62 = vld [vmem:[#allocation56 + $0x248] sm:$0xff]  }
0x1873   : > { %v13746_v0 = vsel %vm13710_vm7, %v13705_v5, 0.0  ;;  %v13760_v53 = vsel %vm13710_vm7, %v13707_v47, 0.0  ;;  %16704 = vmatprep.subr.bf16.mxu0 %v18824_v20  ;;  %v18852_v20 = vld [vmem:[#allocation56 + $0x208] sm:$0xff]   ;;  %v18853_v46 = vld [vmem:[#allocation56 + $0x240] sm:$0xff]  }
0x1874   : > { %v13741_v33 = vadd.f32 %v13740_v1, %v13739_v14  ;;  %v13755_v42 = vadd.f32 %v13754_v19, %v13753_v7  ;;  %v13747_v15 = vrot.slane %v13746_v0, 4  ;;  %v13761_v22 = vrot.slane %v13760_v53, 4  ;;  %v18854_v39 = vld [vmem:[#allocation56 + $0x200] sm:$0xff]   ;;  %v12642_v14 = vld [vmem:[%s20212_s25 + $0x8] sm:$0x3] }
0x1875   : > { %v12680_v7 = vrot.slane %v12642_v14, %v23383_v24  ;;  %v12684_v5 = vrot.slane %v12642_v14, %v23384_v32 }
0x1876   : > { %v13742_v56 = vrot.slane %v13741_v33, 2  ;;  %v13756_v25 = vrot.slane %v13755_v42, 2  ;;  %v13748_v52 = vadd.f32 %v13747_v15, %v13746_v0  ;;  %v13762_v10 = vadd.f32 %v13761_v22, %v13760_v53  ;;  %16705 = vmatpush3.bf16.msra.mxu0 %v18826_v17 }
0x1877   : > { %16706 = vmatprep.subr.bf16.mxu0 %v18828_v18 }
0x1878   : > { %v13743_v38 = vadd.f32 %v13742_v56, %v13741_v33  ;;  %v13757_v29 = vadd.f32 %v13756_v25, %v13755_v42  ;;  %v13749_v26 = vrot.slane %v13748_v52, 2  ;;  %v13763_v57 = vrot.slane %v13762_v10, 2 }
0x187a   : > { %v13744_v9 = vrot.slane %v13743_v38, 1  ;;  %v13758_v50 = vrot.slane %v13757_v29, 1  ;;  %v13750_v40 = vadd.f32 %v13749_v26, %v13748_v52  ;;  %v13764_v37 = vadd.f32 %v13763_v57, %v13762_v10  ;;  %16707 = vmatpush3.bf16.msra.mxu0 %v18830_v12 }
0x187b   : > { %16708 = vmatprep.subr.bf16.mxu0 %v18832_v45 }
0x187c   : > { %v13745_v21 = vadd.f32 %v13744_v9, %v13743_v38  ;;  %v13759_v23 = vadd.f32 %v13758_v50, %v13757_v29  ;;  %v13751_v6 = vrot.slane %v13750_v40, 1  ;;  %v13765_v31 = vrot.slane %v13764_v37, 1 }
0x187e   : > { %16709 = vmatpush3.bf16.msra.mxu0 %v18834_v30  ;;  %v13752_v4 = vadd.f32 %v13751_v6, %v13750_v40  ;;  %v13766_v13 = vadd.f32 %v13765_v31, %v13764_v37  ;;  %v13785_v3 = vmul.f32 0.25, %v13745_v21  ;;  %v13787_v51 = vmul.f32 0.25, %v13759_v23  ;;  %v13961_v21 = vld [vmem:[#allocation58] sm:$0x1] }
0x187f   : > { %16710 = vmatprep.subr.bf16.mxu0 %v18836_v28 }
0x1880   : > { %v13786_v2 = vmul.f32 0.25, %v13752_v4  ;;  %v13788_v58 = vmul.f32 0.25, %v13766_v13  ;;  %v13795_v34 = vpack.c.bf16 %v13785_v3, %v13785_v3  ;;  %v13797_v35 = vpack.c.bf16 %v13787_v51, %v13787_v51 }
0x1882   : > { %16711 = vmatpush3.bf16.msra.mxu0 %v18838_v16  ;;  %v13796_v55 = vpack.c.bf16 %v13786_v2, %v13786_v2  ;;  %v13798_v27 = vpack.c.bf16 %v13788_v58, %v13788_v58 }
0x1884   : > { %14554 = vmatprep.mubr.bf16.mxu1 %v13796_v55  ;;  %14594 = vmatprep.mubr.bf16.mxu0 %v13798_v27 }
0x1885   : > { %14555 = vmatmul.mubr.bf16.vlgmr.msra.gmra.mxu1 %v13795_v34  ;;  %14595 = vmatmul.mubr.bf16.vlgmr.msra.gmra.mxu0 %v13797_v35 }
0x1886   : > { %16719 = vmatpush3.bf16.msra.mxu1 %v18840_v59 }
0x1887   : > { %16720 = vmatprep.subr.bf16.mxu1 %v18841_v48 }
0x188a   : > { %16721 = vmatpush3.bf16.msra.mxu1 %v18842_v43 }
0x188b   : > { %16722 = vmatprep.subr.bf16.mxu1 %v18843_v54 }
0x188e   : > { %16723 = vmatpush3.bf16.msra.mxu1 %v18844_v61 }
0x188f   : > { %16724 = vmatprep.subr.bf16.mxu1 %v18845_v49 }
0x1892   : > { %16725 = vmatpush3.bf16.msra.mxu1 %v18846_v60 }
0x1893   : > { %16726 = vmatprep.subr.bf16.mxu1 %v18847_v63 }
0x1896   : > { %16727 = vmatpush3.bf16.msra.mxu1 %v18848_v8 }
0x1897   : > { %16728 = vmatprep.subr.bf16.mxu1 %v18849_v11 }
0x189a   : > { %16729 = vmatpush3.bf16.msra.mxu1 %v18850_v36 }
0x189b   : > { %16730 = vmatprep.subr.bf16.mxu1 %v18851_v62 }
0x189e   : > { %16731 = vmatpush3.bf16.msra.mxu1 %v18852_v20 }
0x189f   : > { %16732 = vmatprep.subr.bf16.mxu1 %v18853_v46 }
0x18a2   : > { %16733 = vmatpush3.bf16.msra.mxu1 %v18854_v39 }
0x18ac   : > { %v13693_v47 = vpop.f32.mrf.mxu1 }
0x18ad   : > { %v13694_v1 = vadd.f32 %v13693_v47, %v12680_v7 }
0x18ae   : > { %v13695_v19 = vpop.f32.mrf.mxu1 }
0x18af   : > { %v13708_v41 = vmax.f32 %v13694_v1, 0.0  ;;  %v13696_v44 = vadd.f32 %v13695_v19, %v12684_v5 }
0x18b0   : > { %v13697_v17 = vpop.f32.mrf.mxu1 }
0x18b1   : > { %v13767_v0 = vsel %vm13710_vm7, %v13708_v41, 0.0  ;;  %v13709_v53 = vmax.f32 %v13696_v44, 0.0 }
0x18b2   : > { %v13768_v18 = vrot.slane %v13767_v0, 4  ;;  %v13698_v33 = vpop.f32.mrf.mxu1 }
0x18b3   : > { %v13774_v42 = vsel %vm13710_vm7, %v13709_v53, 0.0 }
0x18b4   : > { %v13769_v15 = vadd.f32 %v13768_v18, %v13767_v0  ;;  %v13775_v22 = vrot.slane %v13774_v42, 4 }
0x18b6   : > { %v13770_v56 = vrot.slane %v13769_v15, 2  ;;  %v13776_v25 = vadd.f32 %v13775_v22, %v13774_v42 }
0x18b8   : > { %v13771_v24 = vadd.f32 %v13770_v56, %v13769_v15  ;;  %v13777_v52 = vrot.slane %v13776_v25, 2 }
0x18ba   : > { %v13772_v32 = vrot.slane %v13771_v24, 1  ;;  %v13778_v10 = vadd.f32 %v13777_v52, %v13776_v25 }
0x18bc   : > { %v13773_v12 = vadd.f32 %v13772_v32, %v13771_v24  ;;  %v13779_v45 = vrot.slane %v13778_v10, 1 }
0x18be   : > { %v13780_v38 = vadd.f32 %v13779_v45, %v13778_v10  ;;  %v13789_v29 = vmul.f32 0.25, %v13773_v12 }
0x18c0   : > { %v13790_v26 = vmul.f32 0.25, %v13780_v38  ;;  %v13799_v9 = vpack.c.bf16 %v13789_v29, %v13789_v29 }
0x18c2   : > { %v13800_v57 = vpack.c.bf16 %v13790_v26, %v13790_v26 }
0x18c4   : > { %14634 = vmatprep.mubr.bf16.mxu1 %v13800_v57 }
0x18c5   : > { %14635 = vmatmul.mubr.bf16.vlgmr.msra.gmra.mxu1 %v13799_v9 }
0x1905   : > { %v16646_v50 = vpop.f32.mrf.mxu0 }
0x1907   : > { %v16647_v40 = vpop.f32.mrf.mxu0 }
0x1908   : > { %v16648_v37 = vadd.f32 %v16647_v40, %v16646_v50 }
0x1909   : > { %v16649_v30 = vpop.f32.mrf.mxu0 }
0x190a   : > { %v14477_v31 = vadd.f32 %v16648_v37, %v13961_v21 }
0x190b   : > { %v16650_v28 = vpop.f32.mrf.mxu0 }
0x1925   : > { %v16668_v23 = vpop.f32.mrf.mxu0 }
0x1927   : > { %v16669_v6 = vpop.f32.mrf.mxu0 }
0x1928   : > { %v16670_v16 = vadd.f32 %v16669_v6, %v16668_v23 }
0x1929   : > { %v16671_v4 = vpop.f32.mrf.mxu0 }
0x192a   : > { %v14517_v13 = vadd.f32 %v16670_v16, %v14477_v31 }
0x192b   : > { %v16672_v3 = vpop.f32.mrf.mxu0 }
0x1945   : > { %v16690_v51 = vpop.f32.mrf.mxu1  ;;  %v16712_v2 = vpop.f32.mrf.mxu0 }
0x1947   : > { %v16691_v58 = vpop.f32.mrf.mxu1  ;;  %v16713_v55 = vpop.f32.mrf.mxu0 }
0x1948   : > { %v16692_v27 = vadd.f32 %v16691_v58, %v16690_v51  ;;  %v16714_v48 = vadd.f32 %v16713_v55, %v16712_v2 }
0x1949   : > { %v16693_v59 = vpop.f32.mrf.mxu1  ;;  %v16715_v34 = vpop.f32.mrf.mxu0 }
0x194a   : > { %v14557_v35 = vadd.f32 %v16692_v27, %v14517_v13 }
0x194b   : > { %v16694_v43 = vpop.f32.mrf.mxu1  ;;  %v16716_v54 = vpop.f32.mrf.mxu0 }
0x194c   : > { %v14597_v61 = vadd.f32 %v16714_v48, %v14557_v35 }
0x1985   : > { %v16734_v49 = vpop.f32.mrf.mxu1 }
0x1987   : > { %v16735_v60 = vpop.f32.mrf.mxu1 }
0x1988   : > { %v16736_v63 = vadd.f32 %v16735_v60, %v16734_v49 }
0x1989   : > { %v16737_v8 = vpop.f32.mrf.mxu1 }
0x198a   : > { %v14637_v11 = vadd.f32 %v16736_v63, %v14597_v61 }
0x198b   : > { %v16738_v36 = vpop.f32.mrf.mxu1 }
0x198c   : > { %14642 = vst [vmem:[%s1899_s9] sm:$0x1] %v14637_v11 }
0x198d   : > { %19757 = shalt.err (!%p19754_p13)
}
0x198e   : > { %s19758_s23 = scalar_lea.hbm %s22913_s18, 16  ;;  %s19762_s16 = scalar_lea.hbm %s20227_s17, 32 }
0x198f   : > { %p19759_p0 = scmp.ne.s32.totalorder %s22913_s18, %s19758_s23  ;;  %p19763_p3 = scmp.lt.s32.totalorder %s22913_s18, %s20227_s17 }
0x1990   : > { %p19764_p4 = scmp.lt.s32.totalorder %s19762_s16, %s19758_s23 }
0x1991   : > { %p19760_p1 = pnand %p19759_p0, %p23393_p6 }
0x1992   : > { %p19765_p9 = por %p19764_p4, %p19763_p3 }
0x1993   : > { %p19761_p2 = pneg %p19760_p1 }
0x1995   : > { %p19766_p10 = pnand %p19765_p9, %p19761_p2 }
0x1997   : > { %19769 = shalt.err (!%p19766_p10)
}
0x1998   : > { %17300 = dma.vmem_to_hbm [thread:$0]  (%p23393_p6), %s14657_s2, 16, %s22913_s18, %s14644_s11  }
0x1999 PF: > { %s23394_s13 = sld [smem:[#allocation122_spill]]  ;;  %p17380_p5 = scmp.ge.s32.totalorder %s19880_s26, 2 }
0x199a   : > { %s14668_s9 = sand.u32 1, %s19868_s0  }
0x199b   : > { %s14669_s10 = scalar_lea.sflag [#allocation4], %s14668_s9 }
0x199f   : > { %p23395_p7 = scmp.ne.s32.totalorder %s23394_s13, 0 }
0x19a1   : > { %p17303_p8 = pnand %p17380_p5, %p23395_p7 }
0x19a3   : > { %p17304_p11 = pneg %p17303_p8 }
0x19a5   : > { %19863 = dma.done.wait (%p17304_p11), %s14669_s10, 16  }
0x19a6   : > { %19865 = vsyncadd (%p17304_p11), %s14669_s10, 4294967280  ;;  %s23396_s26 = sld [smem:[#allocation120_spill]]  ;;  %s23399_s0 = smov %s19872_s22 }
0x19a7   : > { %s23397_s14 = sld [smem:[#allocation119_spill]] }
0x19a8   : > { %s23398_s23 = sld [smem:[#allocation121_spill]] }
0x19ac   : > { %p124_p12 = scmp.ge.s32.totalorder %s23396_s26, 4  }
0x19ad   : > { %s23400_s22 = smov %s23397_s14 }
0x19ae   :  { %126 = sbr.rel (!%p124_p12) target bundleno = 115 (0x73), region = 439 }
0x19b3   :  { %14673 = vsyncpa [#allocation3], 1 }
0x19b4   :  { %14675 = vsyncpa [#allocation3 + $0x1], 1 }
0x19b5   :  { %14676 = vsyncpa [#allocation6], 1 }
0x19b6   :  { %14677 = vsyncpa [#allocation9], 1 }
0x19b7   :  { %14678 = vsyncpa [#allocation12], 1 }
0x19b8   :  { %14679 = vsyncpa [#allocation15], 1 }
0x19b9   :  { %14680 = vsyncpa [#allocation18], 1 }
0x19ba   :  { %14681 = vsyncpa [#allocation21], 1 }
0x19bb   :  { %14682 = vsyncpa [#allocation24], 1 }
0x19bc   :  { %14683 = vsyncpa [#allocation27], 1 }
0x19bd   :  { %14684 = vsyncpa [#allocation30], 1 }
0x19be   :  { %14685 = vsyncpa [#allocation33], 1 }
0x19bf   :  { %14686 = vsyncpa [#allocation36], 1 }
0x19c0   :  { %14687 = vsyncpa [#allocation39], 1 }
0x19c1   :  { %14688 = vsyncpa [#allocation42], 1 }
0x19c2   :  { %14689 = vsyncpa [#allocation45], 1 }
0x19c3   :  { %14690 = vsyncpa [#allocation48], 1 }
0x19c4   :  { %14691 = vsyncpa [#allocation51], 1 }
0x19c5   :  { %14692 = vsyncpa [#allocation54], 1 }
0x19c6   :  { %14693 = vsyncpa [#allocation57], 1 }
0x19c7   :  { %14694 = vsyncpa [#allocation4], 1 }
0x19c8   :  { %14696 = vsyncpa [#allocation4 + $0x1], 1 }

</bundles_post_ra>
